<compile_context>
chip_gen: v7x
topology: tpu7x:2x2x1
jax: 0.10.0
libtpu: 0.0.40
codegen_flags: <defaults>
</compile_context>

<pallas_src>
import functools

import jax
import jax.numpy as jnp
from jax import lax
from jax.experimental import pallas as pl
from jax.experimental.pallas import tpu as pltpu


# --------------------------------------------------------------------------
# In-kernel helpers
# --------------------------------------------------------------------------
def _store_reflect_pad(dst_ref, src):
    """ReflectionPad2d(1): write the padded (H+2, W+2, C) image into dst_ref.

    `src` is the (H, W, C) image already cast to dst_ref's dtype.  Width
    reflection is built as a value (single concat) so all stores are
    full-width row blocks and nothing is read back from dst_ref.
    """
    H, W, _ = src.shape
    wr = jnp.concatenate([src[:, 1:2, :], src, src[:, W - 2:W - 1, :]],
                         axis=1)                      # (H, W+2, C)
    dst_ref[1:H + 1, :, :] = wr                        # interior rows
    dst_ref[0:1, :, :] = wr[1:2]                       # top    (mirror of row 1)
    dst_ref[H + 1:H + 2, :, :] = wr[H - 2:H - 1]       # bottom (mirror of row H-2)


def _conv3x3_kconcat(src_ref, w_ref, b_ref, H, W, C):
    """3x3 conv over a padded bf16 (H+2, W+2, C) image.

    For each dy the three dx taps are concatenated along K -> one
    (H*W, 3C) x (3C, C) MXU matmul (3 matmuls total, f32 accumulation).
    w_ref: (3, 3C, C) bf16 with w[dy, dx*C + cin, cout] == torch_w[cout, cin, dy, dx].
    Returns (H*W, C) f32 (conv + bias).
    """
    acc = jnp.zeros((H * W, C), jnp.float32)
    for dy in range(3):
        op = jnp.concatenate(
            [src_ref[dy:dy + H, dx:dx + W, :].reshape(H * W, C)
             for dx in range(3)],
            axis=-1)                                   # (H*W, 3C) bf16
        acc = acc + jnp.dot(op, w_ref[dy],
                            preferred_element_type=jnp.float32)
    return acc + b_ref[...]                            # (1, C) bias broadcast


def _instance_norm(a, eps, inv_n):
    """InstanceNorm2d(affine=False) on an (H*W, C) f32 tile, single pass.

    Uses E[x^2] - E[x]^2 (one read of the tile for both sums) instead of the
    three-pass centered form; fine in f32 at these magnitudes.
    """
    s = jnp.sum(a, axis=0, keepdims=True)
    ss = jnp.sum(a * a, axis=0, keepdims=True)
    mean = s * inv_n
    var = jnp.maximum(ss * inv_n - mean * mean, 0.0)
    return (a - mean) * lax.rsqrt(var + eps)


# --------------------------------------------------------------------------
# Fused ResnetBlock kernel (one grid step per batch element)
# --------------------------------------------------------------------------
def _resnet_block_kernel(x_ref, w1_ref, b1_ref, w2_ref, b2_ref, out_ref,
                         xpad_ref, h1pad_ref, *, H, W, C, eps):
    inv_n = 1.0 / float(H * W)

    # ---- original x (f32, kept for the residual) + bf16 reflect-padded copy --
    x = x_ref[0]                                       # (H, W, C) f32
    _store_reflect_pad(xpad_ref, x.astype(jnp.bfloat16))

    # ---- conv1 + InstanceNorm + ReLU ----------------------------------------
    h1 = _conv3x3_kconcat(xpad_ref, w1_ref, b1_ref, H, W, C)
    h1 = jnp.maximum(_instance_norm(h1, eps, inv_n), 0.0)

    # ---- in-kernel ReflectionPad2d(1) of h1 (stored bf16, cast once) --------
    _store_reflect_pad(h1pad_ref, h1.reshape(H, W, C).astype(jnp.bfloat16))

    # ---- conv2 + InstanceNorm + residual add --------------------------------
    h2 = _conv3x3_kconcat(h1pad_ref, w2_ref, b2_ref, H, W, C)
    h2 = _instance_norm(h2, eps, inv_n)
    out_ref[0] = (x + h2.reshape(H, W, C)).astype(out_ref.dtype)


def resnet_block(x_nchw, params, *, eps=1e-5):
    """x_nchw: (N, C, H, W) float32 (PyTorch layout). Returns (N, C, H, W)."""
    w1, b1, w2, b2 = params["w1"], params["b1"], params["w2"], params["b2"]
    N, C, H, W = x_nchw.shape

    # NHWC; reflection padding + everything else happens inside the kernel.
    x_nhwc = jnp.transpose(x_nchw, (0, 2, 3, 1)).astype(jnp.float32)

    # Scoped-VMEM budget from the actual block sizes (v5e default is 16 MiB,
    # v7x default 32 MiB); capped below v7x's 64 MiB physical VMEM.
    est = (2 * (H * W * C * 4) * 2                       # x + out blocks, 2x-buffered
           + 2 * (2 * 3 * 3 * C * C * 2 + 2 * C * 4)     # weights + biases, 2x-buffered
           + 2 * (H + 2) * (W + 2) * C * 2               # two bf16 padded scratch bufs
           + 16 * H * W * C * 4)                         # in-kernel temporaries headroom
    vmem_limit = int(min(60 * 1024 * 1024, max(2 * est, 32 * 1024 * 1024)))

    out = pl.pallas_call(
        functools.partial(_resnet_block_kernel, H=H, W=W, C=C, eps=eps),
        out_shape=jax.ShapeDtypeStruct((N, H, W, C), jnp.float32),
        grid_spec=pltpu.PrefetchScalarGridSpec(
            num_scalar_prefetch=0,
            grid=(N,),
            in_specs=[
                pl.BlockSpec((1, H, W, C), lambda n: (n, 0, 0, 0)),      # x
                pl.BlockSpec((3, 3 * C, C), lambda n: (0, 0, 0)),        # conv1 W
                pl.BlockSpec((1, C), lambda n: (0, 0)),                  # conv1 b
                pl.BlockSpec((3, 3 * C, C), lambda n: (0, 0, 0)),        # conv2 W
                pl.BlockSpec((1, C), lambda n: (0, 0)),                  # conv2 b
            ],
            out_specs=pl.BlockSpec((1, H, W, C), lambda n: (n, 0, 0, 0)),
            # bf16 padded activations stay resident in VMEM (no HBM round trip)
            scratch_shapes=[
                pltpu.VMEM((H + 2, W + 2, C), jnp.bfloat16),   # reflect-padded x
                pltpu.VMEM((H + 2, W + 2, C), jnp.bfloat16),   # reflect-padded h1
            ],
        ),
        compiler_params=pltpu.CompilerParams(
            dimension_semantics=("parallel",),
            vmem_limit_bytes=vmem_limit),
    )(x_nhwc, w1, b1, w2, b2)
    return jnp.transpose(out, (0, 3, 1, 2))


# --------------------------------------------------------------------------
# Deterministic synthetic parameters (no checkpoint).
# Weight layout: w[dy, dx*C + cin, cout] == torch Conv2d weight [cout, cin, dy, dx],
# i.e. a real checkpoint converts as  np.transpose(w_t, (2, 3, 1, 0)).reshape(3, 3*C, C).
# --------------------------------------------------------------------------
def init_params(key, dim):
    kw1, kb1, kw2, kb2 = jax.random.split(key, 4)
    lim = (9.0 * dim) ** -0.5                      # ~PyTorch Conv2d default scale
    w1 = jax.random.uniform(kw1, (3, 3 * dim, dim), jnp.float32, -lim, lim)
    w2 = jax.random.uniform(kw2, (3, 3 * dim, dim), jnp.float32, -lim, lim)
    b1 = jax.random.uniform(kb1, (1, dim), jnp.float32, -lim, lim)
    b2 = jax.random.uniform(kb2, (1, dim), jnp.float32, -lim, lim)
    # bf16 weights: half the HBM traffic + fast MXU path; accumulation stays f32.
    return {"w1": w1.astype(jnp.bfloat16), "b1": b1,
            "w2": w2.astype(jnp.bfloat16), "b2": b2}


# --------------------------------------------------------------------------
# Pure-JAX reference (same math: bf16 conv operands, f32 accumulation,
# two-pass centered variance as the "safe" form to validate the kernel against).
# --------------------------------------------------------------------------
def resnet_block_ref(x_nchw, params, *, eps=1e-5):
    w1, b1, w2, b2 = params["w1"], params["b1"], params["w2"], params["b2"]
    x = jnp.transpose(x_nchw, (0, 2, 3, 1)).astype(jnp.float32)

    def pad(a):
        return jnp.pad(a, ((0, 0), (1, 1), (1, 1), (0, 0)), mode="reflect")

    def conv(xp, w, b):
        n, hp, wp, c = xp.shape
        h, wd = hp - 2, wp - 2
        xpb = xp.astype(jnp.bfloat16)
        acc = jnp.zeros((n, h, wd, c), jnp.float32)
        for dy in range(3):
            tap = jnp.concatenate(
                [xpb[:, dy:dy + h, dx:dx + wd, :] for dx in range(3)], axis=-1)
            acc = acc + jnp.einsum("nhwk,kc->nhwc", tap, w[dy],
                                   preferred_element_type=jnp.float32)
        return acc + b.reshape(1, 1, 1, -1)

    def inorm(a):
        mean = jnp.mean(a, axis=(1, 2), keepdims=True)
        var = jnp.mean(jnp.square(a - mean), axis=(1, 2), keepdims=True)
        return (a - mean) * lax.rsqrt(var + eps)

    h = jnp.maximum(inorm(conv(pad(x), w1, b1)), 0.0)
    h = inorm(conv(pad(h), w2, b2))
    return jnp.transpose(x + h, (0, 3, 1, 2))


if __name__ == "__main__":
    key = jax.random.PRNGKey(0)
    k_x, k_p = jax.random.split(key)

    # Small ResnetBlock demo: dim=128 channels (lane-aligned), 16x16 spatial,
    # batch 4 so a v7x megacore gets >=2 pipeline steps per TensorCore.
    N, C, H, W = 4, 128, 16, 16
    x = jax.random.normal(k_x, (N, C, H, W), jnp.float32)
    params = init_params(k_p, C)

    out = jax.block_until_ready(resnet_block(x, params))
    assert out.shape == (N, C, H, W), out.shape
    assert bool(jnp.all(jnp.isfinite(out)))

    ref = jax.block_until_ready(resnet_block_ref(x, params))
    assert bool(jnp.allclose(out, ref, atol=2e-2, rtol=2e-2)), (
        float(jnp.max(jnp.abs(out - ref))))

    print("KERNEL_OK")
</pallas_src>

<mosaic_0001>
module attributes {stable_mosaic.version = 11 : i64} {
  func.func @_resnet_block_kernel(%arg0: i32, %arg1: memref<1x16x16x128xf32, #tpu.memory_space<vmem>>, %arg2: memref<3x384x128xbf16, #tpu.memory_space<vmem>>, %arg3: memref<1x128xf32, #tpu.memory_space<vmem>>, %arg4: memref<3x384x128xbf16, #tpu.memory_space<vmem>>, %arg5: memref<1x128xf32, #tpu.memory_space<vmem>>, %arg6: memref<1x16x16x128xf32, #tpu.memory_space<vmem>>, %arg7: memref<18x18x128xbf16, #tpu.memory_space<vmem>>, %arg8: memref<18x18x128xbf16, #tpu.memory_space<vmem>>) attributes {dimension_semantics = [#tpu.dimension_semantics<parallel>], iteration_bounds = array<i64: 4>, scalar_prefetch = 0 : i64, scratch_operands = 2 : i64, tpu.core_type = #tpu.core_type<tc>, window_params = [{transform_indices = @transform_0, window_bounds = array<i64: 1, 16, 16, 128>}, {pipeline_mode = #tpu.pipeline_mode<synchronous>, transform_indices = @transform_1, window_bounds = array<i64: 3, 384, 128>}, {pipeline_mode = #tpu.pipeline_mode<synchronous>, transform_indices = @transform_2, window_bounds = array<i64: 1, 128>}, {pipeline_mode = #tpu.pipeline_mode<synchronous>, transform_indices = @transform_3, window_bounds = array<i64: 3, 384, 128>}, {pipeline_mode = #tpu.pipeline_mode<synchronous>, transform_indices = @transform_4, window_bounds = array<i64: 1, 128>}, {transform_indices = @transform_5, window_bounds = array<i64: 1, 16, 16, 128>}]} {
    %c0 = arith.constant 0 : index
    %c0_0 = arith.constant 0 : index
    %c0_1 = arith.constant 0 : index
    %c0_2 = arith.constant 0 : index
    %0 = vector.load %arg1[%c0, %c0_0, %c0_1, %c0_2] : memref<1x16x16x128xf32, #tpu.memory_space<vmem>>, vector<1x16x16x128xf32>
    %1 = vector.shape_cast %0 : vector<1x16x16x128xf32> to vector<16x16x128xf32>
    %2 = arith.truncf %1 : vector<16x16x128xf32> to vector<16x16x128xbf16>
    %3 = vector.extract_strided_slice %2 {offsets = [0, 1, 0], sizes = [16, 1, 128], strides = [1, 1, 1]} : vector<16x16x128xbf16> to vector<16x1x128xbf16>
    %4 = vector.extract_strided_slice %2 {offsets = [0, 14, 0], sizes = [16, 1, 128], strides = [1, 1, 1]} : vector<16x16x128xbf16> to vector<16x1x128xbf16>
    %5 = tpu.concatenate %3, %2, %4 in 1 : vector<16x1x128xbf16>, vector<16x16x128xbf16>, vector<16x1x128xbf16> -> vector<16x18x128xbf16>
    %c1 = arith.constant 1 : index
    %c0_3 = arith.constant 0 : index
    %c0_4 = arith.constant 0 : index
    %6 = vector.load %arg7[%c1, %c0_3, %c0_4] : memref<18x18x128xbf16, #tpu.memory_space<vmem>>, vector<16x18x128xbf16>
    tpu.vector_store %arg7[%c1, %c0_3, %c0_4], %5 {strides = array<i32>} : memref<18x18x128xbf16, #tpu.memory_space<vmem>>, vector<16x18x128xbf16>,
    %7 = vector.extract_strided_slice %5 {offsets = [1, 0, 0], sizes = [1, 18, 128], strides = [1, 1, 1]} : vector<16x18x128xbf16> to vector<1x18x128xbf16>
    %c0_5 = arith.constant 0 : index
    %c0_6 = arith.constant 0 : index
    %c0_7 = arith.constant 0 : index
    %8 = vector.load %arg7[%c0_5, %c0_6, %c0_7] : memref<18x18x128xbf16, #tpu.memory_space<vmem>>, vector<1x18x128xbf16>
    tpu.vector_store %arg7[%c0_5, %c0_6, %c0_7], %7 {strides = array<i32>} : memref<18x18x128xbf16, #tpu.memory_space<vmem>>, vector<1x18x128xbf16>,
    %9 = vector.extract_strided_slice %5 {offsets = [14, 0, 0], sizes = [1, 18, 128], strides = [1, 1, 1]} : vector<16x18x128xbf16> to vector<1x18x128xbf16>
    %c17 = arith.constant 17 : index
    %c0_8 = arith.constant 0 : index
    %c0_9 = arith.constant 0 : index
    %10 = vector.load %arg7[%c17, %c0_8, %c0_9] : memref<18x18x128xbf16, #tpu.memory_space<vmem>>, vector<1x18x128xbf16>
    tpu.vector_store %arg7[%c17, %c0_8, %c0_9], %9 {strides = array<i32>} : memref<18x18x128xbf16, #tpu.memory_space<vmem>>, vector<1x18x128xbf16>,
    %cst = arith.constant 0.000000e+00 : f32
    %11 = vector.broadcast %cst : f32 to vector<256x128xf32>
    %c0_10 = arith.constant 0 : index
    %c0_11 = arith.constant 0 : index
    %c0_12 = arith.constant 0 : index
    %12 = vector.load %arg7[%c0_10, %c0_11, %c0_12] : memref<18x18x128xbf16, #tpu.memory_space<vmem>>, vector<16x16x128xbf16>
    %13 = vector.shape_cast %12 : vector<16x16x128xbf16> to vector<256x128xbf16>
    %c0_13 = arith.constant 0 : index
    %c1_14 = arith.constant 1 : index
    %c0_15 = arith.constant 0 : index
    %14 = vector.load %arg7[%c0_13, %c1_14, %c0_15] : memref<18x18x128xbf16, #tpu.memory_space<vmem>>, vector<16x16x128xbf16>
    %15 = vector.shape_cast %14 : vector<16x16x128xbf16> to vector<256x128xbf16>
    %c0_16 = arith.constant 0 : index
    %c2 = arith.constant 2 : index
    %c0_17 = arith.constant 0 : index
    %16 = vector.load %arg7[%c0_16, %c2, %c0_17] : memref<18x18x128xbf16, #tpu.memory_space<vmem>>, vector<16x16x128xbf16>
    %17 = vector.shape_cast %16 : vector<16x16x128xbf16> to vector<256x128xbf16>
    %18 = tpu.concatenate %13, %15, %17 in 1 : vector<256x128xbf16>, vector<256x128xbf16>, vector<256x128xbf16> -> vector<256x384xbf16>
    %c0_18 = arith.constant 0 : index
    %c0_19 = arith.constant 0 : index
    %c0_20 = arith.constant 0 : index
    %19 = vector.load %arg2[%c0_18, %c0_19, %c0_20] : memref<3x384x128xbf16, #tpu.memory_space<vmem>>, vector<1x384x128xbf16>
    %20 = vector.shape_cast %19 : vector<1x384x128xbf16> to vector<384x128xbf16>
    %cst_21 = arith.constant dense<0.000000e+00> : vector<256x128xf32>
    %21 = tpu.matmul %18, %20, %cst_21 {dimension_numbers = #tpu.dot_dimension_numbers<[1], [0], [0], [1], [0, 0, 1, 1], [], []>} : vector<256x384xbf16>, vector<384x128xbf16>, vector<256x128xf32> -> vector<256x128xf32>
    %22 = arith.addf %11, %21 : vector<256x128xf32>
    %c1_22 = arith.constant 1 : index
    %c0_23 = arith.constant 0 : index
    %c0_24 = arith.constant 0 : index
    %23 = vector.load %arg7[%c1_22, %c0_23, %c0_24] : memref<18x18x128xbf16, #tpu.memory_space<vmem>>, vector<16x16x128xbf16>
    %24 = vector.shape_cast %23 : vector<16x16x128xbf16> to vector<256x128xbf16>
    %c1_25 = arith.constant 1 : index
    %c1_26 = arith.constant 1 : index
    %c0_27 = arith.constant 0 : index
    %25 = vector.load %arg7[%c1_25, %c1_26, %c0_27] : memref<18x18x128xbf16, #tpu.memory_space<vmem>>, vector<16x16x128xbf16>
    %26 = vector.shape_cast %25 : vector<16x16x128xbf16> to vector<256x128xbf16>
    %c1_28 = arith.constant 1 : index
    %c2_29 = arith.constant 2 : index
    %c0_30 = arith.constant 0 : index
    %27 = vector.load %arg7[%c1_28, %c2_29, %c0_30] : memref<18x18x128xbf16, #tpu.memory_space<vmem>>, vector<16x16x128xbf16>
    %28 = vector.shape_cast %27 : vector<16x16x128xbf16> to vector<256x128xbf16>
    %29 = tpu.concatenate %24, %26, %28 in 1 : vector<256x128xbf16>, vector<256x128xbf16>, vector<256x128xbf16> -> vector<256x384xbf16>
    %c1_31 = arith.constant 1 : index
    %c0_32 = arith.constant 0 : index
    %c0_33 = arith.constant 0 : index
    %30 = vector.load %arg2[%c1_31, %c0_32, %c0_33] : memref<3x384x128xbf16, #tpu.memory_space<vmem>>, vector<1x384x128xbf16>
    %31 = vector.shape_cast %30 : vector<1x384x128xbf16> to vector<384x128xbf16>
    %cst_34 = arith.constant dense<0.000000e+00> : vector<256x128xf32>
    %32 = tpu.matmul %29, %31, %cst_34 {dimension_numbers = #tpu.dot_dimension_numbers<[1], [0], [0], [1], [0, 0, 1, 1], [], []>} : vector<256x384xbf16>, vector<384x128xbf16>, vector<256x128xf32> -> vector<256x128xf32>
    %33 = arith.addf %22, %32 : vector<256x128xf32>
    %c2_35 = arith.constant 2 : index
    %c0_36 = arith.constant 0 : index
    %c0_37 = arith.constant 0 : index
    %34 = vector.load %arg7[%c2_35, %c0_36, %c0_37] : memref<18x18x128xbf16, #tpu.memory_space<vmem>>, vector<16x16x128xbf16>
    %35 = vector.shape_cast %34 : vector<16x16x128xbf16> to vector<256x128xbf16>
    %c2_38 = arith.constant 2 : index
    %c1_39 = arith.constant 1 : index
    %c0_40 = arith.constant 0 : index
    %36 = vector.load %arg7[%c2_38, %c1_39, %c0_40] : memref<18x18x128xbf16, #tpu.memory_space<vmem>>, vector<16x16x128xbf16>
    %37 = vector.shape_cast %36 : vector<16x16x128xbf16> to vector<256x128xbf16>
    %c2_41 = arith.constant 2 : index
    %c2_42 = arith.constant 2 : index
    %c0_43 = arith.constant 0 : index
    %38 = vector.load %arg7[%c2_41, %c2_42, %c0_43] : memref<18x18x128xbf16, #tpu.memory_space<vmem>>, vector<16x16x128xbf16>
    %39 = vector.shape_cast %38 : vector<16x16x128xbf16> to vector<256x128xbf16>
    %40 = tpu.concatenate %35, %37, %39 in 1 : vector<256x128xbf16>, vector<256x128xbf16>, vector<256x128xbf16> -> vector<256x384xbf16>
    %c2_44 = arith.constant 2 : index
    %c0_45 = arith.constant 0 : index
    %c0_46 = arith.constant 0 : index
    %41 = vector.load %arg2[%c2_44, %c0_45, %c0_46] : memref<3x384x128xbf16, #tpu.memory_space<vmem>>, vector<1x384x128xbf16>
    %42 = vector.shape_cast %41 : vector<1x384x128xbf16> to vector<384x128xbf16>
    %cst_47 = arith.constant dense<0.000000e+00> : vector<256x128xf32>
    %43 = tpu.matmul %40, %42, %cst_47 {dimension_numbers = #tpu.dot_dimension_numbers<[1], [0], [0], [1], [0, 0, 1, 1], [], []>} : vector<256x384xbf16>, vector<384x128xbf16>, vector<256x128xf32> -> vector<256x128xf32>
    %44 = arith.addf %33, %43 : vector<256x128xf32>
    %c0_48 = arith.constant 0 : index
    %c0_49 = arith.constant 0 : index
    %45 = vector.load %arg3[%c0_48, %c0_49] : memref<1x128xf32, #tpu.memory_space<vmem>>, vector<1x128xf32>
    %46 = vector.broadcast %45 : vector<1x128xf32> to vector<256x128xf32>
    %47 = arith.addf %44, %46 : vector<256x128xf32>
    %cst_50 = arith.constant dense<0.000000e+00> : vector<128xf32>
    %48 = vector.multi_reduction <add>, %47, %cst_50 [0] : vector<256x128xf32> to vector<128xf32>
    %49 = vector.shape_cast %48 : vector<128xf32> to vector<1x128xf32>
    %50 = arith.mulf %47, %47 : vector<256x128xf32>
    %cst_51 = arith.constant dense<0.000000e+00> : vector<128xf32>
    %51 = vector.multi_reduction <add>, %50, %cst_51 [0] : vector<256x128xf32> to vector<128xf32>
    %52 = vector.shape_cast %51 : vector<128xf32> to vector<1x128xf32>
    %cst_52 = arith.constant 3.906250e-03 : f32
    %53 = vector.broadcast %cst_52 : f32 to vector<1x128xf32>
    %54 = arith.mulf %49, %53 : vector<1x128xf32>
    %cst_53 = arith.constant 3.906250e-03 : f32
    %55 = vector.broadcast %cst_53 : f32 to vector<1x128xf32>
    %56 = arith.mulf %52, %55 : vector<1x128xf32>
    %57 = arith.mulf %54, %54 : vector<1x128xf32>
    %58 = arith.subf %56, %57 : vector<1x128xf32>
    %cst_54 = arith.constant 0.000000e+00 : f32
    %59 = vector.broadcast %cst_54 : f32 to vector<1x128xf32>
    %60 = arith.maximumf %58, %59 : vector<1x128xf32>
    %61 = vector.broadcast %54 : vector<1x128xf32> to vector<256x128xf32>
    %62 = arith.subf %47, %61 : vector<256x128xf32>
    %cst_55 = arith.constant 9.99999974E-6 : f32
    %63 = vector.broadcast %cst_55 : f32 to vector<1x128xf32>
    %64 = arith.addf %60, %63 : vector<1x128xf32>
    %65 = math.rsqrt %64 : vector<1x128xf32>
    %66 = vector.broadcast %65 : vector<1x128xf32> to vector<256x128xf32>
    %67 = arith.mulf %62, %66 : vector<256x128xf32>
    %cst_56 = arith.constant 0.000000e+00 : f32
    %68 = vector.broadcast %cst_56 : f32 to vector<256x128xf32>
    %69 = arith.maximumf %67, %68 : vector<256x128xf32>
    %70 = vector.shape_cast %69 : vector<256x128xf32> to vector<16x16x128xf32>
    %71 = arith.truncf %70 : vector<16x16x128xf32> to vector<16x16x128xbf16>
    %72 = vector.extract_strided_slice %71 {offsets = [0, 1, 0], sizes = [16, 1, 128], strides = [1, 1, 1]} : vector<16x16x128xbf16> to vector<16x1x128xbf16>
    %73 = vector.extract_strided_slice %71 {offsets = [0, 14, 0], sizes = [16, 1, 128], strides = [1, 1, 1]} : vector<16x16x128xbf16> to vector<16x1x128xbf16>
    %74 = tpu.concatenate %72, %71, %73 in 1 : vector<16x1x128xbf16>, vector<16x16x128xbf16>, vector<16x1x128xbf16> -> vector<16x18x128xbf16>
    %c1_57 = arith.constant 1 : index
    %c0_58 = arith.constant 0 : index
    %c0_59 = arith.constant 0 : index
    %75 = vector.load %arg8[%c1_57, %c0_58, %c0_59] : memref<18x18x128xbf16, #tpu.memory_space<vmem>>, vector<16x18x128xbf16>
    tpu.vector_store %arg8[%c1_57, %c0_58, %c0_59], %74 {strides = array<i32>} : memref<18x18x128xbf16, #tpu.memory_space<vmem>>, vector<16x18x128xbf16>,
    %76 = vector.extract_strided_slice %74 {offsets = [1, 0, 0], sizes = [1, 18, 128], strides = [1, 1, 1]} : vector<16x18x128xbf16> to vector<1x18x128xbf16>
    %c0_60 = arith.constant 0 : index
    %c0_61 = arith.constant 0 : index
    %c0_62 = arith.constant 0 : index
    %77 = vector.load %arg8[%c0_60, %c0_61, %c0_62] : memref<18x18x128xbf16, #tpu.memory_space<vmem>>, vector<1x18x128xbf16>
    tpu.vector_store %arg8[%c0_60, %c0_61, %c0_62], %76 {strides = array<i32>} : memref<18x18x128xbf16, #tpu.memory_space<vmem>>, vector<1x18x128xbf16>,
    %78 = vector.extract_strided_slice %74 {offsets = [14, 0, 0], sizes = [1, 18, 128], strides = [1, 1, 1]} : vector<16x18x128xbf16> to vector<1x18x128xbf16>
    %c17_63 = arith.constant 17 : index
    %c0_64 = arith.constant 0 : index
    %c0_65 = arith.constant 0 : index
    %79 = vector.load %arg8[%c17_63, %c0_64, %c0_65] : memref<18x18x128xbf16, #tpu.memory_space<vmem>>, vector<1x18x128xbf16>
    tpu.vector_store %arg8[%c17_63, %c0_64, %c0_65], %78 {strides = array<i32>} : memref<18x18x128xbf16, #tpu.memory_space<vmem>>, vector<1x18x128xbf16>,
    %cst_66 = arith.constant 0.000000e+00 : f32
    %80 = vector.broadcast %cst_66 : f32 to vector<256x128xf32>
    %c0_67 = arith.constant 0 : index
    %c0_68 = arith.constant 0 : index
    %c0_69 = arith.constant 0 : index
    %81 = vector.load %arg8[%c0_67, %c0_68, %c0_69] : memref<18x18x128xbf16, #tpu.memory_space<vmem>>, vector<16x16x128xbf16>
    %82 = vector.shape_cast %81 : vector<16x16x128xbf16> to vector<256x128xbf16>
    %c0_70 = arith.constant 0 : index
    %c1_71 = arith.constant 1 : index
    %c0_72 = arith.constant 0 : index
    %83 = vector.load %arg8[%c0_70, %c1_71, %c0_72] : memref<18x18x128xbf16, #tpu.memory_space<vmem>>, vector<16x16x128xbf16>
    %84 = vector.shape_cast %83 : vector<16x16x128xbf16> to vector<256x128xbf16>
    %c0_73 = arith.constant 0 : index
    %c2_74 = arith.constant 2 : index
    %c0_75 = arith.constant 0 : index
    %85 = vector.load %arg8[%c0_73, %c2_74, %c0_75] : memref<18x18x128xbf16, #tpu.memory_space<vmem>>, vector<16x16x128xbf16>
    %86 = vector.shape_cast %85 : vector<16x16x128xbf16> to vector<256x128xbf16>
    %87 = tpu.concatenate %82, %84, %86 in 1 : vector<256x128xbf16>, vector<256x128xbf16>, vector<256x128xbf16> -> vector<256x384xbf16>
    %c0_76 = arith.constant 0 : index
    %c0_77 = arith.constant 0 : index
    %c0_78 = arith.constant 0 : index
    %88 = vector.load %arg4[%c0_76, %c0_77, %c0_78] : memref<3x384x128xbf16, #tpu.memory_space<vmem>>, vector<1x384x128xbf16>
    %89 = vector.shape_cast %88 : vector<1x384x128xbf16> to vector<384x128xbf16>
    %cst_79 = arith.constant dense<0.000000e+00> : vector<256x128xf32>
    %90 = tpu.matmul %87, %89, %cst_79 {dimension_numbers = #tpu.dot_dimension_numbers<[1], [0], [0], [1], [0, 0, 1, 1], [], []>} : vector<256x384xbf16>, vector<384x128xbf16>, vector<256x128xf32> -> vector<256x128xf32>
    %91 = arith.addf %80, %90 : vector<256x128xf32>
    %c1_80 = arith.constant 1 : index
    %c0_81 = arith.constant 0 : index
    %c0_82 = arith.constant 0 : index
    %92 = vector.load %arg8[%c1_80, %c0_81, %c0_82] : memref<18x18x128xbf16, #tpu.memory_space<vmem>>, vector<16x16x128xbf16>
    %93 = vector.shape_cast %92 : vector<16x16x128xbf16> to vector<256x128xbf16>
    %c1_83 = arith.constant 1 : index
    %c1_84 = arith.constant 1 : index
    %c0_85 = arith.constant 0 : index
    %94 = vector.load %arg8[%c1_83, %c1_84, %c0_85] : memref<18x18x128xbf16, #tpu.memory_space<vmem>>, vector<16x16x128xbf16>
    %95 = vector.shape_cast %94 : vector<16x16x128xbf16> to vector<256x128xbf16>
    %c1_86 = arith.constant 1 : index
    %c2_87 = arith.constant 2 : index
    %c0_88 = arith.constant 0 : index
    %96 = vector.load %arg8[%c1_86, %c2_87, %c0_88] : memref<18x18x128xbf16, #tpu.memory_space<vmem>>, vector<16x16x128xbf16>
    %97 = vector.shape_cast %96 : vector<16x16x128xbf16> to vector<256x128xbf16>
    %98 = tpu.concatenate %93, %95, %97 in 1 : vector<256x128xbf16>, vector<256x128xbf16>, vector<256x128xbf16> -> vector<256x384xbf16>
    %c1_89 = arith.constant 1 : index
    %c0_90 = arith.constant 0 : index
    %c0_91 = arith.constant 0 : index
    %99 = vector.load %arg4[%c1_89, %c0_90, %c0_91] : memref<3x384x128xbf16, #tpu.memory_space<vmem>>, vector<1x384x128xbf16>
    %100 = vector.shape_cast %99 : vector<1x384x128xbf16> to vector<384x128xbf16>
    %cst_92 = arith.constant dense<0.000000e+00> : vector<256x128xf32>
    %101 = tpu.matmul %98, %100, %cst_92 {dimension_numbers = #tpu.dot_dimension_numbers<[1], [0], [0], [1], [0, 0, 1, 1], [], []>} : vector<256x384xbf16>, vector<384x128xbf16>, vector<256x128xf32> -> vector<256x128xf32>
    %102 = arith.addf %91, %101 : vector<256x128xf32>
    %c2_93 = arith.constant 2 : index
    %c0_94 = arith.constant 0 : index
    %c0_95 = arith.constant 0 : index
    %103 = vector.load %arg8[%c2_93, %c0_94, %c0_95] : memref<18x18x128xbf16, #tpu.memory_space<vmem>>, vector<16x16x128xbf16>
    %104 = vector.shape_cast %103 : vector<16x16x128xbf16> to vector<256x128xbf16>
    %c2_96 = arith.constant 2 : index
    %c1_97 = arith.constant 1 : index
    %c0_98 = arith.constant 0 : index
    %105 = vector.load %arg8[%c2_96, %c1_97, %c0_98] : memref<18x18x128xbf16, #tpu.memory_space<vmem>>, vector<16x16x128xbf16>
    %106 = vector.shape_cast %105 : vector<16x16x128xbf16> to vector<256x128xbf16>
    %c2_99 = arith.constant 2 : index
    %c2_100 = arith.constant 2 : index
    %c0_101 = arith.constant 0 : index
    %107 = vector.load %arg8[%c2_99, %c2_100, %c0_101] : memref<18x18x128xbf16, #tpu.memory_space<vmem>>, vector<16x16x128xbf16>
    %108 = vector.shape_cast %107 : vector<16x16x128xbf16> to vector<256x128xbf16>
    %109 = tpu.concatenate %104, %106, %108 in 1 : vector<256x128xbf16>, vector<256x128xbf16>, vector<256x128xbf16> -> vector<256x384xbf16>
    %c2_102 = arith.constant 2 : index
    %c0_103 = arith.constant 0 : index
    %c0_104 = arith.constant 0 : index
    %110 = vector.load %arg4[%c2_102, %c0_103, %c0_104] : memref<3x384x128xbf16, #tpu.memory_space<vmem>>, vector<1x384x128xbf16>
    %111 = vector.shape_cast %110 : vector<1x384x128xbf16> to vector<384x128xbf16>
    %cst_105 = arith.constant dense<0.000000e+00> : vector<256x128xf32>
    %112 = tpu.matmul %109, %111, %cst_105 {dimension_numbers = #tpu.dot_dimension_numbers<[1], [0], [0], [1], [0, 0, 1, 1], [], []>} : vector<256x384xbf16>, vector<384x128xbf16>, vector<256x128xf32> -> vector<256x128xf32>
    %113 = arith.addf %102, %112 : vector<256x128xf32>
    %c0_106 = arith.constant 0 : index
    %c0_107 = arith.constant 0 : index
    %114 = vector.load %arg5[%c0_106, %c0_107] : memref<1x128xf32, #tpu.memory_space<vmem>>, vector<1x128xf32>
    %115 = vector.broadcast %114 : vector<1x128xf32> to vector<256x128xf32>
    %116 = arith.addf %113, %115 : vector<256x128xf32>
    %cst_108 = arith.constant dense<0.000000e+00> : vector<128xf32>
    %117 = vector.multi_reduction <add>, %116, %cst_108 [0] : vector<256x128xf32> to vector<128xf32>
    %118 = vector.shape_cast %117 : vector<128xf32> to vector<1x128xf32>
    %119 = arith.mulf %116, %116 : vector<256x128xf32>
    %cst_109 = arith.constant dense<0.000000e+00> : vector<128xf32>
    %120 = vector.multi_reduction <add>, %119, %cst_109 [0] : vector<256x128xf32> to vector<128xf32>
    %121 = vector.shape_cast %120 : vector<128xf32> to vector<1x128xf32>
    %cst_110 = arith.constant 3.906250e-03 : f32
    %122 = vector.broadcast %cst_110 : f32 to vector<1x128xf32>
    %123 = arith.mulf %118, %122 : vector<1x128xf32>
    %cst_111 = arith.constant 3.906250e-03 : f32
    %124 = vector.broadcast %cst_111 : f32 to vector<1x128xf32>
    %125 = arith.mulf %121, %124 : vector<1x128xf32>
    %126 = arith.mulf %123, %123 : vector<1x128xf32>
    %127 = arith.subf %125, %126 : vector<1x128xf32>
    %cst_112 = arith.constant 0.000000e+00 : f32
    %128 = vector.broadcast %cst_112 : f32 to vector<1x128xf32>
    %129 = arith.maximumf %127, %128 : vector<1x128xf32>
    %130 = vector.broadcast %123 : vector<1x128xf32> to vector<256x128xf32>
    %131 = arith.subf %116, %130 : vector<256x128xf32>
    %cst_113 = arith.constant 9.99999974E-6 : f32
    %132 = vector.broadcast %cst_113 : f32 to vector<1x128xf32>
    %133 = arith.addf %129, %132 : vector<1x128xf32>
    %134 = math.rsqrt %133 : vector<1x128xf32>
    %135 = vector.broadcast %134 : vector<1x128xf32> to vector<256x128xf32>
    %136 = arith.mulf %131, %135 : vector<256x128xf32>
    %137 = vector.shape_cast %136 : vector<256x128xf32> to vector<16x16x128xf32>
    %138 = arith.addf %1, %137 : vector<16x16x128xf32>
    %c0_114 = arith.constant 0 : index
    %c0_115 = arith.constant 0 : index
    %c0_116 = arith.constant 0 : index
    %c0_117 = arith.constant 0 : index
    %139 = vector.load %arg6[%c0_114, %c0_115, %c0_116, %c0_117] : memref<1x16x16x128xf32, #tpu.memory_space<vmem>>, vector<1x16x16x128xf32>
    %140 = vector.shape_cast %139 : vector<1x16x16x128xf32> to vector<16x16x128xf32>
    %141 = vector.shape_cast %138 : vector<16x16x128xf32> to vector<1x16x16x128xf32>
    tpu.vector_store %arg6[%c0_114, %c0_115, %c0_116, %c0_117], %141 {strides = array<i32>} : memref<1x16x16x128xf32, #tpu.memory_space<vmem>>, vector<1x16x16x128xf32>,
    return
  }
  func.func @transform_0(%arg0: i32) -> (i32, i32, i32, i32) {
    %c0_i32 = arith.constant 0 : i32
    %c0_i32_0 = arith.constant 0 : i32
    %c0_i32_1 = arith.constant 0 : i32
    %c0_i32_2 = arith.constant 0 : i32
    return %arg0, %c0_i32, %c0_i32_0, %c0_i32_1 : i32, i32, i32, i32
  }
  func.func @transform_1(%arg0: i32) -> (i32, i32, i32) {
    %c0_i32 = arith.constant 0 : i32
    %c0_i32_0 = arith.constant 0 : i32
    %c0_i32_1 = arith.constant 0 : i32
    %c0_i32_2 = arith.constant 0 : i32
    return %c0_i32, %c0_i32_0, %c0_i32_1 : i32, i32, i32
  }
  func.func @transform_2(%arg0: i32) -> (i32, i32) {
    %c0_i32 = arith.constant 0 : i32
    %c0_i32_0 = arith.constant 0 : i32
    %c0_i32_1 = arith.constant 0 : i32
    return %c0_i32, %c0_i32_0 : i32, i32
  }
  func.func @transform_3(%arg0: i32) -> (i32, i32, i32) {
    %c0_i32 = arith.constant 0 : i32
    %c0_i32_0 = arith.constant 0 : i32
    %c0_i32_1 = arith.constant 0 : i32
    %c0_i32_2 = arith.constant 0 : i32
    return %c0_i32, %c0_i32_0, %c0_i32_1 : i32, i32, i32
  }
  func.func @transform_4(%arg0: i32) -> (i32, i32) {
    %c0_i32 = arith.constant 0 : i32
    %c0_i32_0 = arith.constant 0 : i32
    %c0_i32_1 = arith.constant 0 : i32
    return %c0_i32, %c0_i32_0 : i32, i32
  }
  func.func @transform_5(%arg0: i32) -> (i32, i32, i32, i32) {
    %c0_i32 = arith.constant 0 : i32
    %c0_i32_0 = arith.constant 0 : i32
    %c0_i32_1 = arith.constant 0 : i32
    %c0_i32_2 = arith.constant 0 : i32
    return %arg0, %c0_i32, %c0_i32_0, %c0_i32_1 : i32, i32, i32, i32
  }
}

</mosaic_0001>

<bundles_post_ra>
// kernel: tpu_custom_call.1
= control target key start
LH: loop header
LB: loop body
LE: loop exit
PB: predicated region body
PF: predicated region fallthrough
CT: control target
= control target key end

     0   :  { %10 = vsyncpa [#allocation5], 0  ;;  %s17262_s0 = inlined_call_operand.hbm [shape: f32[4,16,16,128], index: 0, kind: input, shape index: {}]   ;;  %s17263_s1 = inlined_call_operand.hbm [shape: bf16[3,384,128], index: 1, kind: input, shape index: {}]   ;;  %s17264_s2 = inlined_call_operand.vmem [shape: f32[1,128], index: 2, kind: input, shape index: {}]   ;;  %s17265_s3 = inlined_call_operand.hbm [shape: bf16[3,384,128], index: 3, kind: input, shape index: {}]   ;;  %s17266_s4 = inlined_call_operand.vmem [shape: f32[1,128], index: 4, kind: input, shape index: {}]   ;;  %s17267_s5 = inlined_call_operand.hbm [shape: f32[4,16,16,128], index: 5, kind: output, shape index: {}]  }
   0x1   :  { %12 = vsyncpa [#allocation5 + $0x1], 0 }
   0x2   :  { %13 = vsyncpa [#allocation8], 0 }
   0x3   :  { %14 = vsyncpa [#allocation6], 0 }
   0x4   :  { %16 = vsyncpa [#allocation6 + $0x1], 0  ;;  %s12650_s18 = smov 0   ;;  %s12652_s19 = smov 0  }
   0x5   :  { %s12654_s20 = smov 0   ;;  %s12656_s21 = smov 0  }
   0x6 LB: > { %s12671_s22 = sadd.s32 4294967295, %s12608_s21   ;;  %s9942_s23 = sadd.s32 4294967294, %s12608_s21   ;;  %s12608_s21 = sphi %s12656_s21, %s17537_s21   ;;  %s12604_s20 = sphi %s12654_s20, %s17536_s20   ;;  %s12600_s19 = sphi %s12652_s19, %s17535_s19   ;;  %s12596_s18 = sphi %s12650_s18, %s17534_s18  }
   0x7   : > { %p42_p0 = scmp.ne.s32.totalorder %s12600_s19, %s12596_s18  ;;  %p17268_p1 = scmp.eq.s32.totalorder %s12671_s22, 0 }
   0x8   : > { %p156_p3 = scmp.eq.s32.totalorder %s9942_s23, 3  ;;  %p9943_p5 = scmp.ge.s32.totalorder %s12608_s21, 1 }
   0x9   : > { %p12680_p4 = por %p17268_p1, %p42_p0  ;;  %p163_p7 = scmp.lt.s32.totalorder %s12608_s21, 5 }
   0xa   : > { %p12685_p6 = por %p156_p3, %p42_p0  ;;  %s12610_s27 = smov [#allocation7]  }
   0xb   : > { %s17320_s24 = scalar_select %p12680_p4, 1, 0 }
   0xc   : > { %s17321_s25 = scalar_select %p12685_p6, 1, 0 }
   0xd   : > { %p12690_p8 = pnand %p9943_p5, %p163_p7  ;;  %s175_s28 = sshll.u32 %s12610_s27, 4  ;;  %s176_s28 = int_to_ptr.vmem [resolvable:$true] %s175_s28 }
   0xe   : > { %s12611_s30 = smov [#allocation9]   ;;  %s12452_s9 = scalar_lea.hbm %s17263_s1, 9216 }
   0xf   : > { %s17322_s26 = scalar_select %p12690_p8, 1, 0 }
  0x10   : > { %p12024_p9 = pneg %p12690_p8  ;;  %s191_s6 = sshll.u32 %s12611_s30, 4  ;;  %s12702_s6 = int_to_ptr.vmem [resolvable:$true] %s191_s6 }
  0x11   : > { %p12453_p11 = scmp.ne.s32.totalorder %s17263_s1, %s12452_s9  ;;  %p12459_p3 = scmp.lt.u32.totalorder %s12452_s9, %s17263_s1 }
  0x12   : > { %p12698_p10 = pnand %p12024_p9, %p17268_p1 }
  0x14   : > { %p12454_p12 = pneg %p12698_p10 }
  0x16   : > { %p12455_p13 = pnand %p12454_p12, %p12453_p11 }
  0x18   : > { %p12456_p0 = pneg %p12455_p13 }
  0x1a   : > { %p12461_p5 = pnand %p12459_p3, %p12456_p0 }
  0x1c   : > { %12464 = shalt.err (!%p12461_p5)
}
  0x1d   : > { %s12465_s14 = scalar_lea.vmem %s176_s28, 9216  ;;  %p12473_p2 = scmp.lt.s32.totalorder %s176_s28, %s176_s28 }
  0x1e   : > { %p12466_p7 = scmp.ne.s32.totalorder %s176_s28, %s12465_s14  ;;  %p12474_p6 = scmp.lt.s32.totalorder %s12465_s14, %s12465_s14 }
  0x20   : > { %p12468_p9 = pnand %p12466_p7, %p12454_p12  ;;  %p12475_p4 = por %p12474_p6, %p12473_p2 }
  0x22   : > { %p12469_p1 = pneg %p12468_p9 }
  0x24   : > { %p12476_p8 = pnand %p12475_p4, %p12469_p1 }
  0x26   : > { %12479 = shalt.err (!%p12476_p8)
}
  0x27   : > { %s12612_s15 = smov 64   ;;  %s12613_s16 = smov 4  }
  0x28   : > { %12027 = dma.hbm_to_vmem [thread:$0]  (!%p12698_p10), %s17263_s1, 9216, %s176_s28, [#allocation8], %s12612_s15, %s12612_s15, %s12613_s16  }
  0x29   : > { %s12480_s7 = scalar_lea.hbm %s17265_s3, 9216 }
  0x2a   : > { %p12481_p11 = scmp.ne.s32.totalorder %s17265_s3, %s12480_s7  ;;  %p12487_p4 = scmp.lt.u32.totalorder %s12480_s7, %s17265_s3 }
  0x2c   : > { %p12483_p1 = pnand %p12481_p11, %p12454_p12 }
  0x2e   : > { %p12484_p2 = pneg %p12483_p1 }
  0x30   : > { %p12489_p6 = pnand %p12487_p4, %p12484_p2 }
  0x32   : > { %12492 = shalt.err (!%p12489_p6)
}
  0x33   : > { %s12493_s28 = scalar_lea.vmem %s12702_s6, 9216  ;;  %p12501_p3 = scmp.lt.s32.totalorder %s12702_s6, %s12702_s6 }
  0x34   : > { %p12494_p8 = scmp.ne.s32.totalorder %s12702_s6, %s12493_s28  ;;  %p12502_p5 = scmp.lt.s32.totalorder %s12493_s28, %s12493_s28 }
  0x36   : > { %p12496_p13 = pnand %p12494_p8, %p12454_p12  ;;  %p12503_p7 = por %p12502_p5, %p12501_p3 }
  0x38   : > { %p12497_p0 = pneg %p12496_p13 }
  0x3a   : > { %p12504_p9 = pnand %p12503_p7, %p12497_p0 }
  0x3c   : > { %12507 = shalt.err (!%p12504_p9)
}
  0x3d   : > { %12030 = dma.hbm_to_vmem [thread:$0]  (!%p12698_p10), %s17265_s3, 9216, %s12702_s6, [#allocation8], %s12612_s15, %s12612_s15, %s12613_s16  }
  0x3e   : > { %s12752_s14 = sadd.s32 1, %s12608_s21   ;;  %s29_s29 = sadd.s32 1, %s12604_s20 }
  0x3f   : > { %s26_s17 = ssub.s32 %s12608_s21, %s12752_s14  ;;  %p36_p12 = scmp.ne.s32.totalorder %s12604_s20, %s12600_s19 }
  0x40   : > { %p27_p11 = scmp.eq.s32.totalorder %s26_s17, 0  ;;  %p37_p1 = scmp.eq.s32.totalorder %s12608_s21, 0 }
  0x41   : > { %p17324_p2 = scmp.eq.s32.totalorder %s12671_s22, 3  ;;  %p12041_p6 = scmp.lt.s32.totalorder %s12608_s21, 4 }
  0x42   : > { %s12768_s27 = scalar_select %p27_p11, %s12604_s20, %s29_s29  }
  0x43   : > { %p12762_p4 = por %p17324_p2, %p36_p12  ;;  %p38_p8 = por %p37_p1, %p36_p12 }
  0x44   : > { %s208_s30 = sand.u32 1, %s12604_s20   ;;  %s10586_s6 = sshll.u32 %s12608_s21, 12 }
  0x45   : > { %s9947_s7 = sshll.u32 %s208_s30, 8  ;;  %s12775_s8 = scalar_lea.hbm %s17262_s0, %s10586_s6 }
  0x46   : > { %s212_s9 = scalar_lea.vmem [#allocation4], %s9947_s7  ;;  %p12779_p10 = pnand %p12041_p6, %p38_p8 }
  0x47   : > { %s219_s10 = sshll.u32 %s212_s9, 4  ;;  %s12783_s28 = scalar_lea.sflag [#allocation5], %s208_s30  ;;  %s12777_s10 = int_to_ptr.vmem [resolvable:$true] %s219_s10 }
  0x48   : > { %s12508_s12 = scalar_lea.hbm %s12775_s8, 4096  ;;  %p12510_p0 = pneg %p12779_p10 }
  0x49   : > { %p12509_p13 = scmp.ne.s32.totalorder %s12775_s8, %s12508_s12  ;;  %s12513_s17 = scalar_lea.hbm %s17262_s0, 16384 }
  0x4a   : > { %p12514_p7 = scmp.lt.u32.totalorder %s12775_s8, %s17262_s0  ;;  %p12515_p9 = scmp.lt.u32.totalorder %s12513_s17, %s12508_s12 }
  0x4b   : > { %p12511_p3 = pnand %p12510_p0, %p12509_p13  ;;  %p12517_p11 = scmp.lt.u32.totalorder %s12508_s12, %s12775_s8 }
  0x4c   : > { %p12516_p12 = por %p12515_p9, %p12514_p7 }
  0x4d   : > { %p12512_p5 = pneg %p12511_p3 }
  0x4e   : > { %p12518_p1 = por %p12517_p11, %p12516_p12 }
  0x50   : > { %p12519_p2 = pnand %p12518_p1, %p12512_p5 }
  0x52   : > { %12522 = shalt.err (!%p12519_p2)
}
  0x53   : > { %s12523_s30 = scalar_lea.vmem %s12777_s10, 4096  ;;  %s12614_s15 = smov [#allocation4]  }
  0x54   : > { %p12524_p6 = scmp.ne.s32.totalorder %s12777_s10, %s12523_s30  ;;  %s12528_s16 = sshll.u32 %s12614_s15, 4  ;;  %s12529_s16 = int_to_ptr.vmem [resolvable:$false] %s12528_s16 }
  0x55   : > { %s12530_s9 = scalar_lea.vmem %s12529_s16, 8192  ;;  %p12531_p3 = scmp.lt.s32.totalorder %s12777_s10, %s12529_s16 }
  0x56   : > { %p12526_p8 = pnand %p12524_p6, %p12510_p0  ;;  %p12532_p7 = scmp.lt.s32.totalorder %s12530_s9, %s12523_s30 }
  0x58   : > { %p12527_p13 = pneg %p12526_p8  ;;  %p12533_p9 = por %p12532_p7, %p12531_p3 }
  0x5a   : > { %p12534_p12 = pnand %p12533_p9, %p12527_p13 }
  0x5c   : > { %12537 = shalt.err (!%p12534_p12)
}
  0x5d   : > { %s12615_s12 = smov 128   ;;  %s12616_s13 = smov 8  }
  0x5e   : > { %12034 = dma.hbm_to_vmem [thread:$0]  (!%p12779_p10), %s12775_s8, 4096, %s12777_s10, %s12783_s28, %s12615_s12, %s12615_s12, %s12616_s13  }
  0x5f   : > { %p17327_p0 = scmp.ne.s32.totalorder %s17322_s26, 0 }
  0x61   : > { %231 = sbr.rel (%p17327_p0) target bundleno = 1494 (0x5d6), region = 40 }
  0x68   : > { %s12814_s29 = sand.u32 1, %s12600_s19   ;;  %p17328_p5 = scmp.ne.s32.totalorder %s17320_s24, 0 }
  0x69   : > { %s9951_s17 = sshll.u32 %s12814_s29, 8  ;;  %s234_s7 = scalar_lea.sflag [#allocation5], %s12814_s29 }
  0x6a   : > { %s12820_s6 = scalar_lea.vmem [#allocation4], %s9951_s17 }
  0x6b   : > { %12583 = dma.done.wait (%p17328_p5), %s234_s7, 4096  }
  0x6c   : > { %12585 = vsyncadd (%p17328_p5), %s234_s7, 4294963200  ;;  %p17329_p10 = scmp.eq.s32.totalorder %s12671_s22, 0 }
  0x6e   : > { %12587 = dma.done.wait (%p17329_p10), [#allocation8], 18432   ;;  %p17330_p11 = pmov %p17329_p10 }
  0x6f   : > { %v12085_v0 = vld [vmem:[#allocation7 + $0x100] sm:$0xff]   ;;  %v12089_v4 = vld [vmem:[#allocation7 + $0x108] sm:$0xff]   ;;  %v12093_v8 = vld [vmem:[#allocation7 + $0x110] sm:$0xff]   ;;  %vm513_vm0 = vcmask 1040384   ;;  %vm514_vm1 = vsmask.f32 256 }
  0x70   : > { %12589 = vsyncadd (%p17330_p11), [#allocation8], 4294948864  ;;  %v12086_v1 = vld [vmem:[#allocation7 + $0x40] sm:$0xff]   ;;  %10588 = vmatprep.subr.bf16.mxu0 %v12085_v0  ;;  %v12090_v5 = vld [vmem:[#allocation7 + $0x48] sm:$0xff]   ;;  %v17331_v54 = vmov 0  ;;  %vm1279_vm6 = vcmask 1042432  }
  0x71   : > { %v12087_v2 = vld [vmem:[#allocation7 + $0xc0] sm:$0xff]   ;;  %10724 = vmatprep.subr.bf16.mxu1 %v12086_v1  ;;  %v12091_v6 = vld [vmem:[#allocation7 + $0xc8] sm:$0xff]   ;;  %v12094_v9 = vld [vmem:[#allocation7 + $0x50] sm:$0xff]   ;;  %vm828_vm3 = vsmask.f32 3328  ;;  %vm1280_vm7 = vcmask 1046532  }
  0x72   : > { %v12088_v3 = vld [vmem:[#allocation7] sm:$0xff]   ;;  %10589 = vmatpush3.bf16.msra.mxu0 %v12087_v2  ;;  %v12092_v7 = vld [vmem:[#allocation7 + $0x8] sm:$0xff]   ;;  %v12095_v10 = vld [vmem:[#allocation7 + $0xd0] sm:$0xff]   ;;  %vm829_vm4 = vsmask.f32 7440  ;;  %s17107_s11 = scalar_lea.vmem [#allocation10], %s9951_s17 }
  0x73   : > { %10725 = vmatpush3.bf16.msra.mxu1 %v12088_v3  ;;  %10590 = vmatprep.subr.bf16.mxu0 %v12089_v4  ;;  %v12096_v11 = vld [vmem:[#allocation7 + $0x10] sm:$0xff]   ;;  %v12097_v12 = vld [vmem:[#allocation7 + $0x118] sm:$0xff]   ;;  %v12101_v16 = vld [vmem:[#allocation7 + $0x120] sm:$0xff]   ;;  %s10587_s28 = sshll.u32 %s12671_s22, 12  ;;  %s9850_s30 = sshll.u32 %s17107_s11, 4  ;;  %s17199_s30 = int_to_ptr.vmem [resolvable:$true] %s9850_s30 }
  0x74   : > { %10726 = vmatprep.subr.bf16.mxu1 %v12090_v5  ;;  %v12098_v13 = vld [vmem:[#allocation7 + $0x58] sm:$0xff]   ;;  %v12102_v17 = vld [vmem:[#allocation7 + $0x60] sm:$0xff]   ;;  %v12105_v20 = vld [vmem:[#allocation7 + $0x128] sm:$0xff]   ;;  %s17195_s9 = scalar_lea.hbm %s17267_s5, %s10587_s28  ;;  %s9837_s22 = scalar_lea.sflag [#allocation6], %s12814_s29 }
  0x75   : > { %v12099_v14 = vld [vmem:[#allocation7 + $0xd8] sm:$0xff]   ;;  %v12103_v18 = vld [vmem:[#allocation7 + $0xe0] sm:$0xff]   ;;  %v12106_v21 = vld [vmem:[#allocation7 + $0x68] sm:$0xff]   ;;  %s12538_s12 = scalar_lea.vmem %s17199_s30, 4096  ;;  %s12617_s13 = smov [#allocation10]  }
  0x76   : > { %10591 = vmatpush3.bf16.msra.mxu0 %v12091_v6  ;;  %v12100_v15 = vld [vmem:[#allocation7 + $0x18] sm:$0xff]   ;;  %v12104_v19 = vld [vmem:[#allocation7 + $0x20] sm:$0xff]   ;;  %v12107_v22 = vld [vmem:[#allocation7 + $0xe8] sm:$0xff]   ;;  %p12539_p1 = scmp.ne.s32.totalorder %s17199_s30, %s12538_s12  ;;  %s12542_s17 = sshll.u32 %s12617_s13, 4  ;;  %s12543_s17 = int_to_ptr.vmem [resolvable:$false] %s12542_s17 }
  0x77   : > { %10727 = vmatpush3.bf16.msra.mxu1 %v12092_v7  ;;  %10592 = vmatprep.subr.bf16.mxu0 %v12093_v8  ;;  %v12108_v23 = vld [vmem:[#allocation7 + $0x28] sm:$0xff]   ;;  %v12109_v24 = vld [vmem:[#allocation7 + $0x130] sm:$0xff]   ;;  %v12113_v28 = vld [vmem:[#allocation7 + $0x138] sm:$0xff]   ;;  %s12544_s7 = scalar_lea.vmem %s12543_s17, 8192  ;;  %p12545_p8 = scmp.lt.s32.totalorder %s17199_s30, %s12543_s17 }
  0x78   : > { %10728 = vmatprep.subr.bf16.mxu1 %v12094_v9  ;;  %v12110_v25 = vld [vmem:[#allocation7 + $0x70] sm:$0xff]   ;;  %v12114_v29 = vld [vmem:[#allocation7 + $0x78] sm:$0xff]   ;;  %v273_v32 = vld [vmem:[%s12820_s6] sm:$0xff]  ;;  %p12540_p2 = pnand %p12539_p1, %p12762_p4  ;;  %p12546_p13 = scmp.lt.s32.totalorder %s12544_s7, %s12538_s12 }
  0x79   : > { %v12111_v26 = vld [vmem:[#allocation7 + $0xf0] sm:$0xff]   ;;  %v12115_v30 = vld [vmem:[#allocation7 + $0xf8] sm:$0xff]   ;;  %v274_v33 = vld [vmem:[%s12820_s6 + $0x8] sm:$0xff] }
  0x7a   : > { %10593 = vmatpush3.bf16.msra.mxu0 %v12095_v10  ;;  %v12112_v27 = vld [vmem:[#allocation7 + $0x30] sm:$0xff]   ;;  %v12116_v31 = vld [vmem:[#allocation7 + $0x38] sm:$0xff]   ;;  %v305_v35 = vpack.c.bf16 %v274_v33, %v273_v32  ;;  %v12834_v38 = vld [vmem:[#allocation7 + $0x140] sm:$0xff]   ;;  %p12541_p6 = pneg %p12540_p2  ;;  %p12547_p3 = por %p12546_p13, %p12545_p8 }
  0x7b   : > { %10729 = vmatpush3.bf16.msra.mxu1 %v12096_v11  ;;  %10594 = vmatprep.subr.bf16.mxu0 %v12097_v12  ;;  %v275_v34 = vld [vmem:[%s12820_s6 + $0x10] sm:$0xff]  ;;  %v276_v36 = vld [vmem:[%s12820_s6 + $0x18] sm:$0xff]  ;;  %v277_v39 = vld [vmem:[%s12820_s6 + $0x20] sm:$0xff] }
  0x7c   : > { %10730 = vmatprep.subr.bf16.mxu1 %v12098_v13  ;;  %v306_v37 = vpack.c.bf16 %v276_v36, %v275_v34  ;;  %v278_v40 = vld [vmem:[%s12820_s6 + $0x28] sm:$0xff]  ;;  %v322_v41 = vshrl.u32 %v305_v35, 16  ;;  %v386_v42 = vshll.u32 %v305_v35, 16  ;;  %v279_v46 = vld [vmem:[%s12820_s6 + $0x30] sm:$0xff]  ;;  %v280_v47 = vld [vmem:[%s12820_s6 + $0x38] sm:$0xff]  ;;  %p12548_p7 = pnand %p12547_p3, %p12541_p6 }
  0x7d   : > { %v307_v43 = vpack.c.bf16 %v278_v40, %v277_v39  ;;  %v281_v52 = vld [vmem:[%s12820_s6 + $0x40] sm:$0xff]  ;;  %v282_v53 = vld [vmem:[%s12820_s6 + $0x48] sm:$0xff]  ;;  %vm12845_vm2 = vmand %vm513_vm0, %vm514_vm1  ;;  %v308_v57 = vpack.c.bf16 %v280_v47, %v279_v46 }
  0x7e   : > { %10595 = vmatpush3.bf16.msra.mxu0 %v12099_v14  ;;  %v325_v44 = vshrl.u32 %v306_v37, 16  ;;  %v390_v45 = vshll.u32 %v306_v37, 16  ;;  %v385_v48 = vrot.slane %v322_v41, 7  ;;  %v481_v49 = vrot.slane %v386_v42, 7  ;;  %v283_v7 = vld [vmem:[%s12820_s6 + $0x50] sm:$0xff]  ;;  %v284_v8 = vld [vmem:[%s12820_s6 + $0x58] sm:$0xff]  ;;  %vm12923_vm5 = vmor %vm828_vm3, %vm829_vm4 }
  0x7f   : > { %10731 = vmatpush3.bf16.msra.mxu1 %v12100_v15  ;;  %10596 = vmatprep.subr.bf16.mxu0 %v12101_v16  ;;  %v328_v50 = vshrl.u32 %v307_v43, 16  ;;  %v394_v51 = vshll.u32 %v307_v43, 16  ;;  %v17332_v54 = vsel %vm12845_vm2, 4294967295, %v17331_v54  ;;  %v12849_v58 = vpack.c.bf16 %v282_v53, %v281_v52  ;;  %v285_v13 = vld [vmem:[%s12820_s6 + $0x60] sm:$0xff]  ;;  %v286_v14 = vld [vmem:[%s12820_s6 + $0x68] sm:$0xff]  ;;  %v287_v15 = vld [vmem:[%s12820_s6 + $0x70] sm:$0xff] }
  0x80   : > { %10732 = vmatprep.subr.bf16.mxu1 %v12102_v17  ;;  %17333 = vst [vmem:[#allocation14_spill] sm:$0xff] %v17332_v54  ;;  %v389_v55 = vrot.slane %v325_v44, 7  ;;  %v482_v56 = vrot.slane %v390_v45, 7  ;;  %v388_v59 = vor.u32 %v386_v42, %v385_v48  ;;  %v532_v60 = vsel %vm12845_vm2, %v385_v48, %v481_v49  ;;  %v288_v16 = vld [vmem:[%s12820_s6 + $0x78] sm:$0xff]  ;;  %v289_v17 = vld [vmem:[%s12820_s6 + $0x80] sm:$0xff]  ;;  %vm13521_vm8 = vmor %vm1279_vm6, %vm1280_vm7 }
  0x81   : > { %v393_v61 = vrot.slane %v328_v50, 7  ;;  %v483_v62 = vrot.slane %v394_v51, 7  ;;  %v9957_v63 = vcombine.low %v532_v60, %v532_v60  ;;  %v331_v2 = vshrl.u32 %v308_v57, 16 }
  0x82   : > { %10597 = vmatpush3.bf16.msra.mxu0 %v12103_v18  ;;  %v392_v0 = vor.u32 %v390_v45, %v389_v55  ;;  %v533_v1 = vsel %vm12845_vm2, %v389_v55, %v482_v56  ;;  %v516_v3 = vsel %vm12845_vm2, %v322_v41, %v388_v59  ;;  %v12877_v34 = vpack.c.bf16 %v286_v14, %v285_v13 }
  0x83   : > { %10733 = vmatpush3.bf16.msra.mxu1 %v12104_v19  ;;  %10598 = vmatprep.subr.bf16.mxu0 %v12105_v20  ;;  %v9960_v4 = vcombine.low %v533_v1, %v533_v1  ;;  %v396_v5 = vor.u32 %v394_v51, %v393_v61  ;;  %v534_v6 = vsel %vm12845_vm2, %v393_v61, %v483_v62 }
  0x84   : > { %10734 = vmatprep.subr.bf16.mxu1 %v12106_v21  ;;  %v9955_v9 = vcombine.low %v516_v3, %v516_v3  ;;  %v9956_v10 = vcombine.high %v516_v3, %v516_v3  ;;  %727 = vst [vmem:[#allocation2 + $0x14] sm:$0x1] %v9957_v63  ;;  %v517_v11 = vsel %vm12845_vm2, %v325_v44, %v392_v0  ;;  %v397_v21 = vrot.slane %v331_v2, 7 }
  0x85   : > { %v9963_v12 = vcombine.low %v534_v6, %v534_v6  ;;  %v9958_v18 = vcombine.low %v517_v11, %v517_v11  ;;  %v9959_v19 = vcombine.high %v517_v11, %v517_v11  ;;  %775 = vst [vmem:[#allocation2 + $0x8] sm:$0x1] %v9960_v4  ;;  %730 = vst [vmem:[#allocation2 + $0x20] sm:$0x1] %v9960_v4  ;;  %v410_v4 = vshll.u32 %v12877_v34, 16 }
  0x86   : > { %10599 = vmatpush3.bf16.msra.mxu0 %v12107_v22  ;;  %v518_v20 = vsel %vm12845_vm2, %v328_v50, %v396_v5  ;;  %v290_v22 = vld [vmem:[%s12820_s6 + $0x88] sm:$0xff]  ;;  %725 = vst [vmem:[#allocation2 + $0xc] sm:$0xf] %v9955_v9  ;;  %726 = vst [vmem:[#allocation2 + $0x10] sm:$0xf] %v9956_v10  ;;  %v12879_v35 = vpack.c.bf16 %v288_v16, %v287_v15 }
  0x87   : > { %10735 = vmatpush3.bf16.msra.mxu1 %v12108_v23  ;;  %10600 = vmatprep.subr.bf16.mxu0 %v12109_v24  ;;  %v9961_v23 = vcombine.low %v518_v20, %v518_v20  ;;  %v9962_v24 = vcombine.high %v518_v20, %v518_v20  ;;  %733 = vst [vmem:[#allocation2 + $0x2c] sm:$0x1] %v9963_v12  ;;  %773 = vst [vmem:[#allocation2] sm:$0xf] %v9958_v18 }
  0x88   : > { %10736 = vmatprep.subr.bf16.mxu1 %v12110_v25  ;;  %v398_v25 = vshll.u32 %v308_v57, 16  ;;  %774 = vst [vmem:[#allocation2 + $0x4] sm:$0xf] %v9959_v19  ;;  %728 = vst [vmem:[#allocation2 + $0x18] sm:$0xf] %v9958_v18  ;;  %v12881_v36 = vpack.c.bf16 %v290_v22, %v289_v17 }
  0x89   : > { %729 = vst [vmem:[#allocation2 + $0x1c] sm:$0xf] %v9959_v19  ;;  %731 = vst [vmem:[#allocation2 + $0x24] sm:$0xf] %v9961_v23  ;;  %v17334_v19 = vmov 0 }
  0x8a   : > { %10601 = vmatpush3.bf16.msra.mxu0 %v12111_v26  ;;  %v334_v26 = vshrl.u32 %v12849_v58, 16  ;;  %732 = vst [vmem:[#allocation2 + $0x28] sm:$0xf] %v9962_v24  ;;  %v17335_v19 = vsel %vm12923_vm5, 4294967295, %v17334_v19 }
  0x8b   : > { %10737 = vmatpush3.bf16.msra.mxu1 %v12112_v27  ;;  %10602 = vmatprep.subr.bf16.mxu0 %v12113_v28  ;;  %v402_v27 = vshll.u32 %v12849_v58, 16  ;;  %v12873_v28 = vpack.c.bf16 %v284_v8, %v283_v7  ;;  %v12889_v42 = vld [vmem:[#allocation2 + $0x14] sm:$0x1]  ;;  %v340_v58 = vshrl.u32 %v12877_v34, 16  ;;  %17336 = vst [vmem:[#allocation15_spill] sm:$0xff] %v17335_v19 }
  0x8c   : > { %10738 = vmatprep.subr.bf16.mxu1 %v12114_v29  ;;  %v12875_v29 = vld [vmem:[#allocation7 + $0x80] sm:$0xff]   ;;  %v401_v32 = vrot.slane %v334_v26, 7  ;;  %v1718_v47 = vshll.u32 %v12889_v42, 16  ;;  %v812_v48 = vld [vmem:[#allocation2 + $0x8] sm:$0x1] }
  0x8d   : > { %v485_v33 = vrot.slane %v402_v27, 7  ;;  %v337_v41 = vshrl.u32 %v12873_v28, 16  ;;  %v406_v51 = vshll.u32 %v12873_v28, 16  ;;  %v12897_v52 = vld [vmem:[#allocation2 + $0xc] sm:$0xf]  ;;  %v851_v55 = vshll.u32 %v812_v48, 16 }
  0x8e   : > { %10603 = vmatpush3.bf16.msra.mxu0 %v12115_v30  ;;  %v400_v30 = vor.u32 %v398_v25, %v397_v21  ;;  %v404_v40 = vor.u32 %v402_v27, %v401_v32  ;;  %v12899_v53 = vld [vmem:[#allocation2 + $0x10] sm:$0xf]  ;;  %v1699_v59 = vshrl.u32 %v12897_v52, 16  ;;  %v1702_v60 = vshll.u32 %v12897_v52, 16  ;;  %v12906_v63 = vld [vmem:[#allocation2] sm:$0xf] }
  0x8f   : > { %10739 = vmatpush3.bf16.msra.mxu1 %v12116_v31  ;;  %11404 = vmatprep.subr.bf16.mxu0 %v12834_v38  ;;  %v484_v31 = vrot.slane %v398_v25, 7  ;;  %v536_v46 = vsel %vm12845_vm2, %v401_v32, %v485_v33  ;;  %v1708_v61 = vshll.u32 %v12899_v53, 16  ;;  %v1712_v62 = vshrl.u32 %v12899_v53, 16  ;;  %v12908_v1 = vld [vmem:[#allocation2 + $0x4] sm:$0xf] }
  0x90   : > { %11452 = vmatprep.subr.bf16.mxu1 %v12875_v29  ;;  %v519_v37 = vsel %vm12845_vm2, %v331_v2, %v400_v30  ;;  %v520_v49 = vsel %vm12845_vm2, %v334_v26, %v404_v40  ;;  %v9969_v50 = vcombine.low %v536_v46, %v536_v46  ;;  %v1720_v0 = vrot.slane %v1718_v47, 5  ;;  %v12913_v9 = vld [vmem:[#allocation2 + $0x18] sm:$0xf]  ;;  %v12917_v14 = vld [vmem:[#allocation2 + $0x1c] sm:$0xf] }
  0x91   : > { %v535_v39 = vsel %vm12845_vm2, %v397_v21, %v484_v31  ;;  %v9964_v43 = vcombine.low %v519_v37, %v519_v37  ;;  %v9965_v44 = vcombine.high %v519_v37, %v519_v37  ;;  %v9967_v56 = vcombine.low %v520_v49, %v520_v49  ;;  %v1683_v26 = vld [vmem:[#allocation2 + $0x20] sm:$0x1]  ;;  %v12937_v46 = vld [vmem:[#allocation2 + $0x10] sm:$0xf] }
  0x92   : > { %v9966_v45 = vcombine.low %v535_v39, %v535_v39  ;;  %v9968_v57 = vcombine.high %v520_v49, %v520_v49  ;;  %739 = vst [vmem:[#allocation2 + $0x44] sm:$0x1] %v9969_v50  ;;  %v832_v2 = vshrl.u32 %v12906_v63, 16  ;;  %v835_v3 = vshll.u32 %v12906_v63, 16  ;;  %v12931_v39 = vld [vmem:[#allocation2 + $0xc] sm:$0xf] }
  0x93   : > { %734 = vst [vmem:[#allocation2 + $0x30] sm:$0xf] %v9964_v43  ;;  %735 = vst [vmem:[#allocation2 + $0x34] sm:$0xf] %v9965_v44  ;;  %v1701_v5 = vrot.slane %v1699_v59, 4  ;;  %v1704_v6 = vrot.slane %v1702_v60, 5  ;;  %v10083_v18 = vcombine.low %v12897_v52, %v12899_v53  ;;  %v10019_v52 = vcombine.low %v12906_v63, %v12908_v1 }
  0x94   : > { %736 = vst [vmem:[#allocation2 + $0x38] sm:$0x1] %v9966_v45  ;;  %737 = vst [vmem:[#allocation2 + $0x3c] sm:$0xf] %v9967_v56  ;;  %v1710_v7 = vrot.slane %v1708_v61, 5  ;;  %v1714_v8 = vrot.slane %v1712_v62, 4 }
  0x95   : > { %738 = vst [vmem:[#allocation2 + $0x40] sm:$0xf] %v9968_v57  ;;  %v834_v10 = vrot.slane %v832_v2, 4  ;;  %v837_v11 = vrot.slane %v835_v3, 5  ;;  %v841_v12 = vshll.u32 %v12908_v1, 16  ;;  %v845_v13 = vshrl.u32 %v12908_v1, 16 }
  0x96   : > { %v1705_v15 = vor.u32 %v1704_v6, %v1701_v5  ;;  %v1715_v16 = vor.u32 %v1714_v8, %v1710_v7  ;;  %v853_v17 = vrot.slane %v851_v55, 5  ;;  %v1723_v23 = vshrl.u32 %v12913_v9, 16  ;;  %v12122_v57 = vld [vmem:[#allocation7 + $0x148] sm:$0xff]   ;;  %v813_v61 = vld [vmem:[#allocation2 + $0x14] sm:$0x1] }
  0x97   : > { %v838_v20 = vor.u32 %v837_v11, %v834_v10  ;;  %v843_v21 = vrot.slane %v841_v12, 5  ;;  %v847_v22 = vrot.slane %v845_v13, 4  ;;  %v1726_v27 = vshll.u32 %v12913_v9, 16  ;;  %v12948_v1 = vld [vmem:[#allocation2 + $0x24] sm:$0xf]  ;;  %v12145_v11 = vld [vmem:[#allocation7 + $0x88] sm:$0xff]  }
  0x98   : > { %v1706_v24 = vrot.slane %v1705_v15, 4  ;;  %v1716_v25 = vrot.slane %v1715_v16, 4  ;;  %v1732_v30 = vshll.u32 %v12917_v14, 16  ;;  %v1725_v33 = vrot.slane %v1723_v23, 4  ;;  %v1684_v23 = vld [vmem:[#allocation2 + $0x2c] sm:$0x1] }
  0x99   : > { %v839_v31 = vrot.slane %v838_v20, 4  ;;  %v848_v32 = vor.u32 %v847_v22, %v843_v21  ;;  %v1736_v37 = vshrl.u32 %v12917_v14, 16  ;;  %v1728_v44 = vrot.slane %v1726_v27, 5 }
  0x9a   : > { %v1711_v40 = vsel %vm12923_vm5, %v1706_v24, %v1710_v7  ;;  %v1721_v43 = vsel %vm12923_vm5, %v1716_v25, %v1720_v0  ;;  %v1734_v45 = vrot.slane %v1732_v30, 5  ;;  %v1742_v55 = vshll.u32 %v1683_v26, 16  ;;  %v12963_v24 = vld [vmem:[#allocation2 + $0x18] sm:$0xf] }
  0x9b   : > { %v10099_v47 = vcombine.low %v1711_v40, %v1721_v43  ;;  %v844_v48 = vsel %vm12923_vm5, %v839_v31, %v843_v21  ;;  %v849_v49 = vrot.slane %v848_v32, 4  ;;  %v1738_v50 = vrot.slane %v1736_v37, 4  ;;  %v12970_v43 = vld [vmem:[#allocation2 + $0x1c] sm:$0xf] }
  0x9c   : > { %v1729_v53 = vor.u32 %v1728_v44, %v1725_v33  ;;  %v856_v56 = vshrl.u32 %v12931_v39, 16  ;;  %v859_v62 = vshll.u32 %v12931_v39, 16  ;;  %v865_v0 = vshll.u32 %v12937_v46, 16  ;;  %v12132_v33 = vld [vmem:[#allocation7 + $0x158] sm:$0xff]  }
  0x9d   : > { %2691 = vmatprep.mubr.bf16.mxu0 %v10099_v47  ;;  %v854_v59 = vsel %vm12923_vm5, %v849_v49, %v853_v17  ;;  %v1739_v60 = vor.u32 %v1738_v50, %v1734_v45  ;;  %v1744_v5 = vrot.slane %v1742_v55, 5  ;;  %v869_v10 = vshrl.u32 %v12937_v46, 16  ;;  %v12957_v17 = vld [vmem:[#allocation2 + $0x28] sm:$0xf]  ;;  %v12976_v55 = vld [vmem:[#allocation2 + $0x30] sm:$0xf] }
  0x9e   : > { %v10035_v2 = vcombine.low %v844_v48, %v854_v59  ;;  %2692 = vmatmul.mubr.bf16.vlgmr.msra.gmra.mrb[0].mxu0 %v10083_v18  ;;  %v1730_v3 = vrot.slane %v1729_v53, 4  ;;  %v858_v63 = vrot.slane %v856_v56, 4  ;;  %v861_v7 = vrot.slane %v859_v62, 5  ;;  %v814_v48 = vld [vmem:[#allocation2 + $0x20] sm:$0x1] }
  0x9f   : > { %11405 = vmatpush3.bf16.msra.mxu0 %v12834_v38  ;;  %v1740_v6 = vrot.slane %v1739_v60, 4  ;;  %v867_v8 = vrot.slane %v865_v0, 5  ;;  %v2151_v12 = vrot.slane %v12889_v42, 5  ;;  %v875_v15 = vshll.u32 %v813_v61, 16  ;;  %v12127_v38 = vld [vmem:[#allocation7 + $0x150] sm:$0xff]  }
  0xa0   : > { %3157 = vmatprep.mubr.bf16.mxu1 %v10035_v2  ;;  %v1735_v13 = vsel %vm12923_vm5, %v1730_v3, %v1734_v45  ;;  %v10084_v16 = vcombine.low %v12913_v9, %v12917_v14  ;;  %11406 = vmatprep.subr.bf16.mxu0 %v12122_v57  ;;  %v862_v20 = vor.u32 %v861_v7, %v858_v63  ;;  %v871_v21 = vrot.slane %v869_v10, 4  ;;  %v12982_v61 = vld [vmem:[#allocation2 + $0x34] sm:$0xf]  ;;  %v12334_v42 = vld [vmem:[#allocation2 + $0x10] sm:$0xf] }
  0xa1   : > { %3158 = vmatmul.mubr.bf16.vlgmr.msra.gmra.mrb[0].mxu1 %v10019_v52  ;;  %v1745_v18 = vsel %vm12923_vm5, %v1740_v6, %v1744_v5  ;;  %v10020_v22 = vcombine.low %v12931_v39, %v12937_v46  ;;  %v877_v26 = vrot.slane %v875_v15, 5  ;;  %v1747_v9 = vshrl.u32 %v12948_v1, 16  ;;  %v1685_v5 = vld [vmem:[#allocation2 + $0x38] sm:$0x1]  ;;  %v12137_v63 = vld [vmem:[#allocation7 + $0x160] sm:$0xff]  }
  0xa2   : > { %v10100_v25 = vcombine.low %v1735_v13, %v1745_v18  ;;  %v1750_v14 = vshll.u32 %v12948_v1, 16  ;;  %11453 = vmatpush3.bf16.msra.mxu1 %v12875_v29  ;;  %v863_v27 = vrot.slane %v862_v20, 4  ;;  %v872_v30 = vor.u32 %v871_v21, %v867_v8  ;;  %v12151_v13 = vld [vmem:[#allocation7 + $0x90] sm:$0xff]  }
  0xa3   : > { %v1756_v31 = vshll.u32 %v12957_v17, 16  ;;  %v1760_v32 = vshrl.u32 %v12957_v17, 16  ;;  %11407 = vmatpush3.bf16.msra.mxu0 %v12122_v57  ;;  %11454 = vmatprep.subr.bf16.mxu1 %v12145_v11  ;;  %v1749_v37 = vrot.slane %v1747_v9, 4  ;;  %v1766_v40 = vshll.u32 %v1684_v23, 16 }
  0xa4   : > { %2699 = vmatprep.mubr.bf16.mxu0 %v10100_v25  ;;  %v1752_v39 = vrot.slane %v1750_v14, 5  ;;  %v880_v44 = vshrl.u32 %v12963_v24, 16  ;;  %11408 = vmatprep.subr.bf16.mxu0 %v12127_v38  ;;  %v868_v29 = vsel %vm12923_vm5, %v863_v27, %v867_v8  ;;  %v873_v45 = vrot.slane %v872_v30, 4  ;;  %v815_v27 = vld [vmem:[#allocation2 + $0x2c] sm:$0x1] }
  0xa5   : > { %v1758_v46 = vrot.slane %v1756_v31, 5  ;;  %v1762_v47 = vrot.slane %v1760_v32, 4  ;;  %v1768_v50 = vrot.slane %v1766_v40, 5  ;;  %v883_v53 = vshll.u32 %v12963_v24, 16 }
  0xa6   : > { %2700 = vmatmul.mubr.bf16.gmra.mrb[4].mxu0 %v10084_v16  ;;  %v1753_v49 = vor.u32 %v1752_v39, %v1749_v37  ;;  %v882_v52 = vrot.slane %v880_v44, 4  ;;  %11455 = vmatpush3.bf16.msra.mxu1 %v12145_v11  ;;  %v878_v56 = vsel %vm12923_vm5, %v873_v45, %v877_v26  ;;  %v889_v59 = vshll.u32 %v12970_v43, 16  ;;  %v12986_v11 = vld [vmem:[#allocation2 + $0x24] sm:$0xf] }
  0xa7   : > { %v1763_v57 = vor.u32 %v1762_v47, %v1758_v46  ;;  %v893_v60 = vshrl.u32 %v12970_v43, 16  ;;  %11409 = vmatpush3.bf16.msra.mxu0 %v12127_v38  ;;  %v10036_v62 = vcombine.low %v868_v29, %v878_v56  ;;  %v885_v2 = vrot.slane %v883_v53, 5  ;;  %11456 = vmatprep.subr.bf16.mxu1 %v12151_v13  ;;  %v13008_v47 = vld [vmem:[#allocation2 + $0x40] sm:$0xf] }
  0xa8   : > { %v1754_v0 = vrot.slane %v1753_v49, 4  ;;  %v899_v3 = vshll.u32 %v814_v48, 16  ;;  %11410 = vmatprep.subr.bf16.mxu0 %v12132_v33  ;;  %v891_v7 = vrot.slane %v889_v59, 5  ;;  %v10085_v10 = vcombine.low %v12948_v1, %v12957_v17  ;;  %v12996_v17 = vld [vmem:[#allocation2 + $0x28] sm:$0xf]  ;;  %v12149_v48 = vld [vmem:[#allocation7 + $0x170] sm:$0xff]  }
  0xa9   : > { %v1764_v6 = vrot.slane %v1763_v57, 4  ;;  %v895_v8 = vrot.slane %v893_v60, 4  ;;  %3165 = vmatprep.mubr.bf16.mxu1 %v10036_v62  ;;  %v886_v16 = vor.u32 %v885_v2, %v882_v52  ;;  %v10021_v18 = vcombine.low %v12963_v24, %v12970_v43  ;;  %v1686_v62 = vld [vmem:[#allocation2 + $0x44] sm:$0x1] }
  0xaa   : > { %v1759_v15 = vsel %vm12923_vm5, %v1754_v0, %v1758_v46  ;;  %v901_v38 = vrot.slane %v899_v3, 5  ;;  %3166 = vmatmul.mubr.bf16.gmra.mrb[4].mxu1 %v10020_v22  ;;  %v1771_v23 = vshrl.u32 %v12976_v55, 16  ;;  %v1774_v1 = vshll.u32 %v12976_v55, 16  ;;  %v12143_v22 = vld [vmem:[#allocation7 + $0x168] sm:$0xff]  }
  0xab   : > { %v1769_v20 = vsel %vm12923_vm5, %v1764_v6, %v1768_v50  ;;  %v896_v21 = vor.u32 %v895_v8, %v891_v7  ;;  %11411 = vmatpush3.bf16.msra.mxu0 %v12132_v33  ;;  %v887_v26 = vrot.slane %v886_v16, 4  ;;  %v1780_v9 = vshll.u32 %v12982_v61, 16  ;;  %11457 = vmatpush3.bf16.msra.mxu1 %v12151_v13  ;;  %v13006_v46 = vld [vmem:[#allocation2 + $0x3c] sm:$0xf]  ;;  %v13016_v6 = vld [vmem:[#allocation2 + $0x30] sm:$0xf] }
  0xac   : > { %v10101_v25 = vcombine.low %v1759_v15, %v1769_v20  ;;  %v1784_v14 = vshrl.u32 %v12982_v61, 16  ;;  %11412 = vmatprep.subr.bf16.mxu0 %v12137_v63  ;;  %v1773_v30 = vrot.slane %v1771_v23, 4  ;;  %v1776_v31 = vrot.slane %v1774_v1, 5  ;;  %v13020_v13 = vld [vmem:[#allocation2 + $0x34] sm:$0xf] }
  0xad   : > { %v897_v24 = vrot.slane %v896_v21, 4  ;;  %v1790_v32 = vshll.u32 %v1685_v5, 16  ;;  %v892_v37 = vsel %vm12923_vm5, %v887_v26, %v891_v7  ;;  %v1782_v33 = vrot.slane %v1780_v9, 5  ;;  %v816_v26 = vld [vmem:[#allocation2 + $0x38] sm:$0x1] }
  0xae   : > { %2707 = vmatprep.mubr.bf16.mxu0 %v10101_v25  ;;  %v1786_v39 = vrot.slane %v1784_v14, 4  ;;  %v904_v40 = vshrl.u32 %v12986_v11, 16  ;;  %v1777_v44 = vor.u32 %v1776_v31, %v1773_v30  ;;  %v907_v45 = vshll.u32 %v12986_v11, 16 }
  0xaf   : > { %v902_v43 = vsel %vm12923_vm5, %v897_v24, %v901_v38  ;;  %2708 = vmatmul.mubr.bf16.gmra.mrb[8].mxu0 %v10085_v10  ;;  %v1792_v29 = vrot.slane %v1790_v32, 5  ;;  %v913_v53 = vshll.u32 %v12996_v17, 16  ;;  %v917_v59 = vshrl.u32 %v12996_v17, 16 }
  0xb0   : > { %v10037_v49 = vcombine.low %v892_v37, %v902_v43  ;;  %v1787_v50 = vor.u32 %v1786_v39, %v1782_v33  ;;  %v906_v52 = vrot.slane %v904_v40, 4  ;;  %11413 = vmatpush3.bf16.msra.mxu0 %v12137_v63  ;;  %v1778_v56 = vrot.slane %v1777_v44, 4  ;;  %v13036_v43 = vld [vmem:[#allocation2 + $0x3c] sm:$0xf] }
  0xb1   : > { %v909_v57 = vrot.slane %v907_v45, 5  ;;  %v923_v60 = vshll.u32 %v815_v27, 16  ;;  %11414 = vmatprep.subr.bf16.mxu0 %v12143_v22  ;;  %v915_v2 = vrot.slane %v913_v53, 5  ;;  %v10086_v3 = vcombine.low %v12976_v55, %v12982_v61 }
  0xb2   : > { %3173 = vmatprep.mubr.bf16.mxu1 %v10037_v49  ;;  %v1788_v0 = vrot.slane %v1787_v50, 4  ;;  %v10022_v5 = vcombine.low %v12986_v11, %v12996_v17  ;;  %v1783_v63 = vsel %vm12923_vm5, %v1778_v56, %v1782_v33  ;;  %v919_v8 = vrot.slane %v917_v59, 4  ;;  %v12154_v11 = vld [vmem:[#allocation7 + $0x98] sm:$0xff]   ;;  %v13038_v50 = vld [vmem:[#allocation2 + $0x40] sm:$0xf] }
  0xb3   : > { %3174 = vmatmul.mubr.bf16.gmra.mrb[8].mxu1 %v10021_v18  ;;  %v910_v7 = vor.u32 %v909_v57, %v906_v52  ;;  %v925_v10 = vrot.slane %v923_v60, 5  ;;  %v1795_v16 = vshrl.u32 %v13006_v46, 16  ;;  %v1798_v55 = vshll.u32 %v13006_v46, 16  ;;  %11458 = vmatprep.subr.bf16.mxu1 %v12154_v11  ;;  %v12158_v52 = vld [vmem:[#allocation7 + $0xa0] sm:$0xff]  }
  0xb4   : > { %v1793_v15 = vsel %vm12923_vm5, %v1788_v0, %v1792_v29  ;;  %v1804_v61 = vshll.u32 %v13008_v47, 16  ;;  %11415 = vmatpush3.bf16.msra.mxu0 %v12143_v22  ;;  %v920_v20 = vor.u32 %v919_v8, %v915_v2  ;;  %v1808_v21 = vshrl.u32 %v13008_v47, 16  ;;  %11459 = vmatpush3.bf16.msra.mxu1 %v12154_v11  ;;  %v817_v8 = vld [vmem:[#allocation2 + $0x44] sm:$0x1] }
  0xb5   : > { %v10102_v38 = vcombine.low %v1783_v63, %v1793_v15  ;;  %v911_v18 = vrot.slane %v910_v7, 4  ;;  %11416 = vmatprep.subr.bf16.mxu0 %v12149_v48  ;;  %v1797_v23 = vrot.slane %v1795_v16, 4  ;;  %v1800_v1 = vrot.slane %v1798_v55, 5  ;;  %11460 = vmatprep.subr.bf16.mxu1 %v12158_v52 }
  0xb6   : > { %v1806_v17 = vrot.slane %v1804_v61, 5  ;;  %v1814_v25 = vshll.u32 %v1686_v62, 16  ;;  %v921_v14 = vrot.slane %v920_v20, 4  ;;  %v1810_v27 = vrot.slane %v1808_v21, 4 }
  0xb7   : > { %2715 = vmatprep.mubr.bf16.mxu0 %v10102_v38  ;;  %v916_v9 = vsel %vm12923_vm5, %v911_v18, %v915_v2  ;;  %v928_v22 = vshrl.u32 %v13016_v6, 16  ;;  %v1801_v24 = vor.u32 %v1800_v1, %v1797_v23  ;;  %v931_v31 = vshll.u32 %v13016_v6, 16  ;;  %v12156_v2 = vld [vmem:[#allocation7 + $0x178] sm:$0xff]  }
  0xb8   : > { %2716 = vmatmul.mubr.bf16.gmra.mrb[12].mxu0 %v10086_v3  ;;  %v1816_v30 = vrot.slane %v1814_v25, 5  ;;  %v937_v32 = vshll.u32 %v13020_v13, 16  ;;  %v926_v37 = vsel %vm12923_vm5, %v921_v14, %v925_v10  ;;  %v1811_v33 = vor.u32 %v1810_v27, %v1806_v17  ;;  %v12159_v3 = vld [vmem:[#allocation7 + $0xa8] sm:$0xff]   ;;  %11461 = vmatpush3.bf16.msra.mxu1 %v12158_v52 }
  0xb9   : > { %v930_v39 = vrot.slane %v928_v22, 4  ;;  %v941_v40 = vshrl.u32 %v13020_v13, 16  ;;  %11417 = vmatpush3.bf16.msra.mxu0 %v12149_v48  ;;  %v10038_v44 = vcombine.low %v916_v9, %v926_v37  ;;  %v1802_v29 = vrot.slane %v1801_v24, 4  ;;  %11462 = vmatprep.subr.bf16.mxu1 %v12159_v3 }
  0xba   : > { %v933_v45 = vrot.slane %v931_v31, 5  ;;  %v939_v49 = vrot.slane %v937_v32, 5  ;;  %v1812_v53 = vrot.slane %v1811_v33, 4  ;;  %v947_v57 = vshll.u32 %v816_v26, 16  ;;  %11418 = vmatprep.subr.bf16.mxu0 %v12156_v2 }
  0xbb   : > { %v943_v56 = vrot.slane %v941_v40, 4  ;;  %v10087_v59 = vcombine.low %v13006_v46, %v13008_v47  ;;  %3181 = vmatprep.mubr.bf16.mxu1 %v10038_v44  ;;  %v1807_v60 = vsel %vm12923_vm5, %v1802_v29, %v1806_v17  ;;  %v10023_v48 = vcombine.low %v13016_v6, %v13020_v13 }
  0xbc   : > { %v934_v62 = vor.u32 %v933_v45, %v930_v39  ;;  %v405_v0 = vrot.slane %v337_v41, 7  ;;  %3182 = vmatmul.mubr.bf16.gmra.mrb[12].mxu1 %v10022_v5  ;;  %v1817_v63 = vsel %vm12923_vm5, %v1812_v53, %v1816_v30  ;;  %v949_v46 = vrot.slane %v947_v57, 5 }
  0xbd   : > { %v944_v7 = vor.u32 %v943_v56, %v939_v49  ;;  %v486_v47 = vrot.slane %v406_v51, 7  ;;  %v10103_v10 = vcombine.low %v1807_v60, %v1817_v63  ;;  %v952_v13 = vshrl.u32 %v13036_v43, 16  ;;  %11419 = vmatpush3.bf16.msra.mxu0 %v12156_v2  ;;  %11463 = vmatpush3.bf16.msra.mxu1 %v12159_v3 }
  0xbe   : > { %v935_v15 = vrot.slane %v934_v62, 4  ;;  %v408_v6 = vor.u32 %v406_v51, %v405_v0  ;;  %v955_v55 = vshll.u32 %v13036_v43, 16  ;;  %v961_v61 = vshll.u32 %v13038_v50, 16  ;;  %v12162_v62 = vld [vmem:[#allocation7 + $0xb0] sm:$0xff]  }
  0xbf   : > { %v945_v16 = vrot.slane %v944_v7, 4  ;;  %v537_v5 = vsel %vm12845_vm2, %v405_v0, %v486_v47  ;;  %2723 = vmatprep.mubr.bf16.mxu0 %v10103_v10  ;;  %v954_v18 = vrot.slane %v952_v13, 4  ;;  %v965_v26 = vshrl.u32 %v13038_v50, 16  ;;  %11464 = vmatprep.subr.bf16.mxu1 %v12162_v62 }
  0xc0   : > { %v940_v11 = vsel %vm12923_vm5, %v935_v15, %v939_v49  ;;  %v521_v51 = vsel %vm12845_vm2, %v337_v41, %v408_v6  ;;  %v9972_v38 = vcombine.low %v537_v5, %v537_v5  ;;  %2724 = vmatmul.mubr.bf16.gmra.mrb[16].mxu0 %v10087_v59  ;;  %v957_v1 = vrot.slane %v955_v55, 5 }
  0xc1   : > { %v950_v20 = vsel %vm12923_vm5, %v945_v16, %v949_v46  ;;  %v9970_v21 = vcombine.low %v521_v51, %v521_v51  ;;  %v9971_v23 = vcombine.high %v521_v51, %v521_v51  ;;  %v963_v25 = vrot.slane %v961_v61, 5  ;;  %11465 = vmatpush3.bf16.msra.mxu1 %v12162_v62  ;;  %v12163_v61 = vld [vmem:[#allocation7 + $0xb8] sm:$0xff]  }
  0xc2   : > { %v10039_v17 = vcombine.low %v940_v11, %v950_v20  ;;  %742 = vst [vmem:[#allocation2 + $0x50] sm:$0x1] %v9972_v38  ;;  %v971_v9 = vshll.u32 %v817_v8, 16  ;;  %v958_v28 = vor.u32 %v957_v1, %v954_v18  ;;  %v409_v41 = vrot.slane %v340_v58, 7  ;;  %11466 = vmatprep.subr.bf16.mxu1 %v12163_v61 }
  0xc3   : > { %740 = vst [vmem:[#allocation2 + $0x48] sm:$0xf] %v9970_v21  ;;  %741 = vst [vmem:[#allocation2 + $0x4c] sm:$0xf] %v9971_v23  ;;  %v487_v14 = vrot.slane %v410_v4, 7  ;;  %v967_v27 = vrot.slane %v965_v26, 4  ;;  %v10024_v45 = vcombine.low %v13036_v43, %v13038_v50 }
  0xc4   : > { %3189 = vmatprep.mubr.bf16.mxu1 %v10039_v17  ;;  %v973_v22 = vrot.slane %v971_v9, 5  ;;  %v343_v24 = vshrl.u32 %v12879_v35, 16  ;;  %v414_v30 = vshll.u32 %v12879_v35, 16  ;;  %v959_v31 = vrot.slane %v958_v28, 4 }
  0xc5   : > { %3190 = vmatmul.mubr.bf16.gmra.mrb[16].mxu1 %v10023_v48  ;;  %v412_v32 = vor.u32 %v410_v4, %v409_v41  ;;  %v538_v37 = vsel %vm12845_vm2, %v409_v41, %v487_v14  ;;  %v346_v33 = vshrl.u32 %v12881_v36, 16  ;;  %v968_v39 = vor.u32 %v967_v27, %v963_v25 }
  0xc6   : > { %v9975_v40 = vcombine.low %v538_v37, %v538_v37  ;;  %v413_v44 = vrot.slane %v343_v24, 7  ;;  %v488_v29 = vrot.slane %v414_v30, 7  ;;  %v418_v49 = vshll.u32 %v12881_v36, 16  ;;  %11467 = vmatpush3.bf16.msra.mxu1 %v12163_v61 }
  0xc7   : > { %v522_v35 = vsel %vm12845_vm2, %v340_v58, %v412_v32  ;;  %v13087_v4 = vrot.slane %v346_v33, 7  ;;  %v969_v52 = vrot.slane %v968_v39, 4  ;;  %v964_v43 = vsel %vm12923_vm5, %v959_v31, %v963_v25 }
  0xc8   : > { %v9973_v53 = vcombine.low %v522_v35, %v522_v35  ;;  %v9974_v56 = vcombine.high %v522_v35, %v522_v35  ;;  %745 = vst [vmem:[#allocation2 + $0x5c] sm:$0x1] %v9975_v40  ;;  %v416_v57 = vor.u32 %v414_v30, %v413_v44  ;;  %v13094_v34 = vsel %vm12845_vm2, %v413_v44, %v488_v29 }
  0xc9   : > { %v1687_v59 = vld [vmem:[#allocation2 + $0x50] sm:$0x1]  ;;  %v13097_v58 = vor.u32 %v418_v49, %v13087_v4  ;;  %v13099_v60 = vrot.slane %v418_v49, 7  ;;  %v974_v3 = vsel %vm12923_vm5, %v969_v52, %v973_v22 }
  0xca   : > { %v818_v50 = vld [vmem:[#allocation2 + $0x50] sm:$0x1]  ;;  %v13101_v48 = vld [vmem:[#allocation2 + $0x48] sm:$0xf]  ;;  %v13103_v0 = vld [vmem:[#allocation2 + $0x4c] sm:$0xf]  ;;  %v523_v7 = vsel %vm12845_vm2, %v343_v24, %v416_v57  ;;  %v10040_v13 = vcombine.low %v964_v43, %v974_v3 }
  0xcb   : > { %v1838_v2 = vshll.u32 %v1687_v59, 16  ;;  %743 = vst [vmem:[#allocation2 + $0x54] sm:$0xf] %v9973_v53  ;;  %744 = vst [vmem:[#allocation2 + $0x58] sm:$0xf] %v9974_v56  ;;  %v995_v63 = vshll.u32 %v818_v50, 16  ;;  %v10088_v16 = vcombine.low %v13101_v48, %v13103_v0  ;;  %v9976_v37 = vcombine.low %v523_v7, %v523_v7 }
  0xcc   : > { %v1819_v46 = vshrl.u32 %v13101_v48, 16  ;;  %v1822_v47 = vshll.u32 %v13101_v48, 16  ;;  %v1828_v8 = vshll.u32 %v13103_v0, 16  ;;  %v1832_v10 = vshrl.u32 %v13103_v0, 16  ;;  %v13113_v15 = vld [vmem:[#allocation2 + $0x48] sm:$0xf]  ;;  %3197 = vmatprep.mubr.bf16.mxu1 %v10040_v13 }
  0xcd   : > { %v1840_v6 = vrot.slane %v1838_v2, 5  ;;  %v13117_v5 = vld [vmem:[#allocation2 + $0x4c] sm:$0xf]  ;;  %v976_v55 = vshrl.u32 %v13113_v15, 16  ;;  %v979_v21 = vshll.u32 %v13113_v15, 16  ;;  %3198 = vmatmul.mubr.bf16.gmra.mrb[20].mxu1 %v10024_v45  ;;  %v997_v9 = vrot.slane %v995_v63, 5 }
  0xce   : > { %v1821_v11 = vrot.slane %v1819_v46, 4  ;;  %v1824_v51 = vrot.slane %v1822_v47, 5  ;;  %v1830_v38 = vrot.slane %v1828_v8, 5  ;;  %v1834_v18 = vrot.slane %v1832_v10, 4  ;;  %746 = vst [vmem:[#allocation2 + $0x60] sm:$0xf] %v9976_v37 }
  0xcf   : > { %v978_v20 = vrot.slane %v976_v55, 4  ;;  %v985_v23 = vshll.u32 %v13117_v5, 16  ;;  %v989_v1 = vshrl.u32 %v13117_v5, 16  ;;  %v1688_v26 = vld [vmem:[#allocation2 + $0x5c] sm:$0x1]  ;;  %v10025_v28 = vcombine.low %v13113_v15, %v13117_v5  ;;  %v12164_v57 = vld [vmem:[#allocation7 + $0x1c0] sm:$0xff]  }
  0xd0   : > { %v1825_v17 = vor.u32 %v1824_v51, %v1821_v11  ;;  %v1835_v25 = vor.u32 %v1834_v18, %v1830_v38  ;;  %v1862_v41 = vshll.u32 %v1688_v26, 16  ;;  %v981_v14 = vrot.slane %v979_v21, 5  ;;  %10860 = vmatprep.subr.bf16.mxu0 %v12164_v57  ;;  %v819_v47 = vld [vmem:[#allocation2 + $0x5c] sm:$0x1] }
  0xd1   : > { %v987_v27 = vrot.slane %v985_v23, 5  ;;  %v991_v22 = vrot.slane %v989_v1, 4  ;;  %v9977_v39 = vcombine.high %v523_v7, %v523_v7  ;;  %v9978_v46 = vcombine.low %v13094_v34, %v13094_v34 }
  0xd2   : > { %v1826_v24 = vrot.slane %v1825_v17, 4  ;;  %v1836_v30 = vrot.slane %v1835_v25, 4  ;;  %v13125_v31 = vld [vmem:[#allocation2 + $0x54] sm:$0xf]  ;;  %v13127_v32 = vld [vmem:[#allocation2 + $0x58] sm:$0xf]  ;;  %v982_v53 = vor.u32 %v981_v14, %v978_v20  ;;  %v524_v5 = vsel %vm12845_vm2, %v346_v33, %v13097_v58 }
  0xd3   : > { %v1843_v40 = vshrl.u32 %v13125_v31, 16  ;;  %v1846_v44 = vshll.u32 %v13125_v31, 16  ;;  %v1852_v29 = vshll.u32 %v13127_v32, 16  ;;  %v1856_v45 = vshrl.u32 %v13127_v32, 16  ;;  %747 = vst [vmem:[#allocation2 + $0x64] sm:$0xf] %v9977_v39 }
  0xd4   : > { %v1831_v35 = vsel %vm12923_vm5, %v1826_v24, %v1830_v38  ;;  %v1841_v49 = vsel %vm12923_vm5, %v1836_v30, %v1840_v6  ;;  %v1864_v52 = vrot.slane %v1862_v41, 5  ;;  %v13137_v56 = vld [vmem:[#allocation2 + $0x54] sm:$0xf]  ;;  %v13139_v48 = vld [vmem:[#allocation2 + $0x58] sm:$0xf]  ;;  %v983_v2 = vrot.slane %v982_v53, 4 }
  0xd5   : > { %v10104_v59 = vcombine.low %v1831_v35, %v1841_v49  ;;  %v1845_v43 = vrot.slane %v1843_v40, 4  ;;  %v1848_v50 = vrot.slane %v1846_v44, 5  ;;  %v1854_v62 = vrot.slane %v1852_v29, 5  ;;  %748 = vst [vmem:[#allocation2 + $0x68] sm:$0x1] %v9978_v46  ;;  %v291_v24 = vld [vmem:[%s12820_s6 + $0x90] sm:$0xff] }
  0xd6   : > { %v1858_v0 = vrot.slane %v1856_v45, 4  ;;  %v992_v3 = vor.u32 %v991_v22, %v987_v27  ;;  %v10089_v63 = vcombine.low %v13125_v31, %v13127_v32  ;;  %v1000_v8 = vshrl.u32 %v13137_v56, 16  ;;  %v13155_v17 = vld [vmem:[#allocation2 + $0x60] sm:$0xf]  ;;  %v292_v30 = vld [vmem:[%s12820_s6 + $0x98] sm:$0xff] }
  0xd7   : > { %2731 = vmatprep.mubr.bf16.mxu0 %v10104_v59  ;;  %v1849_v7 = vor.u32 %v1848_v50, %v1845_v43  ;;  %v1003_v10 = vshll.u32 %v13137_v56, 16  ;;  %v988_v13 = vsel %vm12923_vm5, %v983_v2, %v987_v27  ;;  %v1009_v61 = vshll.u32 %v13139_v48, 16  ;;  %v13172_v53 = vld [vmem:[#allocation2 + $0x60] sm:$0xf] }
  0xd8   : > { %2732 = vmatmul.mubr.bf16.gmra.mrb[20].mxu0 %v10088_v16  ;;  %v1859_v6 = vor.u32 %v1858_v0, %v1854_v62  ;;  %v993_v55 = vrot.slane %v992_v3, 4  ;;  %v1002_v51 = vrot.slane %v1000_v8, 4  ;;  %v1013_v34 = vshrl.u32 %v13139_v48, 16 }
  0xd9   : > { %v1850_v11 = vrot.slane %v1849_v7, 4  ;;  %v1005_v38 = vrot.slane %v1003_v10, 5  ;;  %v1011_v16 = vrot.slane %v1009_v61, 5  ;;  %v1019_v21 = vshll.u32 %v819_v47, 16 }
  0xda   : > { %v1860_v18 = vrot.slane %v1859_v6, 4  ;;  %v998_v20 = vsel %vm12923_vm5, %v993_v55, %v997_v9  ;;  %v13157_v25 = vld [vmem:[#allocation2 + $0x64] sm:$0xf]  ;;  %v1015_v41 = vrot.slane %v1013_v34, 4  ;;  %v1867_v27 = vshrl.u32 %v13155_v17, 16  ;;  %v293_v6 = vld [vmem:[%s12820_s6 + $0xa0] sm:$0xff] }
  0xdb   : > { %v1855_v23 = vsel %vm12923_vm5, %v1850_v11, %v1854_v62  ;;  %v10041_v1 = vcombine.low %v988_v13, %v998_v20  ;;  %v1006_v26 = vor.u32 %v1005_v38, %v1002_v51  ;;  %v1870_v22 = vshll.u32 %v13155_v17, 16  ;;  %v13187_v50 = vld [vmem:[#allocation2 + $0x64] sm:$0xf]  ;;  %v294_v13 = vld [vmem:[%s12820_s6 + $0xa8] sm:$0xff] }
  0xdc   : > { %v1865_v14 = vsel %vm12923_vm5, %v1860_v18, %v1864_v52  ;;  %v1876_v9 = vshll.u32 %v13157_v25, 16  ;;  %v1880_v32 = vshrl.u32 %v13157_v25, 16  ;;  %v1016_v39 = vor.u32 %v1015_v41, %v1011_v16  ;;  %v1689_v59 = vld [vmem:[#allocation2 + $0x68] sm:$0x1] }
  0xdd   : > { %v10105_v31 = vcombine.low %v1855_v23, %v1865_v14  ;;  %3205 = vmatprep.mubr.bf16.mxu1 %v10041_v1  ;;  %v1007_v37 = vrot.slane %v1006_v26, 4  ;;  %v1869_v40 = vrot.slane %v1867_v27, 4  ;;  %v1872_v44 = vrot.slane %v1870_v22, 5  ;;  %v820_v62 = vld [vmem:[#allocation2 + $0x68] sm:$0x1]  ;;  %v295_v26 = vld [vmem:[%s12820_s6 + $0xb0] sm:$0xff] }
  0xde   : > { %3206 = vmatmul.mubr.bf16.gmra.mrb[24].mxu1 %v10025_v28  ;;  %v1878_v29 = vrot.slane %v1876_v9, 5  ;;  %v1021_v45 = vrot.slane %v1019_v21, 5  ;;  %v1882_v35 = vrot.slane %v1880_v32, 4  ;;  %v1017_v52 = vrot.slane %v1016_v39, 4  ;;  %v296_v41 = vld [vmem:[%s12820_s6 + $0xb8] sm:$0xff] }
  0xdf   : > { %2739 = vmatprep.mubr.bf16.mxu0 %v10105_v31  ;;  %v1012_v49 = vsel %vm12923_vm5, %v1007_v37, %v1011_v16  ;;  %v13174_v57 = vpack.c.bf16 %v292_v30, %v291_v24  ;;  %v1873_v43 = vor.u32 %v1872_v44, %v1869_v40  ;;  %v10026_v15 = vcombine.low %v13137_v56, %v13139_v48  ;;  %v13209_v27 = vld [vmem:[#allocation2 + $0x8] sm:$0x1] }
  0xe0   : > { %2740 = vmatmul.mubr.bf16.gmra.mrb[24].mxu0 %v10089_v63  ;;  %v540_v28 = vsel %vm12845_vm2, %v13087_v4, %v13099_v60  ;;  %v1883_v0 = vor.u32 %v1882_v35, %v1878_v29  ;;  %v1886_v2 = vshll.u32 %v1689_v59, 16  ;;  %v1022_v3 = vsel %vm12923_vm5, %v1017_v52, %v1021_v45 }
  0xe1   : > { %v9979_v56 = vcombine.low %v524_v5, %v524_v5  ;;  %v1874_v48 = vrot.slane %v1873_v43, 4  ;;  %v10042_v36 = vcombine.low %v1012_v49, %v1022_v3  ;;  %v9980_v63 = vcombine.high %v524_v5, %v524_v5 }
  0xe2   : > { %v9981_v33 = vcombine.low %v540_v28, %v540_v28  ;;  %v1884_v58 = vrot.slane %v1883_v0, 4  ;;  %v1888_v7 = vrot.slane %v1886_v2, 5  ;;  %v1024_v4 = vshrl.u32 %v13172_v53, 16 }
  0xe3   : > { %749 = vst [vmem:[#allocation2 + $0x6c] sm:$0xf] %v9979_v56  ;;  %v1027_v60 = vshll.u32 %v13172_v53, 16  ;;  %v1879_v46 = vsel %vm12923_vm5, %v1874_v48, %v1878_v29  ;;  %3213 = vmatprep.mubr.bf16.mxu1 %v10042_v36  ;;  %750 = vst [vmem:[#allocation2 + $0x70] sm:$0xf] %v9980_v63  ;;  %v1033_v47 = vshll.u32 %v13187_v50, 16  ;;  %v10090_v61 = vcombine.low %v13155_v17, %v13157_v25 }
  0xe4   : > { %751 = vst [vmem:[#allocation2 + $0x74] sm:$0x1] %v9981_v33  ;;  %v1037_v8 = vshrl.u32 %v13187_v50, 16  ;;  %v1043_v10 = vshll.u32 %v820_v62, 16  ;;  %v1889_v55 = vsel %vm12923_vm5, %v1884_v58, %v1888_v7  ;;  %v1026_v11 = vrot.slane %v1024_v4, 4  ;;  %v297_v58 = vld [vmem:[%s12820_s6 + $0xc0] sm:$0xff] }
  0xe5   : > { %v1029_v51 = vrot.slane %v1027_v60, 5  ;;  %v10106_v38 = vcombine.low %v1879_v46, %v1889_v55  ;;  %v1035_v34 = vrot.slane %v1033_v47, 5  ;;  %v349_v21 = vshrl.u32 %v13174_v57, 16  ;;  %v298_v7 = vld [vmem:[%s12820_s6 + $0xc8] sm:$0xff] }
  0xe6   : > { %3214 = vmatmul.mubr.bf16.gmra.mrb[28].mxu1 %v10026_v15  ;;  %v1039_v18 = vrot.slane %v1037_v8, 4  ;;  %v1045_v20 = vrot.slane %v1043_v10, 5  ;;  %v422_v23 = vshll.u32 %v13174_v57, 16  ;;  %v13205_v1 = vpack.c.bf16 %v294_v13, %v293_v6  ;;  %v299_v8 = vld [vmem:[%s12820_s6 + $0xd0] sm:$0xff]  ;;  %v300_v10 = vld [vmem:[%s12820_s6 + $0xd8] sm:$0xff] }
  0xe7   : > { %v1030_v16 = vor.u32 %v1029_v51, %v1026_v11  ;;  %2747 = vmatprep.mubr.bf16.mxu0 %v10106_v38  ;;  %v1287_v17 = vrot.slane %v13209_v27, 5  ;;  %v10027_v22 = vcombine.low %v13172_v53, %v13187_v50  ;;  %v421_v9 = vrot.slane %v349_v21, 7 }
  0xe8   : > { %v1040_v14 = vor.u32 %v1039_v18, %v1035_v34  ;;  %2748 = vmatmul.mubr.bf16.gmra.mrb[28].mxu0 %v10090_v61  ;;  %v490_v31 = vrot.slane %v422_v23, 7  ;;  %v352_v32 = vshrl.u32 %v13205_v1, 16  ;;  %v13217_v37 = vpack.c.bf16 %v296_v41, %v295_v26  ;;  %v13248_v18 = vld [vmem:[#allocation7 + $0x200] sm:$0xff]  }
  0xe9   : > { %v1031_v25 = vrot.slane %v1030_v16, 4  ;;  %v424_v35 = vor.u32 %v422_v23, %v421_v9  ;;  %v426_v50 = vshll.u32 %v13205_v1, 16  ;;  %11500 = vmatprep.subr.bf16.mxu1 %v13248_v18 }
  0xea   : > { %v13214_v24 = vld [vmem:[#allocation2 + $0x6c] sm:$0xf]  ;;  %v1041_v30 = vrot.slane %v1040_v14, 4  ;;  %v13219_v39 = vld [vmem:[#allocation2 + $0x70] sm:$0xf]  ;;  %v541_v36 = vsel %vm12845_vm2, %v421_v9, %v490_v31  ;;  %v425_v14 = vrot.slane %v352_v32, 7 }
  0xeb   : > { %v1690_v40 = vld [vmem:[#allocation2 + $0x74] sm:$0x1]  ;;  %v1891_v44 = vshrl.u32 %v13214_v24, 16  ;;  %v1894_v29 = vshll.u32 %v13214_v24, 16  ;;  %v1036_v45 = vsel %vm12923_vm5, %v1031_v25, %v1035_v34  ;;  %v1900_v49 = vshll.u32 %v13219_v39, 16 }
  0xec   : > { %v1904_v52 = vshrl.u32 %v13219_v39, 16  ;;  %v1910_v53 = vshll.u32 %v1690_v40, 16  ;;  %v1046_v57 = vsel %vm12923_vm5, %v1041_v30, %v1045_v20  ;;  %v13229_v59 = vld [vmem:[#allocation2 + $0x6c] sm:$0xf]  ;;  %v13231_v28 = vld [vmem:[#allocation2 + $0x70] sm:$0xf]  ;;  %v525_v3 = vsel %vm12845_vm2, %v349_v21, %v424_v35 }
  0xed   : > { %v1893_v43 = vrot.slane %v1891_v44, 4  ;;  %v1896_v15 = vrot.slane %v1894_v29, 5  ;;  %v10043_v5 = vcombine.low %v1036_v45, %v1046_v57  ;;  %v1902_v62 = vrot.slane %v1900_v49, 5  ;;  %v821_v56 = vld [vmem:[#allocation2 + $0x74] sm:$0x1] }
  0xee   : > { %v1906_v0 = vrot.slane %v1904_v52, 4  ;;  %v1912_v2 = vrot.slane %v1910_v53, 5  ;;  %v9982_v63 = vcombine.low %v525_v3, %v525_v3  ;;  %v9983_v33 = vcombine.high %v525_v3, %v525_v3 }
  0xef   : > { %v1897_v48 = vor.u32 %v1896_v15, %v1893_v43  ;;  %3221 = vmatprep.mubr.bf16.mxu1 %v10043_v5  ;;  %v9984_v60 = vcombine.low %v541_v36, %v541_v36  ;;  %v1048_v46 = vshrl.u32 %v13229_v59, 16  ;;  %v1051_v47 = vshll.u32 %v13229_v59, 16 }
  0xf0   : > { %v1907_v4 = vor.u32 %v1906_v0, %v1902_v62  ;;  %3222 = vmatmul.mubr.bf16.gmra.mrb[32].mxu1 %v10027_v22  ;;  %752 = vst [vmem:[#allocation2 + $0x78] sm:$0xf] %v9982_v63  ;;  %753 = vst [vmem:[#allocation2 + $0x7c] sm:$0xf] %v9983_v33  ;;  %v1057_v13 = vshll.u32 %v13231_v28, 16  ;;  %v1061_v55 = vshrl.u32 %v13231_v28, 16  ;;  %v13246_v34 = vpack.c.bf16 %v298_v7, %v297_v58 }
  0xf1   : > { %v1898_v6 = vrot.slane %v1897_v48, 4  ;;  %v1067_v61 = vshll.u32 %v821_v56, 16  ;;  %754 = vst [vmem:[#allocation2 + $0x80] sm:$0x1] %v9984_v60  ;;  %v1050_v51 = vrot.slane %v1048_v46, 4  ;;  %v1053_v38 = vrot.slane %v1051_v47, 5 }
  0xf2   : > { %v1908_v11 = vrot.slane %v1907_v4, 4  ;;  %v10091_v16 = vcombine.low %v13214_v24, %v13219_v39  ;;  %v1059_v21 = vrot.slane %v1057_v13, 5  ;;  %v1063_v23 = vrot.slane %v1061_v55, 4  ;;  %v301_v22 = vld [vmem:[%s12820_s6 + $0xe0] sm:$0xff]  ;;  %v302_v24 = vld [vmem:[%s12820_s6 + $0xe8] sm:$0xff]  ;;  %v303_v33 = vld [vmem:[%s12820_s6 + $0xf0] sm:$0xff] }
  0xf3   : > { %v1903_v20 = vsel %vm12923_vm5, %v1898_v6, %v1902_v62  ;;  %v1054_v41 = vor.u32 %v1053_v38, %v1050_v51  ;;  %v491_v25 = vrot.slane %v426_v50, 7  ;;  %v355_v31 = vshrl.u32 %v13217_v37, 16  ;;  %v304_v58 = vld [vmem:[%s12820_s6 + $0xf8] sm:$0xff] }
  0xf4   : > { %v1913_v26 = vsel %vm12923_vm5, %v1908_v11, %v1912_v2  ;;  %v1064_v30 = vor.u32 %v1063_v23, %v1059_v21  ;;  %v13261_v40 = vpack.c.bf16 %v300_v10, %v299_v8  ;;  %v1069_v44 = vrot.slane %v1067_v61, 5 }
  0xf5   : > { %v10107_v9 = vcombine.low %v1903_v20, %v1913_v26  ;;  %v1055_v39 = vrot.slane %v1054_v41, 4  ;;  %v428_v29 = vor.u32 %v426_v50, %v425_v14  ;;  %v542_v45 = vsel %vm12845_vm2, %v425_v14, %v491_v25 }
  0xf6   : > { %v1065_v35 = vrot.slane %v1064_v30, 4  ;;  %v9987_v49 = vcombine.low %v542_v45, %v542_v45  ;;  %v429_v52 = vrot.slane %v355_v31, 7  ;;  %v430_v53 = vshll.u32 %v13217_v37, 16 }
  0xf7   : > { %2755 = vmatprep.mubr.bf16.mxu0 %v10107_v9  ;;  %v13269_v57 = vld [vmem:[#allocation2 + $0x78] sm:$0xf]  ;;  %v13271_v43 = vld [vmem:[#allocation2 + $0x7c] sm:$0xf]  ;;  %v1060_v15 = vsel %vm12923_vm5, %v1055_v39, %v1059_v21  ;;  %v10028_v5 = vcombine.low %v13229_v59, %v13231_v28  ;;  %v526_v50 = vsel %vm12845_vm2, %v352_v32, %v428_v29  ;;  %v13283_v0 = vpack.c.bf16 %v302_v24, %v301_v22 }
  0xf8   : > { %2756 = vmatmul.mubr.bf16.gmra.mrb[32].mxu0 %v10091_v16  ;;  %v13281_v62 = vld [vmem:[#allocation2 + $0x78] sm:$0xf]  ;;  %v1691_v2 = vld [vmem:[#allocation2 + $0x80] sm:$0x1]  ;;  %v1915_v3 = vshrl.u32 %v13269_v57, 16  ;;  %v1918_v56 = vshll.u32 %v13269_v57, 16  ;;  %v1070_v1 = vsel %vm12923_vm5, %v1065_v35, %v1069_v44  ;;  %v9985_v28 = vcombine.low %v526_v50, %v526_v50 }
  0xf9   : > { %v1924_v48 = vshll.u32 %v13271_v43, 16  ;;  %v1928_v36 = vshrl.u32 %v13271_v43, 16  ;;  %757 = vst [vmem:[#allocation2 + $0x8c] sm:$0x1] %v9987_v49  ;;  %v1934_v59 = vshll.u32 %v1691_v2, 16  ;;  %v492_v63 = vrot.slane %v430_v53, 7 }
  0xfa   : > { %v13291_v32 = vld [vmem:[#allocation2 + $0x7c] sm:$0xf]  ;;  %v1917_v7 = vrot.slane %v1915_v3, 4  ;;  %v1920_v4 = vrot.slane %v1918_v56, 5  ;;  %v822_v47 = vld [vmem:[#allocation2 + $0x80] sm:$0x1]  ;;  %v10044_v10 = vcombine.low %v1060_v15, %v1070_v1  ;;  %v9986_v6 = vcombine.high %v526_v50, %v526_v50 }
  0xfb   : > { %v1926_v60 = vrot.slane %v1924_v48, 5  ;;  %v1930_v46 = vrot.slane %v1928_v36, 4  ;;  %v1936_v8 = vrot.slane %v1934_v59, 5  ;;  %755 = vst [vmem:[#allocation2 + $0x84] sm:$0xf] %v9985_v28  ;;  %v1072_v13 = vshrl.u32 %v13281_v62, 16 }
  0xfc   : > { %v1921_v55 = vor.u32 %v1920_v4, %v1917_v7  ;;  %v1075_v11 = vshll.u32 %v13281_v62, 16  ;;  %v1081_v51 = vshll.u32 %v13291_v32, 16  ;;  %3229 = vmatprep.mubr.bf16.mxu1 %v10044_v10  ;;  %756 = vst [vmem:[#allocation2 + $0x88] sm:$0xf] %v9986_v6  ;;  %v1085_v20 = vshrl.u32 %v13291_v32, 16 }
  0xfd   : > { %v1931_v61 = vor.u32 %v1930_v46, %v1926_v60  ;;  %v1074_v38 = vrot.slane %v1072_v13, 4  ;;  %v1091_v16 = vshll.u32 %v822_v47, 16  ;;  %v13299_v21 = vpack.c.bf16 %v304_v58, %v303_v33  ;;  %3230 = vmatmul.mubr.bf16.gmra.mrb[36].mxu1 %v10028_v5 }
  0xfe   : > { %v1922_v23 = vrot.slane %v1921_v55, 4  ;;  %v1077_v41 = vrot.slane %v1075_v11, 5  ;;  %v1083_v14 = vrot.slane %v1081_v51, 5  ;;  %v1087_v25 = vrot.slane %v1085_v20, 4 }
  0xff   : > { %v1932_v26 = vrot.slane %v1931_v61, 4  ;;  %v432_v22 = vor.u32 %v430_v53, %v429_v52  ;;  %v543_v9 = vsel %vm12845_vm2, %v429_v52, %v492_v63  ;;  %v358_v30 = vshrl.u32 %v13246_v34, 16 }
 0x100   : > { %v1927_v24 = vsel %vm12923_vm5, %v1922_v23, %v1926_v60  ;;  %v10092_v44 = vcombine.low %v13269_v57, %v13271_v43  ;;  %v1692_v29 = vld [vmem:[#allocation2 + $0x8c] sm:$0x1]  ;;  %v1078_v45 = vor.u32 %v1077_v41, %v1074_v38  ;;  %v1088_v49 = vor.u32 %v1087_v25, %v1083_v14 }
 0x101   : > { %v1937_v39 = vsel %vm12923_vm5, %v1932_v26, %v1936_v8  ;;  %v527_v52 = vsel %vm12845_vm2, %v355_v31, %v432_v22  ;;  %v9990_v53 = vcombine.low %v543_v9, %v543_v9  ;;  %v823_v15 = vld [vmem:[#allocation2 + $0x8c] sm:$0x1]  ;;  %v1093_v2 = vrot.slane %v1091_v16, 5 }
 0x102   : > { %v10108_v35 = vcombine.low %v1927_v24, %v1937_v39  ;;  %v13314_v5 = vld [vmem:[#allocation2 + $0x84] sm:$0xf]  ;;  %v1079_v50 = vrot.slane %v1078_v45, 4  ;;  %v9988_v3 = vcombine.low %v527_v52, %v527_v52  ;;  %v9989_v56 = vcombine.high %v527_v52, %v527_v52 }
 0x103   : > { %v13316_v48 = vld [vmem:[#allocation2 + $0x84] sm:$0xf]  ;;  %v1939_v57 = vshrl.u32 %v13314_v5, 16  ;;  %v1942_v43 = vshll.u32 %v13314_v5, 16  ;;  %v1089_v36 = vrot.slane %v1088_v49, 4  ;;  %v1958_v59 = vshll.u32 %v1692_v29, 16 }
 0x104   : > { %2763 = vmatprep.mubr.bf16.mxu0 %v10108_v35  ;;  %760 = vst [vmem:[#allocation2 + $0x98] sm:$0x1] %v9990_v53  ;;  %v1096_v37 = vshrl.u32 %v13316_v48, 16  ;;  %v13321_v31 = vld [vmem:[#allocation2 + $0x88] sm:$0xf]  ;;  %v1084_v1 = vsel %vm12923_vm5, %v1079_v50, %v1083_v14  ;;  %v1099_v28 = vshll.u32 %v13316_v48, 16  ;;  %v10029_v47 = vcombine.low %v13281_v62, %v13291_v32 }
 0x105   : > { %2764 = vmatmul.mubr.bf16.gmra.mrb[36].mxu0 %v10092_v44  ;;  %758 = vst [vmem:[#allocation2 + $0x90] sm:$0xf] %v9988_v3  ;;  %759 = vst [vmem:[#allocation2 + $0x94] sm:$0xf] %v9989_v56  ;;  %v1115_v63 = vshll.u32 %v823_v15, 16  ;;  %v1941_v33 = vrot.slane %v1939_v57, 4  ;;  %v1094_v46 = vsel %vm12923_vm5, %v1089_v36, %v1093_v2  ;;  %v10093_v39 = vcombine.low %v13314_v5, %v13321_v31 }
 0x106   : > { %v1944_v58 = vrot.slane %v1942_v43, 5  ;;  %v1948_v7 = vshll.u32 %v13321_v31, 16  ;;  %v1952_v4 = vshrl.u32 %v13321_v31, 16  ;;  %v13328_v60 = vld [vmem:[#allocation2 + $0x88] sm:$0xf]  ;;  %v1098_v8 = vrot.slane %v1096_v37, 4 }
 0x107   : > { %v1101_v10 = vrot.slane %v1099_v28, 5  ;;  %v10045_v61 = vcombine.low %v1084_v1, %v1094_v46  ;;  %v1960_v11 = vrot.slane %v1958_v59, 5  ;;  %v1105_v38 = vshll.u32 %v13328_v60, 16 }
 0x108   : > { %v1945_v6 = vor.u32 %v1944_v58, %v1941_v33  ;;  %v1950_v13 = vrot.slane %v1948_v7, 5  ;;  %v1954_v55 = vrot.slane %v1952_v4, 4  ;;  %v1109_v20 = vshrl.u32 %v13328_v60, 16 }
 0x109   : > { %v1102_v51 = vor.u32 %v1101_v10, %v1098_v8  ;;  %3237 = vmatprep.mubr.bf16.mxu1 %v10045_v61  ;;  %v1117_v26 = vrot.slane %v1115_v63, 5  ;;  %v433_v41 = vrot.slane %v358_v30, 7  ;;  %v1107_v14 = vrot.slane %v1105_v38, 5 }
 0x10a   : > { %v1946_v16 = vrot.slane %v1945_v6, 4  ;;  %v1955_v23 = vor.u32 %v1954_v55, %v1950_v13  ;;  %3238 = vmatmul.mubr.bf16.gmra.mrb[40].mxu1 %v10029_v47  ;;  %v1111_v25 = vrot.slane %v1109_v20, 4  ;;  %v434_v22 = vshll.u32 %v13246_v34, 16 }
 0x10b   : > { %v1693_v62 = vld [vmem:[#allocation2 + $0x98] sm:$0x1]  ;;  %v1103_v32 = vrot.slane %v1102_v51, 4  ;;  %v10030_v5 = vcombine.low %v13316_v48, %v13328_v60 }
 0x10c   : > { %v1951_v9 = vsel %vm12923_vm5, %v1946_v16, %v1950_v13  ;;  %v1956_v24 = vrot.slane %v1955_v23, 4  ;;  %v13343_v44 = vld [vmem:[#allocation2 + $0x90] sm:$0xf]  ;;  %v13345_v29 = vld [vmem:[#allocation2 + $0x94] sm:$0xf]  ;;  %v1982_v45 = vshll.u32 %v1693_v62, 16  ;;  %v1112_v2 = vor.u32 %v1111_v25, %v1107_v14 }
 0x10d   : > { %v1963_v35 = vshrl.u32 %v13343_v44, 16  ;;  %v1966_v49 = vshll.u32 %v13343_v44, 16  ;;  %v1972_v52 = vshll.u32 %v13345_v29, 16  ;;  %v1976_v53 = vshrl.u32 %v13345_v29, 16  ;;  %v13355_v3 = vld [vmem:[#allocation2 + $0x90] sm:$0xf] }
 0x10e   : > { %v1961_v15 = vsel %vm12923_vm5, %v1956_v24, %v1960_v11  ;;  %v1984_v50 = vrot.slane %v1982_v45, 5  ;;  %v13357_v37 = vld [vmem:[#allocation2 + $0x94] sm:$0xf]  ;;  %v1108_v59 = vsel %vm12923_vm5, %v1103_v32, %v1107_v14  ;;  %v1113_v1 = vrot.slane %v1112_v2, 4  ;;  %v824_v13 = vld [vmem:[#allocation2 + $0x98] sm:$0x1] }
 0x10f   : > { %v10109_v56 = vcombine.low %v1951_v9, %v1961_v15  ;;  %v1965_v57 = vrot.slane %v1963_v35, 4  ;;  %v1968_v43 = vrot.slane %v1966_v49, 5  ;;  %v1974_v36 = vrot.slane %v1972_v52, 5  ;;  %v13384_v49 = vld [vmem:[#allocation2 + $0x20] sm:$0x1] }
 0x110   : > { %v1978_v31 = vrot.slane %v1976_v53, 4  ;;  %v436_v28 = vor.u32 %v434_v22, %v433_v41  ;;  %v493_v33 = vrot.slane %v434_v22, 7  ;;  %v1120_v58 = vshrl.u32 %v13355_v3, 16 }
 0x111   : > { %2771 = vmatprep.mubr.bf16.mxu0 %v10109_v56  ;;  %v1969_v63 = vor.u32 %v1968_v43, %v1965_v57  ;;  %v1123_v48 = vshll.u32 %v13355_v3, 16  ;;  %v1118_v4 = vsel %vm12923_vm5, %v1113_v1, %v1117_v26  ;;  %v1129_v46 = vshll.u32 %v13357_v37, 16 }
 0x112   : > { %2772 = vmatmul.mubr.bf16.gmra.mrb[40].mxu0 %v10093_v39  ;;  %v1979_v7 = vor.u32 %v1978_v31, %v1974_v36  ;;  %v528_v60 = vsel %vm12845_vm2, %v358_v30, %v436_v28  ;;  %v10046_v8 = vcombine.low %v1108_v59, %v1118_v4  ;;  %v544_v10 = vsel %vm12845_vm2, %v433_v41, %v493_v33 }
 0x113   : > { %v1970_v47 = vrot.slane %v1969_v63, 4  ;;  %v9991_v6 = vcombine.low %v528_v60, %v528_v60  ;;  %v9992_v61 = vcombine.high %v528_v60, %v528_v60  ;;  %v9993_v11 = vcombine.low %v544_v10, %v544_v10 }
 0x114   : > { %v1980_v55 = vrot.slane %v1979_v7, 4  ;;  %v1122_v51 = vrot.slane %v1120_v58, 4  ;;  %3245 = vmatprep.mubr.bf16.mxu1 %v10046_v8  ;;  %v1125_v34 = vrot.slane %v1123_v48, 5  ;;  %v1131_v30 = vrot.slane %v1129_v46, 5 }
 0x115   : > { %v1975_v38 = vsel %vm12923_vm5, %v1970_v47, %v1974_v36  ;;  %761 = vst [vmem:[#allocation2 + $0x9c] sm:$0xf] %v9991_v6  ;;  %v1133_v20 = vshrl.u32 %v13357_v37, 16  ;;  %v10094_v23 = vcombine.low %v13343_v44, %v13345_v29  ;;  %3246 = vmatmul.mubr.bf16.gmra.mrb[44].mxu1 %v10030_v5  ;;  %762 = vst [vmem:[#allocation2 + $0xa0] sm:$0xf] %v9992_v61  ;;  %v1139_v26 = vshll.u32 %v824_v13, 16 }
 0x116   : > { %v1985_v16 = vsel %vm12923_vm5, %v1980_v55, %v1984_v50  ;;  %763 = vst [vmem:[#allocation2 + $0xa4] sm:$0x1] %v9993_v11  ;;  %v361_v41 = vshrl.u32 %v13261_v40, 16  ;;  %v1126_v32 = vor.u32 %v1125_v34, %v1122_v51  ;;  %v438_v25 = vshll.u32 %v13261_v40, 16 }
 0x117   : > { %v10110_v62 = vcombine.low %v1975_v38, %v1985_v16  ;;  %v1135_v14 = vrot.slane %v1133_v20, 4  ;;  %v1141_v22 = vrot.slane %v1139_v26, 5  ;;  %v364_v24 = vshrl.u32 %v13283_v0, 16 }
 0x118   : > { %v437_v9 = vrot.slane %v361_v41, 7  ;;  %v442_v39 = vshll.u32 %v13283_v0, 16  ;;  %v1127_v45 = vrot.slane %v1126_v32, 4  ;;  %v494_v29 = vrot.slane %v438_v25, 7 }
 0x119   : > { %2779 = vmatprep.mubr.bf16.mxu0 %v10110_v62  ;;  %v1136_v44 = vor.u32 %v1135_v14, %v1131_v30  ;;  %v367_v35 = vshrl.u32 %v13299_v21, 16  ;;  %v2158_v52 = vrot.slane %v13384_v49, 5  ;;  %v10031_v40 = vcombine.low %v13355_v3, %v13357_v37 }
 0x11a   : > { %2780 = vmatmul.mubr.bf16.gmra.mrb[44].mxu0 %v10094_v23  ;;  %v440_v53 = vor.u32 %v438_v25, %v437_v9  ;;  %v441_v15 = vrot.slane %v364_v24, 7  ;;  %v1132_v50 = vsel %vm12923_vm5, %v1127_v45, %v1131_v30  ;;  %v545_v5 = vsel %vm12845_vm2, %v437_v9, %v494_v29 }
 0x11b   : > { %v1137_v2 = vrot.slane %v1136_v44, 4  ;;  %v495_v56 = vrot.slane %v442_v39, 7  ;;  %v9996_v36 = vcombine.low %v545_v5, %v545_v5  ;;  %v13403_v3 = vrot.slane %v367_v35, 7 }
 0x11c   : > { %v13395_v57 = vld [vmem:[#allocation2 + $0x9c] sm:$0xf]  ;;  %v529_v43 = vsel %vm12845_vm2, %v361_v41, %v440_v53  ;;  %v446_v37 = vshll.u32 %v13299_v21, 16  ;;  %v13406_v59 = vld [vmem:[#allocation2 + $0xa0] sm:$0xf]  ;;  %v444_v13 = vor.u32 %v442_v39, %v441_v15 }
 0x11d   : > { %v13399_v31 = vld [vmem:[#allocation2 + $0x9c] sm:$0xf]  ;;  %v13408_v1 = vld [vmem:[#allocation2 + $0xa4] sm:$0x1]  ;;  %v1987_v28 = vshrl.u32 %v13395_v57, 16  ;;  %v1990_v63 = vshll.u32 %v13395_v57, 16  ;;  %v1142_v33 = vsel %vm12923_vm5, %v1137_v2, %v1141_v22  ;;  %v9994_v58 = vcombine.low %v529_v43, %v529_v43 }
 0x11e   : > { %v1996_v48 = vshll.u32 %v13406_v59, 16  ;;  %v2000_v7 = vshrl.u32 %v13406_v59, 16  ;;  %v2006_v4 = vshll.u32 %v13408_v1, 16  ;;  %v10047_v60 = vcombine.low %v1132_v50, %v1142_v33  ;;  %766 = vst [vmem:[#allocation2 + $0xb0] sm:$0x1] %v9996_v36 }
 0x11f   : > { %v13417_v46 = vld [vmem:[#allocation2 + $0xa0] sm:$0xf]  ;;  %v1989_v47 = vrot.slane %v1987_v28, 4  ;;  %v1992_v8 = vrot.slane %v1990_v63, 5  ;;  %v9995_v10 = vcombine.high %v529_v43, %v529_v43  ;;  %764 = vst [vmem:[#allocation2 + $0xa8] sm:$0xf] %v9994_v58  ;;  %v546_v51 = vsel %vm12845_vm2, %v441_v15, %v495_v56 }
 0x120   : > { %v13419_v6 = vld [vmem:[#allocation2 + $0xa4] sm:$0x1]  ;;  %v1998_v55 = vrot.slane %v1996_v48, 5  ;;  %v2002_v61 = vrot.slane %v2000_v7, 4  ;;  %3253 = vmatprep.mubr.bf16.mxu1 %v10047_v60  ;;  %v1144_v11 = vshrl.u32 %v13399_v31, 16  ;;  %v1147_v34 = vshll.u32 %v13399_v31, 16 }
 0x121   : > { %v1993_v38 = vor.u32 %v1992_v8, %v1989_v47  ;;  %3254 = vmatmul.mubr.bf16.gmra.mrb[48].mxu1 %v10031_v40  ;;  %765 = vst [vmem:[#allocation2 + $0xac] sm:$0xf] %v9995_v10  ;;  %v1153_v30 = vshll.u32 %v13417_v46, 16  ;;  %v1157_v20 = vshrl.u32 %v13417_v46, 16  ;;  %v2008_v23 = vrot.slane %v2006_v4, 5 }
 0x122   : > { %v2003_v16 = vor.u32 %v2002_v61, %v1998_v55  ;;  %v1146_v26 = vrot.slane %v1144_v11, 4  ;;  %v1163_v41 = vshll.u32 %v13419_v6, 16  ;;  %v1149_v32 = vrot.slane %v1147_v34, 5 }
 0x123   : > { %v1994_v62 = vrot.slane %v1993_v38, 4  ;;  %v1155_v14 = vrot.slane %v1153_v30, 5  ;;  %v1159_v25 = vrot.slane %v1157_v20, 4  ;;  %v10095_v9 = vcombine.low %v13395_v57, %v13406_v59 }
 0x124   : > { %v2004_v22 = vrot.slane %v2003_v16, 4  ;;  %v530_v39 = vsel %vm12845_vm2, %v364_v24, %v444_v13  ;;  %v9999_v45 = vcombine.low %v546_v51, %v546_v51  ;;  %v1150_v40 = vor.u32 %v1149_v32, %v1146_v26 }
 0x125   : > { %v1999_v44 = vsel %vm12923_vm5, %v1994_v62, %v1998_v55  ;;  %v13436_v29 = vld [vmem:[#allocation2 + $0xb0] sm:$0x1]  ;;  %v1160_v53 = vor.u32 %v1159_v25, %v1155_v14  ;;  %v9997_v15 = vcombine.low %v530_v39, %v530_v39  ;;  %v1165_v56 = vrot.slane %v1163_v41, 5 }
 0x126   : > { %v13438_v50 = vld [vmem:[#allocation2 + $0xb0] sm:$0x1]  ;;  %v2009_v2 = vsel %vm12923_vm5, %v2004_v22, %v2008_v23  ;;  %v13442_v5 = vld [vmem:[#allocation2 + $0xa8] sm:$0xf]  ;;  %v2030_v0 = vshll.u32 %v13436_v29, 16  ;;  %v9998_v24 = vcombine.high %v530_v39, %v530_v39  ;;  %v1151_v28 = vrot.slane %v1150_v40, 4 }
 0x127   : > { %769 = vst [vmem:[#allocation2 + $0xbc] sm:$0x1] %v9999_v45  ;;  %779 = vst [vmem:[#allocation2 + $0xd4] sm:$0x1] %v9999_v45  ;;  %v10111_v57 = vcombine.low %v1999_v44, %v2009_v2  ;;  %v2011_v43 = vshrl.u32 %v13442_v5, 16  ;;  %v2014_v36 = vshll.u32 %v13442_v5, 16  ;;  %v10032_v7 = vcombine.low %v13399_v31, %v13417_v46 }
 0x128   : > { %767 = vst [vmem:[#allocation2 + $0xb4] sm:$0xf] %v9997_v15  ;;  %777 = vst [vmem:[#allocation2 + $0xcc] sm:$0xf] %v9997_v15  ;;  %v13447_v63 = vld [vmem:[#allocation2 + $0xa8] sm:$0xf]  ;;  %v1156_v55 = vsel %vm12923_vm5, %v1151_v28, %v1155_v14  ;;  %v448_v61 = vor.u32 %v446_v37, %v13403_v3 }
 0x129   : > { %v13449_v33 = vld [vmem:[#allocation2 + $0xac] sm:$0xf]  ;;  %v2032_v58 = vrot.slane %v2030_v0, 5  ;;  %v1161_v48 = vrot.slane %v1160_v53, 4  ;;  %768 = vst [vmem:[#allocation2 + $0xb8] sm:$0xf] %v9998_v24  ;;  %2787 = vmatprep.mubr.bf16.mxu0 %v10111_v57 }
 0x12a   : > { %778 = vst [vmem:[#allocation2 + $0xd0] sm:$0xf] %v9998_v24  ;;  %v1187_v4 = vshll.u32 %v13438_v50, 16  ;;  %v2013_v60 = vrot.slane %v2011_v43, 4  ;;  %v2016_v47 = vrot.slane %v2014_v36, 5  ;;  %v2020_v8 = vshll.u32 %v13449_v33, 16  ;;  %2788 = vmatmul.mubr.bf16.gmra.mrb[48].mxu0 %v10095_v9 }
 0x12b   : > { %v2024_v10 = vshrl.u32 %v13449_v33, 16  ;;  %v13456_v13 = vld [vmem:[#allocation2 + $0xac] sm:$0xf]  ;;  %v1166_v31 = vsel %vm12923_vm5, %v1161_v48, %v1165_v56  ;;  %v1168_v46 = vshrl.u32 %v13447_v63, 16  ;;  %v1171_v20 = vshll.u32 %v13447_v63, 16 }
 0x12c   : > { %v2017_v11 = vor.u32 %v2016_v47, %v2013_v60  ;;  %v2022_v51 = vrot.slane %v2020_v8, 5  ;;  %v10048_v34 = vcombine.low %v1156_v55, %v1166_v31  ;;  %v1177_v16 = vshll.u32 %v13456_v13, 16 }
 0x12d   : > { %v2026_v38 = vrot.slane %v2024_v10, 4  ;;  %v1170_v30 = vrot.slane %v1168_v46, 4  ;;  %v1181_v23 = vshrl.u32 %v13456_v13, 16  ;;  %v10096_v62 = vcombine.low %v13442_v5, %v13449_v33 }
 0x12e   : > { %v2018_v26 = vrot.slane %v2017_v11, 4  ;;  %3261 = vmatprep.mubr.bf16.mxu1 %v10048_v34  ;;  %v13471_v32 = vld [vmem:[#allocation2 + $0xbc] sm:$0x1]  ;;  %v1189_v14 = vrot.slane %v1187_v4, 5  ;;  %v1173_v9 = vrot.slane %v1171_v20, 5  ;;  %v1179_v39 = vrot.slane %v1177_v16, 5 }
 0x12f   : > { %v2027_v41 = vor.u32 %v2026_v38, %v2022_v51  ;;  %3262 = vmatmul.mubr.bf16.gmra.mrb[52].mxu1 %v10032_v7  ;;  %v13473_v25 = vld [vmem:[#allocation2 + $0xb4] sm:$0xf]  ;;  %v2054_v22 = vshll.u32 %v13471_v32, 16  ;;  %v1183_v45 = vrot.slane %v1181_v23, 4  ;;  %v10033_v24 = vcombine.low %v13447_v63, %v13456_v13  ;;  %v13506_v20 = vld [vmem:[#allocation2 + $0xbc] sm:$0x1] }
 0x130   : > { %v2023_v44 = vsel %vm12923_vm5, %v2018_v26, %v2022_v51  ;;  %v13478_v53 = vld [vmem:[#allocation2 + $0xb8] sm:$0xf]  ;;  %v2035_v15 = vshrl.u32 %v13473_v25, 16  ;;  %v2038_v2 = vshll.u32 %v13473_v25, 16  ;;  %v1174_v56 = vor.u32 %v1173_v9, %v1170_v30  ;;  %v13488_v48 = vld [vmem:[#allocation2 + $0xb4] sm:$0xf] }
 0x131   : > { %v2028_v40 = vrot.slane %v2027_v41, 4  ;;  %v2044_v5 = vshll.u32 %v13478_v53, 16  ;;  %v2048_v0 = vshrl.u32 %v13478_v53, 16  ;;  %v1184_v28 = vor.u32 %v1183_v45, %v1179_v39  ;;  %v13498_v11 = vld [vmem:[#allocation2 + $0xb8] sm:$0xf] }
 0x132   : > { %v2037_v43 = vrot.slane %v2035_v15, 4  ;;  %v2040_v36 = vrot.slane %v2038_v2, 5  ;;  %v1175_v47 = vrot.slane %v1174_v56, 4  ;;  %v2056_v10 = vrot.slane %v2054_v22, 5  ;;  %v1215_v45 = vld [vmem:[#allocation2] sm:$0xe] }
 0x133   : > { %v2033_v57 = vsel %vm12923_vm5, %v2028_v40, %v2032_v58  ;;  %v2046_v4 = vrot.slane %v2044_v5, 5  ;;  %v2050_v60 = vrot.slane %v2048_v0, 4  ;;  %v1185_v55 = vrot.slane %v1184_v28, 4  ;;  %v2083_v2 = vld [vmem:[#allocation2 + $0x18] sm:$0xe] }
 0x134   : > { %v10112_v7 = vcombine.low %v2023_v44, %v2033_v57  ;;  %v2041_v8 = vor.u32 %v2040_v36, %v2037_v43  ;;  %v496_v31 = vrot.slane %v446_v37, 7  ;;  %v1180_v58 = vsel %vm12923_vm5, %v1175_v47, %v1179_v39  ;;  %v13518_v5 = vld [vmem:[#allocation2 + $0x14] sm:$0x1]  ;;  %v1216_v57 = vld [vmem:[#allocation2 + $0xc] sm:$0xe] }
 0x135   : > { %v2051_v63 = vor.u32 %v2050_v60, %v2046_v4  ;;  %v531_v46 = vsel %vm12845_vm2, %v367_v35, %v448_v61  ;;  %v1192_v51 = vshrl.u32 %v13488_v48, 16  ;;  %v1190_v34 = vsel %vm12923_vm5, %v1185_v55, %v1189_v14  ;;  %v2082_v14 = vld [vmem:[#allocation2 + $0xc] sm:$0xe]  ;;  %v12331_v28 = vld [vmem:[#allocation2 + $0x10] sm:$0xf] }
 0x136   : > { %2795 = vmatprep.mubr.bf16.mxu0 %v10112_v7  ;;  %v2042_v38 = vrot.slane %v2041_v8, 4  ;;  %v547_v37 = vsel %vm12845_vm2, %v13403_v3, %v496_v31  ;;  %v10000_v30 = vcombine.low %v531_v46, %v531_v46  ;;  %v10049_v16 = vcombine.low %v1180_v58, %v1190_v34  ;;  %v12333_v58 = vld [vmem:[#allocation2 + $0x1c] sm:$0xf] }
 0x137   : > { %2796 = vmatmul.mubr.bf16.gmra.mrb[52].mxu0 %v10096_v62  ;;  %v2052_v21 = vrot.slane %v2051_v63, 4  ;;  %v10001_v23 = vcombine.high %v531_v46, %v531_v46  ;;  %v10002_v35 = vcombine.low %v547_v37, %v547_v37  ;;  %v1194_v26 = vrot.slane %v1192_v51, 4 }
 0x138   : > { %v2047_v61 = vsel %vm12923_vm5, %v2042_v38, %v2046_v4  ;;  %770 = vst [vmem:[#allocation2 + $0xc0] sm:$0xf] %v10000_v30  ;;  %v1195_v41 = vshll.u32 %v13488_v48, 16  ;;  %v1201_v62 = vshll.u32 %v13498_v11, 16  ;;  %3269 = vmatprep.mubr.bf16.mxu1 %v10049_v16  ;;  %v10097_v22 = vcombine.low %v13473_v25, %v13478_v53  ;;  %v12332_v4 = vld [vmem:[#allocation2 + $0x4] sm:$0xf] }
 0x139   : > { %v2057_v3 = vsel %vm12923_vm5, %v2052_v21, %v2056_v10  ;;  %771 = vst [vmem:[#allocation2 + $0xc4] sm:$0xf] %v10001_v23  ;;  %772 = vst [vmem:[#allocation2 + $0xc8] sm:$0x1] %v10002_v35  ;;  %v1205_v9 = vshrl.u32 %v13498_v11, 16  ;;  %v1211_v39 = vshll.u32 %v13506_v20, 16  ;;  %3270 = vmatmul.mubr.bf16.gmra.mrb[56].mxu1 %v10033_v24  ;;  %v10034_v10 = vcombine.low %v13488_v48, %v13498_v11 }
 0x13a   : > { %v10113_v44 = vcombine.low %v2047_v61, %v2057_v3  ;;  %v1197_v40 = vrot.slane %v1195_v41, 5  ;;  %v1203_v15 = vrot.slane %v1201_v62, 5  ;;  %v1294_v0 = vrot.slane %v13518_v5, 5 }
 0x13b   : > { %v1207_v56 = vrot.slane %v1205_v9, 4  ;;  %v10067_v25 = vrot.slane %v2082_v14, 9  ;;  %v17337_v36 = vmov 0  ;;  %v2148_v24 = vrot.slane %v12331_v28, 5 }
 0x13c   : > { %2803 = vmatprep.mubr.bf16.mxu0 %v10113_v44  ;;  %v1198_v43 = vor.u32 %v1197_v40, %v1194_v26  ;;  %v17338_v36 = vsel %vm13521_vm8, 4294967295, %v17337_v36  ;;  %v10003_v7 = vrot.slane %v1215_v45, 9  ;;  %v1284_v60 = vrot.slane %v12332_v4, 5  ;;  %v2084_v44 = vld [vmem:[#allocation2 + $0x24] sm:$0xe] }
 0x13d   : > { %17339 = vst [vmem:[#allocation16_spill] sm:$0xff] %v17338_v36  ;;  %v1208_v47 = vor.u32 %v1207_v56, %v1203_v15  ;;  %v1213_v8 = vrot.slane %v1211_v39, 5  ;;  %v10068_v55 = vrot.slane %v2083_v2, 9  ;;  %v2150_v63 = vrot.slane %v2148_v24, 4 }
 0x13e   : > { %v1199_v31 = vrot.slane %v1198_v43, 4  ;;  %v2155_v46 = vrot.slane %v12333_v58, 5  ;;  %v10004_v51 = vrot.slane %v1216_v57, 9  ;;  %v13531_v37 = vsel %vm13521_vm8, %v10067_v25, %v2148_v24  ;;  %v1217_v24 = vld [vmem:[#allocation2 + $0x18] sm:$0xe] }
 0x13f   : > { %2804 = vmatmul.mubr.bf16.gmra.mrb[56].mxu0 %v10097_v22  ;;  %v13527_v38 = vld [vmem:[#allocation2 + $0xc0] sm:$0xf]  ;;  %v1209_v34 = vrot.slane %v1208_v47, 4  ;;  %v1285_v30 = vsel %vm13521_vm8, %v10003_v7, %v1284_v60  ;;  %v1286_v21 = vrot.slane %v1284_v60, 4  ;;  %v13556_v45 = vsel %vm13521_vm8, %v2150_v63, %v2151_v12 }
 0x140   : > { %v13535_v16 = vld [vmem:[#allocation2 + $0xc4] sm:$0xf]  ;;  %v13537_v48 = vld [vmem:[#allocation2 + $0xc8] sm:$0x1]  ;;  %v2059_v23 = vshrl.u32 %v13527_v38, 16  ;;  %v2062_v35 = vshll.u32 %v13527_v38, 16  ;;  %v1204_v61 = vsel %vm12923_vm5, %v1199_v31, %v1203_v15  ;;  %v13545_v26 = vsel %vm13521_vm8, %v10068_v55, %v2155_v46 }
 0x141   : > { %v2068_v41 = vshll.u32 %v13535_v16, 16  ;;  %v2072_v62 = vshrl.u32 %v13535_v16, 16  ;;  %v2078_v14 = vshll.u32 %v13537_v48, 16  ;;  %v1214_v3 = vsel %vm12923_vm5, %v1209_v34, %v1213_v8  ;;  %v12335_v31 = vld [vmem:[#allocation2 + $0x28] sm:$0xf] }
 0x142   : > { %v2061_v22 = vrot.slane %v2059_v23, 4  ;;  %v2064_v9 = vrot.slane %v2062_v35, 5  ;;  %v10050_v39 = vcombine.low %v1204_v61, %v1214_v3  ;;  %v10098_v2 = vcombine.low %v13527_v38, %v13535_v16  ;;  %v12337_v38 = vld [vmem:[#allocation2 + $0x1c] sm:$0xf]  ;;  %v1218_v23 = vld [vmem:[#allocation2 + $0x24] sm:$0xe] }
 0x143   : > { %v2070_v40 = vrot.slane %v2068_v41, 5  ;;  %v2074_v15 = vrot.slane %v2072_v62, 4  ;;  %v2157_v56 = vrot.slane %v2155_v46, 4  ;;  %v2080_v57 = vrot.slane %v2078_v14, 5  ;;  %v2086_v35 = vld [vmem:[#allocation2 + $0x3c] sm:$0xe] }
 0x144   : > { %v2065_v25 = vor.u32 %v2064_v9, %v2061_v22  ;;  %3277 = vmatprep.mubr.bf16.mxu1 %v10050_v39  ;;  %v1288_v43 = vsel %vm13521_vm8, %v1286_v21, %v1287_v17  ;;  %v1291_v28 = vrot.slane %v12334_v42, 5  ;;  %v10115_v7 = vcombine.low %v13531_v37, %v13556_v45  ;;  %v12336_v17 = vld [vmem:[#allocation2 + $0x2c] sm:$0x1]  ;;  %v1219_v14 = vld [vmem:[#allocation2 + $0x30] sm:$0xe]  ;;  %v12175_v9 = vld [vmem:[#allocation7 + $0x208] sm:$0xff]  }
 0x145   : > { %v2075_v12 = vor.u32 %v2074_v15, %v2070_v40  ;;  %3278 = vmatmul.mubr.bf16.gmra.mrb[60].mxu1 %v10034_v10  ;;  %v10051_v4 = vcombine.low %v1285_v30, %v1288_v43  ;;  %v10069_v60 = vrot.slane %v2084_v44, 9  ;;  %v2162_v27 = vrot.slane %v12335_v31, 5  ;;  %v2085_v10 = vld [vmem:[#allocation2 + $0x30] sm:$0xe]  ;;  %v12338_v3 = vld [vmem:[#allocation2 + $0x20] sm:$0x1] }
 0x146   : > { %v2066_v47 = vrot.slane %v2065_v25, 4  ;;  %v1292_v8 = vsel %vm13521_vm8, %v10004_v51, %v1291_v28  ;;  %v1293_v55 = vrot.slane %v1291_v28, 4  ;;  %v2165_v58 = vrot.slane %v12336_v17, 5  ;;  %v12339_v45 = vld [vmem:[#allocation2 + $0x34] sm:$0xf] }
 0x147   : > { %v2076_v63 = vrot.slane %v2075_v12, 4  ;;  %11468 = vmatprep.mubr.bf16.mxu1 %v10051_v4  ;;  %v10005_v46 = vrot.slane %v1217_v24, 9  ;;  %v1298_v34 = vrot.slane %v12337_v38, 5  ;;  %v13574_v30 = vsel %vm13521_vm8, %v2157_v56, %v2158_v52  ;;  %v12342_v42 = vld [vmem:[#allocation2 + $0x2c] sm:$0x1] }
 0x148   : > { %v2071_v37 = vsel %vm12923_vm5, %v2066_v47, %v2070_v40  ;;  %v1295_v51 = vsel %vm13521_vm8, %v1293_v55, %v1294_v0  ;;  %v2164_v21 = vrot.slane %v2162_v27, 4  ;;  %v13584_v62 = vsel %vm13521_vm8, %v10069_v60, %v2162_v27  ;;  %v12340_v40 = vld [vmem:[#allocation2 + $0x38] sm:$0x1]  ;;  %v12343_v60 = vld [vmem:[#allocation2 + $0x40] sm:$0xf] }
 0x149   : > { %v2081_v61 = vsel %vm12923_vm5, %v2076_v63, %v2080_v57  ;;  %v10052_v41 = vcombine.low %v1292_v8, %v1295_v51  ;;  %v1300_v49 = vrot.slane %v1298_v34, 4  ;;  %v1299_v0 = vsel %vm13521_vm8, %v10005_v46, %v1298_v34  ;;  %v12341_v57 = vld [vmem:[#allocation2 + $0x28] sm:$0xf]  ;;  %v1220_v55 = vld [vmem:[#allocation2 + $0x3c] sm:$0xe]  ;;  %v13599_v46 = vld [vmem:[#allocation7 + $0x210] sm:$0xff]  }
 0x14a   : > { %v10114_v52 = vcombine.low %v2071_v37, %v2081_v61  ;;  %v13588_v5 = vsel %vm13521_vm8, %v2164_v21, %v2165_v58  ;;  %v1301_v22 = vrot.slane %v12338_v3, 5  ;;  %v10070_v39 = vrot.slane %v2085_v10, 9  ;;  %v13594_v8 = vld [vmem:[#allocation2 + $0x48] sm:$0xe]  ;;  %v12344_v63 = vld [vmem:[#allocation2 + $0x44] sm:$0x1] }
 0x14b   : > { %v2169_v44 = vrot.slane %v12339_v45, 5  ;;  %v2172_v15 = vrot.slane %v12340_v40, 5  ;;  %v10006_v56 = vrot.slane %v1218_v23, 9  ;;  %v1305_v43 = vrot.slane %v12341_v57, 5  ;;  %v1221_v21 = vld [vmem:[#allocation2 + $0x48] sm:$0xe] }
 0x14c   : > { %2811 = vmatprep.mubr.bf16.mxu0 %v10114_v52  ;;  %v1302_v25 = vsel %vm13521_vm8, %v1300_v49, %v1301_v22  ;;  %v1308_v28 = vrot.slane %v12342_v42, 5  ;;  %v10071_v24 = vrot.slane %v2086_v35, 9  ;;  %v2176_v47 = vrot.slane %v12343_v60, 5  ;;  %v12165_v49 = vld [vmem:[#allocation7 + $0x180] sm:$0xff]   ;;  %v12166_v22 = vld [vmem:[#allocation7 + $0x1c8] sm:$0xff]  }
 0x14d   : > { %2812 = vmatmul.mubr.bf16.gmra.mrb[60].mxu0 %v10098_v2  ;;  %11469 = vmatmul.mubr.bf16.vlgmr.msra.gmra.mrb[64].mxu1 %v10052_v41  ;;  %v10053_v12 = vcombine.low %v1299_v0, %v1302_v25  ;;  %v2171_v4 = vrot.slane %v2169_v44, 4  ;;  %v1306_v31 = vsel %vm13521_vm8, %v10006_v56, %v1305_v43  ;;  %v1307_v27 = vrot.slane %v1305_v43, 4  ;;  %v12348_v45 = vld [vmem:[#allocation2 + $0x50] sm:$0x1]  ;;  %v12349_v40 = vld [vmem:[#allocation2 + $0x40] sm:$0xf] }
 0x14e   : > { %11420 = vmatprep.mubr.bf16.mxu0 %v10115_v7  ;;  %v2179_v17 = vrot.slane %v12344_v63, 5  ;;  %v10007_v58 = vrot.slane %v1219_v14, 9  ;;  %11501 = vmatpush3.bf16.msra.mxu1 %v13248_v18  ;;  %v10116_v2 = vcombine.low %v13545_v26, %v13574_v30  ;;  %v10117_v38 = vcombine.low %v13584_v62, %v13588_v5  ;;  %v12345_v7 = vld [vmem:[#allocation2 + $0x34] sm:$0xf]  ;;  %v12346_v26 = vld [vmem:[#allocation2 + $0x38] sm:$0x1] }
 0x14f   : > { %11472 = vmatprep.mubr.bf16.mxu1 %v10053_v12  ;;  %v2178_v34 = vrot.slane %v2176_v47, 4  ;;  %v1312_v10 = vrot.slane %v12345_v7, 5  ;;  %11502 = vmatprep.subr.bf16.mxu1 %v12175_v9  ;;  %v13607_v37 = vsel %vm13521_vm8, %v10070_v39, %v2169_v44  ;;  %v13611_v18 = vsel %vm13521_vm8, %v2171_v4, %v2172_v15  ;;  %v13621_v62 = vld [vmem:[#allocation2 + $0x54] sm:$0xe]  ;;  %v12347_v5 = vld [vmem:[#allocation2 + $0x4c] sm:$0xf] }
 0x150   : > { %v1309_v51 = vsel %vm13521_vm8, %v1307_v27, %v1308_v28  ;;  %v1315_v30 = vrot.slane %v12346_v26, 5  ;;  %v13617_v35 = vsel %vm13521_vm8, %v10071_v24, %v2176_v47  ;;  %v10072_v52 = vrot.slane %v13594_v8, 9  ;;  %v12350_v56 = vld [vmem:[#allocation2 + $0x44] sm:$0x1]  ;;  %v12167_v57 = vld [vmem:[#allocation7 + $0x188] sm:$0xff]  }
 0x151   : > { %v10054_v23 = vcombine.low %v1306_v31, %v1309_v51  ;;  %v1313_v61 = vsel %vm13521_vm8, %v10007_v58, %v1312_v10  ;;  %v1314_v41 = vrot.slane %v1312_v10, 4  ;;  %v13625_v14 = vsel %vm13521_vm8, %v2178_v34, %v2179_v17  ;;  %v12351_v28 = vld [vmem:[#allocation2 + $0x58] sm:$0xf]  ;;  %v13631_v12 = vld [vmem:[#allocation2 + $0x60] sm:$0xe] }
 0x152   : > { %v2183_v0 = vrot.slane %v12347_v5, 5  ;;  %v10008_v3 = vrot.slane %v1220_v55, 9  ;;  %11503 = vmatpush3.bf16.msra.mxu1 %v12175_v9  ;;  %v2186_v44 = vrot.slane %v12348_v45, 5  ;;  %v1319_v15 = vrot.slane %v12349_v40, 5  ;;  %v13633_v9 = vld [vmem:[#allocation2 + $0x54] sm:$0xe] }
 0x153   : > { %v1316_v39 = vsel %vm13521_vm8, %v1314_v41, %v1315_v30  ;;  %v1322_v25 = vrot.slane %v12350_v56, 5  ;;  %11504 = vmatprep.subr.bf16.mxu1 %v13599_v46  ;;  %v2190_v24 = vrot.slane %v12351_v28, 5  ;;  %v10118_v4 = vcombine.low %v13607_v37, %v13611_v18  ;;  %v12168_v47 = vld [vmem:[#allocation7 + $0x1d0] sm:$0xff]   ;;  %v12179_v55 = vld [vmem:[#allocation7 + $0x218] sm:$0xff]   ;;  %v12354_v10 = vld [vmem:[#allocation2 + $0x50] sm:$0x1] }
 0x154   : > { %v10055_v43 = vcombine.low %v1313_v61, %v1316_v39  ;;  %v2185_v42 = vrot.slane %v2183_v0, 4  ;;  %v1321_v60 = vrot.slane %v1319_v15, 4  ;;  %v10009_v8 = vrot.slane %v1221_v21, 9  ;;  %v12352_v17 = vld [vmem:[#allocation2 + $0x4c] sm:$0xf]  ;;  %v12169_v26 = vld [vmem:[#allocation7 + $0x190] sm:$0xff]  }
 0x155   : > { %11421 = vmatmul.mubr.bf16.vlgmr.msra.gmra.mrb[64].mxu0 %v10116_v2  ;;  %11473 = vmatmul.mubr.bf16.gmra.mrb[68].mxu1 %v10054_v23  ;;  %v10119_v31 = vcombine.low %v13617_v35, %v13625_v14  ;;  %v1320_v27 = vsel %vm13521_vm8, %v10008_v3, %v1319_v15  ;;  %v10073_v63 = vrot.slane %v13621_v62, 9  ;;  %v1326_v58 = vrot.slane %v12352_v17, 5  ;;  %v13648_v18 = vld [vmem:[#allocation2 + $0x6c] sm:$0xe]  ;;  %v1223_v35 = vld [vmem:[#allocation2 + $0x60] sm:$0xe] }
 0x156   : > { %10861 = vmatpush3.bf16.msra.mxu0 %v12165_v49  ;;  %11424 = vmatprep.mubr.bf16.mxu0 %v10117_v38  ;;  %v13644_v2 = vsel %vm13521_vm8, %v10072_v52, %v2183_v0  ;;  %v1323_v34 = vsel %vm13521_vm8, %v1321_v60, %v1322_v25  ;;  %v12353_v38 = vld [vmem:[#allocation2 + $0x5c] sm:$0x1]  ;;  %v1329_v37 = vrot.slane %v12354_v10, 5  ;;  %v13652_v51 = vsel %vm13521_vm8, %v2185_v42, %v2186_v44  ;;  %v12355_v62 = vld [vmem:[#allocation2 + $0x64] sm:$0xf]  ;;  %v12170_v52 = vld [vmem:[#allocation7 + $0x1d8] sm:$0xff]  }
 0x157   : > { %10862 = vmatprep.subr.bf16.mxu0 %v12166_v22  ;;  %11476 = vmatprep.mubr.bf16.mxu1 %v10055_v43  ;;  %v2193_v7 = vrot.slane %v12353_v38, 5  ;;  %v2192_v30 = vrot.slane %v2190_v24, 4  ;;  %v1327_v21 = vsel %vm13521_vm8, %v10009_v8, %v1326_v58  ;;  %v1328_v23 = vrot.slane %v1326_v58, 4  ;;  %v12356_v0 = vld [vmem:[#allocation2 + $0x68] sm:$0x1]  ;;  %v12181_v40 = vld [vmem:[#allocation7 + $0x220] sm:$0xff]  }
 0x158   : > { %11505 = vmatpush3.bf16.msra.mxu1 %v13599_v46  ;;  %v10056_v61 = vcombine.low %v1320_v27, %v1323_v34  ;;  %v10074_v41 = vrot.slane %v13631_v12, 9  ;;  %v2197_v49 = vrot.slane %v12355_v62, 5  ;;  %v10010_v14 = vrot.slane %v13633_v9, 9  ;;  %v12357_v22 = vld [vmem:[#allocation2 + $0x58] sm:$0xf]  ;;  %v12171_v9 = vld [vmem:[#allocation7 + $0x198] sm:$0xff]  }
 0x159   : > { %11506 = vmatprep.subr.bf16.mxu1 %v12179_v55  ;;  %v1330_v5 = vsel %vm13521_vm8, %v1328_v23, %v1329_v37  ;;  %v2200_v3 = vrot.slane %v12356_v0, 5  ;;  %v1333_v39 = vrot.slane %v12357_v22, 5  ;;  %v12358_v45 = vld [vmem:[#allocation2 + $0x5c] sm:$0x1]  ;;  %v13661_v46 = vld [vmem:[#allocation2 + $0x78] sm:$0xe]  ;;  %v13665_v15 = vsel %vm13521_vm8, %v10073_v63, %v2190_v24 }
 0x15a   : > { %10863 = vmatpush3.bf16.msra.mxu0 %v12167_v57  ;;  %v1336_v44 = vrot.slane %v12358_v45, 5  ;;  %v10057_v56 = vcombine.low %v1327_v21, %v1330_v5  ;;  %v2199_v25 = vrot.slane %v2197_v49, 4  ;;  %v13667_v57 = vld [vmem:[#allocation2 + $0x70] sm:$0xf]  ;;  %v13670_v42 = vld [vmem:[#allocation2 + $0x6c] sm:$0xe]  ;;  %v10120_v28 = vcombine.low %v13644_v2, %v13652_v51 }
 0x15b   : > { %10864 = vmatprep.subr.bf16.mxu0 %v12168_v47  ;;  %v2204_v43 = vrot.slane %v13667_v57, 5  ;;  %v1335_v12 = vrot.slane %v1333_v39, 4  ;;  %v10075_v60 = vrot.slane %v13648_v18, 9  ;;  %v10011_v47 = vrot.slane %v1223_v35, 9  ;;  %v13675_v8 = vld [vmem:[#allocation2 + $0x84] sm:$0xe] }
 0x15c   : > { %11507 = vmatpush3.bf16.msra.mxu1 %v12179_v55  ;;  %v13677_v24 = vld [vmem:[#allocation7 + $0x228] sm:$0xff]   ;;  %v13681_v27 = vsel %vm13521_vm8, %v2192_v30, %v2193_v7  ;;  %v1334_v63 = vsel %vm13521_vm8, %v10010_v14, %v1333_v39  ;;  %v12360_v17 = vld [vmem:[#allocation2 + $0x74] sm:$0x1]  ;;  %v12361_v34 = vld [vmem:[#allocation2 + $0x64] sm:$0xf]  ;;  %v13687_v55 = vsel %vm13521_vm8, %v10074_v41, %v2197_v49  ;;  %v13693_v30 = vsel %vm13521_vm8, %v2199_v25, %v2200_v3 }
 0x15d   : > { %11425 = vmatmul.mubr.bf16.gmra.mrb[68].mxu0 %v10118_v4  ;;  %11477 = vmatmul.mubr.bf16.gmra.mrb[72].mxu1 %v10056_v61  ;;  %v2207_v58 = vrot.slane %v12360_v17, 5  ;;  %v1340_v38 = vrot.slane %v12361_v34, 5  ;;  %v12172_v10 = vld [vmem:[#allocation7 + $0x1e0] sm:$0xff]   ;;  %v1337_v4 = vsel %vm13521_vm8, %v1335_v12, %v1336_v44  ;;  %v2206_v37 = vrot.slane %v2204_v43, 4  ;;  %v12362_v7 = vld [vmem:[#allocation2 + $0x68] sm:$0x1] }
 0x15e   : > { %11428 = vmatprep.mubr.bf16.mxu0 %v10119_v31  ;;  %10865 = vmatpush3.bf16.msra.mxu0 %v12169_v26  ;;  %v1343_v18 = vrot.slane %v12362_v7, 5  ;;  %v10076_v21 = vrot.slane %v13661_v46, 9  ;;  %v10058_v23 = vcombine.low %v1334_v63, %v1337_v4  ;;  %v12363_v35 = vld [vmem:[#allocation2 + $0x7c] sm:$0xf]  ;;  %v12364_v41 = vld [vmem:[#allocation2 + $0x80] sm:$0x1]  ;;  %v10121_v46 = vcombine.low %v13665_v15, %v13681_v27 }
 0x15f   : > { %11480 = vmatprep.mubr.bf16.mxu1 %v10057_v56  ;;  %10866 = vmatprep.subr.bf16.mxu0 %v12170_v52  ;;  %v1341_v31 = vsel %vm13521_vm8, %v10011_v47, %v1340_v38  ;;  %v1342_v26 = vrot.slane %v1340_v38, 4  ;;  %v2211_v61 = vrot.slane %v12363_v35, 5  ;;  %v2214_v62 = vrot.slane %v12364_v41, 5  ;;  %v1225_v14 = vld [vmem:[#allocation2 + $0x78] sm:$0xe]  ;;  %v12174_v39 = vld [vmem:[#allocation7 + $0x1a0] sm:$0xff]  }
 0x160   : > { %v10012_v49 = vrot.slane %v13670_v42, 9  ;;  %11508 = vmatprep.subr.bf16.mxu1 %v12181_v40  ;;  %v12365_v0 = vld [vmem:[#allocation2 + $0x70] sm:$0xf]  ;;  %v12366_v3 = vld [vmem:[#allocation2 + $0x74] sm:$0x1]  ;;  %v10077_v45 = vrot.slane %v13675_v8, 9  ;;  %v10122_v8 = vcombine.low %v13687_v55, %v13693_v30  ;;  %v13721_v17 = vsel %vm13521_vm8, %v2206_v37, %v2207_v58 }
 0x161   : > { %v1344_v5 = vsel %vm13521_vm8, %v1342_v26, %v1343_v18  ;;  %v1347_v52 = vrot.slane %v12365_v0, 5  ;;  %v1350_v22 = vrot.slane %v12366_v3, 5  ;;  %v13702_v44 = vld [vmem:[#allocation2 + $0x90] sm:$0xe]  ;;  %11509 = vmatpush3.bf16.msra.mxu1 %v12181_v40  ;;  %v2213_v25 = vrot.slane %v2211_v61, 4  ;;  %v12176_v47 = vld [vmem:[#allocation7 + $0x1e8] sm:$0xff]  }
 0x162   : > { %10867 = vmatpush3.bf16.msra.mxu0 %v12171_v9  ;;  %v10059_v56 = vcombine.low %v1341_v31, %v1344_v5  ;;  %v12367_v57 = vld [vmem:[#allocation2 + $0x88] sm:$0xf]  ;;  %v13706_v12 = vld [vmem:[#allocation2 + $0x84] sm:$0xe]  ;;  %11510 = vmatprep.subr.bf16.mxu1 %v13677_v24  ;;  %v13715_v40 = vsel %vm13521_vm8, %v10075_v60, %v2204_v43  ;;  %v10013_v9 = vrot.slane %v1225_v14, 9  ;;  %v13725_v34 = vsel %vm13521_vm8, %v10076_v21, %v2211_v61  ;;  %v12178_v31 = vld [vmem:[#allocation7 + $0x1a8] sm:$0xff]  }
 0x163   : > { %v2218_v42 = vrot.slane %v12367_v57, 5  ;;  %v13709_v63 = vld [vmem:[#allocation7 + $0x230] sm:$0xff]   ;;  %v1349_v15 = vrot.slane %v1347_v52, 4  ;;  %10868 = vmatprep.subr.bf16.mxu0 %v12172_v10  ;;  %v13717_v27 = vld [vmem:[#allocation2 + $0x9c] sm:$0xe]  ;;  %v13732_v43 = vsel %vm13521_vm8, %v2213_v25, %v2214_v62  ;;  %v1348_v60 = vsel %vm13521_vm8, %v10012_v49, %v1347_v52 }
 0x164   : > { %v12368_v38 = vld [vmem:[#allocation2 + $0x8c] sm:$0x1]  ;;  %v12369_v7 = vld [vmem:[#allocation2 + $0x7c] sm:$0xf]  ;;  %v12370_v10 = vld [vmem:[#allocation2 + $0x80] sm:$0x1] }
 0x165   : > { %v2221_v4 = vrot.slane %v12368_v38, 5  ;;  %v1354_v18 = vrot.slane %v12369_v7, 5  ;;  %11429 = vmatmul.mubr.bf16.gmra.mrb[72].mxu0 %v10120_v28  ;;  %11481 = vmatmul.mubr.bf16.gmra.mrb[76].mxu1 %v10058_v23  ;;  %v2220_v58 = vrot.slane %v2218_v42, 4  ;;  %v1357_v37 = vrot.slane %v12370_v10, 5  ;;  %v12371_v23 = vld [vmem:[#allocation2 + $0x94] sm:$0xf] }
 0x166   : > { %11432 = vmatprep.mubr.bf16.mxu0 %v10121_v46  ;;  %11484 = vmatprep.mubr.bf16.mxu1 %v10059_v56  ;;  %v1351_v26 = vsel %vm13521_vm8, %v1349_v15, %v1350_v22  ;;  %v13740_v2 = vsel %vm13521_vm8, %v10077_v45, %v2218_v42  ;;  %v10078_v28 = vrot.slane %v13702_v44, 9  ;;  %v2225_v35 = vrot.slane %v12371_v23, 5  ;;  %v12372_v61 = vld [vmem:[#allocation2 + $0x98] sm:$0x1]  ;;  %v12180_v49 = vld [vmem:[#allocation7 + $0x1f0] sm:$0xff]   ;;  %v12187_v45 = vld [vmem:[#allocation7 + $0x238] sm:$0xff]  }
 0x167   : > { %v1356_v51 = vrot.slane %v1354_v18, 4  ;;  %10869 = vmatpush3.bf16.msra.mxu0 %v12174_v39  ;;  %v1355_v21 = vsel %vm13521_vm8, %v10013_v9, %v1354_v18  ;;  %v2228_v41 = vrot.slane %v12372_v61, 5  ;;  %v10014_v62 = vrot.slane %v13706_v12, 9  ;;  %11511 = vmatpush3.bf16.msra.mxu1 %v13677_v24  ;;  %v12373_v5 = vld [vmem:[#allocation2 + $0x88] sm:$0xf]  ;;  %v12182_v57 = vld [vmem:[#allocation7 + $0x1b0] sm:$0xff]  }
 0x168   : > { %v1361_v0 = vrot.slane %v12373_v5, 5  ;;  %v12374_v52 = vld [vmem:[#allocation2 + $0x8c] sm:$0x1]  ;;  %10870 = vmatprep.subr.bf16.mxu0 %v12176_v47  ;;  %v10079_v22 = vrot.slane %v13717_v27, 9  ;;  %v1227_v39 = vld [vmem:[#allocation2 + $0x90] sm:$0xe]  ;;  %11512 = vmatprep.subr.bf16.mxu1 %v13709_v63  ;;  %v10060_v44 = vcombine.low %v1348_v60, %v1351_v26  ;;  %v13753_v46 = vsel %vm13521_vm8, %v2220_v58, %v2221_v4 }
 0x169   : > { %v1358_v14 = vsel %vm13521_vm8, %v1356_v51, %v1357_v37  ;;  %v1364_v3 = vrot.slane %v12374_v52, 5  ;;  %v2227_v24 = vrot.slane %v2225_v35, 4  ;;  %v2232_v56 = vrot.slane %v13406_v59, 5  ;;  %v1228_v25 = vld [vmem:[#allocation2 + $0x9c] sm:$0xe]  ;;  %v12184_v27 = vld [vmem:[#allocation7 + $0x1f8] sm:$0xff]  }
 0x16a   : > { %v10123_v42 = vcombine.low %v13715_v40, %v13721_v17  ;;  %v10124_v12 = vcombine.low %v13725_v34, %v13732_v43  ;;  %v10061_v47 = vcombine.low %v1355_v21, %v1358_v14  ;;  %v1363_v15 = vrot.slane %v1361_v0, 4  ;;  %v13760_v9 = vld [vmem:[#allocation2 + $0xa8] sm:$0xe]  ;;  %v12375_v7 = vld [vmem:[#allocation2 + $0x94] sm:$0xf] }
 0x16b   : > { %v13764_v38 = vsel %vm13521_vm8, %v10078_v28, %v2225_v35  ;;  %v13768_v59 = vsel %vm13521_vm8, %v2227_v24, %v2228_v41  ;;  %10871 = vmatpush3.bf16.msra.mxu0 %v12178_v31  ;;  %v10015_v4 = vrot.slane %v1227_v39, 9  ;;  %v1368_v40 = vrot.slane %v12375_v7, 5  ;;  %11513 = vmatpush3.bf16.msra.mxu1 %v13709_v63  ;;  %v12376_v58 = vld [vmem:[#allocation2 + $0x98] sm:$0x1]  ;;  %v13776_v37 = vld [vmem:[#allocation2 + $0xb4] sm:$0xe] }
 0x16c   : > { %v10125_v17 = vcombine.low %v13740_v2, %v13753_v46  ;;  %v1362_v18 = vsel %vm13521_vm8, %v10014_v62, %v1361_v0  ;;  %v2235_v60 = vrot.slane %v13408_v1, 5  ;;  %v1371_v10 = vrot.slane %v12376_v58, 5  ;;  %10872 = vmatprep.subr.bf16.mxu0 %v12180_v49  ;;  %11514 = vmatprep.subr.bf16.mxu1 %v12187_v45  ;;  %v1229_v51 = vld [vmem:[#allocation2 + $0xa8] sm:$0xe]  ;;  %v12377_v61 = vld [vmem:[#allocation2 + $0xa0] sm:$0xf] }
 0x16d   : > { %11433 = vmatmul.mubr.bf16.gmra.mrb[76].mxu0 %v10122_v8  ;;  %11485 = vmatmul.mubr.bf16.gmra.mrb[80].mxu1 %v10060_v44  ;;  %v1365_v63 = vsel %vm13521_vm8, %v1363_v15, %v1364_v3  ;;  %v13785_v31 = vsel %vm13521_vm8, %v10079_v22, %v2232_v56  ;;  %v2234_v26 = vrot.slane %v2232_v56, 4  ;;  %v1370_v1 = vrot.slane %v1368_v40, 4  ;;  %v12186_v8 = vld [vmem:[#allocation7 + $0x1b8] sm:$0xff]   ;;  %v2097_v49 = vld [vmem:[#allocation2 + $0xc0] sm:$0xe] }
 0x16e   : > { %11436 = vmatprep.mubr.bf16.mxu0 %v10123_v42  ;;  %11488 = vmatprep.mubr.bf16.mxu1 %v10061_v47  ;;  %v10126_v28 = vcombine.low %v13764_v38, %v13768_v59  ;;  %v10080_v21 = vrot.slane %v13760_v9, 9  ;;  %v2239_v55 = vrot.slane %v13449_v33, 5  ;;  %v10016_v30 = vrot.slane %v1228_v25, 9  ;;  %v1230_v52 = vld [vmem:[#allocation2 + $0xb4] sm:$0xe] }
 0x16f   : > { %v1369_v23 = vsel %vm13521_vm8, %v10015_v4, %v1368_v40  ;;  %v1372_v35 = vsel %vm13521_vm8, %v1370_v1, %v1371_v10  ;;  %v1375_v41 = vrot.slane %v12377_v61, 5  ;;  %v1378_v62 = vrot.slane %v13419_v6, 5  ;;  %10873 = vmatpush3.bf16.msra.mxu0 %v12182_v57  ;;  %11515 = vmatpush3.bf16.msra.mxu1 %v12187_v45  ;;  %v13804_v44 = vld [vmem:[#allocation2 + $0x18] sm:$0xf]  ;;  %v13820_v15 = vld [vmem:[#allocation2 + $0x1c] sm:$0xf] }
 0x170   : > { %v10062_v14 = vcombine.low %v1362_v18, %v1365_v63  ;;  %v2241_v5 = vrot.slane %v2239_v55, 4  ;;  %v2242_v0 = vrot.slane %v13436_v29, 5  ;;  %v2246_v33 = vrot.slane %v13478_v53, 5  ;;  %10874 = vmatprep.subr.bf16.mxu0 %v12184_v27  ;;  %v13834_v40 = vld [vmem:[#allocation2 + $0x20] sm:$0x1] }
 0x171   : > { %v13800_v3 = vsel %vm13521_vm8, %v2234_v26, %v2235_v60  ;;  %v1377_v22 = vrot.slane %v1375_v41, 4  ;;  %v10081_v39 = vrot.slane %v13776_v37, 9  ;;  %v2249_v6 = vrot.slane %v13471_v32, 5  ;;  %v13822_v9 = vpop.f32.mrb[0].mxu0 }
 0x172   : > { %v10063_v45 = vcombine.low %v1369_v23, %v1372_v35  ;;  %v13808_v24 = vsel %vm13521_vm8, %v10016_v30, %v1375_v41  ;;  %v10017_v29 = vrot.slane %v1229_v51, 9  ;;  %v1382_v56 = vrot.slane %v13456_v13, 5  ;;  %17340 = vst [vmem:[#allocation17_spill] sm:$0xff] %v13822_v9  ;;  %v13875_v23 = vld [vmem:[#allocation2 + $0x24] sm:$0xf] }
 0x173   : > { %v13813_v25 = vsel %vm13521_vm8, %v1377_v22, %v1378_v62  ;;  %v13817_v57 = vrot.slane %v2246_v33, 4  ;;  %v1385_v42 = vrot.slane %v13438_v50, 5  ;;  %v10082_v47 = vrot.slane %v2097_v49, 9  ;;  %10875 = vmatpush3.bf16.msra.mxu0 %v12186_v8  ;;  %v13836_v50 = vpop.f32.mrb[1].mxu0  ;;  %v3881_v8 = vld [vmem:[#allocation2 + $0x24] sm:$0xe] }
 0x174   : > { %v10127_v27 = vcombine.low %v13785_v31, %v13800_v3  ;;  %v13828_v13 = vsel %vm13521_vm8, %v10080_v21, %v2239_v55  ;;  %v13832_v4 = vsel %vm13521_vm8, %v2241_v5, %v2242_v0  ;;  %v1384_v7 = vrot.slane %v1382_v56, 4  ;;  %17341 = vst [vmem:[#allocation18_spill] sm:$0xff] %v13836_v50  ;;  %v13845_v63 = vpop.f32.mrb[2].mxu0 }
 0x175   : > { %11437 = vmatmul.mubr.bf16.gmra.mrb[80].mxu0 %v10124_v12  ;;  %11489 = vmatmul.mubr.bf16.gmra.mrb[84].mxu1 %v10062_v14  ;;  %v10064_v18 = vcombine.low %v13808_v24, %v13813_v25  ;;  %v2253_v60 = vrot.slane %v13535_v16, 5  ;;  %v2256_v58 = vrot.slane %v13537_v48, 5  ;;  %v10018_v10 = vrot.slane %v1230_v52, 9  ;;  %17342 = vst [vmem:[#allocation19_spill] sm:$0xff] %v13845_v63  ;;  %v3880_v16 = vld [vmem:[#allocation2 + $0x18] sm:$0xe] }
 0x176   : > { %11440 = vmatprep.mubr.bf16.mxu0 %v10125_v17  ;;  %11492 = vmatprep.mubr.bf16.mxu1 %v10063_v45  ;;  %v1383_v34 = vsel %vm13521_vm8, %v10017_v29, %v1382_v56  ;;  %v1389_v43 = vrot.slane %v13498_v11, 5  ;;  %v1392_v12 = vrot.slane %v13506_v20, 5  ;;  %v3497_v31 = vshrl.u32 %v13804_v44, 16  ;;  %v13855_v26 = vpop.f32.mrb[3].mxu0  ;;  %v13857_v48 = vpop.f32.mrb[0].mxu1 }
 0x177   : > { %17343 = vst [vmem:[#allocation20_spill] sm:$0xff] %v13855_v26  ;;  %v1386_v1 = vsel %vm13521_vm8, %v1384_v7, %v1385_v42  ;;  %v13863_v2 = vsel %vm13521_vm8, %v10082_v47, %v2253_v60  ;;  %v2255_v46 = vrot.slane %v2253_v60, 4  ;;  %v3500_v17 = vshll.u32 %v13804_v44, 16  ;;  %v13866_v11 = vld [vmem:[#allocation2 + $0x28] sm:$0xf]  ;;  %v13868_v20 = vpop.f32.mrb[1].mxu1 }
 0x178   : > { %v13872_v51 = vsel %vm13521_vm8, %v10018_v10, %v1389_v43  ;;  %v1391_v21 = vrot.slane %v1389_v43, 4  ;;  %v3499_v55 = vrot.slane %v3497_v31, 4  ;;  %v3506_v30 = vshll.u32 %v13820_v15, 16  ;;  %v13877_v35 = vpop.f32.mrb[2].mxu1  ;;  %v13885_v14 = vld [vmem:[#allocation2 + $0x2c] sm:$0x1] }
 0x179   : > { %v13881_v61 = vsel %vm13521_vm8, %v2255_v46, %v2256_v58  ;;  %v3502_v41 = vrot.slane %v3500_v17, 5  ;;  %v3510_v62 = vshrl.u32 %v13820_v15, 16  ;;  %v3516_v49 = vshll.u32 %v13834_v40, 16  ;;  %v13887_v5 = vpop.f32.mrb[3].mxu1  ;;  %v13899_v25 = vpop.f32.mrb[4].mxu0 }
 0x17a   : > { %v10065_v0 = vcombine.low %v1383_v34, %v1386_v1  ;;  %v13893_v3 = vsel %vm13521_vm8, %v1391_v21, %v1392_v12  ;;  %v13895_v22 = vrot.slane %v3506_v30, 5  ;;  %v10179_v56 = vrot.slane %v3880_v16, 9  ;;  %17344 = vst [vmem:[#allocation21_spill] sm:$0xff] %v13899_v25  ;;  %v13912_v58 = vpop.f32.mrb[5].mxu0  ;;  %v13933_v34 = vld [vmem:[#allocation2 + $0x38] sm:$0x1] }
 0x17b   : > { %v10066_v45 = vcombine.low %v13872_v51, %v13893_v3  ;;  %v3503_v24 = vor.u32 %v3502_v41, %v3499_v55  ;;  %v3512_v29 = vrot.slane %v3510_v62, 4  ;;  %v13907_v42 = vsel %vm13521_vm8, %v10081_v39, %v2246_v33  ;;  %17345 = vst [vmem:[#allocation22_spill] sm:$0xff] %v13912_v58  ;;  %v13921_v39 = vpop.f32.mrb[6].mxu0  ;;  %v3882_v43 = vld [vmem:[#allocation2 + $0x30] sm:$0xe] }
 0x17c   : > { %v3946_v47 = vrot.slane %v13820_v15, 5  ;;  %v3949_v7 = vrot.slane %v13834_v40, 5  ;;  %v3953_v60 = vrot.slane %v13866_v11, 5  ;;  %v13918_v37 = vrot.slane %v3516_v49, 5  ;;  %17346 = vst [vmem:[#allocation23_spill] sm:$0xff] %v13921_v39  ;;  %v13935_v12 = vpop.f32.mrb[7].mxu0 }
 0x17d   : > { %11441 = vmatmul.mubr.bf16.gmra.mrb[84].mxu0 %v10126_v28  ;;  %11493 = vmatmul.mubr.bf16.gmra.mrb[88].mxu1 %v10064_v18  ;;  %v3513_v53 = vor.u32 %v3512_v29, %v13895_v22  ;;  %v10180_v10 = vrot.slane %v3881_v8, 9  ;;  %v3521_v33 = vshrl.u32 %v13875_v23, 16  ;;  %v2250_v40 = vsel %vm13521_vm8, %v13817_v57, %v2249_v6  ;;  %v13931_v18 = vld [vmem:[#allocation2 + $0x34] sm:$0xf]  ;;  %17347 = vst [vmem:[#allocation24_spill] sm:$0xff] %v13935_v12  ;;  %v13946_v51 = vpop.f32.mrb[4].mxu1 }
 0x17e   : > { %11444 = vmatprep.mubr.bf16.mxu0 %v10127_v27  ;;  %11496 = vmatprep.mubr.bf16.mxu1 %v10065_v0  ;;  %v13928_v38 = vrot.slane %v3503_v24, 4  ;;  %v3948_v59 = vrot.slane %v3946_v47, 4  ;;  %v3956_v28 = vrot.slane %v13885_v14, 5  ;;  %v3947_v32 = vsel %vm13521_vm8, %v10179_v56, %v3946_v47  ;;  %v13944_v17 = vld [vmem:[#allocation2 + $0x40] sm:$0xf]  ;;  %v13959_v49 = vpop.f32.mrb[5].mxu1 }
 0x17f   : > { %v3955_v27 = vrot.slane %v3953_v60, 4  ;;  %v3523_v31 = vrot.slane %v3521_v33, 4  ;;  %v3524_v6 = vshll.u32 %v13875_v23, 16  ;;  %v3514_v57 = vrot.slane %v3513_v53, 4  ;;  %v13955_v41 = vld [vmem:[#allocation2 + $0x3c] sm:$0xe] }
 0x180   : > { %v3950_v16 = vsel %vm13521_vm8, %v3948_v59, %v3949_v7  ;;  %v3530_v1 = vshll.u32 %v13866_v11, 16  ;;  %v3534_v46 = vshrl.u32 %v13866_v11, 16  ;;  %v10128_v21 = vcombine.low %v13828_v13, %v13832_v4  ;;  %v13957_v62 = vld [vmem:[#allocation2 + $0x30] sm:$0xf]  ;;  %v13964_v13 = vpop.f32.mrb[6].mxu1 }
 0x181   : > { %v10129_v55 = vcombine.low %v13907_v42, %v2250_v40  ;;  %v13953_v30 = vsel %vm13521_vm8, %v10180_v10, %v3953_v60  ;;  %v3526_v8 = vrot.slane %v3524_v6, 5  ;;  %v10227_v0 = vcombine.low %v3947_v32, %v3950_v16  ;;  %v13968_v7 = vpop.f32.mrb[7].mxu1  ;;  %v13979_v33 = vld [vmem:[#allocation2 + $0x44] sm:$0x1]  ;;  %v13996_v16 = vld [vmem:[#allocation2 + $0x4c] sm:$0xf] }
 0x182   : > { %v13961_v3 = vrot.slane %v3530_v1, 5  ;;  %v3536_v24 = vrot.slane %v3534_v46, 4  ;;  %v3540_v29 = vshll.u32 %v13885_v14, 16  ;;  %v10181_v56 = vrot.slane %v3882_v43, 9  ;;  %v13981_v40 = vpop.f32.mrb[8].mxu0 }
 0x183   : > { %v3527_v4 = vor.u32 %v3526_v8, %v3523_v31  ;;  %v3960_v42 = vrot.slane %v13931_v18, 5  ;;  %v3963_v47 = vrot.slane %v13933_v34, 5  ;;  %v3509_v60 = vsel %vm12923_vm5, %v13928_v38, %v13895_v22  ;;  %17348 = vst [vmem:[#allocation25_spill] sm:$0xff] %v13981_v40  ;;  %v13989_v32 = vpop.f32.mrb[9].mxu0  ;;  %v14075_v40 = vld [vmem:[#allocation2 + $0x70] sm:$0xf] }
 0x184   : > { %v3957_v53 = vsel %vm13521_vm8, %v3955_v27, %v3956_v28  ;;  %v3537_v14 = vor.u32 %v3536_v24, %v13961_v3  ;;  %v13977_v10 = vrot.slane %v3540_v29, 5  ;;  %v3519_v59 = vsel %vm12923_vm5, %v3514_v57, %v13918_v37  ;;  %v3884_v28 = vld [vmem:[#allocation2 + $0x48] sm:$0xe]  ;;  %17349 = vst [vmem:[#allocation26_spill] sm:$0xff] %v13989_v32  ;;  %v13998_v37 = vld [vmem:[#allocation2 + $0x50] sm:$0x1] }
 0x185   : > { %11445 = vmatmul.mubr.bf16.gmra.mrb[88].mxu0 %v10128_v21  ;;  %11497 = vmatmul.mubr.bf16.gmra.mrb[92].mxu1 %v10066_v45  ;;  %v13986_v43 = vrot.slane %v3527_v4, 4  ;;  %v3962_v22 = vrot.slane %v3960_v42, 4  ;;  %v3967_v38 = vrot.slane %v13944_v17, 5  ;;  %v10182_v31 = vrot.slane %v13955_v41, 9  ;;  %v14000_v57 = vpop.f32.mrb[10].mxu0 }
 0x186   : > { %11448 = vmatprep.mubr.bf16.mxu0 %v10129_v55  ;;  %11516 = vmatprep.mubr.bf16.mxu1 %v10227_v0  ;;  %v13991_v27 = vrot.slane %v3537_v14, 4  ;;  %v3545_v45 = vshrl.u32 %v13957_v62, 16  ;;  %v3548_v6 = vshll.u32 %v13957_v62, 16  ;;  %17350 = vst [vmem:[#allocation27_spill] sm:$0xff] %v14000_v57  ;;  %v3961_v1 = vsel %vm13521_vm8, %v10181_v56, %v3960_v42  ;;  %v14007_v55 = vpop.f32.mrb[11].mxu0  ;;  %v14012_v4 = vpop.f32.mrb[8].mxu1 }
 0x187   : > { %v3964_v46 = vsel %vm13521_vm8, %v3962_v22, %v3963_v47  ;;  %v3970_v21 = vrot.slane %v13979_v33, 5  ;;  %17351 = vst [vmem:[#allocation28_spill] sm:$0xff] %v14007_v55  ;;  %v10228_v8 = vcombine.low %v13953_v30, %v3957_v53  ;;  %v3969_v41 = vrot.slane %v3967_v38, 4  ;;  %v14010_v29 = vld [vmem:[#allocation2 + $0x58] sm:$0xf]  ;;  %v14024_v53 = vpop.f32.mrb[9].mxu1 }
 0x188   : > { %v3547_v0 = vrot.slane %v3545_v45, 4  ;;  %v3550_v24 = vrot.slane %v3548_v6, 5  ;;  %v10211_v14 = vcombine.low %v3509_v60, %v3519_v59  ;;  %v3533_v56 = vsel %vm12923_vm5, %v13986_v43, %v13961_v3  ;;  %v14020_v22 = vld [vmem:[#allocation2 + $0x54] sm:$0xe]  ;;  %v14022_v30 = vld [vmem:[#allocation2 + $0x3c] sm:$0xf] }
 0x189   : > { %v3554_v42 = vshll.u32 %v13931_v18, 16  ;;  %v3558_v47 = vshrl.u32 %v13931_v18, 16  ;;  %v10229_v45 = vcombine.low %v3961_v1, %v3964_v46  ;;  %v3564_v52 = vshll.u32 %v13933_v34, 16  ;;  %v14027_v59 = vpop.f32.mrb[10].mxu1  ;;  %v14083_v26 = vld [vmem:[#allocation2 + $0x6c] sm:$0xe] }
 0x18a   : > { %v3551_v6 = vor.u32 %v3550_v24, %v3547_v0  ;;  %v10183_v60 = vrot.slane %v3884_v28, 9  ;;  %v3974_v43 = vrot.slane %v13996_v16, 5  ;;  %v3977_v55 = vrot.slane %v13998_v37, 5  ;;  %v14033_v57 = vpop.f32.mrb[11].mxu1  ;;  %v14045_v0 = vld [vmem:[#allocation2 + $0x5c] sm:$0x1] }
 0x18b   : > { %v14029_v54 = vrot.slane %v3554_v42, 5  ;;  %v3560_v3 = vrot.slane %v3558_v47, 4  ;;  %v3543_v1 = vsel %vm12923_vm5, %v13991_v27, %v13977_v10  ;;  %v3968_v34 = vsel %vm13521_vm8, %v10182_v31, %v3967_v38  ;;  %v14054_v38 = vpop.f32.mrb[12].mxu0  ;;  %v14087_v12 = vld [vmem:[#allocation2 + $0x74] sm:$0x1] }
 0x18c   : > { %v3971_v28 = vsel %vm13521_vm8, %v3969_v41, %v3970_v21  ;;  %v14043_v46 = vrot.slane %v3551_v6, 4  ;;  %v17352_v24 = vcombine.low %v13863_v2, %v13881_v61  ;;  %v14051_v47 = vrot.slane %v3564_v52, 5  ;;  %17353 = vst [vmem:[#allocation29_spill] sm:$0xff] %v14054_v38  ;;  %v3886_v52 = vld [vmem:[#allocation2 + $0x60] sm:$0xe]  ;;  %v14063_v41 = vpop.f32.mrb[13].mxu0 }
 0x18d   : > { %11517 = vmatmul.mubr.bf16.vlgmr.msra.gmra.mrb[64].mxu1 %v10228_v8  ;;  %v3561_v42 = vor.u32 %v3560_v3, %v14029_v54  ;;  %v3976_v10 = vrot.slane %v3974_v43, 4  ;;  %v3981_v27 = vrot.slane %v14010_v29, 5  ;;  %v3975_v31 = vsel %vm13521_vm8, %v10183_v60, %v3974_v43  ;;  %v14061_v8 = vld [vmem:[#allocation2 + $0x64] sm:$0xf]  ;;  %17354 = vst [vmem:[#allocation30_spill] sm:$0xff] %v14063_v41 }
 0x18e   : > { %11449 = vmatmul.mubr.bf16.gmra.mrb[92].mxu0 %v17352_v24  ;;  %11520 = vmatprep.mubr.bf16.mxu1 %v10229_v45  ;;  %v10184_v21 = vrot.slane %v14020_v22, 9  ;;  %v3569_v2 = vshrl.u32 %v14022_v30, 16  ;;  %v3572_v61 = vshll.u32 %v14022_v30, 16  ;;  %v3984_v3 = vrot.slane %v14045_v0, 5  ;;  %v14070_v60 = vld [vmem:[#allocation2 + $0x68] sm:$0x1] }
 0x18f   : > { %4489 = vmatprep.mubr.bf16.mxu0 %v10211_v14  ;;  %v14065_v6 = vrot.slane %v3561_v42, 4  ;;  %v3978_v14 = vsel %vm13521_vm8, %v3976_v10, %v3977_v55  ;;  %v3983_v45 = vrot.slane %v3981_v27, 4  ;;  %v14072_v22 = vpop.f32.mrb[14].mxu0  ;;  %v3578_v32 = vshll.u32 %v13944_v17, 16  ;;  %v14089_v39 = vpop.f32.mrb[12].mxu1 }
 0x190   : > { %17355 = vst [vmem:[#allocation31_spill] sm:$0xff] %v14072_v22  ;;  %v3571_v43 = vrot.slane %v3569_v2, 4  ;;  %v3574_v24 = vrot.slane %v3572_v61, 5  ;;  %v14077_v38 = vpop.f32.mrb[15].mxu0  ;;  %v10195_v42 = vcombine.low %v13804_v44, %v13820_v15  ;;  %v10230_v41 = vcombine.low %v3968_v34, %v3971_v28  ;;  %17357 = vst [vmem:[#allocation33_spill] sm:$0xff] %v14089_v39 }
 0x191   : > { %17356 = vst [vmem:[#allocation32_spill] sm:$0xff] %v14077_v38  ;;  %v3582_v55 = vshrl.u32 %v13944_v17, 16  ;;  %v3588_v10 = vshll.u32 %v13979_v33, 16  ;;  %v10212_v63 = vcombine.low %v3533_v56, %v3543_v1  ;;  %v10231_v22 = vcombine.low %v3975_v31, %v3978_v14  ;;  %v14096_v28 = vld [vmem:[#allocation2 + $0x48] sm:$0xf]  ;;  %v14098_v56 = vpop.f32.mrb[13].mxu1 }
 0x192   : > { %v3575_v2 = vor.u32 %v3574_v24, %v3571_v43  ;;  %v14085_v61 = vrot.slane %v3578_v32, 5  ;;  %v3557_v44 = vsel %vm12923_vm5, %v14043_v46, %v14029_v54  ;;  %v10185_v34 = vrot.slane %v3886_v52, 9  ;;  %17358 = vst [vmem:[#allocation34_spill] sm:$0xff] %v14098_v56  ;;  %v14109_v46 = vpop.f32.mrb[14].mxu1 }
 0x193   : > { %v3584_v15 = vrot.slane %v3582_v55, 4  ;;  %v3988_v33 = vrot.slane %v14061_v8, 5  ;;  %v3567_v32 = vsel %vm12923_vm5, %v14065_v6, %v14051_v47  ;;  %v3982_v1 = vsel %vm13521_vm8, %v10184_v21, %v3981_v27  ;;  %17359 = vst [vmem:[#allocation35_spill] sm:$0xff] %v14109_v46  ;;  %v14115_v55 = vpop.f32.mrb[15].mxu1  ;;  %v14122_v6 = vld [vmem:[#allocation2 + $0x7c] sm:$0xf] }
 0x194   : > { %v14106_v31 = vrot.slane %v3588_v10, 5  ;;  %v3991_v54 = vrot.slane %v14070_v60, 5  ;;  %v14111_v52 = vrot.slane %v3575_v2, 4  ;;  %v3995_v24 = vrot.slane %v14075_v40, 5  ;;  %17360 = vst [vmem:[#allocation36_spill] sm:$0xff] %v14115_v55  ;;  %v14124_v10 = vpop.f32.mrb[16].mxu0 }
 0x195   : > { %11521 = vmatmul.mubr.bf16.gmra.mrb[68].mxu1 %v10230_v41  ;;  %v3585_v14 = vor.u32 %v3584_v15, %v14085_v61  ;;  %v3990_v43 = vrot.slane %v3988_v33, 4  ;;  %v3985_v47 = vsel %vm13521_vm8, %v3983_v45, %v3984_v3  ;;  %v10186_v27 = vrot.slane %v14083_v26, 9  ;;  %17361 = vst [vmem:[#allocation37_spill] sm:$0xff] %v14124_v10  ;;  %v14131_v3 = vld [vmem:[#allocation2 + $0x80] sm:$0x1]  ;;  %v14133_v26 = vpop.f32.mrb[17].mxu0 }
 0x196   : > { %4490 = vmatmul.mubr.bf16.vlgmr.msra.gmra.mrb[96].mxu0 %v10195_v42  ;;  %11524 = vmatprep.mubr.bf16.mxu1 %v10231_v22  ;;  %v3593_v21 = vshrl.u32 %v14096_v28, 16  ;;  %v3596_v41 = vshll.u32 %v14096_v28, 16  ;;  %v3888_v42 = vld [vmem:[#allocation2 + $0x78] sm:$0xe]  ;;  %v3989_v15 = vsel %vm13521_vm8, %v10185_v34, %v3988_v33  ;;  %v3998_v45 = vrot.slane %v14087_v12, 5  ;;  %17362 = vst [vmem:[#allocation38_spill] sm:$0xff] %v14133_v26 }
 0x197   : > { %4497 = vmatprep.mubr.bf16.mxu0 %v10212_v63  ;;  %v3586_v2 = vrot.slane %v3585_v14, 4  ;;  %v3992_v63 = vsel %vm13521_vm8, %v3990_v43, %v3991_v54  ;;  %v10196_v22 = vcombine.low %v13875_v23, %v13866_v11  ;;  %v3602_v10 = vshll.u32 %v13996_v16, 16  ;;  %v14138_v14 = vpop.f32.mrb[18].mxu0  ;;  %v14142_v43 = vld [vmem:[#allocation2 + $0x88] sm:$0xf] }
 0x198   : > { %v3595_v38 = vrot.slane %v3593_v21, 4  ;;  %v3598_v50 = vrot.slane %v3596_v41, 5  ;;  %17363 = vst [vmem:[#allocation39_spill] sm:$0xff] %v14138_v14  ;;  %v10232_v9 = vcombine.low %v3982_v1, %v3985_v47  ;;  %v3997_v34 = vrot.slane %v3995_v24, 4  ;;  %v14144_v58 = vpop.f32.mrb[19].mxu0  ;;  %v14150_v21 = vpop.f32.mrb[16].mxu1 }
 0x199   : > { %v3606_v33 = vshrl.u32 %v13996_v16, 16  ;;  %v3612_v54 = vshll.u32 %v13998_v37, 16  ;;  %17364 = vst [vmem:[#allocation40_spill] sm:$0xff] %v14144_v58  ;;  %v10213_v26 = vcombine.low %v3557_v44, %v3567_v32  ;;  %v10233_v25 = vcombine.low %v3989_v15, %v3992_v63  ;;  %v14148_v23 = vld [vmem:[#allocation2 + $0x8c] sm:$0x1]  ;;  %17365 = vst [vmem:[#allocation41_spill] sm:$0xff] %v14150_v21 }
 0x19a   : > { %v3599_v55 = vor.u32 %v3598_v50, %v3595_v38  ;;  %v14146_v11 = vrot.slane %v3602_v10, 5  ;;  %v10197_v1 = vcombine.low %v13957_v62, %v13931_v18  ;;  %v10187_v41 = vrot.slane %v3888_v42, 9  ;;  %v14155_v14 = vld [vmem:[#allocation2 + $0x54] sm:$0xf]  ;;  %v14157_v46 = vpop.f32.mrb[17].mxu1 }
 0x19b   : > { %v3608_v47 = vrot.slane %v3606_v33, 4  ;;  %v4002_v37 = vrot.slane %v14122_v6, 5  ;;  %17366 = vst [vmem:[#allocation42_spill] sm:$0xff] %v14157_v46  ;;  %v3581_v50 = vsel %vm12923_vm5, %v14111_v52, %v14085_v61  ;;  %v3591_v38 = vsel %vm12923_vm5, %v3586_v2, %v14106_v31  ;;  %v3889_v44 = vld [vmem:[#allocation2 + $0x84] sm:$0xe]  ;;  %v14169_v32 = vpop.f32.mrb[18].mxu1 }
 0x19c   : > { %v3996_v18 = vsel %vm13521_vm8, %v10186_v27, %v3995_v24  ;;  %v4005_v62 = vrot.slane %v14131_v3, 5  ;;  %17367 = vst [vmem:[#allocation43_spill] sm:$0xff] %v14169_v32  ;;  %v3999_v42 = vsel %vm13521_vm8, %v3997_v34, %v3998_v45  ;;  %v14174_v61 = vrot.slane %v3612_v54, 5  ;;  %v14176_v15 = vpop.f32.mrb[19].mxu1  ;;  %v14183_v2 = vld [vmem:[#allocation2 + $0x94] sm:$0xf] }
 0x19d   : > { %11525 = vmatmul.mubr.bf16.gmra.mrb[72].mxu1 %v10232_v9  ;;  %v3609_v10 = vor.u32 %v3608_v47, %v14146_v11  ;;  %v4004_v52 = vrot.slane %v4002_v37, 4  ;;  %17368 = vst [vmem:[#allocation44_spill] sm:$0xff] %v14176_v15  ;;  %v14178_v31 = vrot.slane %v3599_v55, 4  ;;  %v4009_v24 = vrot.slane %v14142_v43, 5  ;;  %v3890_v63 = vld [vmem:[#allocation2 + $0x90] sm:$0xe] }
 0x19e   : > { %4498 = vmatmul.mubr.bf16.gmra.mrb[100].mxu0 %v10196_v22  ;;  %11528 = vmatprep.mubr.bf16.mxu1 %v10233_v25  ;;  %v3617_v27 = vshrl.u32 %v14155_v14, 16  ;;  %v3620_v9 = vshll.u32 %v14155_v14, 16  ;;  %v4003_v45 = vsel %vm13521_vm8, %v10187_v41, %v4002_v37  ;;  %v10188_v34 = vrot.slane %v3889_v44, 9  ;;  %v14190_v55 = vld [vmem:[#allocation2 + $0x98] sm:$0x1] }
 0x19f   : > { %4505 = vmatprep.mubr.bf16.mxu0 %v10213_v26  ;;  %v4006_v22 = vsel %vm13521_vm8, %v4004_v52, %v4005_v62  ;;  %v4012_v25 = vrot.slane %v14148_v23, 5  ;;  %v3610_v26 = vrot.slane %v3609_v10, 4  ;;  %v3626_v47 = vshll.u32 %v14010_v29, 16  ;;  %v14193_v58 = vld [vmem:[#allocation2 + $0xa0] sm:$0xf] }
 0x1a0   : > { %v3619_v33 = vrot.slane %v3617_v27, 4  ;;  %v3622_v54 = vrot.slane %v3620_v9, 5  ;;  %v10214_v15 = vcombine.low %v3581_v50, %v3591_v38  ;;  %v10234_v32 = vcombine.low %v3996_v18, %v3999_v42  ;;  %v3891_v37 = vld [vmem:[#allocation2 + $0x9c] sm:$0xe]  ;;  %v14197_v62 = vld [vmem:[#allocation2 + $0x60] sm:$0xf] }
 0x1a1   : > { %v3630_v46 = vshrl.u32 %v14010_v29, 16  ;;  %v3636_v41 = vshll.u32 %v14045_v0, 16  ;;  %v10235_v44 = vcombine.low %v4003_v45, %v4006_v22  ;;  %v4011_v52 = vrot.slane %v4009_v24, 4  ;;  %v14201_v10 = vld [vmem:[#allocation2 + $0xa4] sm:$0x1]  ;;  %v14216_v22 = vpop.f32.mrb[20].mxu1 }
 0x1a2   : > { %v3623_v21 = vor.u32 %v3622_v54, %v3619_v33  ;;  %v14199_v56 = vrot.slane %v3626_v47, 5  ;;  %v3605_v50 = vsel %vm12923_vm5, %v14178_v31, %v14146_v11  ;;  %v10189_v18 = vrot.slane %v3890_v63, 9  ;;  %17369 = vst [vmem:[#allocation45_spill] sm:$0xff] %v14216_v22  ;;  %v14222_v33 = vpop.f32.mrb[21].mxu1 }
 0x1a3   : > { %v3632_v38 = vrot.slane %v3630_v46, 4  ;;  %v4016_v42 = vrot.slane %v14183_v2, 5  ;;  %v3615_v0 = vsel %vm12923_vm5, %v3610_v26, %v14174_v61  ;;  %v4010_v27 = vsel %vm13521_vm8, %v10188_v34, %v4009_v24  ;;  %17370 = vst [vmem:[#allocation46_spill] sm:$0xff] %v14222_v33  ;;  %v14230_v26 = vpop.f32.mrb[22].mxu1 }
 0x1a4   : > { %v14213_v9 = vrot.slane %v3636_v41, 5  ;;  %v4019_v45 = vrot.slane %v14190_v55, 5  ;;  %v14218_v11 = vrot.slane %v3623_v21, 4  ;;  %v4023_v63 = vrot.slane %v14193_v58, 5  ;;  %v3892_v21 = vld [vmem:[#allocation2 + $0xa8] sm:$0xe] }
 0x1a5   : > { %11529 = vmatmul.mubr.bf16.gmra.mrb[76].mxu1 %v10234_v32  ;;  %v3633_v46 = vor.u32 %v3632_v38, %v14199_v56  ;;  %v4018_v31 = vrot.slane %v4016_v42, 4  ;;  %v4013_v61 = vsel %vm13521_vm8, %v4011_v52, %v4012_v25  ;;  %v10190_v24 = vrot.slane %v3891_v37, 9  ;;  %v14228_v32 = vld [vmem:[#allocation2 + $0xac] sm:$0xf]  ;;  %17371 = vst [vmem:[#allocation47_spill] sm:$0xff] %v14230_v26  ;;  %v14237_v25 = vpop.f32.mrb[23].mxu1 }
 0x1a6   : > { %4506 = vmatmul.mubr.bf16.gmra.mrb[104].mxu0 %v10197_v1  ;;  %11532 = vmatprep.mubr.bf16.mxu1 %v10235_v44  ;;  %v3641_v34 = vshrl.u32 %v14197_v62, 16  ;;  %v3644_v1 = vshll.u32 %v14197_v62, 16  ;;  %v4017_v47 = vsel %vm13521_vm8, %v10189_v18, %v4016_v42  ;;  %v4026_v41 = vrot.slane %v14201_v10, 5  ;;  %17372 = vst [vmem:[#allocation48_spill] sm:$0xff] %v14237_v25  ;;  %v14244_v42 = vld [vmem:[#allocation2 + $0xb0] sm:$0x1] }
 0x1a7   : > { %4513 = vmatprep.mubr.bf16.mxu0 %v10214_v15  ;;  %v3634_v54 = vrot.slane %v3633_v46, 4  ;;  %v4020_v15 = vsel %vm13521_vm8, %v4018_v31, %v4019_v45  ;;  %v4025_v37 = vrot.slane %v4023_v63, 4  ;;  %v3650_v38 = vshll.u32 %v14061_v8, 16  ;;  %v14248_v25 = vld [vmem:[#allocation2 + $0xb8] sm:$0xf] }
 0x1a8   : > { %v3643_v44 = vrot.slane %v3641_v34, 4  ;;  %v3646_v52 = vrot.slane %v3644_v1, 5  ;;  %v10198_v33 = vcombine.low %v14022_v30, %v13944_v17  ;;  %v10236_v26 = vcombine.low %v4010_v27, %v4013_v61  ;;  %v3893_v34 = vld [vmem:[#allocation2 + $0xb4] sm:$0xe] }
 0x1a9   : > { %v3654_v46 = vshrl.u32 %v14061_v8, 16  ;;  %v3660_v18 = vshll.u32 %v14070_v60, 16  ;;  %v10215_v45 = vcombine.low %v3605_v50, %v3615_v0  ;;  %v10237_v31 = vcombine.low %v4017_v47, %v4020_v15  ;;  %v14255_v60 = vld [vmem:[#allocation2 + $0x6c] sm:$0xf]  ;;  %v14265_v15 = vld [vmem:[#allocation2 + $0xbc] sm:$0x1] }
 0x1aa   : > { %v3647_v22 = vor.u32 %v3646_v52, %v3643_v44  ;;  %v14246_v39 = vrot.slane %v3650_v38, 5  ;;  %v3629_v17 = vsel %vm12923_vm5, %v14218_v11, %v14199_v56  ;;  %v10191_v27 = vrot.slane %v3892_v21, 9  ;;  %17373 = vst [vmem:[#allocation49_spill] sm:$0xff] %v14265_v15 }
 0x1ab   : > { %v3656_v30 = vrot.slane %v3654_v46, 4  ;;  %v4030_v61 = vrot.slane %v14228_v32, 5  ;;  %v3639_v50 = vsel %vm12923_vm5, %v3634_v54, %v14213_v9  ;;  %v4024_v0 = vsel %vm13521_vm8, %v10190_v24, %v4023_v63  ;;  %v14267_v56 = vpop.f32.mrb[20].mxu0 }
 0x1ac   : > { %v4027_v1 = vsel %vm13521_vm8, %v4025_v37, %v4026_v41  ;;  %v4033_v47 = vrot.slane %v14244_v42, 5  ;;  %17374 = vst [vmem:[#allocation50_spill] sm:$0xff] %v14267_v56  ;;  %v3662_v21 = vrot.slane %v3660_v18, 5  ;;  %v4037_v9 = vrot.slane %v14248_v25, 5  ;;  %v14271_v54 = vpop.f32.mrb[21].mxu0 }
 0x1ad   : > { %11533 = vmatmul.mubr.bf16.gmra.mrb[80].mxu1 %v10236_v26  ;;  %v3657_v11 = vor.u32 %v3656_v30, %v14246_v39  ;;  %v4032_v44 = vrot.slane %v4030_v61, 4  ;;  %17375 = vst [vmem:[#allocation51_spill] sm:$0xff] %v14271_v54  ;;  %v3648_v63 = vrot.slane %v3647_v22, 4  ;;  %v10192_v24 = vrot.slane %v3893_v34, 9  ;;  %v14275_v52 = vpop.f32.mrb[22].mxu0 }
 0x1ae   : > { %4514 = vmatmul.mubr.bf16.gmra.mrb[108].mxu0 %v10198_v33  ;;  %11536 = vmatprep.mubr.bf16.mxu1 %v10237_v31  ;;  %v3665_v41 = vshrl.u32 %v14255_v60, 16  ;;  %v3668_v37 = vshll.u32 %v14255_v60, 16  ;;  %17376 = vst [vmem:[#allocation52_spill] sm:$0xff] %v14275_v52  ;;  %v4031_v26 = vsel %vm13521_vm8, %v10191_v27, %v4030_v61  ;;  %v4040_v46 = vrot.slane %v14265_v15, 5  ;;  %v14282_v18 = vld [vmem:[#allocation2 + $0xc4] sm:$0xf] }
 0x1af   : > { %4521 = vmatprep.mubr.bf16.mxu0 %v10215_v45  ;;  %v3658_v33 = vrot.slane %v3657_v11, 4  ;;  %v4034_v38 = vsel %vm13521_vm8, %v4032_v44, %v4033_v47  ;;  %17377 = vst [vmem:[#allocation53_spill] sm:$0xff] %v14282_v18  ;;  %v14284_v45 = vpop.f32.mrb[23].mxu0  ;;  %v4039_v22 = vrot.slane %v4037_v9, 4  ;;  %v3674_v30 = vshll.u32 %v14075_v40, 16 }
 0x1b0   : > { %17378 = vst [vmem:[#allocation54_spill] sm:$0xff] %v14284_v45  ;;  %v3667_v31 = vrot.slane %v3665_v41, 4  ;;  %v3670_v34 = vrot.slane %v3668_v37, 5  ;;  %v3894_v54 = vld [vmem:[#allocation2 + $0xc0] sm:$0xe]  ;;  %v10199_v11 = vcombine.low %v14096_v28, %v13996_v16  ;;  %v10216_v52 = vcombine.low %v3629_v17, %v3639_v50 }
 0x1b1   : > { %v10238_v27 = vcombine.low %v4024_v0, %v4027_v1  ;;  %v3678_v61 = vshrl.u32 %v14075_v40, 16  ;;  %v14290_v47 = vld [vmem:[#allocation2 + $0xc8] sm:$0x1]  ;;  %v3653_v44 = vsel %vm12923_vm5, %v3648_v63, %v14246_v39  ;;  %v10239_v45 = vcombine.low %v4031_v26, %v4034_v38  ;;  %v14299_v56 = vld [vmem:[#allocation2 + $0xd0] sm:$0xf]  ;;  %v14301_v15 = vpop.f32.mrb[24].mxu1 }
 0x1b2   : > { %17379 = vst [vmem:[#allocation55_spill] sm:$0xff] %v14290_v47  ;;  %v4038_v41 = vsel %vm13521_vm8, %v10192_v24, %v4037_v9  ;;  %v14297_v37 = vrot.slane %v3674_v30, 5  ;;  %17380 = vst [vmem:[#allocation56_spill] sm:$0xff] %v14299_v56  ;;  %v3663_v16 = vsel %vm12923_vm5, %v3658_v33, %v3662_v21  ;;  %v10193_v17 = vrot.slane %v3894_v54, 9  ;;  %v14306_v0 = vld [vmem:[#allocation2 + $0x78] sm:$0xf] }
 0x1b3   : > { %v3680_v28 = vrot.slane %v3678_v61, 4  ;;  %v4044_v50 = vrot.slane %v14282_v18, 5  ;;  %v14308_v39 = vpop.f32.mrb[25].mxu1  ;;  %v4041_v1 = vsel %vm13521_vm8, %v4039_v22, %v4040_v46  ;;  %v3671_v9 = vor.u32 %v3670_v34, %v3667_v31  ;;  %v14314_v26 = vpop.f32.mrb[24].mxu0  ;;  %v3895_v33 = vld [vmem:[#allocation2 + $0xcc] sm:$0xe] }
 0x1b4   : > { %v3684_v63 = vshll.u32 %v14087_v12, 16  ;;  %v4047_v24 = vrot.slane %v14290_v47, 5  ;;  %17381 = vst [vmem:[#allocation57_spill] sm:$0xff] %v14314_v26  ;;  %v14316_v38 = vpop.f32.mrb[26].mxu1  ;;  %v4051_v30 = vrot.slane %v14299_v56, 5  ;;  %v14320_v61 = vpop.f32.mrb[25].mxu0  ;;  %v10200_v12 = vcombine.low %v14155_v14, %v14010_v29 }
 0x1b5   : > { %11537 = vmatmul.mubr.bf16.gmra.mrb[84].mxu1 %v10238_v27  ;;  %v3681_v21 = vor.u32 %v3680_v28, %v14297_v37  ;;  %v4046_v54 = vrot.slane %v4044_v50, 4  ;;  %17382 = vst [vmem:[#allocation58_spill] sm:$0xff] %v14320_v61  ;;  %v14322_v46 = vpop.f32.mrb[27].mxu1  ;;  %v14326_v22 = vld [vmem:[#allocation2 + $0xd4] sm:$0x1]  ;;  %v3689_v31 = vshrl.u32 %v14306_v0, 16  ;;  %v10217_v27 = vcombine.low %v3653_v44, %v3663_v16 }
 0x1b6   : > { %4522 = vmatmul.mubr.bf16.gmra.mrb[112].mxu0 %v10199_v11  ;;  %17383 = vst [vmem:[#allocation59_spill] sm:$0xff] %v14322_v46  ;;  %11540 = vmatprep.mubr.bf16.mxu1 %v10239_v45  ;;  %17384 = vst [vmem:[#allocation60_spill] sm:$0xff] %v14326_v22  ;;  %v3692_v34 = vshll.u32 %v14306_v0, 16  ;;  %v14330_v11 = vpop.f32.mrb[26].mxu0  ;;  %v10240_v28 = vcombine.low %v4038_v41, %v4041_v1  ;;  %v4045_v56 = vsel %vm13521_vm8, %v10193_v17, %v4044_v50  ;;  %v14339_v26 = vld [vmem:[#allocation2 + $0x84] sm:$0xf] }
 0x1b7   : > { %4529 = vmatprep.mubr.bf16.mxu0 %v10216_v52  ;;  %17385 = vst [vmem:[#allocation61_spill] sm:$0xff] %v14330_v11  ;;  %v4048_v52 = vsel %vm13521_vm8, %v4046_v54, %v4047_v24  ;;  %v14336_v47 = vpop.f32.mrb[27].mxu0  ;;  %v3672_v29 = vrot.slane %v3671_v9, 4  ;;  %v3686_v14 = vrot.slane %v3684_v63, 5  ;;  %v10194_v45 = vrot.slane %v3895_v33, 9 }
 0x1b8   : > { %17386 = vst [vmem:[#allocation62_spill] sm:$0xff] %v14336_v47  ;;  %v3698_v61 = vshll.u32 %v14122_v6, 16  ;;  %v3682_v18 = vrot.slane %v3681_v21, 4  ;;  %v4053_v46 = vrot.slane %v4051_v30, 4  ;;  %v4054_v44 = vrot.slane %v14326_v22, 5 }
 0x1b9   : > { %v3702_v41 = vshrl.u32 %v14122_v6, 16  ;;  %v10241_v16 = vcombine.low %v4045_v56, %v4048_v52  ;;  %v3691_v17 = vrot.slane %v3689_v31, 4  ;;  %v3694_v50 = vrot.slane %v3692_v34, 5  ;;  %v14345_v24 = vpop.f32.mrb[28].mxu1 }
 0x1ba   : > { %v14343_v1 = vrot.slane %v3698_v61, 5  ;;  %v3713_v63 = vshrl.u32 %v14339_v26, 16  ;;  %v14348_v54 = vpop.f32.mrb[29].mxu1  ;;  %v3716_v33 = vshll.u32 %v14339_v26, 16  ;;  %v3722_v21 = vshll.u32 %v14142_v43, 16 }
 0x1bb   : > { %v3704_v9 = vrot.slane %v3702_v41, 4  ;;  %v3726_v22 = vshrl.u32 %v14142_v43, 16  ;;  %v14353_v47 = vpop.f32.mrb[30].mxu1  ;;  %v3677_v56 = vsel %vm12923_vm5, %v3672_v29, %v14297_v37  ;;  %v3687_v61 = vsel %vm12923_vm5, %v3682_v18, %v3686_v14  ;;  %v14362_v34 = vpop.f32.mrb[28].mxu0 }
 0x1bc   : > { %v4052_v31 = vsel %vm13521_vm8, %v10194_v45, %v4051_v30  ;;  %17387 = vst [vmem:[#allocation63_spill] sm:$0xff] %v14362_v34  ;;  %v14364_v52 = vpop.f32.mrb[31].mxu1  ;;  %v3708_v37 = vshll.u32 %v14131_v3, 16  ;;  %v14370_v29 = vpop.f32.mrb[29].mxu0  ;;  %v3715_v18 = vrot.slane %v3713_v63, 4  ;;  %v3718_v14 = vrot.slane %v3716_v33, 5 }
 0x1bd   : > { %11541 = vmatmul.mubr.bf16.gmra.mrb[88].mxu1 %v10240_v28  ;;  %v3695_v28 = vor.u32 %v3694_v50, %v3691_v17  ;;  %v3705_v41 = vor.u32 %v3704_v9, %v14343_v1  ;;  %v14372_v11 = vrot.slane %v3722_v21, 5  ;;  %v3728_v30 = vrot.slane %v3726_v22, 4  ;;  %v14374_v45 = vpop.f32.mrb[30].mxu0 }
 0x1be   : > { %4530 = vmatmul.mubr.bf16.gmra.mrb[116].mxu0 %v10200_v12  ;;  %11544 = vmatprep.mubr.bf16.mxu1 %v10241_v16  ;;  %v4055_v12 = vsel %vm13521_vm8, %v4053_v46, %v4054_v44  ;;  %v14376_v34 = vpop.f32.mrb[31].mxu0  ;;  %v10201_v46 = vcombine.low %v14197_v62, %v14061_v8  ;;  %v10218_v44 = vcombine.low %v3677_v56, %v3687_v61  ;;  %v3710_v50 = vrot.slane %v3708_v37, 5  ;;  %v14398_v56 = vld [vmem:[#allocation2 + $0x9c] sm:$0xf] }
 0x1bf   : > { %4537 = vmatprep.mubr.bf16.mxu0 %v10217_v27  ;;  %17388 = vst [vmem:[#allocation64_spill] sm:$0xff] %v14376_v34  ;;  %v14378_v27 = vld [vmem:[#allocation2 + $0x90] sm:$0xf]  ;;  %v10242_v16 = vcombine.low %v4052_v31, %v4055_v12  ;;  %v3696_v17 = vrot.slane %v3695_v28, 4  ;;  %v3706_v3 = vrot.slane %v3705_v41, 4  ;;  %v3732_v9 = vshll.u32 %v14148_v23, 16 }
 0x1c0   : > { %v3719_v63 = vor.u32 %v3718_v14, %v3715_v18  ;;  %v3729_v33 = vor.u32 %v3728_v30, %v14372_v11  ;;  %v3737_v22 = vshrl.u32 %v14378_v27, 16  ;;  %v3740_v21 = vshll.u32 %v14378_v27, 16 }
 0x1c1   : > { %v3746_v36 = vshll.u32 %v14183_v2, 16  ;;  %v3750_v34 = vshrl.u32 %v14183_v2, 16  ;;  %v14390_v8 = vadd.f32 %v13868_v20, %v13857_v48  ;;  %v14394_v62 = vadd.f32 %v13887_v5, %v13877_v35 }
 0x1c2   : > { %v10202_v31 = vcombine.low %v14255_v60, %v14075_v40  ;;  %v3701_v48 = vsel %vm12923_vm5, %v3696_v17, %v14343_v1  ;;  %v3711_v20 = vsel %vm12923_vm5, %v3706_v3, %v3710_v50  ;;  %v3734_v35 = vrot.slane %v3732_v9, 5 }
 0x1c3   : > { %v14396_v23 = vpop.f32.mrb[32].mxu1  ;;  %v3720_v12 = vrot.slane %v3719_v63, 4  ;;  %v3730_v28 = vrot.slane %v3729_v33, 4  ;;  %v3739_v41 = vrot.slane %v3737_v22, 4  ;;  %v3742_v37 = vrot.slane %v3740_v21, 5 }
 0x1c4   : > { %v14400_v61 = vpop.f32.mrb[33].mxu1  ;;  %v14413_v14 = vrot.slane %v3746_v36, 5  ;;  %v3752_v30 = vrot.slane %v3750_v34, 4  ;;  %v3761_v40 = vshrl.u32 %v14398_v56, 16  ;;  %v3764_v60 = vshll.u32 %v14398_v56, 16 }
 0x1c5   : > { %11545 = vmatmul.mubr.bf16.gmra.mrb[92].mxu1 %v10242_v16  ;;  %v14409_v5 = vpop.f32.mrb[34].mxu1  ;;  %v3770_v1 = vshll.u32 %v14193_v58, 16  ;;  %v14425_v16 = vadd.f32 %v13968_v7, %v13964_v13  ;;  %v10219_v17 = vcombine.low %v3701_v48, %v3711_v20  ;;  %v14427_v36 = vld [vmem:[#allocation2 + $0xa8] sm:$0xf]  ;;  %v3725_v34 = vsel %vm12923_vm5, %v3720_v12, %v14372_v11 }
 0x1c6   : > { %4538 = vmatmul.mubr.bf16.gmra.mrb[120].mxu0 %v10201_v46  ;;  %v14411_v18 = vpop.f32.mrb[35].mxu1  ;;  %v3774_v46 = vshrl.u32 %v14193_v58, 16  ;;  %v3743_v3 = vor.u32 %v3742_v37, %v3739_v41  ;;  %v3756_v50 = vshll.u32 %v14190_v55, 16  ;;  %v3735_v9 = vsel %vm12923_vm5, %v3730_v28, %v3734_v35 }
 0x1c7   : > { %4545 = vmatprep.mubr.bf16.mxu0 %v10218_v44  ;;  %v14421_v44 = vadd.f32 %v13959_v49, %v13946_v51  ;;  %v3753_v51 = vor.u32 %v3752_v30, %v14413_v14  ;;  %v3763_v63 = vrot.slane %v3761_v40, 4  ;;  %v3766_v33 = vrot.slane %v3764_v60, 5 }
 0x1c8   : > { %v14436_v7 = vrot.slane %v3770_v1, 5  ;;  %v3776_v22 = vrot.slane %v3774_v46, 4  ;;  %v3785_v21 = vshrl.u32 %v14427_v36, 16  ;;  %v14441_v11 = vadd.f32 %v14024_v53, %v14012_v4 }
 0x1c9   : > { %v3788_v20 = vshll.u32 %v14427_v36, 16  ;;  %v3794_v35 = vshll.u32 %v14228_v32, 16  ;;  %v10203_v12 = vcombine.low %v14306_v0, %v14122_v6  ;;  %v14452_v41 = vadd.f32 %v14033_v57, %v14027_v59  ;;  %v14460_v0 = vld [vmem:[#allocation2 + $0xb4] sm:$0xf]  ;;  %v17391_v57 = vld [vmem:[#allocation33_spill] sm:$0xff] }
 0x1ca   : > { %v3744_v4 = vrot.slane %v3743_v3, 4  ;;  %v3758_v53 = vrot.slane %v3756_v50, 5  ;;  %v3780_v30 = vshll.u32 %v14201_v10, 16  ;;  %v10220_v40 = vcombine.low %v3725_v34, %v3735_v9  ;;  %v17392_v59 = vld [vmem:[#allocation34_spill] sm:$0xff]  ;;  %v17393_v9 = vld [vmem:[#allocation35_spill] sm:$0xff] }
 0x1cb   : > { %v10652_v49 = vpop.f32.mrb[32].mxu0  ;;  %v3754_v60 = vrot.slane %v3753_v51, 4  ;;  %v3767_v1 = vor.u32 %v3766_v33, %v3763_v63  ;;  %v3777_v46 = vor.u32 %v3776_v22, %v14436_v7  ;;  %v14464_v3 = vadd.f32 %v17392_v59, %v17391_v57  ;;  %v17394_v51 = vld [vmem:[#allocation36_spill] sm:$0xff] }
 0x1cc   : > { %v10653_v13 = vpop.f32.mrb[33].mxu0  ;;  %v3749_v10 = vsel %vm12923_vm5, %v3744_v4, %v14413_v14  ;;  %v3782_v34 = vrot.slane %v3780_v30, 5  ;;  %v14473_v63 = vadd.f32 %v17394_v51, %v17393_v9  ;;  %v3812_v4 = vshll.u32 %v14460_v0, 16 }
 0x1cd   : > { %v14443_v55 = vadd.f32 %v10653_v13, %v10652_v49  ;;  %v10655_v48 = vpop.f32.mrb[34].mxu0  ;;  %v3790_v49 = vrot.slane %v3788_v20, 5  ;;  %v14458_v13 = vrot.slane %v3794_v35, 5  ;;  %v3759_v22 = vsel %vm12923_vm5, %v3754_v60, %v3758_v53  ;;  %v17395_v60 = vld [vmem:[#allocation41_spill] sm:$0xff] }
 0x1ce   : > { %4546 = vmatmul.mubr.bf16.gmra.mrb[124].mxu0 %v10202_v31  ;;  %v3798_v31 = vshrl.u32 %v14228_v32, 16  ;;  %v10656_v28 = vpop.f32.mrb[35].mxu0  ;;  %v3804_v20 = vshll.u32 %v14244_v42, 16  ;;  %v3818_v57 = vshll.u32 %v14248_v25, 16  ;;  %v3822_v53 = vshrl.u32 %v14248_v25, 16 }
 0x1cf   : > { %4553 = vmatprep.mubr.bf16.mxu0 %v10219_v17  ;;  %17389 = vst [vmem:[#allocation65_spill] sm:$0xff] %v14443_v55  ;;  %v14454_v37 = vadd.f32 %v10656_v28, %v10655_v48  ;;  %v3787_v17 = vrot.slane %v3785_v21, 4  ;;  %v3768_v21 = vrot.slane %v3767_v1, 4  ;;  %v3778_v48 = vrot.slane %v3777_v46, 4  ;;  %v17396_v1 = vld [vmem:[#allocation42_spill] sm:$0xff]  ;;  %v17398_v46 = vld [vmem:[#allocation44_spill] sm:$0xff] }
 0x1d0   : > { %v3800_v6 = vrot.slane %v3798_v31, 4  ;;  %v14466_v50 = vpop.f32.mrb[36].mxu1  ;;  %v3809_v28 = vshrl.u32 %v14460_v0, 16  ;;  %v14489_v42 = vadd.f32 %v17396_v1, %v17395_v60  ;;  %v14500_v59 = vrot.slane %v3804_v20, 5  ;;  %v17430_v55 = vld [vmem:[#allocation27_spill] sm:$0xff] }
 0x1d1   : > { %17390 = vst [vmem:[#allocation66_spill] sm:$0xff] %v14454_v37  ;;  %v14475_v33 = vpop.f32.mrb[37].mxu1  ;;  %v3791_v31 = vor.u32 %v3790_v49, %v3787_v17  ;;  %v10221_v49 = vcombine.low %v3749_v10, %v3759_v22  ;;  %v17425_v37 = vld [vmem:[#allocation25_spill] sm:$0xff] }
 0x1d2   : > { %v10797_v35 = vpop.f32.mrb[38].mxu1  ;;  %v3801_v14 = vor.u32 %v3800_v6, %v14458_v13  ;;  %v3773_v6 = vsel %vm12923_vm5, %v3768_v21, %v14436_v7  ;;  %v14506_v1 = vrot.slane %v3809_v28, 4  ;;  %v14512_v7 = vrot.slane %v3818_v57, 5  ;;  %v17403_v57 = vld [vmem:[#allocation46_spill] sm:$0xff] }
 0x1d3   : > { %v10798_v30 = vpop.f32.mrb[39].mxu1  ;;  %v14502_v51 = vrot.slane %v3791_v31, 4  ;;  %v3824_v21 = vrot.slane %v3822_v53, 4  ;;  %v14518_v31 = vld [vmem:[#allocation2 + $0xc0] sm:$0xf] }
 0x1d4   : > { %v14504_v60 = vrot.slane %v3801_v14, 4 }
 0x1d5   : > { %v3797_v14 = vsel %vm12923_vm5, %v14502_v51, %v14458_v13  ;;  %v14541_v13 = vadd.f32 %v14308_v39, %v14301_v15  ;;  %v3825_v51 = vor.u32 %v3824_v21, %v14512_v7  ;;  %v14559_v15 = vadd.f32 %v14400_v61, %v14396_v23  ;;  %v17412_v39 = vld [vmem:[#allocation21_spill] sm:$0xff]  ;;  %v17419_v23 = vld [vmem:[#allocation24_spill] sm:$0xff] }
 0x1d6   : > { %4554 = vmatmul.mubr.bf16.gmra.mrb[128].mxu0 %v10203_v12  ;;  %v10204_v12 = vcombine.low %v14339_v26, %v14142_v43  ;;  %v3783_v43 = vsel %vm12923_vm5, %v3778_v48, %v3782_v34  ;;  %v10205_v34 = vcombine.low %v14378_v27, %v14183_v2  ;;  %v3807_v28 = vsel %vm12923_vm5, %v14504_v60, %v14500_v59  ;;  %v17401_v2 = vld [vmem:[#allocation49_spill] sm:$0xff] }
 0x1d7   : > { %4561 = vmatprep.mubr.bf16.mxu0 %v10220_v40  ;;  %v17397_v40 = vld [vmem:[#allocation43_spill] sm:$0xff]  ;;  %v10222_v48 = vcombine.low %v3773_v6, %v3783_v43  ;;  %v3828_v27 = vshll.u32 %v17401_v2, 16  ;;  %v17405_v6 = vld [vmem:[#allocation48_spill] sm:$0xff]  ;;  %17406 = vst [vmem:[#allocation35_spill] sm:$0xff] %v14541_v13  ;;  %v3833_v60 = vshrl.u32 %v14518_v31, 16  ;;  %v17414_v21 = vld [vmem:[#allocation17_spill] sm:$0xff] }
 0x1d8   : > { %v14493_v17 = vadd.f32 %v17398_v46, %v17397_v40  ;;  %v10658_v26 = vpop.f32.mrb[36].mxu0  ;;  %v14508_v40 = vrot.slane %v3812_v4, 5  ;;  %17411 = vst [vmem:[#allocation43_spill] sm:$0xff] %v14559_v15  ;;  %v17415_v2 = vld [vmem:[#allocation18_spill] sm:$0xff] }
 0x1d9   : > { %v10659_v9 = vpop.f32.mrb[37].mxu0  ;;  %v17426_v15 = vld [vmem:[#allocation26_spill] sm:$0xff] }
 0x1da   : > { %v14510_v10 = vadd.f32 %v10659_v9, %v10658_v26  ;;  %v10661_v22 = vpop.f32.mrb[38].mxu0  ;;  %v3815_v4 = vor.u32 %v14508_v40, %v14506_v1  ;;  %v17407_v26 = vld [vmem:[#allocation59_spill] sm:$0xff]  ;;  %v14551_v1 = vadd.f32 %v14348_v54, %v14345_v24  ;;  %v14555_v40 = vadd.f32 %v14364_v52, %v14353_v47  ;;  %v17417_v52 = vld [vmem:[#allocation53_spill] sm:$0xff] }
 0x1db   : > { %v10662_v46 = vpop.f32.mrb[39].mxu0  ;;  %v14545_v59 = vadd.f32 %v17407_v26, %v14316_v38  ;;  %v17413_v38 = vld [vmem:[#allocation22_spill] sm:$0xff]  ;;  %v14571_v24 = vadd.f32 %v14411_v18, %v14409_v5  ;;  %v3836_v47 = vshll.u32 %v14518_v31, 16  ;;  %v17421_v26 = vld [vmem:[#allocation20_spill] sm:$0xff]  ;;  %v14586_v5 = vadd.f32 %v14475_v33, %v14466_v50  ;;  %v17423_v18 = vld [vmem:[#allocation29_spill] sm:$0xff] }
 0x1dc   : > { %17399 = vst [vmem:[#allocation33_spill] sm:$0xff] %v14510_v10  ;;  %v14516_v20 = vadd.f32 %v10662_v46, %v10661_v22  ;;  %17409 = vst [vmem:[#allocation41_spill] sm:$0xff] %v14551_v1  ;;  %v14563_v46 = vadd.f32 %v17413_v38, %v17412_v39  ;;  %v17431_v10 = vld [vmem:[#allocation28_spill] sm:$0xff]  ;;  %v17433_v33 = vld [vmem:[#allocation50_spill] sm:$0xff] }
 0x1dd   : > { %17408 = vst [vmem:[#allocation36_spill] sm:$0xff] %v14545_v59  ;;  %v10800_v9 = vpop.f32.mrb[40].mxu1  ;;  %17410 = vst [vmem:[#allocation42_spill] sm:$0xff] %v14555_v40  ;;  %v14604_v59 = vadd.f32 %v17431_v10, %v17430_v55  ;;  %v17440_v10 = vld [vmem:[#allocation39_spill] sm:$0xff]  ;;  %v3835_v40 = vrot.slane %v3833_v60, 4 }
 0x1de   : > { %4562 = vmatmul.mubr.bf16.gmra.mrb[132].mxu0 %v10204_v12  ;;  %17400 = vst [vmem:[#allocation34_spill] sm:$0xff] %v14516_v20  ;;  %v17402_v12 = vld [vmem:[#allocation45_spill] sm:$0xff]  ;;  %v10801_v22 = vpop.f32.mrb[41].mxu1  ;;  %17416 = vst [vmem:[#allocation44_spill] sm:$0xff] %v14571_v24  ;;  %v14594_v20 = vadd.f32 %v17426_v15, %v17425_v37  ;;  %v17436_v37 = vld [vmem:[#allocation38_spill] sm:$0xff] }
 0x1df   : > { %4569 = vmatprep.mubr.bf16.mxu0 %v10221_v49  ;;  %v14533_v53 = vadd.f32 %v17403_v57, %v17402_v12  ;;  %v17404_v49 = vld [vmem:[#allocation47_spill] sm:$0xff]  ;;  %v14567_v12 = vadd.f32 %v17415_v2, %v17414_v21  ;;  %v10803_v54 = vpop.f32.mrb[42].mxu1  ;;  %v3842_v57 = vshll.u32 %v17417_v52, 16  ;;  %v3846_v21 = vshrl.u32 %v17417_v52, 16  ;;  %17422 = vst [vmem:[#allocation49_spill] sm:$0xff] %v14586_v5  ;;  %v17424_v2 = vld [vmem:[#allocation30_spill] sm:$0xff] }
 0x1e0   : > { %v14537_v43 = vadd.f32 %v17405_v6, %v17404_v49  ;;  %v17418_v49 = vld [vmem:[#allocation23_spill] sm:$0xff]  ;;  %v10804_v38 = vpop.f32.mrb[43].mxu1  ;;  %v14590_v24 = vadd.f32 %v17424_v2, %v17423_v18  ;;  %v14606_v50 = vadd.f32 %v10801_v22, %v10800_v9  ;;  %v17435_v5 = vld [vmem:[#allocation37_spill] sm:$0xff]  ;;  %v17441_v9 = vld [vmem:[#allocation40_spill] sm:$0xff] }
 0x1e1   : > { %v14577_v61 = vadd.f32 %v17419_v23, %v17418_v49  ;;  %v17420_v6 = vld [vmem:[#allocation19_spill] sm:$0xff]  ;;  %v14596_v49 = vadd.f32 %v10798_v30, %v10797_v35  ;;  %v14614_v15 = vadd.f32 %v17436_v37, %v17435_v5  ;;  %v14616_v35 = vadd.f32 %v10804_v38, %v10803_v54  ;;  %v17438_v30 = vld [vmem:[#allocation52_spill] sm:$0xff] }
 0x1e2   : > { %v14581_v39 = vadd.f32 %v17421_v26, %v17420_v6  ;;  %v17428_v23 = vld [vmem:[#allocation31_spill] sm:$0xff]  ;;  %v17429_v6 = vld [vmem:[#allocation32_spill] sm:$0xff]  ;;  %17432 = vst [vmem:[#allocation46_spill] sm:$0xff] %v14606_v50  ;;  %v14624_v22 = vadd.f32 %v17441_v9, %v17440_v10  ;;  %v17444_v50 = vld [vmem:[#allocation58_spill] sm:$0xff]  ;;  %v10206_v10 = vcombine.low %v14398_v56, %v14193_v58 }
 0x1e3   : > { %17427 = vst [vmem:[#allocation45_spill] sm:$0xff] %v14596_v49  ;;  %v14600_v26 = vadd.f32 %v17429_v6, %v17428_v23  ;;  %v17434_v18 = vld [vmem:[#allocation51_spill] sm:$0xff]  ;;  %17437 = vst [vmem:[#allocation47_spill] sm:$0xff] %v14616_v35  ;;  %v17439_v23 = vld [vmem:[#allocation54_spill] sm:$0xff]  ;;  %v10223_v35 = vcombine.low %v3797_v14, %v3807_v28 }
 0x1e4   : > { %v14610_v2 = vadd.f32 %v17434_v18, %v17433_v33  ;;  %v14620_v6 = vadd.f32 %v17439_v23, %v17438_v30  ;;  %v17443_v18 = vld [vmem:[#allocation57_spill] sm:$0xff]  ;;  %v17445_v54 = vld [vmem:[#allocation64_spill] sm:$0xff]  ;;  %v17451_v14 = vld [vmem:[#allocation55_spill] sm:$0xff] }
 0x1e5   : > { %v10664_v55 = vpop.f32.mrb[40].mxu0  ;;  %v14632_v5 = vadd.f32 %v17444_v50, %v17443_v18  ;;  %v14636_v38 = vadd.f32 %v17445_v54, %v14374_v45  ;;  %v17447_v30 = vld [vmem:[#allocation61_spill] sm:$0xff]  ;;  %v3816_v50 = vrot.slane %v3815_v4, 4  ;;  %v3826_v18 = vrot.slane %v3825_v51, 4 }
 0x1e6   : > { %4570 = vmatmul.mubr.bf16.gmra.mrb[136].mxu0 %v10205_v34  ;;  %v17442_v34 = vld [vmem:[#allocation63_spill] sm:$0xff]  ;;  %v10665_v37 = vpop.f32.mrb[41].mxu0  ;;  %v3838_v45 = vrot.slane %v3836_v47, 5  ;;  %v3844_v54 = vrot.slane %v3842_v57, 5  ;;  %v3852_v28 = vshll.u32 %v17451_v14, 16 }
 0x1e7   : > { %4577 = vmatprep.mubr.bf16.mxu0 %v10222_v48  ;;  %v14628_v33 = vadd.f32 %v14370_v29, %v17442_v34  ;;  %17446 = vst [vmem:[#allocation48_spill] sm:$0xff] %v14636_v38  ;;  %v17448_v48 = vld [vmem:[#allocation62_spill] sm:$0xff]  ;;  %v14644_v9 = vadd.f32 %v10665_v37, %v10664_v55  ;;  %v10667_v29 = vpop.f32.mrb[42].mxu0  ;;  %v3830_v34 = vrot.slane %v3828_v27, 5  ;;  %v3848_v38 = vrot.slane %v3846_v21, 4  ;;  %v17453_v55 = vld [vmem:[#allocation56_spill] sm:$0xff] }
 0x1e8   : > { %v14640_v23 = vadd.f32 %v17448_v48, %v17447_v30  ;;  %v10668_v49 = vpop.f32.mrb[43].mxu0  ;;  %v10806_v1 = vpop.f32.mrb[44].mxu1  ;;  %v14648_v48 = vld [vmem:[#allocation2 + $0xcc] sm:$0xf]  ;;  %v3821_v56 = vsel %vm12923_vm5, %v3816_v50, %v14512_v7  ;;  %v3839_v60 = vor.u32 %v3838_v45, %v3835_v40  ;;  %v3866_v37 = vshll.u32 %v17453_v55, 16 }
 0x1e9   : > { %v14646_v13 = vadd.f32 %v10668_v49, %v10667_v29  ;;  %v10807_v30 = vpop.f32.mrb[45].mxu1  ;;  %v3831_v27 = vsel %vm12923_vm5, %v3826_v18, %v3830_v34  ;;  %v3849_v47 = vor.u32 %v3848_v38, %v3844_v54  ;;  %v3857_v21 = vshrl.u32 %v14648_v48, 16 }
 0x1ea   : > { %17449 = vst [vmem:[#allocation59_spill] sm:$0xff] %v14640_v23  ;;  %v14650_v23 = vadd.f32 %v10807_v30, %v10806_v1  ;;  %v10809_v58 = vpop.f32.mrb[46].mxu1  ;;  %v3860_v49 = vshll.u32 %v14648_v48, 16  ;;  %v3870_v7 = vshrl.u32 %v17453_v55, 16  ;;  %v10207_v29 = vcombine.low %v14427_v36, %v14228_v32 }
 0x1eb   : > { %17450 = vst [vmem:[#allocation21_spill] sm:$0xff] %v14646_v13  ;;  %v10810_v4 = vpop.f32.mrb[47].mxu1  ;;  %v3854_v40 = vrot.slane %v3852_v28, 5  ;;  %v10224_v38 = vcombine.low %v3821_v56, %v3831_v27  ;;  %v3840_v18 = vrot.slane %v3839_v60, 4  ;;  %v3850_v45 = vrot.slane %v3849_v47, 4 }
 0x1ec   : > { %v14658_v57 = vadd.f32 %v10810_v4, %v10809_v58  ;;  %v3859_v30 = vrot.slane %v3857_v21, 4  ;;  %v3862_v58 = vrot.slane %v3860_v49, 5  ;;  %v3868_v14 = vrot.slane %v3866_v37, 5 }
 0x1ed   : > { %v10670_v51 = vpop.f32.mrb[44].mxu0  ;;  %v3872_v4 = vrot.slane %v3870_v7, 4  ;;  %v3855_v36 = vsel %vm12923_vm5, %v3850_v45, %v3854_v40  ;;  %v10208_v21 = vcombine.low %v14460_v0, %v14248_v25  ;;  %v10209_v25 = vcombine.low %v14518_v31, %v17417_v52 }
 0x1ee   : > { %4578 = vmatmul.mubr.bf16.gmra.mrb[140].mxu0 %v10206_v10  ;;  %17452 = vst [vmem:[#allocation22_spill] sm:$0xff] %v14658_v57  ;;  %v10671_v1 = vpop.f32.mrb[45].mxu0  ;;  %v3863_v56 = vor.u32 %v3862_v58, %v3859_v30 }
 0x1ef   : > { %4585 = vmatprep.mubr.bf16.mxu0 %v10223_v35  ;;  %v14664_v10 = vadd.f32 %v10671_v1, %v10670_v51  ;;  %v10673_v35 = vpop.f32.mrb[46].mxu0  ;;  %v3845_v51 = vsel %vm12923_vm5, %v3840_v18, %v3844_v54  ;;  %v17454_v1 = vld [vmem:[#allocation60_spill] sm:$0xff]  ;;  %v3873_v28 = vor.u32 %v3872_v4, %v3868_v14 }
 0x1f0   : > { %v10674_v34 = vpop.f32.mrb[47].mxu0  ;;  %v3876_v13 = vshll.u32 %v17454_v1, 16  ;;  %v10225_v37 = vcombine.low %v3845_v51, %v3855_v36  ;;  %v3864_v7 = vrot.slane %v3863_v56, 4 }
 0x1f1   : > { %v14668_v50 = vadd.f32 %v10674_v34, %v10673_v35  ;;  %v3874_v54 = vrot.slane %v3873_v28, 4 }
 0x1f2   : > { %v3878_v35 = vrot.slane %v3876_v13, 5  ;;  %v3869_v40 = vsel %vm12923_vm5, %v3864_v7, %v3868_v14 }
 0x1f4   : > { %v10812_v57 = vpop.f32.mrb[48].mxu1 }
 0x1f5   : > { %v10813_v32 = vpop.f32.mrb[49].mxu1 }
 0x1f6   : > { %4586 = vmatmul.mubr.bf16.gmra.mrb[144].mxu0 %v10207_v29  ;;  %v14675_v27 = vadd.f32 %v10813_v32, %v10812_v57  ;;  %v10815_v60 = vpop.f32.mrb[50].mxu1  ;;  %v3879_v57 = vsel %vm12923_vm5, %v3874_v54, %v3878_v35  ;;  %v10210_v32 = vcombine.low %v14648_v48, %v17453_v55 }
 0x1f7   : > { %4593 = vmatprep.mubr.bf16.mxu0 %v10224_v38  ;;  %v10816_v47 = vpop.f32.mrb[51].mxu1  ;;  %v10226_v13 = vcombine.low %v3869_v40, %v3879_v57 }
 0x1f8   : > { %v14679_v49 = vadd.f32 %v10816_v47, %v10815_v60 }
 0x1fd   : > { %v10676_v29 = vpop.f32.mrb[48].mxu0 }
 0x1fe   : > { %4594 = vmatmul.mubr.bf16.gmra.mrb[148].mxu0 %v10208_v21  ;;  %v10677_v34 = vpop.f32.mrb[49].mxu0 }
 0x1ff   : > { %4601 = vmatprep.mubr.bf16.mxu0 %v10225_v37  ;;  %v14685_v38 = vadd.f32 %v10677_v34, %v10676_v29  ;;  %v10679_v18 = vpop.f32.mrb[50].mxu0 }
 0x200   : > { %v10680_v0 = vpop.f32.mrb[51].mxu0 }
 0x201   : > { %v14689_v45 = vadd.f32 %v10680_v0, %v10679_v18 }
 0x202   : > { %v10818_v30 = vpop.f32.mrb[52].mxu1 }
 0x203   : > { %v10819_v58 = vpop.f32.mrb[53].mxu1 }
 0x204   : > { %v14691_v4 = vadd.f32 %v10819_v58, %v10818_v30  ;;  %v10821_v51 = vpop.f32.mrb[54].mxu1 }
 0x205   : > { %v10822_v14 = vpop.f32.mrb[55].mxu1 }
 0x206   : > { %4602 = vmatmul.mubr.bf16.gmra.mrb[152].mxu0 %v10209_v25  ;;  %v14693_v1 = vadd.f32 %v10822_v14, %v10821_v51 }
 0x207   : > { %4609 = vmatprep.mubr.bf16.mxu0 %v10226_v13 }
 0x20a   : > { %v10682_v36 = vpop.f32.mrb[52].mxu0 }
 0x20b   : > { %v10683_v56 = vpop.f32.mrb[53].mxu0 }
 0x20c   : > { %v14697_v31 = vadd.f32 %v10683_v56, %v10682_v36  ;;  %v10685_v52 = vpop.f32.mrb[54].mxu0  ;;  %v10824_v47 = vpop.f32.mrb[56].mxu1 }
 0x20d   : > { %v10686_v28 = vpop.f32.mrb[55].mxu0  ;;  %v10825_v21 = vpop.f32.mrb[57].mxu1 }
 0x20e   : > { %4610 = vmatmul.mubr.bf16.gmra.mrb[156].mxu0 %v10210_v32  ;;  %v14699_v60 = vadd.f32 %v10686_v28, %v10685_v52  ;;  %v14701_v37 = vadd.f32 %v10825_v21, %v10824_v47  ;;  %v10827_v7 = vpop.f32.mrb[58].mxu1 }
 0x20f   : > { %v10828_v54 = vpop.f32.mrb[59].mxu1 }
 0x210   : > { %v14703_v29 = vadd.f32 %v10828_v54, %v10827_v7 }
 0x212   : > { %v10688_v35 = vpop.f32.mrb[56].mxu0 }
 0x213   : > { %v10689_v34 = vpop.f32.mrb[57].mxu0 }
 0x214   : > { %v14705_v48 = vadd.f32 %v10689_v34, %v10688_v35  ;;  %v10691_v55 = vpop.f32.mrb[58].mxu0 }
 0x215   : > { %v10692_v40 = vpop.f32.mrb[59].mxu0 }
 0x216   : > { %v14707_v57 = vadd.f32 %v10692_v40, %v10691_v55 }
 0x218   : > { %v10830_v18 = vpop.f32.mrb[60].mxu1 }
 0x219   : > { %v10831_v25 = vpop.f32.mrb[61].mxu1 }
 0x21a   : > { %v14709_v0 = vadd.f32 %v10831_v25, %v10830_v18  ;;  %v10833_v13 = vpop.f32.mrb[62].mxu1 }
 0x21b   : > { %v10834_v30 = vpop.f32.mrb[63].mxu1 }
 0x21c   : > { %v14711_v58 = vadd.f32 %v10834_v30, %v10833_v13 }
 0x220   : > { %v10694_v51 = vpop.f32.mrb[60].mxu0 }
 0x221   : > { %v10695_v14 = vpop.f32.mrb[61].mxu0 }
 0x222   : > { %v14713_v32 = vadd.f32 %v10695_v14, %v10694_v51  ;;  %v10697_v36 = vpop.f32.mrb[62].mxu0 }
 0x223   : > { %v10698_v56 = vpop.f32.mrb[63].mxu0 }
 0x224   : > { %v14715_v52 = vadd.f32 %v10698_v56, %v10697_v36 }
 0x228   : > { %v11422_v28 = vpop.f32.mrb[64].mxu0 }
 0x229   : > { %v2863_v47 = vadd.f32 %v11422_v28, %v14563_v46  ;;  %v2854_v21 = vpop.f32.mrb[65].mxu0 }
 0x22a   : > { %v2855_v7 = vadd.f32 %v14567_v12, %v2854_v21  ;;  %v11423_v54 = vpop.f32.mrb[66].mxu0 }
 0x22b   : > { %v14720_v35 = vadd.f32 %v14421_v44, %v2863_v47  ;;  %v2866_v34 = vadd.f32 %v11423_v54, %v14577_v61  ;;  %v2857_v55 = vpop.f32.mrb[67].mxu0 }
 0x22c   : > { %v14724_v40 = vadd.f32 %v14390_v8, %v2855_v7  ;;  %v2858_v18 = vadd.f32 %v14581_v39, %v2857_v55 }
 0x22d   : > { %v14728_v25 = vadd.f32 %v14425_v16, %v2866_v34 }
 0x22e   : > { %v14731_v46 = vadd.f32 %v14394_v62, %v2858_v18 }
 0x230   : > { %v11426_v13 = vpop.f32.mrb[68].mxu0 }
 0x231   : > { %v2879_v12 = vadd.f32 %v11426_v13, %v14590_v24  ;;  %v2870_v30 = vpop.f32.mrb[69].mxu0 }
 0x232   : > { %v2871_v44 = vadd.f32 %v14594_v20, %v2870_v30  ;;  %v11427_v51 = vpop.f32.mrb[70].mxu0 }
 0x233   : > { %v14736_v61 = vadd.f32 %v14464_v3, %v2879_v12  ;;  %v2882_v8 = vadd.f32 %v11427_v51, %v14600_v26  ;;  %v2873_v14 = vpop.f32.mrb[71].mxu0 }
 0x234   : > { %v14740_v39 = vadd.f32 %v14441_v11, %v2871_v44  ;;  %v2874_v16 = vadd.f32 %v14604_v59, %v2873_v14  ;;  %v17460_v44 = vld [vmem:[#allocation36_spill] sm:$0xff] }
 0x235   : > { %v14744_v62 = vadd.f32 %v14473_v63, %v2882_v8 }
 0x236   : > { %v14747_v24 = vadd.f32 %v14452_v41, %v2874_v16  ;;  %v17462_v16 = vld [vmem:[#allocation65_spill] sm:$0xff] }
 0x238   : > { %v11430_v36 = vpop.f32.mrb[72].mxu0 }
 0x239   : > { %v2895_v20 = vadd.f32 %v11430_v36, %v14610_v2  ;;  %v2886_v56 = vpop.f32.mrb[73].mxu0 }
 0x23a   : > { %v2887_v3 = vadd.f32 %v14614_v15, %v2886_v56  ;;  %v11431_v28 = vpop.f32.mrb[74].mxu0  ;;  %v17463_v56 = vld [vmem:[#allocation49_spill] sm:$0xff] }
 0x23b   : > { %v14752_v26 = vadd.f32 %v14533_v53, %v2895_v20  ;;  %v2898_v11 = vadd.f32 %v11431_v28, %v14620_v6  ;;  %v2889_v47 = vpop.f32.mrb[75].mxu0  ;;  %v17455_v6 = vld [vmem:[#allocation41_spill] sm:$0xff]  ;;  %v17464_v28 = vld [vmem:[#allocation34_spill] sm:$0xff] }
 0x23c   : > { %v14756_v59 = vadd.f32 %v14489_v42, %v2887_v3  ;;  %v2890_v63 = vadd.f32 %v14624_v22, %v2889_v47  ;;  %v17456_v42 = vld [vmem:[#allocation48_spill] sm:$0xff]  ;;  %v17457_v22 = vld [vmem:[#allocation35_spill] sm:$0xff] }
 0x23d   : > { %v14760_v41 = vadd.f32 %v14537_v43, %v2898_v11  ;;  %v17458_v43 = vld [vmem:[#allocation59_spill] sm:$0xff] }
 0x23e   : > { %v14763_v2 = vadd.f32 %v14493_v17, %v2890_v63  ;;  %v17459_v17 = vld [vmem:[#allocation42_spill] sm:$0xff]  ;;  %v17465_v63 = vld [vmem:[#allocation43_spill] sm:$0xff] }
 0x240   : > { %v11434_v21 = vpop.f32.mrb[76].mxu0 }
 0x241   : > { %v2911_v15 = vadd.f32 %v11434_v21, %v14628_v33  ;;  %v2902_v7 = vpop.f32.mrb[77].mxu0 }
 0x242   : > { %v2903_v53 = vadd.f32 %v14632_v5, %v2902_v7  ;;  %v11435_v54 = vpop.f32.mrb[78].mxu0  ;;  %v17461_v5 = vld [vmem:[#allocation33_spill] sm:$0xff] }
 0x243   : > { %v14768_v34 = vadd.f32 %v17455_v6, %v2911_v15  ;;  %v2914_v55 = vadd.f32 %v11435_v54, %v17456_v42  ;;  %v2905_v18 = vpop.f32.mrb[79].mxu0  ;;  %v17466_v15 = vld [vmem:[#allocation66_spill] sm:$0xff]  ;;  %v17468_v6 = vld [vmem:[#allocation44_spill] sm:$0xff] }
 0x244   : > { %v14772_v13 = vadd.f32 %v17457_v22, %v2903_v53  ;;  %v2906_v12 = vadd.f32 %v17458_v43, %v2905_v18  ;;  %v17467_v53 = vld [vmem:[#allocation45_spill] sm:$0xff] }
 0x245   : > { %v14776_v30 = vadd.f32 %v17459_v17, %v2914_v55 }
 0x246   : > { %v14779_v33 = vadd.f32 %v17460_v44, %v2906_v12 }
 0x248   : > { %v11438_v51 = vpop.f32.mrb[80].mxu0 }
 0x249   : > { %v2927_v8 = vadd.f32 %v11438_v51, %v17461_v5  ;;  %v2918_v14 = vpop.f32.mrb[81].mxu0  ;;  %v17469_v5 = vld [vmem:[#allocation46_spill] sm:$0xff] }
 0x24a   : > { %v2919_v36 = vadd.f32 %v17462_v16, %v2918_v14  ;;  %v11439_v20 = vpop.f32.mrb[82].mxu0  ;;  %v17470_v14 = vld [vmem:[#allocation21_spill] sm:$0xff] }
 0x24b   : > { %v14784_v3 = vadd.f32 %v17463_v56, %v2927_v8  ;;  %v2930_v11 = vadd.f32 %v11439_v20, %v17464_v28  ;;  %v2921_v47 = vpop.f32.mrb[83].mxu0  ;;  %v17472_v56 = vld [vmem:[#allocation47_spill] sm:$0xff] }
 0x24c   : > { %v14788_v21 = vadd.f32 %v17465_v63, %v2919_v36  ;;  %v2922_v7 = vadd.f32 %v17466_v15, %v2921_v47  ;;  %v17471_v36 = vld [vmem:[#allocation22_spill] sm:$0xff] }
 0x24d   : > { %v14792_v54 = vadd.f32 %v17467_v53, %v2930_v11 }
 0x24e   : > { %v14795_v42 = vadd.f32 %v17468_v6, %v2922_v7 }
 0x250   : > { %v11442_v55 = vpop.f32.mrb[84].mxu0 }
 0x251   : > { %v2943_v18 = vadd.f32 %v11442_v55, %v14664_v10  ;;  %v2934_v22 = vpop.f32.mrb[85].mxu0 }
 0x252   : > { %v2935_v43 = vadd.f32 %v14644_v9, %v2934_v22  ;;  %v11443_v12 = vpop.f32.mrb[86].mxu0 }
 0x253   : > { %v14800_v17 = vadd.f32 %v14650_v23, %v2943_v18  ;;  %v2946_v44 = vadd.f32 %v11443_v12, %v14668_v50  ;;  %v2937_v51 = vpop.f32.mrb[87].mxu0 }
 0x254   : > { %v14804_v8 = vadd.f32 %v17469_v5, %v2935_v43  ;;  %v2938_v16 = vadd.f32 %v17470_v14, %v2937_v51 }
 0x255   : > { %v14808_v20 = vadd.f32 %v17471_v36, %v2946_v44 }
 0x256   : > { %v14811_v10 = vadd.f32 %v17472_v56, %v2938_v16 }
 0x258   : > { %v11446_v28 = vpop.f32.mrb[88].mxu0 }
 0x259   : > { %v2959_v9 = vadd.f32 %v11446_v28, %v14697_v31  ;;  %v2950_v11 = vpop.f32.mrb[89].mxu0 }
 0x25a   : > { %v2951_v23 = vadd.f32 %v14685_v38, %v2950_v11  ;;  %v11447_v47 = vpop.f32.mrb[90].mxu0 }
 0x25b   : > { %v14816_v50 = vadd.f32 %v14691_v4, %v2959_v9  ;;  %v2962_v63 = vadd.f32 %v11447_v47, %v14699_v60  ;;  %v2953_v15 = vpop.f32.mrb[91].mxu0 }
 0x25c   : > { %v14820_v7 = vadd.f32 %v14675_v27, %v2951_v23  ;;  %v2954_v53 = vadd.f32 %v14689_v45, %v2953_v15 }
 0x25d   : > { %v14824_v6 = vadd.f32 %v14693_v1, %v2962_v63 }
 0x25e   : > { %v14827_v31 = vadd.f32 %v14679_v49, %v2954_v53 }
 0x260   : > { %v11518_v38 = vpop.f32.mrb[64].mxu1 }
 0x261   : > { %v11450_v55 = vpop.f32.mrb[92].mxu0  ;;  %v4652_v22 = vpop.f32.mrb[65].mxu1 }
 0x262   : > { %v2975_v18 = vadd.f32 %v11450_v55, %v14713_v32  ;;  %v2966_v4 = vpop.f32.mrb[93].mxu0  ;;  %v11519_v12 = vpop.f32.mrb[66].mxu1 }
 0x263   : > { %v2967_v60 = vadd.f32 %v14705_v48, %v2966_v4  ;;  %v11451_v43 = vpop.f32.mrb[94].mxu0  ;;  %v4655_v44 = vpop.f32.mrb[67].mxu1 }
 0x264   : > { %v14832_v27 = vadd.f32 %v14709_v0, %v2975_v18  ;;  %v2978_v45 = vadd.f32 %v11451_v43, %v14715_v52  ;;  %v2969_v1 = vpop.f32.mrb[95].mxu0 }
 0x265   : > { %v14836_v49 = vadd.f32 %v14701_v37, %v2967_v60  ;;  %v2970_v51 = vadd.f32 %v14707_v57, %v2969_v1 }
 0x266   : > { %v14840_v32 = vadd.f32 %v14711_v58, %v2978_v45 }
 0x267   : > { %v14843_v5 = vadd.f32 %v14703_v29, %v2970_v51 }
 0x268   : > { %v11522_v14 = vpop.f32.mrb[68].mxu1 }
 0x269   : > { %v10876_v48 = vpop.f32.mrb[96].mxu0  ;;  %v4668_v0 = vpop.f32.mrb[69].mxu1 }
 0x26a   : > { %v10877_v16 = vpop.f32.mrb[97].mxu0  ;;  %v11523_v52 = vpop.f32.mrb[70].mxu1 }
 0x26b   : > { %v10878_v36 = vadd.f32 %v10877_v16, %v10876_v48  ;;  %v10879_v56 = vpop.f32.mrb[98].mxu0  ;;  %v4671_v9 = vpop.f32.mrb[71].mxu1 }
 0x26c   : > { %v10880_v28 = vpop.f32.mrb[99].mxu0 }
 0x26d   : > { %v11698_v37 = vadd.f32 %v10878_v36, %v14724_v40  ;;  %v10881_v11 = vadd.f32 %v10880_v28, %v10879_v56 }
 0x26f   : > { %v11699_v23 = vadd.f32 %v11698_v37, %v4652_v22  ;;  %v11706_v57 = vadd.f32 %v10881_v11, %v14731_v46 }
 0x270   : > { %v14847_v63 = vpop.f32.mrb[72].mxu1 }
 0x271   : > { %v11707_v58 = vadd.f32 %v11706_v57, %v4655_v44  ;;  %v10882_v47 = vpop.f32.mrb[100].mxu0  ;;  %v14849_v15 = vpop.f32.mrb[73].mxu1 }
 0x272   : > { %v10883_v29 = vpop.f32.mrb[101].mxu0  ;;  %v14851_v18 = vpop.f32.mrb[74].mxu1 }
 0x273   : > { %v10884_v53 = vadd.f32 %v10883_v29, %v10882_v47  ;;  %v10885_v55 = vpop.f32.mrb[102].mxu0  ;;  %v14853_v60 = vpop.f32.mrb[75].mxu1 }
 0x274   : > { %v10886_v4 = vpop.f32.mrb[103].mxu0 }
 0x275   : > { %v11694_v40 = vadd.f32 %v10884_v53, %v14720_v35  ;;  %v10887_v43 = vadd.f32 %v10886_v4, %v10885_v55 }
 0x277   : > { %v11695_v22 = vadd.f32 %v11694_v40, %v11518_v38  ;;  %v11702_v46 = vadd.f32 %v10887_v43, %v14728_v25  ;;  %v14876_v43 = vld [vmem:[%s17264_s2] ss:$0 sm:$0xff] }
 0x278   : > { %v14857_v44 = vpop.f32.mrb[76].mxu1 }
 0x279   : > { %v11703_v45 = vadd.f32 %v11702_v46, %v11519_v12  ;;  %v10888_v1 = vpop.f32.mrb[104].mxu0  ;;  %v14859_v48 = vpop.f32.mrb[77].mxu1 }
 0x27a   : > { %v10889_v51 = vpop.f32.mrb[105].mxu0  ;;  %v14861_v56 = vpop.f32.mrb[78].mxu1 }
 0x27b   : > { %v10890_v16 = vadd.f32 %v10889_v51, %v10888_v1  ;;  %v10891_v36 = vpop.f32.mrb[106].mxu0  ;;  %v14863_v37 = vpop.f32.mrb[79].mxu1  ;;  %v14885_v1 = vadd.f32 %v11699_v23, %v14876_v43  ;;  %v14888_v51 = vadd.f32 %v11695_v22, %v14876_v43 }
 0x27c   : > { %v10892_v28 = vpop.f32.mrb[107].mxu0 }
 0x27d   : > { %v11714_v35 = vadd.f32 %v10890_v16, %v14740_v39  ;;  %v10893_v11 = vadd.f32 %v10892_v28, %v10891_v36  ;;  %17474 = vst [vmem:[#allocation18_spill] sm:$0xff] %v14888_v51  ;;  %v4887_v23 = vmul.f32 %v14885_v1, %v14885_v1 }
 0x27f   : > { %v11715_v38 = vadd.f32 %v11714_v35, %v4668_v0  ;;  %v11722_v25 = vadd.f32 %v10893_v11, %v14747_v24  ;;  %v14881_v24 = vadd.f32 %v11707_v58, %v14876_v43 }
 0x280   : > { %v14867_v57 = vpop.f32.mrb[80].mxu1 }
 0x281   : > { %v10894_v12 = vpop.f32.mrb[108].mxu0  ;;  %v11723_v47 = vadd.f32 %v11722_v25, %v4671_v9  ;;  %v14869_v53 = vpop.f32.mrb[81].mxu1  ;;  %17473 = vst [vmem:[#allocation17_spill] sm:$0xff] %v14881_v24  ;;  %v4888_v28 = vmul.f32 %v14881_v24, %v14881_v24 }
 0x282   : > { %v10895_v29 = vpop.f32.mrb[109].mxu0  ;;  %v14871_v40 = vpop.f32.mrb[82].mxu1 }
 0x283   : > { %v10896_v55 = vadd.f32 %v10895_v29, %v10894_v12  ;;  %v10897_v4 = vpop.f32.mrb[110].mxu0  ;;  %v14878_v0 = vpop.f32.mrb[83].mxu1 }
 0x284   : > { %v10898_v39 = vpop.f32.mrb[111].mxu0 }
 0x285   : > { %v11710_v9 = vadd.f32 %v10896_v55, %v14736_v61  ;;  %v10899_v46 = vadd.f32 %v10898_v39, %v10897_v4  ;;  %v4850_v61 = vadd.f32 %v14881_v24, %v14885_v1 }
 0x287   : > { %v11711_v16 = vadd.f32 %v11710_v9, %v11522_v14  ;;  %v11718_v36 = vadd.f32 %v10899_v46, %v14744_v62  ;;  %v4889_v14 = vmul.f32 %v14888_v51, %v14888_v51  ;;  %v14904_v62 = vadd.f32 %v11703_v45, %v14876_v43 }
 0x288   : > { %v14893_v25 = vpop.f32.mrb[84].mxu1  ;;  %v4851_v55 = vadd.f32 %v4850_v61, %v14888_v51  ;;  %v4919_v9 = vadd.f32 %v4888_v28, %v4887_v23  ;;  %v14912_v46 = vadd.f32 %v11715_v38, %v14876_v43  ;;  %v14923_v28 = vadd.f32 %v11723_v47, %v14876_v43 }
 0x289   : > { %v11719_v35 = vadd.f32 %v11718_v36, %v11523_v52  ;;  %v10900_v11 = vpop.f32.mrb[112].mxu0  ;;  %v14897_v12 = vpop.f32.mrb[85].mxu1  ;;  %17475 = vst [vmem:[#allocation53_spill] sm:$0xff] %v14904_v62  ;;  %v4890_v45 = vmul.f32 %v14904_v62, %v14904_v62 }
 0x28a   : > { %v10901_v58 = vpop.f32.mrb[113].mxu0  ;;  %v14906_v29 = vpop.f32.mrb[86].mxu1  ;;  %17476 = vst [vmem:[#allocation23_spill] sm:$0xff] %v14912_v46  ;;  %v4920_v24 = vadd.f32 %v4919_v9, %v4889_v14  ;;  %v4891_v51 = vmul.f32 %v14912_v46, %v14912_v46  ;;  %17477 = vst [vmem:[#allocation24_spill] sm:$0xff] %v14923_v28 }
 0x28b   : > { %v10902_v22 = vadd.f32 %v10901_v58, %v10900_v11  ;;  %v10903_v52 = vpop.f32.mrb[114].mxu0  ;;  %v14909_v39 = vpop.f32.mrb[87].mxu1  ;;  %v4852_v58 = vadd.f32 %v4851_v55, %v14904_v62  ;;  %v14932_v55 = vadd.f32 %v11711_v16, %v14876_v43  ;;  %v14945_v16 = vadd.f32 %v11719_v35, %v14876_v43 }
 0x28c   : > { %v10904_v4 = vpop.f32.mrb[115].mxu0 }
 0x28d   : > { %v11730_v36 = vadd.f32 %v10902_v22, %v14756_v59  ;;  %v10905_v19 = vadd.f32 %v10904_v4, %v10903_v52  ;;  %v4853_v59 = vadd.f32 %v4852_v58, %v14912_v46  ;;  %17478 = vst [vmem:[#allocation19_spill] sm:$0xff] %v14932_v55  ;;  %v4892_v58 = vmul.f32 %v14923_v28, %v14923_v28 }
 0x28e   : > { %17479 = vst [vmem:[#allocation20_spill] sm:$0xff] %v14945_v16 }
 0x28f   : > { %v11731_v11 = vadd.f32 %v11730_v36, %v14849_v15  ;;  %v11738_v61 = vadd.f32 %v10905_v19, %v14763_v2  ;;  %v4921_v15 = vadd.f32 %v4920_v24, %v4890_v45  ;;  %v4854_v46 = vadd.f32 %v4853_v59, %v14923_v28 }
 0x290   : > { %v14925_v23 = vpop.f32.mrb[88].mxu1  ;;  %v4893_v24 = vmul.f32 %v14932_v55, %v14932_v55 }
 0x291   : > { %v10906_v38 = vpop.f32.mrb[116].mxu0  ;;  %v11739_v14 = vadd.f32 %v11738_v61, %v14853_v60  ;;  %v14929_v52 = vpop.f32.mrb[89].mxu1  ;;  %v4922_v36 = vadd.f32 %v4921_v15, %v4891_v51  ;;  %v4855_v51 = vadd.f32 %v4854_v46, %v14932_v55  ;;  %v14951_v15 = vadd.f32 %v11731_v11, %v14876_v43 }
 0x292   : > { %v10907_v22 = vpop.f32.mrb[117].mxu0  ;;  %v14934_v4 = vpop.f32.mrb[90].mxu1 }
 0x293   : > { %v10908_v19 = vadd.f32 %v10907_v22, %v10906_v38  ;;  %v10909_v2 = vpop.f32.mrb[118].mxu0  ;;  %v14936_v9 = vpop.f32.mrb[91].mxu1  ;;  %v4923_v22 = vadd.f32 %v4922_v36, %v4892_v58  ;;  %v4856_v46 = vadd.f32 %v4855_v51, %v14945_v16  ;;  %v14968_v58 = vadd.f32 %v11739_v14, %v14876_v43 }
 0x294   : > { %v10910_v47 = vpop.f32.mrb[119].mxu0 }
 0x295   : > { %v11726_v60 = vadd.f32 %v10908_v19, %v14752_v26  ;;  %v10911_v61 = vadd.f32 %v10910_v47, %v10909_v2  ;;  %v4924_v35 = vadd.f32 %v4923_v22, %v4893_v24  ;;  %v4896_v28 = vmul.f32 %v14968_v58, %v14968_v58 }
 0x297   : > { %v11727_v45 = vadd.f32 %v11726_v60, %v14847_v63  ;;  %v11734_v38 = vadd.f32 %v10911_v61, %v14760_v41  ;;  %v4894_v63 = vmul.f32 %v14945_v16, %v14945_v16 }
 0x298   : > { %v14954_v59 = vpop.f32.mrb[92].mxu1 }
 0x299   : > { %v11735_v26 = vadd.f32 %v11734_v38, %v14851_v18  ;;  %v10912_v19 = vpop.f32.mrb[120].mxu0  ;;  %v14956_v47 = vpop.f32.mrb[93].mxu1  ;;  %v4895_v18 = vmul.f32 %v14951_v15, %v14951_v15  ;;  %v4857_v38 = vadd.f32 %v4856_v46, %v14951_v15 }
 0x29a   : > { %v10913_v2 = vpop.f32.mrb[121].mxu0  ;;  %v14960_v61 = vpop.f32.mrb[94].mxu1 }
 0x29b   : > { %v10914_v60 = vadd.f32 %v10913_v2, %v10912_v19  ;;  %v10915_v41 = vpop.f32.mrb[122].mxu0  ;;  %v14963_v36 = vpop.f32.mrb[95].mxu1  ;;  %v4925_v19 = vadd.f32 %v4924_v35, %v4894_v63  ;;  %v14973_v2 = vadd.f32 %v11727_v45, %v14876_v43  ;;  %v4858_v14 = vadd.f32 %v4857_v38, %v14968_v58 }
 0x29c   : > { %v10916_v11 = vpop.f32.mrb[123].mxu0  ;;  %v14984_v45 = vadd.f32 %v11735_v26, %v14876_v43 }
 0x29d   : > { %v11746_v24 = vadd.f32 %v10914_v60, %v14772_v13  ;;  %v10917_v22 = vadd.f32 %v10916_v11, %v10915_v41  ;;  %v4926_v55 = vadd.f32 %v4925_v19, %v4895_v18  ;;  %v4897_v35 = vmul.f32 %v14973_v2, %v14973_v2 }
 0x29f   : > { %v11747_v51 = vadd.f32 %v11746_v24, %v14859_v48  ;;  %v11754_v16 = vadd.f32 %v10917_v22, %v14779_v33  ;;  %v4859_v33 = vadd.f32 %v4858_v14, %v14973_v2  ;;  %v4927_v46 = vadd.f32 %v4926_v55, %v4896_v28 }
 0x2a1   : > { %v10918_v62 = vpop.f32.mrb[124].mxu0  ;;  %v11755_v13 = vadd.f32 %v11754_v16, %v14863_v37  ;;  %v14988_v11 = vadd.f32 %v11747_v51, %v14876_v43  ;;  %v4928_v37 = vadd.f32 %v4927_v46, %v4897_v35  ;;  %v4898_v16 = vmul.f32 %v14984_v45, %v14984_v45 }
 0x2a2   : > { %v10919_v60 = vpop.f32.mrb[125].mxu0 }
 0x2a3   : > { %v10920_v63 = vadd.f32 %v10919_v60, %v10918_v62  ;;  %v10921_v48 = vpop.f32.mrb[126].mxu0  ;;  %v4860_v62 = vadd.f32 %v4859_v33, %v14984_v45  ;;  %v4899_v22 = vmul.f32 %v14988_v11, %v14988_v11  ;;  %v14999_v28 = vadd.f32 %v11755_v13, %v14876_v43 }
 0x2a4   : > { %v10922_v41 = vpop.f32.mrb[127].mxu0  ;;  %v4929_v14 = vadd.f32 %v4928_v37, %v4898_v16 }
 0x2a5   : > { %v11742_v18 = vadd.f32 %v10920_v63, %v14768_v34  ;;  %v10923_v24 = vadd.f32 %v10922_v41, %v10921_v48  ;;  %v4861_v19 = vadd.f32 %v4860_v62, %v14988_v11  ;;  %v4900_v48 = vmul.f32 %v14999_v28, %v14999_v28 }
 0x2a6   : > { %v4930_v63 = vadd.f32 %v4929_v14, %v4899_v22 }
 0x2a7   : > { %v11743_v38 = vadd.f32 %v11742_v18, %v14857_v44  ;;  %v11750_v26 = vadd.f32 %v10923_v24, %v14776_v30  ;;  %v4862_v33 = vadd.f32 %v4861_v19, %v14999_v28 }
 0x2a8   : > { %v4931_v16 = vadd.f32 %v4930_v63, %v4900_v48 }
 0x2a9   : > { %v11751_v55 = vadd.f32 %v11750_v26, %v14861_v56  ;;  %v10924_v34 = vpop.f32.mrb[128].mxu0  ;;  %v15004_v60 = vadd.f32 %v11743_v38, %v14876_v43 }
 0x2aa   : > { %v10925_v51 = vpop.f32.mrb[129].mxu0 }
 0x2ab   : > { %v10926_v44 = vadd.f32 %v10925_v51, %v10924_v34  ;;  %v10927_v30 = vpop.f32.mrb[130].mxu0  ;;  %v4901_v41 = vmul.f32 %v15004_v60, %v15004_v60  ;;  %v15013_v46 = vadd.f32 %v11751_v55, %v14876_v43  ;;  %v4863_v24 = vadd.f32 %v4862_v33, %v15004_v60 }
 0x2ac   : > { %v10928_v35 = vpop.f32.mrb[131].mxu0 }
 0x2ad   : > { %v11762_v13 = vadd.f32 %v10926_v44, %v14788_v21  ;;  %v10929_v56 = vadd.f32 %v10928_v35, %v10927_v30  ;;  %v4932_v22 = vadd.f32 %v4931_v16, %v4901_v41  ;;  %v4902_v34 = vmul.f32 %v15013_v46, %v15013_v46 }
 0x2af   : > { %v11763_v18 = vadd.f32 %v11762_v13, %v14869_v53  ;;  %v11770_v37 = vadd.f32 %v10929_v56, %v14795_v42  ;;  %v4864_v53 = vadd.f32 %v4863_v24, %v15013_v46 }
 0x2b1   : > { %v15019_v38 = vadd.f32 %v11763_v18, %v14876_v43  ;;  %v10930_v21 = vpop.f32.mrb[132].mxu0  ;;  %v11771_v26 = vadd.f32 %v11770_v37, %v14878_v0  ;;  %v4933_v0 = vadd.f32 %v4932_v22, %v4902_v34 }
 0x2b2   : > { %v10931_v62 = vpop.f32.mrb[133].mxu0 }
 0x2b3   : > { %v10932_v55 = vadd.f32 %v10931_v62, %v10930_v21  ;;  %v10933_v19 = vpop.f32.mrb[134].mxu0  ;;  %v4903_v42 = vmul.f32 %v15019_v38, %v15019_v38  ;;  %v15028_v14 = vadd.f32 %v11771_v26, %v14876_v43  ;;  %v4865_v35 = vadd.f32 %v4864_v53, %v15019_v38 }
 0x2b4   : > { %v10934_v51 = vpop.f32.mrb[135].mxu0 }
 0x2b5   : > { %v11758_v44 = vadd.f32 %v10932_v55, %v14784_v3  ;;  %v10935_v30 = vadd.f32 %v10934_v51, %v10933_v19  ;;  %v4934_v13 = vadd.f32 %v4933_v0, %v4903_v42  ;;  %v4904_v33 = vmul.f32 %v15028_v14, %v15028_v14 }
 0x2b6   : > { %v4866_v3 = vadd.f32 %v4865_v35, %v15028_v14 }
 0x2b7   : > { %v11759_v63 = vadd.f32 %v11758_v44, %v14867_v57  ;;  %v11766_v48 = vadd.f32 %v10935_v30, %v14792_v54  ;;  %v4935_v26 = vadd.f32 %v4934_v13, %v4904_v33  ;;  %v12206_v33 = vld [vmem:[#allocation9 + $0x140] sm:$0xff]  }
 0x2b8   : > { %11548 = vmatprep.subr.bf16.mxu1 %v12206_v33 }
 0x2b9   : > { %v15037_v56 = vadd.f32 %v11759_v63, %v14876_v43  ;;  %v11767_v41 = vadd.f32 %v11766_v48, %v14871_v40  ;;  %v10936_v18 = vpop.f32.mrb[136].mxu0  ;;  %11549 = vmatpush3.bf16.msra.mxu1 %v12206_v33 }
 0x2ba   : > { %v10937_v24 = vpop.f32.mrb[137].mxu0 }
 0x2bb   : > { %v4905_v37 = vmul.f32 %v15037_v56, %v15037_v56  ;;  %v15044_v57 = vadd.f32 %v11767_v41, %v14876_v43  ;;  %v10938_v54 = vadd.f32 %v10937_v24, %v10936_v18  ;;  %v10939_v16 = vpop.f32.mrb[138].mxu0  ;;  %v4867_v62 = vadd.f32 %v4866_v3, %v15037_v56 }
 0x2bc   : > { %v10940_v21 = vpop.f32.mrb[139].mxu0 }
 0x2bd   : > { %v11778_v22 = vadd.f32 %v10938_v54, %v14804_v8  ;;  %v10941_v34 = vadd.f32 %v10940_v21, %v10939_v16  ;;  %v4936_v40 = vadd.f32 %v4935_v26, %v4905_v37  ;;  %v4906_v55 = vmul.f32 %v15044_v57, %v15044_v57  ;;  %v12204_v21 = vld [vmem:[#allocation9 + $0x100] sm:$0xff]   ;;  %v12207_v26 = vld [vmem:[#allocation9 + $0x148] sm:$0xff]  }
 0x2be   : > { %v4868_v51 = vadd.f32 %v4867_v62, %v15044_v57  ;;  %10996 = vmatprep.subr.bf16.mxu0 %v12204_v21  ;;  %11550 = vmatprep.subr.bf16.mxu1 %v12207_v26 }
 0x2bf   : > { %v11779_v19 = vadd.f32 %v11778_v22, %v14897_v12  ;;  %v11786_v53 = vadd.f32 %v10941_v34, %v14811_v10  ;;  %v4937_v35 = vadd.f32 %v4936_v40, %v4906_v55  ;;  %v12205_v34 = vld [vmem:[#allocation9 + $0xc0] sm:$0xff]   ;;  %11551 = vmatpush3.bf16.msra.mxu1 %v12207_v26 }
 0x2c0   : > { %10997 = vmatpush3.bf16.msra.mxu0 %v12205_v34 }
 0x2c1   : > { %v15054_v42 = vadd.f32 %v11779_v19, %v14876_v43  ;;  %v10942_v44 = vpop.f32.mrb[140].mxu0  ;;  %v11787_v30 = vadd.f32 %v11786_v53, %v14909_v39 }
 0x2c2   : > { %v10943_v0 = vpop.f32.mrb[141].mxu0 }
 0x2c3   : > { %v4869_v8 = vadd.f32 %v4868_v51, %v15054_v42  ;;  %v4907_v63 = vmul.f32 %v15054_v42, %v15054_v42  ;;  %v10944_v48 = vadd.f32 %v10943_v0, %v10942_v44  ;;  %v10945_v13 = vpop.f32.mrb[142].mxu0  ;;  %v15061_v12 = vadd.f32 %v11787_v30, %v14876_v43  ;;  %v12208_v44 = vld [vmem:[#allocation9 + $0x108] sm:$0xff]  }
 0x2c4   : > { %v10946_v10 = vpop.f32.mrb[143].mxu0  ;;  %10998 = vmatprep.subr.bf16.mxu0 %v12208_v44 }
 0x2c5   : > { %v4938_v41 = vadd.f32 %v4937_v35, %v4907_v63  ;;  %v11774_v18 = vadd.f32 %v10944_v48, %v14800_v17  ;;  %v10947_v24 = vadd.f32 %v10946_v10, %v10945_v13  ;;  %v4870_v39 = vadd.f32 %v4869_v8, %v15061_v12  ;;  %v12209_v63 = vld [vmem:[#allocation9 + $0xc8] sm:$0xff]   ;;  %v12211_v48 = vld [vmem:[#allocation9 + $0x158] sm:$0xff]   ;;  %v12212_v13 = vld [vmem:[#allocation9 + $0x110] sm:$0xff]  }
 0x2c6   : > { %v4908_v3 = vmul.f32 %v15061_v12, %v15061_v12  ;;  %10999 = vmatpush3.bf16.msra.mxu0 %v12209_v63 }
 0x2c7   : > { %v11775_v37 = vadd.f32 %v11774_v18, %v14893_v25  ;;  %v11782_v54 = vadd.f32 %v10947_v24, %v14808_v20  ;;  %v12213_v18 = vld [vmem:[#allocation9 + $0xd0] sm:$0xff]   ;;  %11000 = vmatprep.subr.bf16.mxu0 %v12212_v13 }
 0x2c8   : > { %v4939_v16 = vadd.f32 %v4938_v41, %v4908_v3 }
 0x2c9   : > { %v15070_v62 = vadd.f32 %v11775_v37, %v14876_v43  ;;  %v11783_v17 = vadd.f32 %v11782_v54, %v14906_v29  ;;  %v10948_v22 = vpop.f32.mrb[144].mxu0  ;;  %v12210_v29 = vld [vmem:[#allocation9 + $0x150] sm:$0xff]   ;;  %v12214_v37 = vld [vmem:[#allocation9 + $0x160] sm:$0xff]  }
 0x2ca   : > { %v10949_v40 = vpop.f32.mrb[145].mxu0  ;;  %11552 = vmatprep.subr.bf16.mxu1 %v12210_v29  ;;  %11001 = vmatpush3.bf16.msra.mxu0 %v12213_v18  ;;  %v12223_v18 = vld [vmem:[#allocation9 + $0xe8] sm:$0xff]  }
 0x2cb   : > { %v4871_v55 = vadd.f32 %v4870_v39, %v15070_v62  ;;  %v4909_v25 = vmul.f32 %v15070_v62, %v15070_v62  ;;  %v15077_v20 = vadd.f32 %v11783_v17, %v14876_v43  ;;  %v10950_v19 = vadd.f32 %v10949_v40, %v10948_v22  ;;  %v10951_v53 = vpop.f32.mrb[146].mxu0  ;;  %11553 = vmatpush3.bf16.msra.mxu1 %v12210_v29  ;;  %v12216_v39 = vld [vmem:[#allocation9 + $0x118] sm:$0xff]   ;;  %v12219_v40 = vld [vmem:[#allocation9 + $0x120] sm:$0xff]  }
 0x2cc   : > { %v10952_v51 = vpop.f32.mrb[147].mxu0  ;;  %11554 = vmatprep.subr.bf16.mxu1 %v12211_v48  ;;  %11002 = vmatprep.subr.bf16.mxu0 %v12216_v39 }
 0x2cd   : > { %v4940_v30 = vadd.f32 %v4939_v16, %v4909_v25  ;;  %v4872_v0 = vadd.f32 %v4871_v55, %v15077_v20  ;;  %v4910_v35 = vmul.f32 %v15077_v20, %v15077_v20  ;;  %v11794_v8 = vadd.f32 %v10950_v19, %v14820_v7  ;;  %v12215_v19 = vld [vmem:[#allocation9 + $0x168] sm:$0xff]  }
 0x2ce   : > { %v10953_v10 = vadd.f32 %v10952_v51, %v10951_v53 }
 0x2cf   : > { %v4941_v33 = vadd.f32 %v4940_v30, %v4910_v35  ;;  %v11795_v41 = vadd.f32 %v11794_v8, %v14929_v52  ;;  %11555 = vmatpush3.bf16.msra.mxu1 %v12211_v48  ;;  %v12220_v30 = vld [vmem:[#allocation9 + $0xe0] sm:$0xff]   ;;  %v12221_v35 = vld [vmem:[#allocation9 + $0x128] sm:$0xff]   ;;  %v12218_v48 = vld [vmem:[#allocation9 + $0x170] sm:$0xff]  }
 0x2d0   : > { %v11802_v24 = vadd.f32 %v10953_v10, %v14827_v31  ;;  %v12217_v31 = vld [vmem:[#allocation9 + $0xd8] sm:$0xff]   ;;  %11556 = vmatprep.subr.bf16.mxu1 %v12214_v37 }
 0x2d1   : > { %v15086_v3 = vadd.f32 %v11795_v41, %v14876_v43  ;;  %v10954_v7 = vpop.f32.mrb[148].mxu0  ;;  %11003 = vmatpush3.bf16.msra.mxu0 %v12217_v31 }
 0x2d2   : > { %v11803_v54 = vadd.f32 %v11802_v24, %v14936_v9  ;;  %v10955_v16 = vpop.f32.mrb[149].mxu0  ;;  %11004 = vmatprep.subr.bf16.mxu0 %v12219_v40 }
 0x2d3   : > { %v4873_v21 = vadd.f32 %v4872_v0, %v15086_v3  ;;  %v4911_v52 = vmul.f32 %v15086_v3, %v15086_v3  ;;  %v10956_v26 = vadd.f32 %v10955_v16, %v10954_v7  ;;  %v10957_v17 = vpop.f32.mrb[150].mxu0  ;;  %11557 = vmatpush3.bf16.msra.mxu1 %v12214_v37  ;;  %v12222_v16 = vld [vmem:[#allocation9 + $0x178] sm:$0xff]  }
 0x2d4   : > { %v15093_v22 = vadd.f32 %v11803_v54, %v14876_v43  ;;  %v10958_v34 = vpop.f32.mrb[151].mxu0  ;;  %11558 = vmatprep.subr.bf16.mxu1 %v12215_v19 }
 0x2d5   : > { %v4942_v55 = vadd.f32 %v4941_v33, %v4911_v52  ;;  %v11790_v9 = vadd.f32 %v10956_v26, %v14816_v50  ;;  %v10959_v25 = vadd.f32 %v10958_v34, %v10957_v17  ;;  %11005 = vmatpush3.bf16.msra.mxu0 %v12220_v30  ;;  %v12225_v17 = vld [vmem:[#allocation9 + $0xf0] sm:$0xff]   ;;  %v12226_v34 = vld [vmem:[#allocation9 + $0x138] sm:$0xff]  }
 0x2d6   : > { %v4874_v53 = vadd.f32 %v4873_v21, %v15093_v22  ;;  %v4912_v51 = vmul.f32 %v15093_v22, %v15093_v22  ;;  %11006 = vmatprep.subr.bf16.mxu0 %v12221_v35 }
 0x2d7   : > { %v11791_v44 = vadd.f32 %v11790_v9, %v14925_v23  ;;  %v11798_v29 = vadd.f32 %v10959_v25, %v14824_v6  ;;  %11559 = vmatpush3.bf16.msra.mxu1 %v12215_v19  ;;  %v15120_v9 = vld [vmem:[#allocation9 + $0x80] sm:$0xff]  }
 0x2d8   : > { %v4943_v0 = vadd.f32 %v4942_v55, %v4912_v51  ;;  %11560 = vmatprep.subr.bf16.mxu1 %v12218_v48  ;;  %17480 = vst [vmem:[#allocation29_spill] sm:$0xff] %v15120_v9  ;;  %v12228_v51 = vld [vmem:[#allocation9 + $0xf8] sm:$0xff]  }
 0x2d9   : > { %v15102_v50 = vadd.f32 %v11791_v44, %v14876_v43  ;;  %v11799_v8 = vadd.f32 %v11798_v29, %v14934_v4  ;;  %v10960_v63 = vpop.f32.mrb[152].mxu0  ;;  %v12224_v4 = vld [vmem:[#allocation9 + $0x130] sm:$0xff]   ;;  %11007 = vmatpush3.bf16.msra.mxu0 %v12223_v18 }
 0x2da   : > { %v10961_v13 = vpop.f32.mrb[153].mxu0  ;;  %11008 = vmatprep.subr.bf16.mxu0 %v12224_v4 }
 0x2db   : > { %v4875_v10 = vadd.f32 %v4874_v53, %v15102_v50  ;;  %v4913_v6 = vmul.f32 %v15102_v50, %v15102_v50  ;;  %v15109_v23 = vadd.f32 %v11799_v8, %v14876_v43  ;;  %v10962_v33 = vadd.f32 %v10961_v13, %v10960_v63  ;;  %v10963_v41 = vpop.f32.mrb[154].mxu0  ;;  %11561 = vmatpush3.bf16.msra.mxu1 %v12218_v48 }
 0x2dc   : > { %v10964_v24 = vpop.f32.mrb[155].mxu0  ;;  %11562 = vmatprep.subr.bf16.mxu1 %v12222_v16 }
 0x2dd   : > { %v4944_v39 = vadd.f32 %v4943_v0, %v4913_v6  ;;  %v4876_v7 = vadd.f32 %v4875_v10, %v15109_v23  ;;  %v4914_v37 = vmul.f32 %v15109_v23, %v15109_v23  ;;  %v11810_v54 = vadd.f32 %v10962_v33, %v14836_v49  ;;  %11009 = vmatpush3.bf16.msra.mxu0 %v12225_v17 }
 0x2de   : > { %v10965_v21 = vadd.f32 %v10964_v24, %v10963_v41  ;;  %11010 = vmatprep.subr.bf16.mxu0 %v12226_v34 }
 0x2df   : > { %v4945_v52 = vadd.f32 %v4944_v39, %v4914_v37  ;;  %v11811_v26 = vadd.f32 %v11810_v54, %v14956_v47  ;;  %11563 = vmatpush3.bf16.msra.mxu1 %v12222_v16 }
 0x2e0   : > { %v11818_v31 = vadd.f32 %v10965_v21, %v14843_v5  ;;  %11596 = vmatprep.subr.bf16.mxu1 %v15120_v9 }
 0x2e1   : > { %v15118_v40 = vadd.f32 %v11811_v26, %v14876_v43  ;;  %v10966_v55 = vpop.f32.mrb[156].mxu0  ;;  %11011 = vmatpush3.bf16.msra.mxu0 %v12228_v51 }
 0x2e2   : > { %v11819_v49 = vadd.f32 %v11818_v31, %v14963_v36  ;;  %v10967_v25 = vpop.f32.mrb[157].mxu0 }
 0x2e3   : > { %v4877_v19 = vadd.f32 %v4876_v7, %v15118_v40  ;;  %v4915_v47 = vmul.f32 %v15118_v40, %v15118_v40  ;;  %v10968_v53 = vadd.f32 %v10967_v25, %v10966_v55  ;;  %v10969_v5 = vpop.f32.mrb[158].mxu0 }
 0x2e4   : > { %v15127_v44 = vadd.f32 %v11819_v49, %v14876_v43  ;;  %v10970_v29 = vpop.f32.mrb[159].mxu0 }
 0x2e5   : > { %v4946_v30 = vadd.f32 %v4945_v52, %v4915_v47  ;;  %v11806_v0 = vadd.f32 %v10968_v53, %v14832_v27  ;;  %v10971_v36 = vadd.f32 %v10970_v29, %v10969_v5 }
 0x2e6   : > { %v4878_v35 = vadd.f32 %v4877_v19, %v15127_v44  ;;  %v4916_v8 = vmul.f32 %v15127_v44, %v15127_v44 }
 0x2e7   : > { %v11807_v63 = vadd.f32 %v11806_v0, %v14954_v59  ;;  %v11814_v48 = vadd.f32 %v10971_v36, %v14840_v32 }
 0x2e8   : > { %v4947_v13 = vadd.f32 %v4946_v30, %v4916_v8 }
 0x2e9   : > { %v4848_v10 = vadd.f32 %v11807_v63, %v14876_v43  ;;  %v11815_v6 = vadd.f32 %v11814_v48, %v14960_v61 }
 0x2eb   : > { %v4879_v33 = vadd.f32 %v4878_v35, %v4848_v10  ;;  %v4917_v27 = vmul.f32 %v4848_v10, %v4848_v10  ;;  %v4849_v41 = vadd.f32 %v11815_v6, %v14876_v43 }
 0x2ed   : > { %v4948_v18 = vadd.f32 %v4947_v13, %v4917_v27  ;;  %v4880_v24 = vadd.f32 %v4879_v33, %v4849_v41  ;;  %v4918_v4 = vmul.f32 %v4849_v41, %v4849_v41 }
 0x2ef   : > { %v4881_v39 = vrot.slane %v4880_v24, 4  ;;  %v4949_v7 = vadd.f32 %v4948_v18, %v4918_v4 }
 0x2f1   : > { %v4882_v37 = vadd.f32 %v4881_v39, %v4880_v24  ;;  %v4950_v54 = vrot.slane %v4949_v7, 4 }
 0x2f3   : > { %v4883_v59 = vrot.slane %v4882_v37, 2  ;;  %v4951_v16 = vadd.f32 %v4950_v54, %v4949_v7 }
 0x2f5   : > { %v4884_v32 = vadd.f32 %v4883_v59, %v4882_v37  ;;  %v4952_v21 = vrot.slane %v4951_v16, 2 }
 0x2f7   : > { %v4885_v52 = vrot.slane %v4884_v32, 1  ;;  %v4953_v26 = vadd.f32 %v4952_v21, %v4951_v16 }
 0x2f9   : > { %v4886_v17 = vadd.f32 %v4885_v52, %v4884_v32  ;;  %v4954_v31 = vrot.slane %v4953_v26, 1 }
 0x2fb   : > { %v4955_v61 = vadd.f32 %v4954_v31, %v4953_v26  ;;  %v15139_v34 = vmul.f32 0.00390625, %v4886_v17 }
 0x2fd   : > { %v4957_v55 = vmul.f32 0.00390625, %v4955_v61  ;;  %v4958_v43 = vmul.f32 %v15139_v34, %v15139_v34  ;;  %v4991_v49 = vsub.f32 %v4848_v10, %v15139_v34  ;;  %v4992_v25 = vsub.f32 %v4849_v41, %v15139_v34 }
 0x2fe   : > { %v4981_v5 = vsub.f32 %v15054_v42, %v15139_v34  ;;  %v4982_v51 = vsub.f32 %v15061_v12, %v15139_v34  ;;  %v4983_v29 = vsub.f32 %v15070_v62, %v15139_v34  ;;  %v4984_v30 = vsub.f32 %v15077_v20, %v15139_v34 }
 0x2ff   : > { %v4959_v19 = vsub.f32 %v4957_v55, %v4958_v43  ;;  %v4985_v0 = vsub.f32 %v15086_v3, %v15139_v34  ;;  %v4986_v36 = vsub.f32 %v15093_v22, %v15139_v34  ;;  %v4987_v35 = vsub.f32 %v15102_v50, %v15139_v34  ;;  %v17481_v3 = vld [vmem:[#allocation17_spill] sm:$0xff]  ;;  %v17482_v22 = vld [vmem:[#allocation18_spill] sm:$0xff] }
 0x300   : > { %v4988_v42 = vsub.f32 %v15109_v23, %v15139_v34  ;;  %v4989_v12 = vsub.f32 %v15118_v40, %v15139_v34  ;;  %v4990_v62 = vsub.f32 %v15127_v44, %v15139_v34  ;;  %v4961_v20 = vsub.f32 %v14885_v1, %v15139_v34  ;;  %v17483_v50 = vld [vmem:[#allocation53_spill] sm:$0xff]  ;;  %v17484_v23 = vld [vmem:[#allocation23_spill] sm:$0xff]  ;;  %v17485_v40 = vld [vmem:[#allocation24_spill] sm:$0xff] }
 0x301   : > { %v4960_v47 = vmax.f32 %v4959_v19, 0.0  ;;  %v4962_v8 = vsub.f32 %v17481_v3, %v15139_v34  ;;  %v4963_v63 = vsub.f32 %v17482_v22, %v15139_v34  ;;  %v4964_v48 = vsub.f32 %v17483_v50, %v15139_v34  ;;  %v17486_v44 = vld [vmem:[#allocation19_spill] sm:$0xff]  ;;  %v17487_v1 = vld [vmem:[#allocation20_spill] sm:$0xff] }
 0x302   : > { %v4965_v13 = vsub.f32 %v17484_v23, %v15139_v34  ;;  %v4966_v10 = vsub.f32 %v17485_v40, %v15139_v34  ;;  %v4967_v6 = vsub.f32 %v17486_v44, %v15139_v34  ;;  %v4968_v33 = vsub.f32 %v17487_v1, %v15139_v34  ;;  %v12244_v44 = vld [vmem:[#allocation9 + $0x40] sm:$0xff]  }
 0x303   : > { %v4993_v53 = vadd.f32 1e-05, %v4960_v47  ;;  %v4969_v27 = vsub.f32 %v14951_v15, %v15139_v34  ;;  %v4970_v41 = vsub.f32 %v14968_v58, %v15139_v34  ;;  %v4971_v18 = vsub.f32 %v14973_v2, %v15139_v34  ;;  %11132 = vmatprep.subr.bf16.mxu0 %v12244_v44 }
 0x304   : > { %v4972_v24 = vsub.f32 %v14984_v45, %v15139_v34  ;;  %v4973_v4 = vsub.f32 %v14988_v11, %v15139_v34  ;;  %v4974_v39 = vsub.f32 %v14999_v28, %v15139_v34  ;;  %v4975_v7 = vsub.f32 %v15004_v60, %v15139_v34 }
 0x305   : > { %12324 = vrsqrt.f32 %v4993_v53  ;;  %v4976_v15 = vsub.f32 %v15013_v46, %v15139_v34  ;;  %v4977_v58 = vsub.f32 %v15019_v38, %v15139_v34  ;;  %v4978_v2 = vsub.f32 %v15028_v14, %v15139_v34 }
 0x306   : > { %v4979_v45 = vsub.f32 %v15037_v56, %v15139_v34  ;;  %v4980_v11 = vsub.f32 %v15044_v57, %v15139_v34 }
 0x30f   : > { %v12325_v37 = vpop.eup %12324 }
 0x310   : > { %v5025_v28 = vmul.f32 %v12325_v37, %v4991_v49  ;;  %v5026_v54 = vmul.f32 %v12325_v37, %v4992_v25  ;;  %v15205_v59 = vmul.f32 %v12325_v37, %v4961_v20  ;;  %v15207_v60 = vmul.f32 %v12325_v37, %v4962_v8 }
 0x311   : > { %v15209_v46 = vmul.f32 %v12325_v37, %v4963_v63  ;;  %v15211_v16 = vmul.f32 %v12325_v37, %v4964_v48  ;;  %v15213_v38 = vmul.f32 %v12325_v37, %v4965_v13  ;;  %v15215_v32 = vmul.f32 %v12325_v37, %v4966_v10 }
 0x312   : > { %v5057_v14 = vmax.f32 %v5025_v28, 0.0  ;;  %v5058_v21 = vmax.f32 %v5026_v54, 0.0  ;;  %v15217_v56 = vmul.f32 %v12325_v37, %v4967_v6  ;;  %v15219_v52 = vmul.f32 %v12325_v37, %v4968_v33 }
 0x313   : > { %v15221_v57 = vmul.f32 %v12325_v37, %v4969_v27  ;;  %v15223_v26 = vmul.f32 %v12325_v37, %v4970_v41  ;;  %v15225_v17 = vmul.f32 %v12325_v37, %v4971_v18  ;;  %v15227_v31 = vmul.f32 %v12325_v37, %v4972_v24 }
 0x314   : > { %v5074_v61 = vpack.c.bf16 %v5058_v21, %v5057_v14  ;;  %v15229_v34 = vmul.f32 %v12325_v37, %v4973_v4  ;;  %v15231_v55 = vmul.f32 %v12325_v37, %v4974_v39  ;;  %v15233_v43 = vmul.f32 %v12325_v37, %v4975_v7 }
 0x315   : > { %v15235_v49 = vmul.f32 %v12325_v37, %v4976_v15  ;;  %v15237_v25 = vmul.f32 %v12325_v37, %v4977_v58  ;;  %v15239_v19 = vmul.f32 %v12325_v37, %v4978_v2  ;;  %v15241_v47 = vmul.f32 %v12325_v37, %v4979_v45 }
 0x316   : > { %v5121_v53 = vshrl.u32 %v5074_v61, 16  ;;  %v5200_v20 = vshll.u32 %v5074_v61, 16  ;;  %v15243_v3 = vmul.f32 %v12325_v37, %v4980_v11  ;;  %v15245_v8 = vmul.f32 %v12325_v37, %v4981_v5 }
 0x317   : > { %v15247_v22 = vmul.f32 %v12325_v37, %v4982_v51  ;;  %v15249_v63 = vmul.f32 %v12325_v37, %v4983_v29  ;;  %v5018_v50 = vmul.f32 %v12325_v37, %v4984_v30  ;;  %v5019_v48 = vmul.f32 %v12325_v37, %v4985_v0 }
 0x318   : > { %v5199_v23 = vrot.slane %v5121_v53, 7  ;;  %v5250_v13 = vrot.slane %v5200_v20, 7  ;;  %v5020_v40 = vmul.f32 %v12325_v37, %v4986_v36  ;;  %v5021_v10 = vmul.f32 %v12325_v37, %v4987_v35 }
 0x319   : > { %v5022_v6 = vmul.f32 %v12325_v37, %v4988_v42  ;;  %v5023_v1 = vmul.f32 %v12325_v37, %v4989_v12  ;;  %v5024_v33 = vmul.f32 %v12325_v37, %v4990_v62  ;;  %v5027_v27 = vmax.f32 %v15205_v59, 0.0 }
 0x31a   : > { %v5202_v41 = vor.u32 %v5200_v20, %v5199_v23  ;;  %v5298_v5 = vsel %vm12845_vm2, %v5199_v23, %v5250_v13  ;;  %v5028_v51 = vmax.f32 %v15207_v60, 0.0  ;;  %v5029_v29 = vmax.f32 %v15209_v46, 0.0 }
 0x31b   : > { %v10315_v30 = vcombine.low %v5298_v5, %v5298_v5  ;;  %v5030_v0 = vmax.f32 %v15211_v16, 0.0  ;;  %v5031_v36 = vmax.f32 %v15213_v38, 0.0  ;;  %v5032_v35 = vmax.f32 %v15215_v32, 0.0 }
 0x31c   : > { %v5282_v42 = vsel %vm12845_vm2, %v5121_v53, %v5202_v41  ;;  %v5033_v12 = vmax.f32 %v15217_v56, 0.0  ;;  %v5034_v62 = vmax.f32 %v15219_v52, 0.0  ;;  %v5035_v24 = vmax.f32 %v15221_v57, 0.0 }
 0x31d   : > { %v10313_v4 = vcombine.low %v5282_v42, %v5282_v42  ;;  %v10314_v39 = vcombine.high %v5282_v42, %v5282_v42  ;;  %5523 = vst [vmem:[#allocation3 + $0xc8] sm:$0x1] %v10315_v30  ;;  %v5036_v7 = vmax.f32 %v15223_v26, 0.0  ;;  %v5037_v15 = vmax.f32 %v15225_v17, 0.0 }
 0x31e   : > { %v5038_v37 = vmax.f32 %v15227_v31, 0.0  ;;  %v5039_v58 = vmax.f32 %v15229_v34, 0.0  ;;  %v5040_v2 = vmax.f32 %v15231_v55, 0.0  ;;  %v5041_v45 = vmax.f32 %v15233_v43, 0.0 }
 0x31f   : > { %5521 = vst [vmem:[#allocation3 + $0xc0] sm:$0xf] %v10313_v4  ;;  %5522 = vst [vmem:[#allocation3 + $0xc4] sm:$0xf] %v10314_v39  ;;  %v5042_v11 = vmax.f32 %v15235_v49, 0.0  ;;  %v5043_v28 = vmax.f32 %v15237_v25, 0.0  ;;  %v15278_v17 = vpack.c.bf16 %v5028_v51, %v5027_v27  ;;  %v15280_v31 = vpack.c.bf16 %v5030_v0, %v5029_v29 }
 0x320   : > { %v5044_v54 = vmax.f32 %v15239_v19, 0.0  ;;  %v5045_v59 = vmax.f32 %v15241_v47, 0.0  ;;  %v5046_v60 = vmax.f32 %v15243_v3, 0.0  ;;  %v5047_v46 = vmax.f32 %v15245_v8, 0.0 }
 0x321   : > { %v5048_v16 = vmax.f32 %v15247_v22, 0.0  ;;  %v5049_v38 = vmax.f32 %v15249_v63, 0.0  ;;  %v5050_v32 = vmax.f32 %v5018_v50, 0.0  ;;  %v5051_v14 = vmax.f32 %v5019_v48, 0.0 }
 0x322   : > { %v5052_v21 = vmax.f32 %v5020_v40, 0.0  ;;  %v5053_v56 = vmax.f32 %v5021_v10, 0.0  ;;  %v5054_v52 = vmax.f32 %v5022_v6, 0.0  ;;  %v5055_v57 = vmax.f32 %v5023_v1, 0.0 }
 0x323   : > { %v5056_v26 = vmax.f32 %v5024_v33, 0.0  ;;  %v15282_v61 = vpack.c.bf16 %v5032_v35, %v5031_v36  ;;  %v15284_v34 = vpack.c.bf16 %v5034_v62, %v5033_v12  ;;  %v15286_v55 = vpack.c.bf16 %v5036_v7, %v5035_v24 }
 0x324   : > { %v15288_v43 = vpack.c.bf16 %v5038_v37, %v5037_v15  ;;  %v15290_v49 = vpack.c.bf16 %v5040_v2, %v5039_v58  ;;  %v15292_v25 = vpack.c.bf16 %v5042_v11, %v5041_v45  ;;  %v15294_v19 = vpack.c.bf16 %v5044_v54, %v5043_v28 }
 0x325   : > { %v15296_v47 = vpack.c.bf16 %v5046_v60, %v5045_v59  ;;  %v15298_v53 = vpack.c.bf16 %v5048_v16, %v5047_v46  ;;  %v15300_v20 = vpack.c.bf16 %v5050_v32, %v5049_v38  ;;  %v15302_v3 = vpack.c.bf16 %v5052_v21, %v5051_v14 }
 0x326   : > { %v15304_v8 = vpack.c.bf16 %v5054_v52, %v5053_v56  ;;  %v15306_v22 = vpack.c.bf16 %v5056_v26, %v5055_v57  ;;  %v17302_v63 = vshrl.u32 %v15278_v17, 16  ;;  %v17301_v50 = vshrl.u32 %v15280_v31, 16 }
 0x327   : > { %17489 = vst [vmem:[#allocation30_spill] sm:$0xff] %v15298_v53  ;;  %17490 = vst [vmem:[#allocation25_spill] sm:$0xff] %v15300_v20  ;;  %v17299_v48 = vshrl.u32 %v15282_v61, 16  ;;  %v17298_v23 = vshrl.u32 %v15284_v34, 16  ;;  %v17296_v13 = vshrl.u32 %v15286_v55, 16  ;;  %v17295_v40 = vshrl.u32 %v15288_v43, 16 }
 0x328   : > { %17491 = vst [vmem:[#allocation26_spill] sm:$0xff] %v15302_v3  ;;  %17492 = vst [vmem:[#allocation31_spill] sm:$0xff] %v15304_v8  ;;  %v17293_v10 = vshrl.u32 %v15290_v49, 16  ;;  %v17292_v44 = vshrl.u32 %v15292_v25, 16  ;;  %v17291_v6 = vshrl.u32 %v15294_v19, 16  ;;  %v17294_v1 = vshrl.u32 %v15296_v47, 16 }
 0x329   : > { %17493 = vst [vmem:[#allocation32_spill] sm:$0xff] %v15306_v22  ;;  %v17297_v33 = vshrl.u32 %v15298_v53, 16  ;;  %v17300_v27 = vshrl.u32 %v15300_v20, 16  ;;  %v17306_v41 = vshrl.u32 %v15302_v3, 16  ;;  %v17312_v5 = vshrl.u32 %v15304_v8, 16 }
 0x32a   : > { %v17318_v51 = vshrl.u32 %v15306_v22, 16  ;;  %v15325_v29 = vrot.slane %v17302_v63, 7  ;;  %v5140_v30 = vshll.u32 %v15278_v17, 16  ;;  %v15330_v0 = vrot.slane %v17301_v50, 7 }
 0x32b   : > { %v5144_v36 = vshll.u32 %v15280_v31, 16  ;;  %v15335_v35 = vrot.slane %v17299_v48, 7  ;;  %v5148_v42 = vshll.u32 %v15282_v61, 16  ;;  %v15340_v12 = vrot.slane %v17298_v23, 7 }
 0x32c   : > { %17494 = vst [vmem:[#allocation27_spill] sm:$0xff] %v15325_v29  ;;  %17495 = vst [vmem:[#allocation28_spill] sm:$0xff] %v15330_v0  ;;  %v5142_v62 = vor.u32 %v5140_v30, %v15325_v29  ;;  %v5152_v24 = vshll.u32 %v15284_v34, 16  ;;  %v15346_v4 = vrot.slane %v17296_v13, 7  ;;  %v5156_v39 = vshll.u32 %v15286_v55, 16 }
 0x32d   : > { %17496 = vst [vmem:[#allocation50_spill] sm:$0xff] %v15335_v35  ;;  %17497 = vst [vmem:[#allocation51_spill] sm:$0xff] %v15340_v12  ;;  %v5146_v7 = vor.u32 %v5144_v36, %v15330_v0  ;;  %v5150_v15 = vor.u32 %v5148_v42, %v15335_v35  ;;  %v15353_v37 = vrot.slane %v17295_v40, 7  ;;  %v5160_v58 = vshll.u32 %v15288_v43, 16 }
 0x32e   : > { %17498 = vst [vmem:[#allocation37_spill] sm:$0xff] %v15346_v4  ;;  %v5154_v2 = vor.u32 %v5152_v24, %v15340_v12  ;;  %v5158_v45 = vor.u32 %v5156_v39, %v15346_v4  ;;  %v15360_v11 = vrot.slane %v17293_v10, 7  ;;  %v5164_v28 = vshll.u32 %v15290_v49, 16 }
 0x32f   : > { %17499 = vst [vmem:[#allocation38_spill] sm:$0xff] %v15353_v37  ;;  %v5162_v54 = vor.u32 %v5160_v58, %v15353_v37  ;;  %v15366_v59 = vrot.slane %v17292_v44, 7  ;;  %v5168_v60 = vshll.u32 %v15292_v25, 16  ;;  %v5171_v46 = vrot.slane %v17291_v6, 7 }
 0x330   : > { %17500 = vst [vmem:[#allocation52_spill] sm:$0xff] %v15360_v11  ;;  %v5166_v16 = vor.u32 %v5164_v28, %v15360_v11  ;;  %v5172_v38 = vshll.u32 %v15294_v19, 16  ;;  %v5175_v32 = vrot.slane %v17294_v1, 7  ;;  %v5176_v14 = vshll.u32 %v15296_v47, 16 }
 0x331   : > { %17501 = vst [vmem:[#allocation54_spill] sm:$0xff] %v15366_v59  ;;  %v5170_v21 = vor.u32 %v5168_v60, %v15366_v59  ;;  %v5179_v56 = vrot.slane %v17297_v33, 7  ;;  %v5180_v52 = vshll.u32 %v15298_v53, 16  ;;  %v5183_v57 = vrot.slane %v17300_v27, 7 }
 0x332   : > { %v5174_v26 = vor.u32 %v5172_v38, %v5171_v46  ;;  %v5178_v6 = vor.u32 %v5176_v14, %v5175_v32  ;;  %v5184_v44 = vshll.u32 %v15300_v20, 16  ;;  %v5187_v10 = vrot.slane %v17306_v41, 7 }
 0x333   : > { %v5182_v1 = vor.u32 %v5180_v52, %v5179_v56  ;;  %v5188_v40 = vshll.u32 %v15302_v3, 16  ;;  %v5191_v13 = vrot.slane %v17312_v5, 7  ;;  %v5192_v33 = vshll.u32 %v15304_v8, 16 }
 0x334   : > { %v5186_v23 = vor.u32 %v5184_v44, %v5183_v57  ;;  %v5195_v48 = vrot.slane %v17318_v51, 7  ;;  %v5196_v27 = vshll.u32 %v15306_v22, 16  ;;  %v5235_v50 = vrot.slane %v5140_v30, 7 }
 0x335   : > { %v5190_v63 = vor.u32 %v5188_v40, %v5187_v10  ;;  %v5194_v9 = vor.u32 %v5192_v33, %v5191_v13  ;;  %v5236_v59 = vrot.slane %v5144_v36, 7  ;;  %v5237_v11 = vrot.slane %v5148_v42, 7 }
 0x336   : > { %v5198_v41 = vor.u32 %v5196_v27, %v5195_v48  ;;  %v5238_v37 = vrot.slane %v5152_v24, 7  ;;  %v5239_v4 = vrot.slane %v5156_v39, 7  ;;  %v5240_v12 = vrot.slane %v5160_v58, 7 }
 0x337   : > { %v5241_v35 = vrot.slane %v5164_v28, 7  ;;  %v5242_v0 = vrot.slane %v5168_v60, 7  ;;  %v5243_v5 = vrot.slane %v5172_v38, 7  ;;  %v5244_v29 = vrot.slane %v5176_v14, 7  ;;  %v17516_v28 = vld [vmem:[#allocation26_spill] sm:$0xff] }
 0x338   : > { %v5245_v8 = vrot.slane %v5180_v52, 7  ;;  %v5246_v3 = vrot.slane %v5184_v44, 7  ;;  %v5247_v20 = vrot.slane %v5188_v40, 7  ;;  %v5248_v53 = vrot.slane %v5192_v33, 7  ;;  %v17523_v52 = vld [vmem:[#allocation28_spill] sm:$0xff] }
 0x339   : > { %v5249_v51 = vrot.slane %v5196_v27, 7  ;;  %v17502_v22 = vshrl.u32 %v15278_v17, 16  ;;  %v17503_v36 = vshrl.u32 %v15280_v31, 16  ;;  %v17504_v24 = vshrl.u32 %v15282_v61, 16 }
 0x33a   : > { %v17505_v44 = vshrl.u32 %v15284_v34, 16  ;;  %v17506_v17 = vshrl.u32 %v15286_v55, 16  ;;  %v17507_v31 = vshrl.u32 %v15288_v43, 16  ;;  %v17508_v61 = vshrl.u32 %v15290_v49, 16 }
 0x33b   : > { %v5267_v30 = vsel %vm12845_vm2, %v17502_v22, %v5142_v62  ;;  %v5268_v42 = vsel %vm12845_vm2, %v17503_v36, %v5146_v7  ;;  %v5269_v39 = vsel %vm12845_vm2, %v17504_v24, %v5150_v15  ;;  %v17509_v27 = vshrl.u32 %v15292_v25, 16  ;;  %v17512_v15 = vld [vmem:[#allocation30_spill] sm:$0xff] }
 0x33c   : > { %v5270_v40 = vsel %vm12845_vm2, %v17505_v44, %v5154_v2  ;;  %v15412_v22 = vsel %vm12845_vm2, %v17506_v17, %v5158_v45  ;;  %v15418_v33 = vsel %vm12845_vm2, %v17507_v31, %v5162_v54  ;;  %v15424_v34 = vsel %vm12845_vm2, %v17508_v61, %v5166_v16  ;;  %v17514_v2 = vld [vmem:[#allocation25_spill] sm:$0xff]  ;;  %v17527_v17 = vld [vmem:[#allocation38_spill] sm:$0xff]  ;;  %v17528_v31 = vld [vmem:[#allocation52_spill] sm:$0xff] }
 0x33d   : > { %v15430_v55 = vsel %vm12845_vm2, %v17509_v27, %v5170_v21  ;;  %v17510_v62 = vshrl.u32 %v15294_v19, 16  ;;  %v17511_v7 = vshrl.u32 %v15296_v47, 16  ;;  %v17513_v58 = vshrl.u32 %v17512_v15, 16  ;;  %v17526_v44 = vld [vmem:[#allocation37_spill] sm:$0xff]  ;;  %v17529_v61 = vld [vmem:[#allocation54_spill] sm:$0xff] }
 0x33e   : > { %v17515_v45 = vshrl.u32 %v17514_v2, 16  ;;  %v17517_v54 = vshrl.u32 %v17516_v28, 16  ;;  %v10272_v27 = vcombine.high %v5268_v42, %v5268_v42  ;;  %v10281_v18 = vcombine.high %v15412_v22, %v15412_v22 }
 0x33f   : > { %v15436_v43 = vsel %vm12845_vm2, %v17510_v62, %v5174_v26  ;;  %v15442_v49 = vsel %vm12845_vm2, %v17511_v7, %v5178_v6  ;;  %v15448_v25 = vsel %vm12845_vm2, %v17513_v58, %v5182_v1  ;;  %v17518_v6 = vld [vmem:[#allocation31_spill] sm:$0xff]  ;;  %v17520_v1 = vld [vmem:[#allocation32_spill] sm:$0xff]  ;;  %v17524_v26 = vld [vmem:[#allocation50_spill] sm:$0xff] }
 0x340   : > { %v15454_v19 = vsel %vm12845_vm2, %v17515_v45, %v5186_v23  ;;  %v15460_v47 = vsel %vm12845_vm2, %v17517_v54, %v5190_v63  ;;  %v17519_v60 = vshrl.u32 %v17518_v6, 16  ;;  %v17521_v38 = vshrl.u32 %v17520_v1, 16  ;;  %v17522_v23 = vld [vmem:[#allocation27_spill] sm:$0xff]  ;;  %5480 = vst [vmem:[#allocation3 + $0x1c] sm:$0xf] %v10272_v27 }
 0x341   : > { %v5283_v21 = vsel %vm12845_vm2, %v17522_v23, %v5235_v50  ;;  %v5284_v63 = vsel %vm12845_vm2, %v17523_v52, %v5236_v59  ;;  %v5285_v36 = vsel %vm12845_vm2, %v17524_v26, %v5237_v11  ;;  %v5288_v50 = vsel %vm12845_vm2, %v17527_v17, %v5240_v12  ;;  %5525 = vst [vmem:[#allocation3 + $0x4] sm:$0xf] %v10272_v27 }
 0x342   : > { %v15466_v16 = vsel %vm12845_vm2, %v17519_v60, %v5194_v9  ;;  %v15472_v14 = vsel %vm12845_vm2, %v17521_v38, %v5198_v41  ;;  %v17525_v9 = vld [vmem:[#allocation51_spill] sm:$0xff]  ;;  %v5287_v41 = vsel %vm12845_vm2, %v17526_v44, %v5239_v4  ;;  %v5289_v59 = vsel %vm12845_vm2, %v17528_v31, %v5241_v35  ;;  %5489 = vst [vmem:[#allocation3 + $0x40] sm:$0xf] %v10281_v18 }
 0x343   : > { %v5286_v24 = vsel %vm12845_vm2, %v17525_v9, %v5238_v37  ;;  %v15498_v11 = vsel %vm12845_vm2, %v17529_v61, %v5242_v0  ;;  %v15502_v37 = vsel %vm12845_vm2, %v5171_v46, %v5243_v5  ;;  %v15506_v4 = vsel %vm12845_vm2, %v5175_v32, %v5244_v29 }
 0x344   : > { %v15510_v12 = vsel %vm12845_vm2, %v5179_v56, %v5245_v8  ;;  %v15514_v35 = vsel %vm12845_vm2, %v5183_v57, %v5246_v3  ;;  %v15518_v0 = vsel %vm12845_vm2, %v5187_v10, %v5247_v20  ;;  %v15522_v5 = vsel %vm12845_vm2, %v5191_v13, %v5248_v53 }
 0x345   : > { %v15526_v29 = vsel %vm12845_vm2, %v5195_v48, %v5249_v51  ;;  %v10268_v46 = vcombine.low %v5267_v30, %v5267_v30  ;;  %v10269_v32 = vcombine.high %v5267_v30, %v5267_v30  ;;  %v10270_v8 = vcombine.low %v5283_v21, %v5283_v21 }
 0x346   : > { %v10271_v56 = vcombine.low %v5268_v42, %v5268_v42  ;;  %v10273_v62 = vcombine.low %v5284_v63, %v5284_v63  ;;  %v10274_v3 = vcombine.low %v5269_v39, %v5269_v39  ;;  %v10275_v57 = vcombine.high %v5269_v39, %v5269_v39 }
 0x347   : > { %v10276_v7 = vcombine.low %v5285_v36, %v5285_v36  ;;  %5476 = vst [vmem:[#allocation3 + $0xc] sm:$0xf] %v10268_v46  ;;  %v10277_v20 = vcombine.low %v5270_v40, %v5270_v40  ;;  %v10278_v10 = vcombine.high %v5270_v40, %v5270_v40  ;;  %v10279_v15 = vcombine.low %v5286_v24, %v5286_v24  ;;  %v15586_v24 = vld [vmem:[#allocation3 + $0x1c] sm:$0xf] }
 0x348   : > { %v10280_v53 = vcombine.low %v15412_v22, %v15412_v22  ;;  %5477 = vst [vmem:[#allocation3 + $0x10] sm:$0xf] %v10269_v32  ;;  %5478 = vst [vmem:[#allocation3 + $0x14] sm:$0x1] %v10270_v8  ;;  %v10282_v48 = vcombine.low %v5287_v41, %v5287_v41  ;;  %v10283_v13 = vcombine.low %v15418_v33, %v15418_v33 }
 0x349   : > { %5479 = vst [vmem:[#allocation3 + $0x18] sm:$0xf] %v10271_v56  ;;  %5524 = vst [vmem:[#allocation3] sm:$0xf] %v10271_v56  ;;  %v10284_v51 = vcombine.high %v15418_v33, %v15418_v33  ;;  %v10285_v30 = vcombine.low %v5288_v50, %v5288_v50  ;;  %v10286_v42 = vcombine.low %v15424_v34, %v15424_v34 }
 0x34a   : > { %5481 = vst [vmem:[#allocation3 + $0x20] sm:$0x1] %v10273_v62  ;;  %5482 = vst [vmem:[#allocation3 + $0x24] sm:$0xf] %v10274_v3  ;;  %v10287_v39 = vcombine.high %v15424_v34, %v15424_v34  ;;  %v10288_v40 = vcombine.low %v5289_v59, %v5289_v59  ;;  %v10289_v22 = vcombine.low %v15430_v55, %v15430_v55 }
 0x34b   : > { %5483 = vst [vmem:[#allocation3 + $0x28] sm:$0xf] %v10275_v57  ;;  %5484 = vst [vmem:[#allocation3 + $0x2c] sm:$0x1] %v10276_v7  ;;  %v10290_v33 = vcombine.high %v15430_v55, %v15430_v55  ;;  %v10291_v58 = vcombine.low %v15498_v11, %v15498_v11  ;;  %v10292_v2 = vcombine.low %v15436_v43, %v15436_v43 }
 0x34c   : > { %5526 = vst [vmem:[#allocation3 + $0x8] sm:$0x1] %v10273_v62  ;;  %5485 = vst [vmem:[#allocation3 + $0x30] sm:$0xf] %v10277_v20  ;;  %v10293_v34 = vcombine.high %v15436_v43, %v15436_v43  ;;  %v10294_v45 = vcombine.low %v15502_v37, %v15502_v37  ;;  %v10295_v28 = vcombine.low %v15442_v49, %v15442_v49 }
 0x34d   : > { %5486 = vst [vmem:[#allocation3 + $0x34] sm:$0xf] %v10278_v10  ;;  %5487 = vst [vmem:[#allocation3 + $0x38] sm:$0x1] %v10279_v15  ;;  %v10296_v55 = vcombine.high %v15442_v49, %v15442_v49  ;;  %v10297_v54 = vcombine.low %v15506_v4, %v15506_v4  ;;  %v10298_v6 = vcombine.low %v15448_v25, %v15448_v25  ;;  %v6900_v4 = vrot.slane %v15586_v24, 5 }
 0x34e   : > { %5488 = vst [vmem:[#allocation3 + $0x3c] sm:$0xf] %v10280_v53  ;;  %5490 = vst [vmem:[#allocation3 + $0x44] sm:$0x1] %v10282_v48  ;;  %v10299_v43 = vcombine.high %v15448_v25, %v15448_v25  ;;  %v10300_v60 = vcombine.low %v15510_v12, %v15510_v12  ;;  %v10301_v49 = vcombine.low %v15454_v19, %v15454_v19  ;;  %v6827_v25 = vld [vmem:[#allocation3 + $0xc] sm:$0xe] }
 0x34f   : > { %5491 = vst [vmem:[#allocation3 + $0x48] sm:$0xf] %v10283_v13  ;;  %5492 = vst [vmem:[#allocation3 + $0x4c] sm:$0xf] %v10284_v51  ;;  %v10302_v1 = vcombine.high %v15454_v19, %v15454_v19  ;;  %v10303_v38 = vcombine.low %v15514_v35, %v15514_v35  ;;  %v10304_v23 = vcombine.low %v15460_v47, %v15460_v47  ;;  %v15572_v21 = vld [vmem:[#allocation3 + $0xc] sm:$0xf] }
 0x350   : > { %5493 = vst [vmem:[#allocation3 + $0x50] sm:$0x1] %v10285_v30  ;;  %5494 = vst [vmem:[#allocation3 + $0x54] sm:$0xf] %v10286_v42  ;;  %v10305_v52 = vcombine.high %v15460_v47, %v15460_v47  ;;  %v10306_v63 = vcombine.low %v15518_v0, %v15518_v0  ;;  %v10307_v19 = vcombine.low %v15466_v16, %v15466_v16  ;;  %v15582_v36 = vld [vmem:[#allocation3 + $0x10] sm:$0xf] }
 0x351   : > { %5495 = vst [vmem:[#allocation3 + $0x58] sm:$0xf] %v10287_v39  ;;  %5496 = vst [vmem:[#allocation3 + $0x5c] sm:$0x1] %v10288_v40  ;;  %v10308_v26 = vcombine.high %v15466_v16, %v15466_v16  ;;  %v15584_v9 = vld [vmem:[#allocation3 + $0x14] sm:$0x1]  ;;  %v10309_v47 = vcombine.low %v15522_v5, %v15522_v5  ;;  %v10310_v44 = vcombine.low %v15472_v14, %v15472_v14 }
 0x352   : > { %5497 = vst [vmem:[#allocation3 + $0x60] sm:$0xf] %v10289_v22  ;;  %5498 = vst [vmem:[#allocation3 + $0x64] sm:$0xf] %v10290_v33  ;;  %v10311_v41 = vcombine.high %v15472_v14, %v15472_v14  ;;  %v10312_v16 = vcombine.low %v15526_v29, %v15526_v29  ;;  %v15596_v17 = vld [vmem:[#allocation3 + $0x20] sm:$0x1] }
 0x353   : > { %5499 = vst [vmem:[#allocation3 + $0x68] sm:$0x1] %v10291_v58  ;;  %5500 = vst [vmem:[#allocation3 + $0x6c] sm:$0xf] %v10292_v2  ;;  %v6828_v50 = vld [vmem:[#allocation3 + $0x18] sm:$0xe]  ;;  %v10396_v2 = vcombine.low %v15572_v21, %v15582_v36 }
 0x354   : > { %5501 = vst [vmem:[#allocation3 + $0x70] sm:$0xf] %v10293_v34  ;;  %5502 = vst [vmem:[#allocation3 + $0x74] sm:$0x1] %v10294_v45  ;;  %v15598_v31 = vld [vmem:[#allocation3 + $0x28] sm:$0xf] }
 0x355   : > { %5503 = vst [vmem:[#allocation3 + $0x78] sm:$0xf] %v10295_v28  ;;  %5504 = vst [vmem:[#allocation3 + $0x7c] sm:$0xf] %v10296_v55  ;;  %v10380_v59 = vrot.slane %v6827_v25, 9  ;;  %v6893_v61 = vrot.slane %v15582_v36, 5 }
 0x356   : > { %5505 = vst [vmem:[#allocation3 + $0x80] sm:$0x1] %v10297_v54  ;;  %5506 = vst [vmem:[#allocation3 + $0x84] sm:$0xf] %v10298_v6  ;;  %v6896_v14 = vrot.slane %v15584_v9, 5  ;;  %v10381_v11 = vrot.slane %v6828_v50, 9 }
 0x357   : > { %5507 = vst [vmem:[#allocation3 + $0x88] sm:$0xf] %v10299_v43  ;;  %5508 = vst [vmem:[#allocation3 + $0x8c] sm:$0x1] %v10300_v60  ;;  %v15602_v37 = vld [vmem:[#allocation3 + $0x2c] sm:$0x1]  ;;  %v6894_v46 = vsel %vm13521_vm8, %v10380_v59, %v6893_v61 }
 0x358   : > { %5509 = vst [vmem:[#allocation3 + $0x90] sm:$0xf] %v10301_v49  ;;  %5510 = vst [vmem:[#allocation3 + $0x94] sm:$0xf] %v10302_v1  ;;  %v6903_v12 = vrot.slane %v15596_v17, 5  ;;  %v6907_v0 = vrot.slane %v15598_v31, 5  ;;  %v6901_v27 = vsel %vm13521_vm8, %v10381_v11, %v6900_v4 }
 0x359   : > { %5511 = vst [vmem:[#allocation3 + $0x98] sm:$0x1] %v10303_v38  ;;  %5512 = vst [vmem:[#allocation3 + $0x9c] sm:$0xf] %v10304_v23  ;;  %v6829_v35 = vld [vmem:[#allocation3 + $0x24] sm:$0xe] }
 0x35a   : > { %5513 = vst [vmem:[#allocation3 + $0xa0] sm:$0xf] %v10305_v52  ;;  %5514 = vst [vmem:[#allocation3 + $0xa4] sm:$0x1] %v10306_v63  ;;  %v6910_v5 = vrot.slane %v15602_v37, 5  ;;  %v6895_v32 = vrot.slane %v6893_v61, 4 }
 0x35b   : > { %5515 = vst [vmem:[#allocation3 + $0xa8] sm:$0xf] %v10307_v19  ;;  %5516 = vst [vmem:[#allocation3 + $0xac] sm:$0xf] %v10308_v26  ;;  %v10382_v8 = vrot.slane %v6829_v35, 9  ;;  %v6444_v56 = vshrl.u32 %v15572_v21, 16 }
 0x35c   : > { %5517 = vst [vmem:[#allocation3 + $0xb0] sm:$0x1] %v10309_v47  ;;  %5518 = vst [vmem:[#allocation3 + $0xb4] sm:$0xf] %v10310_v44  ;;  %v6902_v62 = vrot.slane %v6900_v4, 4  ;;  %v6909_v3 = vrot.slane %v6907_v0, 4  ;;  %v6897_v7 = vsel %vm13521_vm8, %v6895_v32, %v6896_v14 }
 0x35d   : > { %5519 = vst [vmem:[#allocation3 + $0xb8] sm:$0xf] %v10311_v41  ;;  %5520 = vst [vmem:[#allocation3 + $0xbc] sm:$0x1] %v10312_v16  ;;  %v6447_v57 = vshll.u32 %v15572_v21, 16  ;;  %v6908_v20 = vsel %vm13521_vm8, %v10382_v8, %v6907_v0  ;;  %v6446_v10 = vrot.slane %v6444_v56, 4  ;;  %v10428_v18 = vcombine.low %v6894_v46, %v6897_v7 }
 0x35e   : > { %5528 = vst [vmem:[#allocation3 + $0xcc] sm:$0xf] %v10310_v44  ;;  %5529 = vst [vmem:[#allocation3 + $0xd0] sm:$0xf] %v10311_v41  ;;  %v6453_v15 = vshll.u32 %v15582_v36, 16  ;;  %v6904_v48 = vsel %vm13521_vm8, %v6902_v62, %v6903_v12  ;;  %v6911_v13 = vsel %vm13521_vm8, %v6909_v3, %v6910_v5  ;;  %v6457_v40 = vshrl.u32 %v15582_v36, 16 }
 0x35f   : > { %5530 = vst [vmem:[#allocation3 + $0xd4] sm:$0x1] %v10312_v16  ;;  %v15619_v53 = vld [vmem:[#allocation3 + $0x18] sm:$0xf]  ;;  %v6449_v51 = vrot.slane %v6447_v57, 5  ;;  %v10429_v30 = vcombine.low %v6901_v27, %v6904_v48  ;;  %v10430_v42 = vcombine.low %v6908_v20, %v6911_v13  ;;  %v12230_v22 = vld [vmem:[#allocation9 + $0x88] sm:$0xff]   ;;  %11564 = vmatprep.mubr.bf16.mxu1 %v10428_v18 }
 0x360   : > { %v6455_v39 = vrot.slane %v6453_v15, 5  ;;  %v6463_v58 = vshll.u32 %v15584_v9, 16  ;;  %v6468_v34 = vshrl.u32 %v15619_v53, 16  ;;  %v15630_v45 = vld [vmem:[#allocation3 + $0x34] sm:$0xf]  ;;  %v6459_v55 = vrot.slane %v6457_v40, 4 }
 0x361   : > { %v6450_v33 = vor.u32 %v6449_v51, %v6446_v10  ;;  %v15632_v28 = vld [vmem:[#allocation3 + $0x38] sm:$0x1]  ;;  %11565 = vmatmul.mubr.bf16.vlgmr.msra.gmra.mrb[96].mxu1 %v10429_v30  ;;  %v6471_v54 = vshll.u32 %v15619_v53, 16  ;;  %v6477_v6 = vshll.u32 %v15586_v24, 16  ;;  %v6481_v43 = vshrl.u32 %v15586_v24, 16  ;;  %v17531_v49 = vld [vmem:[#allocation29_spill] sm:$0xff] }
 0x362   : > { %v6830_v60 = vld [vmem:[#allocation3 + $0x30] sm:$0xe]  ;;  %11568 = vmatprep.mubr.bf16.mxu1 %v10430_v42  ;;  %11597 = vmatpush3.bf16.msra.mxu1 %v17531_v49  ;;  %v6465_v38 = vrot.slane %v6463_v58, 5  ;;  %v6470_v23 = vrot.slane %v6468_v34, 4  ;;  %v6487_v25 = vshll.u32 %v15596_v17, 16  ;;  %v6460_v63 = vor.u32 %v6459_v55, %v6455_v39  ;;  %v12232_v44 = vld [vmem:[#allocation9 + $0x90] sm:$0xff]  }
 0x363   : > { %v6451_v1 = vrot.slane %v6450_v33, 4  ;;  %v15639_v52 = vld [vmem:[#allocation3 + $0x40] sm:$0xf]  ;;  %v6473_v19 = vrot.slane %v6471_v54, 5  ;;  %v6479_v26 = vrot.slane %v6477_v6, 5  ;;  %v6483_v9 = vrot.slane %v6481_v43, 4  ;;  %11598 = vmatprep.subr.bf16.mxu1 %v12230_v22 }
 0x364   : > { %v6831_v47 = vld [vmem:[#allocation3 + $0x3c] sm:$0xe]  ;;  %v6489_v50 = vrot.slane %v6487_v25, 5  ;;  %v10383_v59 = vrot.slane %v6830_v60, 9  ;;  %v6914_v61 = vrot.slane %v15630_v45, 5  ;;  %v6461_v11 = vrot.slane %v6460_v63, 4 }
 0x365   : > { %v6456_v16 = vsel %vm12923_vm5, %v6451_v1, %v6455_v39  ;;  %v15644_v14 = vld [vmem:[#allocation3 + $0x44] sm:$0x1]  ;;  %v6474_v17 = vor.u32 %v6473_v19, %v6470_v23  ;;  %v6484_v4 = vor.u32 %v6483_v9, %v6479_v26  ;;  %v6917_v12 = vrot.slane %v15632_v28, 5  ;;  %v12234_v10 = vld [vmem:[#allocation9 + $0x98] sm:$0xff]   ;;  %v12245_v15 = vld [vmem:[#allocation9] sm:$0xff]  }
 0x366   : > { %v6915_v35 = vsel %vm13521_vm8, %v10383_v59, %v6914_v61  ;;  %v6916_v0 = vrot.slane %v6914_v61, 4  ;;  %v10384_v5 = vrot.slane %v6831_v47, 9  ;;  %v6921_v46 = vrot.slane %v15639_v52, 5  ;;  %11599 = vmatpush3.bf16.msra.mxu1 %v12230_v22  ;;  %v15653_v62 = vld [vmem:[#allocation3 + $0x24] sm:$0xf]  ;;  %v12236_v39 = vld [vmem:[#allocation9 + $0xa0] sm:$0xff]  }
 0x367   : > { %v6466_v32 = vsel %vm12923_vm5, %v6461_v11, %v6465_v38  ;;  %v6475_v8 = vrot.slane %v6474_v17, 4  ;;  %v6485_v56 = vrot.slane %v6484_v4, 4  ;;  %v6924_v27 = vrot.slane %v15644_v14, 5  ;;  %11600 = vmatprep.subr.bf16.mxu1 %v12232_v44  ;;  %v15665_v30 = vld [vmem:[#allocation3 + $0x4c] sm:$0xf]  ;;  %v12252_v40 = vld [vmem:[#allocation9 + $0x48] sm:$0xff]  }
 0x368   : > { %v10412_v3 = vcombine.low %v6456_v16, %v6466_v32  ;;  %v6918_v57 = vsel %vm13521_vm8, %v6916_v0, %v6917_v12  ;;  %v6922_v7 = vsel %vm13521_vm8, %v10384_v5, %v6921_v46  ;;  %v6923_v20 = vrot.slane %v6921_v46, 4  ;;  %v6832_v42 = vld [vmem:[#allocation3 + $0x48] sm:$0xe]  ;;  %v15671_v55 = vld [vmem:[#allocation3 + $0x50] sm:$0x1]  ;;  %v12253_v38 = vld [vmem:[#allocation9 + $0x8] sm:$0xff]  }
 0x369   : > { %v6480_v18 = vsel %vm12923_vm5, %v6475_v8, %v6479_v26  ;;  %v6490_v48 = vsel %vm12923_vm5, %v6485_v56, %v6489_v50  ;;  %v10431_v13 = vcombine.low %v6915_v35, %v6918_v57  ;;  %v10397_v51 = vcombine.low %v15619_v53, %v15586_v24  ;;  %v15673_v54 = vld [vmem:[#allocation3 + $0x58] sm:$0xf]  ;;  %v6833_v1 = vld [vmem:[#allocation3 + $0x54] sm:$0xe]  ;;  %v15682_v26 = vld [vmem:[#allocation3 + $0x5c] sm:$0x1] }
 0x36a   : > { %7436 = vmatprep.mubr.bf16.mxu0 %v10412_v3  ;;  %v10413_v22 = vcombine.low %v6480_v18, %v6490_v48  ;;  %v6925_v33 = vsel %vm13521_vm8, %v6923_v20, %v6924_v27  ;;  %v6492_v58 = vshrl.u32 %v15653_v62, 16  ;;  %v6495_v34 = vshll.u32 %v15653_v62, 16  ;;  %11601 = vmatpush3.bf16.msra.mxu1 %v12232_v44  ;;  %v15685_v47 = vld [vmem:[#allocation3 + $0x30] sm:$0xf]  ;;  %v12260_v59 = vld [vmem:[#allocation9 + $0x50] sm:$0xff]   ;;  %v12238_v46 = vld [vmem:[#allocation9 + $0xa8] sm:$0xff]  }
 0x36b   : > { %7437 = vmatmul.mubr.bf16.vlgmr.msra.gmra.mrb[160].mxu0 %v10396_v2  ;;  %11569 = vmatmul.mubr.bf16.gmra.mrb[100].mxu1 %v10431_v13  ;;  %v10432_v6 = vcombine.low %v6922_v7, %v6925_v33  ;;  %v6501_v43 = vshll.u32 %v15598_v31, 16  ;;  %v6505_v60 = vshrl.u32 %v15598_v31, 16  ;;  %v6511_v49 = vshll.u32 %v15602_v37, 16  ;;  %v12261_v32 = vld [vmem:[#allocation9 + $0x10] sm:$0xff]   ;;  %v15699_v57 = vld [vmem:[#allocation3 + $0x64] sm:$0xf] }
 0x36c   : > { %7444 = vmatprep.mubr.bf16.mxu0 %v10413_v22  ;;  %v6494_v23 = vrot.slane %v6492_v58, 4  ;;  %v6497_v25 = vrot.slane %v6495_v34, 5  ;;  %v10385_v63 = vrot.slane %v6832_v42, 9  ;;  %v6928_v19 = vrot.slane %v15665_v30, 5  ;;  %11602 = vmatprep.subr.bf16.mxu1 %v12234_v10  ;;  %v15701_v7 = vld [vmem:[#allocation3 + $0x68] sm:$0x1] }
 0x36d   : > { %11572 = vmatprep.mubr.bf16.mxu1 %v10432_v6  ;;  %v6503_v21 = vrot.slane %v6501_v43, 5  ;;  %v6507_v36 = vrot.slane %v6505_v60, 4  ;;  %v6513_v2 = vrot.slane %v6511_v49, 5  ;;  %v6931_v9 = vrot.slane %v15671_v55, 5  ;;  %11133 = vmatpush3.bf16.msra.mxu0 %v12245_v15  ;;  %v6834_v48 = vld [vmem:[#allocation3 + $0x60] sm:$0xe] }
 0x36e   : > { %v6498_v37 = vor.u32 %v6497_v25, %v6494_v23  ;;  %v6929_v44 = vsel %vm13521_vm8, %v10385_v63, %v6928_v19  ;;  %v6930_v16 = vrot.slane %v6928_v19, 4  ;;  %v10386_v50 = vrot.slane %v6833_v1, 9  ;;  %11603 = vmatpush3.bf16.msra.mxu1 %v12234_v10  ;;  %11134 = vmatprep.subr.bf16.mxu0 %v12252_v40  ;;  %v12268_v13 = vld [vmem:[#allocation9 + $0x58] sm:$0xff]   ;;  %v12240_v53 = vld [vmem:[#allocation9 + $0xb0] sm:$0xff]   ;;  %v12273_v25 = vld [vmem:[#allocation9 + $0x60] sm:$0xff]  }
 0x36f   : > { %v6508_v61 = vor.u32 %v6507_v36, %v6503_v21  ;;  %v6935_v11 = vrot.slane %v15673_v54, 5  ;;  %v6938_v17 = vrot.slane %v15682_v26, 5  ;;  %v10398_v4 = vcombine.low %v15653_v62, %v15598_v31  ;;  %11604 = vmatprep.subr.bf16.mxu1 %v12236_v39  ;;  %v15715_v58 = vld [vmem:[#allocation3 + $0x70] sm:$0xf]  ;;  %v15717_v24 = vld [vmem:[#allocation3 + $0x74] sm:$0x1] }
 0x370   : > { %v6499_v12 = vrot.slane %v6498_v37, 4  ;;  %v6932_v35 = vsel %vm13521_vm8, %v6930_v16, %v6931_v9  ;;  %v6516_v0 = vshrl.u32 %v15685_v47, 16  ;;  %v6519_v5 = vshll.u32 %v15685_v47, 16  ;;  %v12269_v23 = vld [vmem:[#allocation9 + $0x18] sm:$0xff]   ;;  %v15722_v36 = vld [vmem:[#allocation3 + $0x3c] sm:$0xf] }
 0x371   : > { %v6509_v8 = vrot.slane %v6508_v61, 4  ;;  %v10433_v56 = vcombine.low %v6929_v44, %v6932_v35  ;;  %v6936_v27 = vsel %vm13521_vm8, %v10386_v50, %v6935_v11  ;;  %v6937_v3 = vrot.slane %v6935_v11, 4  ;;  %11135 = vmatpush3.bf16.msra.mxu0 %v12253_v38  ;;  %v12242_v11 = vld [vmem:[#allocation9 + $0xb8] sm:$0xff]   ;;  %v12246_v31 = vld [vmem:[#allocation9 + $0x1c0] sm:$0xff]  }
 0x372   : > { %v6504_v20 = vsel %vm12923_vm5, %v6499_v12, %v6503_v21  ;;  %v6518_v10 = vrot.slane %v6516_v0, 4  ;;  %v6521_v15 = vrot.slane %v6519_v5, 5  ;;  %v6525_v18 = vshll.u32 %v15630_v45, 16  ;;  %11605 = vmatpush3.bf16.msra.mxu1 %v12236_v39  ;;  %11136 = vmatprep.subr.bf16.mxu0 %v12260_v59  ;;  %v6835_v39 = vld [vmem:[#allocation3 + $0x6c] sm:$0xe] }
 0x373   : > { %7445 = vmatmul.mubr.bf16.gmra.mrb[164].mxu0 %v10397_v51  ;;  %v6514_v42 = vsel %vm12923_vm5, %v6509_v8, %v6513_v2  ;;  %11573 = vmatmul.mubr.bf16.gmra.mrb[104].mxu1 %v10433_v56  ;;  %v6939_v40 = vsel %vm13521_vm8, %v6937_v3, %v6938_v17  ;;  %v6529_v22 = vshrl.u32 %v15630_v45, 16  ;;  %v6535_v33 = vshll.u32 %v15632_v28, 16  ;;  %v12274_v17 = vld [vmem:[#allocation9 + $0x20] sm:$0xff]  }
 0x374   : > { %v10414_v34 = vcombine.low %v6504_v20, %v6514_v42  ;;  %v10434_v6 = vcombine.low %v6936_v27, %v6939_v40  ;;  %v6522_v43 = vor.u32 %v6521_v15, %v6518_v10  ;;  %v6527_v60 = vrot.slane %v6525_v18, 5  ;;  %11606 = vmatprep.subr.bf16.mxu1 %v12238_v46  ;;  %v15743_v20 = vld [vmem:[#allocation3 + $0x80] sm:$0x1]  ;;  %v6836_v10 = vld [vmem:[#allocation3 + $0x78] sm:$0xe] }
 0x375   : > { %v6531_v51 = vrot.slane %v6529_v22, 4  ;;  %v6537_v49 = vrot.slane %v6535_v33, 5  ;;  %v10387_v1 = vrot.slane %v6834_v48, 9  ;;  %v6942_v38 = vrot.slane %v15699_v57, 5  ;;  %11137 = vmatpush3.bf16.msra.mxu0 %v12261_v32  ;;  %v12275_v32 = vld [vmem:[#allocation9 + $0x68] sm:$0xff]  }
 0x376   : > { %7452 = vmatprep.mubr.bf16.mxu0 %v10414_v34  ;;  %11576 = vmatprep.mubr.bf16.mxu1 %v10434_v6  ;;  %v6523_v28 = vrot.slane %v6522_v43, 4  ;;  %v6945_v63 = vrot.slane %v15701_v7, 5  ;;  %v10388_v19 = vrot.slane %v6835_v39, 9  ;;  %v6949_v21 = vrot.slane %v15715_v58, 5  ;;  %v15750_v42 = vld [vmem:[#allocation3 + $0x88] sm:$0xf] }
 0x377   : > { %v6532_v2 = vor.u32 %v6531_v51, %v6527_v60  ;;  %v6943_v9 = vsel %vm13521_vm8, %v10387_v1, %v6942_v38  ;;  %v6944_v37 = vrot.slane %v6942_v38, 4  ;;  %v6952_v44 = vrot.slane %v15717_v24, 5  ;;  %11607 = vmatpush3.bf16.msra.mxu1 %v12238_v46  ;;  %11138 = vmatprep.subr.bf16.mxu0 %v12268_v13  ;;  %v15737_v46 = vld [vmem:[#allocation3 + $0x7c] sm:$0xf]  ;;  %v6837_v40 = vld [vmem:[#allocation3 + $0x84] sm:$0xe] }
 0x378   : > { %v6528_v16 = vsel %vm12923_vm5, %v6523_v28, %v6527_v60  ;;  %v6950_v50 = vsel %vm13521_vm8, %v10388_v19, %v6949_v21  ;;  %v6951_v59 = vrot.slane %v6949_v21, 4  ;;  %v10399_v61 = vcombine.low %v15685_v47, %v15630_v45  ;;  %11608 = vmatprep.subr.bf16.mxu1 %v12240_v53  ;;  %v15753_v6 = vld [vmem:[#allocation3 + $0x8c] sm:$0x1]  ;;  %v12277_v51 = vld [vmem:[#allocation9 + $0x28] sm:$0xff]  }
 0x379   : > { %v6533_v12 = vrot.slane %v6532_v2, 4  ;;  %v6946_v35 = vsel %vm13521_vm8, %v6944_v37, %v6945_v63  ;;  %v6540_v0 = vshrl.u32 %v15722_v36, 16  ;;  %v6543_v5 = vshll.u32 %v15722_v36, 16  ;;  %11139 = vmatpush3.bf16.msra.mxu0 %v12269_v23  ;;  %v12280_v23 = vld [vmem:[#allocation9 + $0x70] sm:$0xff]  }
 0x37a   : > { %v10435_v8 = vcombine.low %v6943_v9, %v6946_v35  ;;  %v6953_v56 = vsel %vm13521_vm8, %v6951_v59, %v6952_v44  ;;  %v6549_v27 = vshll.u32 %v15639_v52, 16  ;;  %v6553_v3 = vshrl.u32 %v15639_v52, 16  ;;  %11140 = vmatprep.subr.bf16.mxu0 %v12273_v25  ;;  %v15767_v44 = vld [vmem:[#allocation3 + $0x94] sm:$0xf] }
 0x37b   : > { %7453 = vmatmul.mubr.bf16.gmra.mrb[168].mxu0 %v10398_v4  ;;  %v6538_v15 = vsel %vm12923_vm5, %v6533_v12, %v6537_v49  ;;  %v10436_v18 = vcombine.low %v6950_v50, %v6953_v56  ;;  %v6542_v48 = vrot.slane %v6540_v0, 4  ;;  %v6545_v13 = vrot.slane %v6543_v5, 5  ;;  %11609 = vmatpush3.bf16.msra.mxu1 %v12240_v53  ;;  %v6838_v12 = vld [vmem:[#allocation3 + $0x90] sm:$0xe]  ;;  %v6839_v56 = vld [vmem:[#allocation3 + $0x9c] sm:$0xe] }
 0x37c   : > { %v10415_v22 = vcombine.low %v6528_v16, %v6538_v15  ;;  %11577 = vmatmul.mubr.bf16.gmra.mrb[108].mxu1 %v10435_v8  ;;  %v6551_v33 = vrot.slane %v6549_v27, 5  ;;  %v6555_v39 = vrot.slane %v6553_v3, 4  ;;  %v6559_v34 = vshll.u32 %v15644_v14, 16  ;;  %11610 = vmatprep.subr.bf16.mxu1 %v12242_v11  ;;  %v15758_v14 = vld [vmem:[#allocation3 + $0x48] sm:$0xf] }
 0x37d   : > { %11580 = vmatprep.mubr.bf16.mxu1 %v10436_v18  ;;  %v6546_v62 = vor.u32 %v6545_v13, %v6542_v48  ;;  %v10389_v4 = vrot.slane %v6836_v10, 9  ;;  %v6956_v43 = vrot.slane %v15737_v46, 5  ;;  %v6959_v60 = vrot.slane %v15743_v20, 5  ;;  %11141 = vmatpush3.bf16.msra.mxu0 %v12274_v17  ;;  %v15775_v17 = vld [vmem:[#allocation3 + $0x98] sm:$0x1]  ;;  %v12281_v27 = vld [vmem:[#allocation9 + $0x30] sm:$0xff]  }
 0x37e   : > { %7460 = vmatprep.mubr.bf16.mxu0 %v10415_v22  ;;  %v6556_v53 = vor.u32 %v6555_v39, %v6551_v33  ;;  %v6561_v49 = vrot.slane %v6559_v34, 5  ;;  %v10390_v1 = vrot.slane %v6837_v40, 9  ;;  %v6963_v38 = vrot.slane %v15750_v42, 5  ;;  %11142 = vmatprep.subr.bf16.mxu0 %v12275_v32  ;;  %v15782_v8 = vld [vmem:[#allocation3 + $0xa0] sm:$0xf]  ;;  %v12282_v13 = vld [vmem:[#allocation9 + $0x78] sm:$0xff]  }
 0x37f   : > { %v6547_v25 = vrot.slane %v6546_v62, 4  ;;  %v6957_v28 = vsel %vm13521_vm8, %v10389_v4, %v6956_v43  ;;  %v6958_v63 = vrot.slane %v6956_v43, 4  ;;  %v6966_v19 = vrot.slane %v15753_v6, 5  ;;  %11611 = vmatpush3.bf16.msra.mxu1 %v12242_v11  ;;  %v15787_v48 = vld [vmem:[#allocation3 + $0xa4] sm:$0x1] }
 0x380   : > { %v6557_v21 = vrot.slane %v6556_v53, 4  ;;  %v6964_v2 = vsel %vm13521_vm8, %v10390_v1, %v6963_v38  ;;  %v6965_v9 = vrot.slane %v6963_v38, 4  ;;  %v10400_v37 = vcombine.low %v15722_v36, %v15639_v52  ;;  %11268 = vmatprep.subr.bf16.mxu1 %v12246_v31  ;;  %v15793_v31 = vld [vmem:[#allocation3 + $0x54] sm:$0xf] }
 0x381   : > { %v6552_v16 = vsel %vm12923_vm5, %v6547_v25, %v6551_v33  ;;  %v6960_v50 = vsel %vm13521_vm8, %v6958_v63, %v6959_v60  ;;  %v6564_v59 = vshrl.u32 %v15758_v14, 16  ;;  %v6567_v11 = vshll.u32 %v15758_v14, 16  ;;  %11143 = vmatpush3.bf16.msra.mxu0 %v12277_v51  ;;  %v12285_v51 = vld [vmem:[#allocation9 + $0x38] sm:$0xff]  }
 0x382   : > { %v6562_v35 = vsel %vm12923_vm5, %v6557_v21, %v6561_v49  ;;  %v10437_v0 = vcombine.low %v6957_v28, %v6960_v50  ;;  %v6967_v5 = vsel %vm13521_vm8, %v6965_v9, %v6966_v19  ;;  %v6573_v32 = vshll.u32 %v15665_v30, 16  ;;  %11144 = vmatprep.subr.bf16.mxu0 %v12280_v23  ;;  %v15810_v9 = vld [vmem:[#allocation3 + $0xac] sm:$0xf] }
 0x383   : > { %7461 = vmatmul.mubr.bf16.gmra.mrb[172].mxu0 %v10399_v61  ;;  %v10416_v3 = vcombine.low %v6552_v16, %v6562_v35  ;;  %v10438_v10 = vcombine.low %v6964_v2, %v6967_v5  ;;  %v6566_v15 = vrot.slane %v6564_v59, 4  ;;  %v6569_v18 = vrot.slane %v6567_v11, 5  ;;  %v15814_v11 = vld [vmem:[#allocation3 + $0xb0] sm:$0x1] }
 0x384   : > { %11581 = vmatmul.mubr.bf16.gmra.mrb[112].mxu1 %v10437_v0  ;;  %v6575_v40 = vrot.slane %v6573_v32, 5  ;;  %v6577_v22 = vshrl.u32 %v15665_v30, 16  ;;  %v6583_v33 = vshll.u32 %v15671_v55, 16  ;;  %v10391_v39 = vrot.slane %v6838_v12, 9  ;;  %v15816_v12 = vld [vmem:[#allocation3 + $0xb8] sm:$0xf] }
 0x385   : > { %7468 = vmatprep.mubr.bf16.mxu0 %v10416_v3  ;;  %11584 = vmatprep.mubr.bf16.mxu1 %v10438_v10  ;;  %v6570_v34 = vor.u32 %v6569_v18, %v6566_v15  ;;  %v6970_v45 = vrot.slane %v15767_v44, 5  ;;  %v6973_v47 = vrot.slane %v15775_v17, 5  ;;  %v10392_v61 = vrot.slane %v6839_v56, 9  ;;  %v6841_v56 = vld [vmem:[#allocation3 + $0xb4] sm:$0xe] }
 0x386   : > { %v6579_v62 = vrot.slane %v6577_v22, 4  ;;  %v6585_v4 = vrot.slane %v6583_v33, 5  ;;  %v6977_v43 = vrot.slane %v15782_v8, 5  ;;  %v6980_v60 = vrot.slane %v15787_v48, 5  ;;  %11145 = vmatpush3.bf16.msra.mxu0 %v12281_v27  ;;  %v15826_v18 = vld [vmem:[#allocation3 + $0xbc] sm:$0x1] }
 0x387   : > { %v6571_v55 = vrot.slane %v6570_v34, 4  ;;  %v6971_v53 = vsel %vm13521_vm8, %v10391_v39, %v6970_v45  ;;  %v6972_v49 = vrot.slane %v6970_v45, 4  ;;  %v10401_v1 = vcombine.low %v15758_v14, %v15665_v30  ;;  %11146 = vmatprep.subr.bf16.mxu0 %v12282_v13  ;;  %v6840_v30 = vld [vmem:[#allocation3 + $0xa8] sm:$0xe] }
 0x388   : > { %v6580_v38 = vor.u32 %v6579_v62, %v6575_v40  ;;  %v6978_v23 = vsel %vm13521_vm8, %v10392_v61, %v6977_v43  ;;  %v6979_v25 = vrot.slane %v6977_v43, 4  ;;  %v6588_v28 = vshrl.u32 %v15793_v31, 16 }
 0x389   : > { %v6576_v63 = vsel %vm12923_vm5, %v6571_v55, %v6575_v40  ;;  %v6974_v19 = vsel %vm13521_vm8, %v6972_v49, %v6973_v47  ;;  %v6591_v21 = vshll.u32 %v15793_v31, 16  ;;  %v6597_v2 = vshll.u32 %v15673_v54, 16  ;;  %v15829_v40 = vld [vmem:[#allocation3 + $0x60] sm:$0xf] }
 0x38a   : > { %v6581_v14 = vrot.slane %v6580_v38, 4  ;;  %v10439_v16 = vcombine.low %v6971_v53, %v6974_v19  ;;  %v6981_v50 = vsel %vm13521_vm8, %v6979_v25, %v6980_v60  ;;  %v6590_v59 = vrot.slane %v6588_v28, 4  ;;  %11147 = vmatpush3.bf16.msra.mxu0 %v12285_v51  ;;  %v6842_v51 = vld [vmem:[#allocation3 + $0xc0] sm:$0xe]  ;;  %v15847_v25 = vld [vmem:[#allocation3 + $0xc8] sm:$0x1] }
 0x38b   : > { %7469 = vmatmul.mubr.bf16.gmra.mrb[176].mxu0 %v10400_v37  ;;  %v10440_v35 = vcombine.low %v6978_v23, %v6981_v50  ;;  %v6593_v0 = vrot.slane %v6591_v21, 5  ;;  %v6599_v5 = vrot.slane %v6597_v2, 5  ;;  %v6601_v32 = vshrl.u32 %v15673_v54, 16  ;;  %v15845_v23 = vld [vmem:[#allocation3 + $0xc4] sm:$0xf] }
 0x38c   : > { %v6586_v27 = vsel %vm12923_vm5, %v6581_v14, %v6585_v4  ;;  %11585 = vmatmul.mubr.bf16.gmra.mrb[116].mxu1 %v10439_v16  ;;  %v6607_v3 = vshll.u32 %v15682_v26, 16  ;;  %v10393_v10 = vrot.slane %v6840_v30, 9  ;;  %v6984_v15 = vrot.slane %v15810_v9, 5  ;;  %v15850_v19 = vld [vmem:[#allocation3 + $0x4] sm:$0xf] }
 0x38d   : > { %v10417_v13 = vcombine.low %v6576_v63, %v6586_v27  ;;  %11588 = vmatprep.mubr.bf16.mxu1 %v10440_v35  ;;  %v6594_v52 = vor.u32 %v6593_v0, %v6590_v59  ;;  %v6603_v36 = vrot.slane %v6601_v32, 4  ;;  %v6987_v37 = vrot.slane %v15814_v11, 5  ;;  %v5963_v16 = vld [vmem:[#allocation3] sm:$0xe] }
 0x38e   : > { %v6609_v22 = vrot.slane %v6607_v3, 5  ;;  %v6985_v33 = vsel %vm13521_vm8, %v10393_v10, %v6984_v15  ;;  %v6986_v39 = vrot.slane %v6984_v15, 4  ;;  %v10394_v34 = vrot.slane %v6841_v56, 9 }
 0x38f   : > { %7476 = vmatprep.mubr.bf16.mxu0 %v10417_v13  ;;  %v6595_v26 = vrot.slane %v6594_v52, 4  ;;  %v6604_v45 = vor.u32 %v6603_v36, %v6599_v5  ;;  %v6991_v47 = vrot.slane %v15816_v12, 5  ;;  %v6994_v61 = vrot.slane %v15826_v18, 5  ;;  %v15863_v13 = vld [vmem:[#allocation3 + $0x6c] sm:$0xf] }
 0x390   : > { %v6988_v62 = vsel %vm13521_vm8, %v6986_v39, %v6987_v37  ;;  %v10402_v4 = vcombine.low %v15793_v31, %v15673_v54  ;;  %v6612_v43 = vshrl.u32 %v15829_v40, 16  ;;  %v6615_v60 = vshll.u32 %v15829_v40, 16 }
 0x391   : > { %v6600_v55 = vsel %vm12923_vm5, %v6595_v26, %v6599_v5  ;;  %v6605_v53 = vrot.slane %v6604_v45, 4  ;;  %v10441_v49 = vcombine.low %v6985_v33, %v6988_v62  ;;  %v6992_v38 = vsel %vm13521_vm8, %v10394_v34, %v6991_v47  ;;  %v15858_v5 = vld [vmem:[#allocation3 + $0x8] sm:$0x1] }
 0x392   : > { %v6993_v28 = vrot.slane %v6991_v47, 4  ;;  %v6614_v63 = vrot.slane %v6612_v43, 4  ;;  %v6617_v54 = vrot.slane %v6615_v60, 5  ;;  %v6621_v31 = vshll.u32 %v15699_v57, 16  ;;  %v5964_v43 = vld [vmem:[#allocation3 + $0xc] sm:$0xe] }
 0x393   : > { %7477 = vmatmul.mubr.bf16.gmra.mrb[180].mxu0 %v10401_v1  ;;  %v6610_v21 = vsel %vm12923_vm5, %v6605_v53, %v6609_v22  ;;  %v6625_v2 = vshrl.u32 %v15699_v57, 16  ;;  %v6631_v30 = vshll.u32 %v15701_v7, 16  ;;  %v10395_v14 = vrot.slane %v6842_v51, 9 }
 0x394   : > { %v10418_v50 = vcombine.low %v6600_v55, %v6610_v21  ;;  %11589 = vmatmul.mubr.bf16.gmra.mrb[120].mxu1 %v10441_v49  ;;  %v6995_v59 = vsel %vm13521_vm8, %v6993_v28, %v6994_v61  ;;  %v6618_v35 = vor.u32 %v6617_v54, %v6614_v63  ;;  %v6623_v0 = vrot.slane %v6621_v31, 5  ;;  %v15882_v49 = vld [vmem:[#allocation3 + $0x10] sm:$0xf]  ;;  %v15888_v54 = vld [vmem:[#allocation3 + $0x1c] sm:$0xf] }
 0x395   : > { %v10442_v32 = vcombine.low %v6992_v38, %v6995_v59  ;;  %v6627_v1 = vrot.slane %v6625_v2, 4  ;;  %v6633_v56 = vrot.slane %v6631_v30, 5  ;;  %v6998_v27 = vrot.slane %v15845_v23, 5  ;;  %v5965_v31 = vld [vmem:[#allocation3 + $0x18] sm:$0xe] }
 0x396   : > { %7484 = vmatprep.mubr.bf16.mxu0 %v10418_v50  ;;  %v6619_v3 = vrot.slane %v6618_v35, 4  ;;  %v7001_v7 = vrot.slane %v15847_v25, 5  ;;  %v10316_v10 = vrot.slane %v5963_v16, 9  ;;  %v6029_v15 = vrot.slane %v15850_v19, 5  ;;  %v15891_v16 = vld [vmem:[#allocation3 + $0x20] sm:$0x1] }
 0x397   : > { %11592 = vmatprep.mubr.bf16.mxu1 %v10442_v32  ;;  %v6628_v52 = vor.u32 %v6627_v1, %v6623_v0  ;;  %v6999_v36 = vsel %vm13521_vm8, %v10395_v14, %v6998_v27  ;;  %v7000_v37 = vrot.slane %v6998_v27, 4  ;;  %v6032_v22 = vrot.slane %v15858_v5, 5  ;;  %v15896_v27 = vld [vmem:[#allocation3 + $0x78] sm:$0xf] }
 0x398   : > { %v6624_v33 = vsel %vm12923_vm5, %v6619_v3, %v6623_v0  ;;  %v6030_v39 = vsel %vm13521_vm8, %v10316_v10, %v6029_v15  ;;  %v6031_v34 = vrot.slane %v6029_v15, 4  ;;  %v10403_v26 = vcombine.low %v15829_v40, %v15699_v57  ;;  %v15884_v57 = vld [vmem:[#allocation3 + $0x14] sm:$0x1] }
 0x399   : > { %v6629_v45 = vrot.slane %v6628_v52, 4  ;;  %v7002_v47 = vsel %vm13521_vm8, %v7000_v37, %v7001_v7  ;;  %v6636_v61 = vshrl.u32 %v15863_v13, 16  ;;  %v6639_v62 = vshll.u32 %v15863_v13, 16  ;;  %v12247_v37 = vld [vmem:[#allocation9 + $0x180] sm:$0xff]  }
 0x39a   : > { %v10443_v60 = vcombine.low %v6999_v36, %v7002_v47  ;;  %v6033_v51 = vsel %vm13521_vm8, %v6031_v34, %v6032_v22  ;;  %v6645_v55 = vshll.u32 %v15715_v58, 16  ;;  %v6649_v53 = vshrl.u32 %v15715_v58, 16  ;;  %v15911_v47 = vld [vmem:[#allocation3 + $0x28] sm:$0xf] }
 0x39b   : > { %7485 = vmatmul.mubr.bf16.gmra.mrb[184].mxu0 %v10402_v4  ;;  %v6634_v40 = vsel %vm12923_vm5, %v6629_v45, %v6633_v56  ;;  %v10364_v38 = vcombine.low %v6030_v39, %v6033_v51  ;;  %v6638_v28 = vrot.slane %v6636_v61, 4  ;;  %v6641_v63 = vrot.slane %v6639_v62, 5  ;;  %v5966_v61 = vld [vmem:[#allocation3 + $0x24] sm:$0xe] }
 0x39c   : > { %v10419_v21 = vcombine.low %v6624_v33, %v6634_v40  ;;  %11593 = vmatmul.mubr.bf16.gmra.mrb[124].mxu1 %v10443_v60  ;;  %v6647_v2 = vrot.slane %v6645_v55, 5  ;;  %v6651_v30 = vrot.slane %v6649_v53, 4  ;;  %v6655_v14 = vshll.u32 %v15717_v24, 16  ;;  %v15918_v60 = vld [vmem:[#allocation3 + $0x2c] sm:$0x1]  ;;  %v12249_v51 = vld [vmem:[#allocation9 + $0x1c8] sm:$0xff]  }
 0x39d   : > { %11612 = vmatprep.mubr.bf16.mxu1 %v10364_v38  ;;  %v6642_v50 = vor.u32 %v6641_v63, %v6638_v28  ;;  %v10317_v4 = vrot.slane %v5964_v43, 9  ;;  %v6036_v59 = vrot.slane %v15882_v49, 5  ;;  %v6039_v35 = vrot.slane %v15884_v57, 5  ;;  %v5967_v55 = vld [vmem:[#allocation3 + $0x30] sm:$0xe] }
 0x39e   : > { %7492 = vmatprep.mubr.bf16.mxu0 %v10419_v21  ;;  %v6652_v0 = vor.u32 %v6651_v30, %v6647_v2  ;;  %v6657_v32 = vrot.slane %v6655_v14, 5  ;;  %v10318_v1 = vrot.slane %v5965_v31, 9  ;;  %v6043_v56 = vrot.slane %v15888_v54, 5  ;;  %v5540_v63 = vld [vmem:[#allocation3 + $0x34] sm:$0xf] }
 0x39f   : > { %v6643_v3 = vrot.slane %v6642_v50, 4  ;;  %v6037_v24 = vsel %vm13521_vm8, %v10317_v4, %v6036_v59  ;;  %v6038_v7 = vrot.slane %v6036_v59, 4  ;;  %v6046_v10 = vrot.slane %v15891_v16, 5  ;;  %v5567_v31 = vld [vmem:[#allocation3 + $0x38] sm:$0x1] }
 0x3a0   : > { %v6653_v15 = vrot.slane %v6652_v0, 4  ;;  %v6044_v52 = vsel %vm13521_vm8, %v10318_v1, %v6043_v56  ;;  %v6045_v36 = vrot.slane %v6043_v56, 4  ;;  %v10404_v22 = vcombine.low %v15863_v13, %v15715_v58 }
 0x3a1   : > { %v6648_v33 = vsel %vm12923_vm5, %v6643_v3, %v6647_v2  ;;  %v6040_v39 = vsel %vm13521_vm8, %v6038_v7, %v6039_v35  ;;  %v6660_v34 = vshrl.u32 %v15896_v27, 16  ;;  %v6663_v45 = vshll.u32 %v15896_v27, 16  ;;  %v15924_v35 = vld [vmem:[#allocation3 + $0x84] sm:$0xf] }
 0x3a2   : > { %v6658_v62 = vsel %vm12923_vm5, %v6653_v15, %v6657_v32  ;;  %v10365_v43 = vcombine.low %v6037_v24, %v6040_v39  ;;  %v6047_v58 = vsel %vm13521_vm8, %v6045_v36, %v6046_v10  ;;  %v6669_v13 = vshll.u32 %v15737_v46, 16  ;;  %v12250_v3 = vld [vmem:[#allocation9 + $0x188] sm:$0xff]   ;;  %v12254_v15 = vld [vmem:[#allocation9 + $0x1d0] sm:$0xff]  }
 0x3a3   : > { %7493 = vmatmul.mubr.bf16.gmra.mrb[188].mxu0 %v10403_v26  ;;  %v10420_v53 = vcombine.low %v6648_v33, %v6658_v62  ;;  %v10366_v40 = vcombine.low %v6044_v52, %v6047_v58  ;;  %v6662_v38 = vrot.slane %v6660_v34, 4  ;;  %v6665_v28 = vrot.slane %v6663_v45, 5  ;;  %v12255_v39 = vld [vmem:[#allocation9 + $0x190] sm:$0xff]   ;;  %v5968_v58 = vld [vmem:[#allocation3 + $0x3c] sm:$0xe] }
 0x3a4   : > { %11613 = vmatmul.mubr.bf16.vlgmr.msra.gmra.mrb[96].mxu1 %v10365_v43  ;;  %v6671_v21 = vrot.slane %v6669_v13, 5  ;;  %v6673_v2 = vshrl.u32 %v15737_v46, 16  ;;  %v6679_v30 = vshll.u32 %v15743_v20, 16  ;;  %v10319_v14 = vrot.slane %v5966_v61, 9  ;;  %v5542_v43 = vld [vmem:[#allocation3 + $0x40] sm:$0xf] }
 0x3a5   : > { %7500 = vmatprep.mubr.bf16.mxu0 %v10420_v53  ;;  %11616 = vmatprep.mubr.bf16.mxu1 %v10366_v40  ;;  %v6666_v50 = vor.u32 %v6665_v28, %v6662_v38  ;;  %v6050_v4 = vrot.slane %v15911_v47, 5  ;;  %v6053_v26 = vrot.slane %v15918_v60, 5  ;;  %v10320_v59 = vrot.slane %v5967_v55, 9  ;;  %v5568_v40 = vld [vmem:[#allocation3 + $0x44] sm:$0x1] }
 0x3a6   : > { %11269 = vmatpush3.bf16.msra.mxu1 %v12247_v37  ;;  %v6675_v0 = vrot.slane %v6673_v2, 4  ;;  %v6681_v32 = vrot.slane %v6679_v30, 5  ;;  %v6057_v1 = vrot.slane %v5540_v63, 5  ;;  %v6060_v56 = vrot.slane %v5567_v31, 5  ;;  %v5544_v38 = vld [vmem:[#allocation3 + $0x4c] sm:$0xf] }
 0x3a7   : > { %v6667_v24 = vrot.slane %v6666_v50, 4  ;;  %v6051_v20 = vsel %vm13521_vm8, %v10319_v14, %v6050_v4  ;;  %v6052_v7 = vrot.slane %v6050_v4, 4  ;;  %11270 = vmatprep.subr.bf16.mxu1 %v12249_v51  ;;  %v10405_v10 = vcombine.low %v15896_v27, %v15737_v46  ;;  %v5969_v2 = vld [vmem:[#allocation3 + $0x48] sm:$0xe]  ;;  %v12257_v30 = vld [vmem:[#allocation9 + $0x1d8] sm:$0xff]  }
 0x3a8   : > { %v6676_v52 = vor.u32 %v6675_v0, %v6671_v21  ;;  %v6058_v36 = vsel %vm13521_vm8, %v10320_v59, %v6057_v1  ;;  %v6059_v37 = vrot.slane %v6057_v1, 4  ;;  %v6684_v33 = vshrl.u32 %v15924_v35, 16  ;;  %v5569_v59 = vld [vmem:[#allocation3 + $0x50] sm:$0x1]  ;;  %v5571_v46 = vld [vmem:[#allocation3 + $0x68] sm:$0x1] }
 0x3a9   : > { %v6672_v34 = vsel %vm12923_vm5, %v6667_v24, %v6671_v21  ;;  %v6054_v45 = vsel %vm13521_vm8, %v6052_v7, %v6053_v26  ;;  %v6687_v61 = vshll.u32 %v15924_v35, 16  ;;  %v6693_v62 = vshll.u32 %v15750_v42, 16 }
 0x3aa   : > { %v6677_v13 = vrot.slane %v6676_v52, 4  ;;  %v10367_v51 = vcombine.low %v6051_v20, %v6054_v45  ;;  %v6061_v55 = vsel %vm13521_vm8, %v6059_v37, %v6060_v56  ;;  %11271 = vmatpush3.bf16.msra.mxu1 %v12250_v3  ;;  %v6686_v53 = vrot.slane %v6684_v33, 4  ;;  %v15945_v3 = vld [vmem:[#allocation3 + $0x90] sm:$0xf]  ;;  %v12262_v33 = vld [vmem:[#allocation9 + $0x1e0] sm:$0xff]  }
 0x3ab   : > { %7501 = vmatmul.mubr.bf16.gmra.mrb[192].mxu0 %v10404_v22  ;;  %v10368_v28 = vcombine.low %v6058_v36, %v6061_v55  ;;  %v6689_v63 = vrot.slane %v6687_v61, 5  ;;  %v6695_v31 = vrot.slane %v6693_v62, 5  ;;  %v6697_v21 = vshrl.u32 %v15750_v42, 16  ;;  %11272 = vmatprep.subr.bf16.mxu1 %v12254_v15  ;;  %v5546_v55 = vld [vmem:[#allocation3 + $0x58] sm:$0xf] }
 0x3ac   : > { %v6682_v14 = vsel %vm12923_vm5, %v6677_v13, %v6681_v32  ;;  %11617 = vmatmul.mubr.bf16.gmra.mrb[100].mxu1 %v10367_v51  ;;  %v6703_v50 = vshll.u32 %v15753_v6, 16  ;;  %v10321_v4 = vrot.slane %v5968_v58, 9  ;;  %v6064_v26 = vrot.slane %v5542_v43, 5  ;;  %v12258_v32 = vld [vmem:[#allocation9 + $0x198] sm:$0xff]  }
 0x3ad   : > { %v10421_v0 = vcombine.low %v6672_v34, %v6682_v14  ;;  %11620 = vmatprep.mubr.bf16.mxu1 %v10368_v28  ;;  %v6690_v22 = vor.u32 %v6689_v63, %v6686_v53  ;;  %v6699_v1 = vrot.slane %v6697_v21, 4  ;;  %v6067_v56 = vrot.slane %v5568_v40, 5  ;;  %v5970_v43 = vld [vmem:[#allocation3 + $0x54] sm:$0xe]  ;;  %v5570_v53 = vld [vmem:[#allocation3 + $0x5c] sm:$0x1] }
 0x3ae   : > { %v6705_v24 = vrot.slane %v6703_v50, 5  ;;  %v6065_v20 = vsel %vm13521_vm8, %v10321_v4, %v6064_v26  ;;  %v6066_v7 = vrot.slane %v6064_v26, 4  ;;  %v10322_v15 = vrot.slane %v5969_v2, 9  ;;  %11273 = vmatpush3.bf16.msra.mxu1 %v12255_v39  ;;  %v12263_v40 = vld [vmem:[#allocation9 + $0x1a0] sm:$0xff]   ;;  %v5548_v2 = vld [vmem:[#allocation3 + $0x64] sm:$0xf] }
 0x3af   : > { %7508 = vmatprep.mubr.bf16.mxu0 %v10421_v0  ;;  %v6691_v6 = vrot.slane %v6690_v22, 4  ;;  %v6700_v52 = vor.u32 %v6699_v1, %v6695_v31  ;;  %v6071_v36 = vrot.slane %v5544_v38, 5  ;;  %v6074_v37 = vrot.slane %v5569_v59, 5  ;;  %11274 = vmatprep.subr.bf16.mxu1 %v12257_v30  ;;  %v5971_v4 = vld [vmem:[#allocation3 + $0x60] sm:$0xe] }
 0x3b0   : > { %v6068_v34 = vsel %vm13521_vm8, %v6066_v7, %v6067_v56  ;;  %v10406_v45 = vcombine.low %v15924_v35, %v15750_v42  ;;  %v6708_v61 = vshrl.u32 %v15945_v3, 16  ;;  %v6711_v62 = vshll.u32 %v15945_v3, 16  ;;  %v12265_v26 = vld [vmem:[#allocation9 + $0x1e8] sm:$0xff]  }
 0x3b1   : > { %v6696_v39 = vsel %vm12923_vm5, %v6691_v6, %v6695_v31  ;;  %v6701_v58 = vrot.slane %v6700_v52, 4  ;;  %v10369_v13 = vcombine.low %v6065_v20, %v6068_v34  ;;  %v6072_v51 = vsel %vm13521_vm8, %v10322_v15, %v6071_v36  ;;  %v12266_v20 = vld [vmem:[#allocation9 + $0x1a8] sm:$0xff]   ;;  %v15969_v6 = vld [vmem:[#allocation3 + $0x9c] sm:$0xf]  ;;  %v12270_v34 = vld [vmem:[#allocation9 + $0x1f0] sm:$0xff]  }
 0x3b2   : > { %v6073_v38 = vrot.slane %v6071_v36, 4  ;;  %v6710_v28 = vrot.slane %v6708_v61, 4  ;;  %v6713_v63 = vrot.slane %v6711_v62, 5  ;;  %v6717_v21 = vshll.u32 %v15767_v44, 16  ;;  %11275 = vmatpush3.bf16.msra.mxu1 %v12258_v32 }
 0x3b3   : > { %7509 = vmatmul.mubr.bf16.gmra.mrb[196].mxu0 %v10405_v10  ;;  %v6706_v31 = vsel %vm12923_vm5, %v6701_v58, %v6705_v24  ;;  %v6721_v30 = vshrl.u32 %v15767_v44, 16  ;;  %v6727_v14 = vshll.u32 %v15775_v17, 16  ;;  %v10323_v50 = vrot.slane %v5970_v43, 9  ;;  %11276 = vmatprep.subr.bf16.mxu1 %v12262_v33  ;;  %v12271_v58 = vld [vmem:[#allocation9 + $0x1b0] sm:$0xff]  }
 0x3b4   : > { %v10422_v59 = vcombine.low %v6696_v39, %v6706_v31  ;;  %11621 = vmatmul.mubr.bf16.gmra.mrb[104].mxu1 %v10369_v13  ;;  %v6075_v0 = vsel %vm13521_vm8, %v6073_v38, %v6074_v37  ;;  %v6714_v22 = vor.u32 %v6713_v63, %v6710_v28  ;;  %v6719_v1 = vrot.slane %v6717_v21, 5  ;;  %v12276_v38 = vld [vmem:[#allocation9 + $0x1f8] sm:$0xff]  }
 0x3b5   : > { %v10370_v27 = vcombine.low %v6072_v51, %v6075_v0  ;;  %v6723_v10 = vrot.slane %v6721_v30, 4  ;;  %v6729_v56 = vrot.slane %v6727_v14, 5  ;;  %v6078_v24 = vrot.slane %v5546_v55, 5  ;;  %v5572_v31 = vld [vmem:[#allocation3 + $0x74] sm:$0x1] }
 0x3b6   : > { %7516 = vmatprep.mubr.bf16.mxu0 %v10422_v59  ;;  %v6715_v7 = vrot.slane %v6714_v22, 4  ;;  %v6081_v17 = vrot.slane %v5570_v53, 5  ;;  %v10324_v15 = vrot.slane %v5971_v4, 9  ;;  %v6085_v32 = vrot.slane %v5548_v2, 5  ;;  %11277 = vmatpush3.bf16.msra.mxu1 %v12263_v40  ;;  %v5550_v40 = vld [vmem:[#allocation3 + $0x70] sm:$0xf] }
 0x3b7   : > { %11624 = vmatprep.mubr.bf16.mxu1 %v10370_v27  ;;  %v6724_v52 = vor.u32 %v6723_v10, %v6719_v1  ;;  %v6079_v36 = vsel %vm13521_vm8, %v10323_v50, %v6078_v24  ;;  %v6080_v37 = vrot.slane %v6078_v24, 4  ;;  %v6088_v33 = vrot.slane %v5571_v46, 5  ;;  %11278 = vmatprep.subr.bf16.mxu1 %v12265_v26  ;;  %v5972_v30 = vld [vmem:[#allocation3 + $0x6c] sm:$0xe]  ;;  %v5552_v59 = vld [vmem:[#allocation3 + $0x7c] sm:$0xf] }
 0x3b8   : > { %v6720_v61 = vsel %vm12923_vm5, %v6715_v7, %v6719_v1  ;;  %v6086_v62 = vsel %vm13521_vm8, %v10324_v15, %v6085_v32  ;;  %v6087_v43 = vrot.slane %v6085_v32, 4  ;;  %v10407_v39 = vcombine.low %v15945_v3, %v15767_v44  ;;  %v5973_v0 = vld [vmem:[#allocation3 + $0x78] sm:$0xe]  ;;  %v5573_v10 = vld [vmem:[#allocation3 + $0x80] sm:$0x1]  ;;  %v12278_v32 = vld [vmem:[#allocation9 + $0x1b8] sm:$0xff]  }
 0x3b9   : > { %v6725_v13 = vrot.slane %v6724_v52, 4  ;;  %v6082_v51 = vsel %vm13521_vm8, %v6080_v37, %v6081_v17  ;;  %v6732_v55 = vshrl.u32 %v15969_v6, 16  ;;  %v6735_v53 = vshll.u32 %v15969_v6, 16  ;;  %v15993_v15 = vld [vmem:[#allocation3 + $0xa8] sm:$0xf] }
 0x3ba   : > { %v10371_v28 = vcombine.low %v6079_v36, %v6082_v51  ;;  %v6089_v63 = vsel %vm13521_vm8, %v6087_v43, %v6088_v33  ;;  %v6741_v21 = vshll.u32 %v15782_v8, 16  ;;  %v6745_v2 = vshrl.u32 %v15782_v8, 16  ;;  %11279 = vmatpush3.bf16.msra.mxu1 %v12266_v20  ;;  %v15997_v33 = vld [vmem:[#allocation9 + $0x200] sm:$0xff]  }
 0x3bb   : > { %7517 = vmatmul.mubr.bf16.gmra.mrb[200].mxu0 %v10406_v45  ;;  %v6730_v14 = vsel %vm12923_vm5, %v6725_v13, %v6729_v56  ;;  %v10372_v50 = vcombine.low %v6086_v62, %v6089_v63  ;;  %v6734_v4 = vrot.slane %v6732_v55, 4  ;;  %v6737_v26 = vrot.slane %v6735_v53, 5  ;;  %11280 = vmatprep.subr.bf16.mxu1 %v12270_v34  ;;  %v5554_v53 = vld [vmem:[#allocation3 + $0x88] sm:$0xf] }
 0x3bc   : > { %v10423_v22 = vcombine.low %v6720_v61, %v6730_v14  ;;  %11625 = vmatmul.mubr.bf16.gmra.mrb[108].mxu1 %v10371_v28  ;;  %v6743_v1 = vrot.slane %v6741_v21, 5  ;;  %v6747_v46 = vrot.slane %v6745_v2, 4  ;;  %v6751_v27 = vshll.u32 %v15787_v48, 16  ;;  %v5975_v21 = vld [vmem:[#allocation3 + $0x90] sm:$0xe] }
 0x3bd   : > { %11628 = vmatprep.mubr.bf16.mxu1 %v10372_v50  ;;  %v6738_v24 = vor.u32 %v6737_v26, %v6734_v4  ;;  %v10325_v42 = vrot.slane %v5972_v30, 9  ;;  %v6092_v35 = vrot.slane %v5550_v40, 5  ;;  %v6095_v45 = vrot.slane %v5572_v31, 5  ;;  %v5974_v40 = vld [vmem:[#allocation3 + $0x84] sm:$0xe] }
 0x3be   : > { %7524 = vmatprep.mubr.bf16.mxu0 %v10423_v22  ;;  %v6748_v56 = vor.u32 %v6747_v46, %v6743_v1  ;;  %v6753_v20 = vrot.slane %v6751_v27, 5  ;;  %v10326_v7 = vrot.slane %v5973_v0, 9  ;;  %v6099_v17 = vrot.slane %v5552_v59, 5  ;;  %11281 = vmatpush3.bf16.msra.mxu1 %v12271_v58  ;;  %v5556_v50 = vld [vmem:[#allocation3 + $0x94] sm:$0xf] }
 0x3bf   : > { %v6739_v52 = vrot.slane %v6738_v24, 4  ;;  %v6093_v36 = vsel %vm13521_vm8, %v10325_v42, %v6092_v35  ;;  %v6094_v48 = vrot.slane %v6092_v35, 4  ;;  %v6102_v37 = vrot.slane %v5573_v10, 5  ;;  %11282 = vmatprep.subr.bf16.mxu1 %v12276_v38  ;;  %v5575_v4 = vld [vmem:[#allocation3 + $0x98] sm:$0x1] }
 0x3c0   : > { %v6749_v34 = vrot.slane %v6748_v56, 4  ;;  %v6100_v61 = vsel %vm13521_vm8, %v10326_v7, %v6099_v17  ;;  %v6101_v62 = vrot.slane %v6099_v17, 4  ;;  %v10408_v43 = vcombine.low %v15969_v6, %v15782_v8  ;;  %v5574_v6 = vld [vmem:[#allocation3 + $0x8c] sm:$0x1]  ;;  %v16020_v46 = vld [vmem:[#allocation3 + $0xb4] sm:$0xf] }
 0x3c1   : > { %v6744_v58 = vsel %vm12923_vm5, %v6739_v52, %v6743_v1  ;;  %v6096_v13 = vsel %vm13521_vm8, %v6094_v48, %v6095_v45  ;;  %v6756_v51 = vshrl.u32 %v15993_v15, 16  ;;  %v6759_v55 = vshll.u32 %v15993_v15, 16 }
 0x3c2   : > { %v6754_v38 = vsel %vm12923_vm5, %v6749_v34, %v6753_v20  ;;  %v10373_v28 = vcombine.low %v6093_v36, %v6096_v13  ;;  %v6103_v63 = vsel %vm13521_vm8, %v6101_v62, %v6102_v37  ;;  %v6765_v8 = vshll.u32 %v15810_v9, 16  ;;  %11283 = vmatpush3.bf16.msra.mxu1 %v12278_v32  ;;  %v5558_v34 = vld [vmem:[#allocation3 + $0xa0] sm:$0xf]  ;;  %v5576_v13 = vld [vmem:[#allocation3 + $0xa4] sm:$0x1] }
 0x3c3   : > { %7525 = vmatmul.mubr.bf16.gmra.mrb[204].mxu0 %v10407_v39  ;;  %v10424_v2 = vcombine.low %v6744_v58, %v6754_v38  ;;  %v10374_v31 = vcombine.low %v6100_v61, %v6103_v63  ;;  %v6758_v30 = vrot.slane %v6756_v51, 4  ;;  %v6761_v14 = vrot.slane %v6759_v55, 5  ;;  %11644 = vmatprep.subr.bf16.mxu1 %v15997_v33  ;;  %v5976_v61 = vld [vmem:[#allocation3 + $0x9c] sm:$0xe]  ;;  %v5560_v51 = vld [vmem:[#allocation3 + $0xac] sm:$0xf] }
 0x3c4   : > { %11629 = vmatmul.mubr.bf16.gmra.mrb[112].mxu1 %v10373_v28  ;;  %v6767_v26 = vrot.slane %v6765_v8, 5  ;;  %v6769_v59 = vshrl.u32 %v15810_v9, 16  ;;  %v6775_v0 = vshll.u32 %v15814_v11, 16  ;;  %v10327_v22 = vrot.slane %v5974_v40, 9  ;;  %v5977_v28 = vld [vmem:[#allocation3 + $0xa8] sm:$0xe] }
 0x3c5   : > { %7532 = vmatprep.mubr.bf16.mxu0 %v10424_v2  ;;  %11632 = vmatprep.mubr.bf16.mxu1 %v10374_v31  ;;  %v6762_v1 = vor.u32 %v6761_v14, %v6758_v30  ;;  %v6106_v44 = vrot.slane %v5554_v53, 5  ;;  %v6109_v3 = vrot.slane %v5574_v6, 5  ;;  %v10328_v39 = vrot.slane %v5975_v21, 9  ;;  %v5577_v2 = vld [vmem:[#allocation3 + $0xb0] sm:$0x1] }
 0x3c6   : > { %v6771_v27 = vrot.slane %v6769_v59, 4  ;;  %v6777_v10 = vrot.slane %v6775_v0, 5  ;;  %v6113_v24 = vrot.slane %v5556_v50, 5  ;;  %v6116_v42 = vrot.slane %v5575_v4, 5  ;;  %v16041_v50 = vld [vmem:[#allocation3 + $0xc0] sm:$0xf] }
 0x3c7   : > { %v6763_v35 = vrot.slane %v6762_v1, 4  ;;  %v6107_v45 = vsel %vm13521_vm8, %v10327_v22, %v6106_v44  ;;  %v6108_v56 = vrot.slane %v6106_v44, 4  ;;  %v10409_v11 = vcombine.low %v15993_v15, %v15810_v9 }
 0x3c8   : > { %v6772_v20 = vor.u32 %v6771_v27, %v6767_v26  ;;  %v6114_v7 = vsel %vm13521_vm8, %v10328_v39, %v6113_v24  ;;  %v6115_v17 = vrot.slane %v6113_v24, 4  ;;  %v6780_v32 = vshrl.u32 %v16020_v46, 16  ;;  %v5978_v24 = vld [vmem:[#allocation3 + $0xb4] sm:$0xe] }
 0x3c9   : > { %v6768_v52 = vsel %vm12923_vm5, %v6763_v35, %v6767_v26  ;;  %v6110_v36 = vsel %vm13521_vm8, %v6108_v56, %v6109_v3  ;;  %v6783_v48 = vshll.u32 %v16020_v46, 16  ;;  %v6789_v37 = vshll.u32 %v15816_v12, 16 }
 0x3ca   : > { %v6773_v9 = vrot.slane %v6772_v20, 4  ;;  %v10375_v15 = vcombine.low %v6107_v45, %v6110_v36  ;;  %v6117_v62 = vsel %vm13521_vm8, %v6115_v17, %v6116_v42  ;;  %v6782_v58 = vrot.slane %v6780_v32, 4  ;;  %v5562_v20 = vld [vmem:[#allocation3 + $0xb8] sm:$0xf] }
 0x3cb   : > { %7533 = vmatmul.mubr.bf16.gmra.mrb[208].mxu0 %v10408_v43  ;;  %v10376_v55 = vcombine.low %v6114_v7, %v6117_v62  ;;  %v6785_v53 = vrot.slane %v6783_v48, 5  ;;  %v6791_v40 = vrot.slane %v6789_v37, 5  ;;  %v6793_v38 = vshrl.u32 %v15816_v12, 16 }
 0x3cc   : > { %v6778_v63 = vsel %vm12923_vm5, %v6773_v9, %v6777_v10  ;;  %11633 = vmatmul.mubr.bf16.gmra.mrb[116].mxu1 %v10375_v15  ;;  %v6799_v8 = vshll.u32 %v15826_v18, 16  ;;  %v10329_v6 = vrot.slane %v5976_v61, 9  ;;  %v6120_v21 = vrot.slane %v5558_v34, 5  ;;  %v16060_v34 = vld [vmem:[#allocation3 + $0x18] sm:$0xf] }
 0x3cd   : > { %v10425_v31 = vcombine.low %v6768_v52, %v6778_v63  ;;  %11636 = vmatprep.mubr.bf16.mxu1 %v10376_v55  ;;  %v6786_v30 = vor.u32 %v6785_v53, %v6782_v58  ;;  %v6795_v14 = vrot.slane %v6793_v38, 4  ;;  %v6123_v43 = vrot.slane %v5576_v13, 5  ;;  %v16064_v58 = vld [vmem:[#allocation3 + $0x1c] sm:$0xf] }
 0x3ce   : > { %v6801_v4 = vrot.slane %v6799_v8, 5  ;;  %v6121_v26 = vsel %vm13521_vm8, %v10329_v6, %v6120_v21  ;;  %v6122_v59 = vrot.slane %v6120_v21, 4  ;;  %v10330_v0 = vrot.slane %v5977_v28, 9 }
 0x3cf   : > { %7540 = vmatprep.mubr.bf16.mxu0 %v10425_v31  ;;  %v6787_v22 = vrot.slane %v6786_v30, 4  ;;  %v6796_v1 = vor.u32 %v6795_v14, %v6791_v40  ;;  %v6127_v18 = vrot.slane %v5560_v51, 5  ;;  %v6130_v44 = vrot.slane %v5577_v2, 5 }
 0x3d0   : > { %v6124_v3 = vsel %vm13521_vm8, %v6122_v59, %v6123_v43  ;;  %v10410_v39 = vcombine.low %v16020_v46, %v15816_v12  ;;  %v6804_v27 = vshrl.u32 %v16041_v50, 16  ;;  %v6807_v10 = vshll.u32 %v16041_v50, 16  ;;  %v5578_v12 = vld [vmem:[#allocation3 + $0xbc] sm:$0x1]  ;;  %v16074_v43 = vld [vmem:[#allocation3] sm:$0xf] }
 0x3d1   : > { %v6792_v42 = vsel %vm12923_vm5, %v6787_v22, %v6791_v40  ;;  %v6797_v35 = vrot.slane %v6796_v1, 4  ;;  %v10377_v45 = vcombine.low %v6121_v26, %v6124_v3  ;;  %v6128_v56 = vsel %vm13521_vm8, %v10330_v0, %v6127_v18 }
 0x3d2   : > { %v6129_v7 = vrot.slane %v6127_v18, 4  ;;  %v6806_v17 = vrot.slane %v6804_v27, 4  ;;  %v6809_v32 = vrot.slane %v6807_v10, 5  ;;  %v6813_v52 = vshll.u32 %v15845_v23, 16 }
 0x3d3   : > { %7541 = vmatmul.mubr.bf16.gmra.mrb[212].mxu0 %v10409_v11  ;;  %v6802_v46 = vsel %vm12923_vm5, %v6797_v35, %v6801_v4  ;;  %v6817_v36 = vshrl.u32 %v15845_v23, 16  ;;  %v6823_v48 = vshll.u32 %v15847_v25, 16  ;;  %v10331_v37 = vrot.slane %v5978_v24, 9  ;;  %v8225_v25 = vld [vmem:[#allocation3 + $0x20] sm:$0x1] }
 0x3d4   : > { %v10426_v61 = vcombine.low %v6792_v42, %v6802_v46  ;;  %11637 = vmatmul.mubr.bf16.gmra.mrb[120].mxu1 %v10377_v45  ;;  %v6131_v9 = vsel %vm13521_vm8, %v6129_v7, %v6130_v44  ;;  %v6810_v15 = vor.u32 %v6809_v32, %v6806_v17  ;;  %v6815_v62 = vrot.slane %v6813_v52, 5  ;;  %v16088_v32 = vld [vmem:[#allocation3 + $0x28] sm:$0xf] }
 0x3d5   : > { %v10378_v11 = vcombine.low %v6128_v56, %v6131_v9  ;;  %v6819_v13 = vrot.slane %v6817_v36, 4  ;;  %v6825_v51 = vrot.slane %v6823_v48, 5  ;;  %v6134_v55 = vrot.slane %v5562_v20, 5  ;;  %v16085_v56 = vld [vmem:[#allocation3 + $0x24] sm:$0xf] }
 0x3d6   : > { %7548 = vmatprep.mubr.bf16.mxu0 %v10426_v61  ;;  %v6811_v53 = vrot.slane %v6810_v15, 4  ;;  %v6137_v40 = vrot.slane %v5578_v12, 5  ;;  %v8242_v38 = vshrl.u32 %v16060_v34, 16  ;;  %v8245_v28 = vshll.u32 %v16060_v34, 16 }
 0x3d7   : > { %11640 = vmatprep.mubr.bf16.mxu1 %v10378_v11  ;;  %v6820_v63 = vor.u32 %v6819_v13, %v6815_v62  ;;  %v6135_v8 = vsel %vm13521_vm8, %v10331_v37, %v6134_v55  ;;  %v6136_v6 = vrot.slane %v6134_v55, 4  ;;  %v8251_v21 = vshll.u32 %v16064_v58, 16  ;;  %v8226_v37 = vld [vmem:[#allocation3 + $0x2c] sm:$0x1] }
 0x3d8   : > { %v6816_v2 = vsel %vm12923_vm5, %v6811_v53, %v6815_v62  ;;  %v8244_v31 = vrot.slane %v8242_v38, 4  ;;  %v8247_v30 = vrot.slane %v8245_v28, 5  ;;  %v8255_v14 = vshrl.u32 %v16064_v58, 16  ;;  %v16101_v53 = vld [vmem:[#allocation3 + $0xc] sm:$0xf]  ;;  %v12290_v38 = vld [vmem:[#allocation9 + $0x208] sm:$0xff]  }
 0x3d9   : > { %v6821_v4 = vrot.slane %v6820_v63, 4  ;;  %v6138_v26 = vsel %vm13521_vm8, %v6136_v6, %v6137_v40  ;;  %v8253_v59 = vrot.slane %v8251_v21, 5  ;;  %v8261_v0 = vshll.u32 %v8225_v25, 16 }
 0x3da   : > { %v10379_v22 = vcombine.low %v6135_v8, %v6138_v26  ;;  %v8248_v1 = vor.u32 %v8247_v30, %v8244_v31  ;;  %v8257_v18 = vrot.slane %v8255_v14, 4  ;;  %v10411_v3 = vcombine.low %v16041_v50, %v15845_v23 }
 0x3db   : > { %7549 = vmatmul.mubr.bf16.gmra.mrb[216].mxu0 %v10410_v39  ;;  %v6826_v44 = vsel %vm12923_vm5, %v6821_v4, %v6825_v51  ;;  %v5580_v27 = vshrl.u32 %v16074_v43, 16  ;;  %v5583_v10 = vshll.u32 %v16074_v43, 16  ;;  %v5589_v45 = vshll.u32 %v15850_v19, 16 }
 0x3dc   : > { %v10427_v24 = vcombine.low %v6816_v2, %v6826_v44  ;;  %11641 = vmatmul.mubr.bf16.gmra.mrb[124].mxu1 %v10379_v22  ;;  %v8249_v42 = vrot.slane %v8248_v1, 4  ;;  %v8258_v35 = vor.u32 %v8257_v18, %v8253_v59  ;;  %v8263_v20 = vrot.slane %v8261_v0, 5  ;;  %v12295_v44 = vld [vmem:[#allocation9 + $0x210] sm:$0xff]  }
 0x3dd   : > { %v5582_v39 = vrot.slane %v5580_v27, 4  ;;  %v5585_v7 = vrot.slane %v5583_v10, 5  ;;  %v5593_v17 = vshrl.u32 %v15850_v19, 16  ;;  %v5591_v52 = vrot.slane %v5589_v45, 5 }
 0x3de   : > { %7556 = vmatprep.mubr.bf16.mxu0 %v10427_v24  ;;  %v8254_v23 = vsel %vm12923_vm5, %v8249_v42, %v8253_v59  ;;  %v8259_v50 = vrot.slane %v8258_v35, 4  ;;  %v5599_v12 = vshll.u32 %v15858_v5, 16  ;;  %v10508_v48 = vcombine.low %v16060_v34, %v16064_v58  ;;  %v16112_v59 = vld [vmem:[#allocation3 + $0x30] sm:$0xf] }
 0x3df   : > { %v5586_v46 = vor.u32 %v5585_v7, %v5582_v39  ;;  %v5595_v36 = vrot.slane %v5593_v17, 4  ;;  %v8266_v61 = vshrl.u32 %v16085_v56, 16  ;;  %v8269_v15 = vshll.u32 %v16085_v56, 16 }
 0x3e0   : > { %v8264_v9 = vsel %vm12923_vm5, %v8259_v50, %v8263_v20  ;;  %v8275_v62 = vshll.u32 %v16088_v32, 16  ;;  %v8279_v11 = vshrl.u32 %v16088_v32, 16  ;;  %v8285_v25 = vshll.u32 %v8226_v37, 16  ;;  %v8227_v20 = vld [vmem:[#allocation3 + $0x38] sm:$0x1] }
 0x3e1   : > { %v10524_v13 = vcombine.low %v8254_v23, %v8264_v9  ;;  %v5587_v51 = vrot.slane %v5586_v46, 4  ;;  %v5596_v5 = vor.u32 %v5595_v36, %v5591_v52  ;;  %v8268_v55 = vrot.slane %v8266_v61, 4  ;;  %v16126_v50 = vld [vmem:[#allocation3 + $0x18] sm:$0xf] }
 0x3e2   : > { %v8271_v40 = vrot.slane %v8269_v15, 5  ;;  %v8277_v34 = vrot.slane %v8275_v62, 5  ;;  %v8281_v58 = vrot.slane %v8279_v11, 4  ;;  %v5601_v8 = vrot.slane %v5599_v12, 5 }
 0x3e3   : > { %9234 = vmatprep.mubr.bf16.mxu1 %v10524_v13  ;;  %7557 = vmatmul.mubr.bf16.gmra.mrb[220].mxu0 %v10411_v3  ;;  %v5592_v28 = vsel %vm12923_vm5, %v5587_v51, %v5591_v52  ;;  %v5597_v63 = vrot.slane %v5596_v5, 4  ;;  %v8287_v2 = vrot.slane %v8285_v25, 5  ;;  %v5604_v31 = vshrl.u32 %v16101_v53, 16  ;;  %v16139_v5 = vld [vmem:[#allocation3 + $0x3c] sm:$0xf] }
 0x3e4   : > { %9235 = vmatmul.mubr.bf16.vlgmr.msra.gmra.mrb[128].mxu1 %v10508_v48  ;;  %v8272_v6 = vor.u32 %v8271_v40, %v8268_v55  ;;  %v8282_v21 = vor.u32 %v8281_v58, %v8277_v34  ;;  %v5607_v14 = vshll.u32 %v16101_v53, 16  ;;  %v5613_v4 = vshll.u32 %v15882_v49, 16  ;;  %v12306_v25 = vld [vmem:[#allocation9 + $0x220] sm:$0xff]  }
 0x3e5   : > { %v5602_v30 = vsel %vm12923_vm5, %v5597_v63, %v5601_v8  ;;  %11645 = vmatpush3.bf16.msra.mxu1 %v15997_v33  ;;  %v5617_v26 = vshrl.u32 %v15882_v49, 16  ;;  %v5606_v18 = vrot.slane %v5604_v31, 4  ;;  %v5623_v24 = vshll.u32 %v15884_v57, 16  ;;  %v16115_v33 = vld [vmem:[#allocation3 + $0x34] sm:$0xf] }
 0x3e6   : > { %v10348_v0 = vcombine.low %v5592_v28, %v5602_v30  ;;  %v8273_v22 = vrot.slane %v8272_v6, 4  ;;  %v8283_v1 = vrot.slane %v8282_v21, 4  ;;  %11646 = vmatprep.subr.bf16.mxu1 %v12290_v38  ;;  %v5609_v3 = vrot.slane %v5607_v14, 5  ;;  %v16144_v21 = vld [vmem:[#allocation3 + $0x40] sm:$0xf] }
 0x3e7   : > { %v5615_v27 = vrot.slane %v5613_v4, 5  ;;  %v5619_v10 = vrot.slane %v5617_v26, 4  ;;  %v10332_v45 = vcombine.low %v16074_v43, %v15850_v19  ;;  %v8290_v39 = vshrl.u32 %v16112_v59, 16  ;;  %v12300_v19 = vld [vmem:[#allocation9 + $0x218] sm:$0xff]   ;;  %v8228_v26 = vld [vmem:[#allocation3 + $0x44] sm:$0x1] }
 0x3e8   : > { %7902 = vmatprep.mubr.bf16.mxu0 %v10348_v0  ;;  %v8278_v42 = vsel %vm12923_vm5, %v8273_v22, %v8277_v34  ;;  %v8288_v35 = vsel %vm12923_vm5, %v8283_v1, %v8287_v2  ;;  %v5610_v17 = vor.u32 %v5609_v3, %v5606_v18  ;;  %v10509_v57 = vcombine.low %v16085_v56, %v16088_v32  ;;  %v16154_v1 = vld [vmem:[#allocation3 + $0x24] sm:$0xf] }
 0x3e9   : > { %v10525_v7 = vcombine.low %v8278_v42, %v8288_v35  ;;  %v5620_v23 = vor.u32 %v5619_v10, %v5615_v27  ;;  %11647 = vmatpush3.bf16.msra.mxu1 %v12290_v38  ;;  %v8292_v52 = vrot.slane %v8290_v39, 4  ;;  %v8293_v12 = vshll.u32 %v16112_v59, 16  ;;  %v12311_v18 = vld [vmem:[#allocation9 + $0x228] sm:$0xff]  }
 0x3ea   : > { %v8299_v46 = vshll.u32 %v16115_v33, 16  ;;  %v8303_v36 = vshrl.u32 %v16115_v33, 16  ;;  %11648 = vmatprep.subr.bf16.mxu1 %v12295_v44  ;;  %v5611_v43 = vrot.slane %v5610_v17, 4  ;;  %v5625_v37 = vrot.slane %v5623_v24, 5 }
 0x3eb   : > { %9242 = vmatprep.mubr.bf16.mxu1 %v10525_v7  ;;  %7903 = vmatmul.mubr.bf16.vlgmr.msra.gmra.mrb[224].mxu0 %v10332_v45  ;;  %v5621_v48 = vrot.slane %v5620_v23, 4  ;;  %v8309_v61 = vshll.u32 %v8227_v20, 16  ;;  %v8295_v56 = vrot.slane %v8293_v12, 5  ;;  %v5628_v15 = vshrl.u32 %v16126_v50, 16  ;;  %v12378_v23 = vld [vmem:[#allocation3 + $0x1c] sm:$0xf] }
 0x3ec   : > { %9243 = vmatmul.mubr.bf16.gmra.mrb[132].mxu1 %v10509_v57  ;;  %v8301_v32 = vrot.slane %v8299_v46, 5  ;;  %v8305_v9 = vrot.slane %v8303_v36, 4  ;;  %v5616_v62 = vsel %vm12923_vm5, %v5611_v43, %v5615_v27  ;;  %v10333_v13 = vcombine.low %v16101_v53, %v15882_v49  ;;  %v12316_v12 = vld [vmem:[#allocation9 + $0x230] sm:$0xff]  }
 0x3ed   : > { %v5626_v11 = vsel %vm12923_vm5, %v5621_v48, %v5625_v37  ;;  %v5631_v51 = vshll.u32 %v16126_v50, 16  ;;  %11649 = vmatpush3.bf16.msra.mxu1 %v12295_v44  ;;  %v8296_v40 = vor.u32 %v8295_v56, %v8292_v52  ;;  %v5630_v58 = vrot.slane %v5628_v15, 4  ;;  %v16167_v48 = vld [vmem:[#allocation3 + $0x48] sm:$0xf] }
 0x3ee   : > { %v10349_v55 = vcombine.low %v5616_v62, %v5626_v11  ;;  %v8306_v34 = vor.u32 %v8305_v9, %v8301_v32  ;;  %11650 = vmatprep.subr.bf16.mxu1 %v12300_v19  ;;  %v8311_v38 = vrot.slane %v8309_v61, 5  ;;  %v5637_v63 = vshll.u32 %v15888_v54, 16  ;;  %v16169_v9 = vld [vmem:[#allocation3 + $0x4c] sm:$0xf] }
 0x3ef   : > { %v5633_v28 = vrot.slane %v5631_v51, 5  ;;  %v5641_v8 = vshrl.u32 %v15888_v54, 16  ;;  %v8297_v6 = vrot.slane %v8296_v40, 4  ;;  %v5647_v53 = vshll.u32 %v15891_v16, 16  ;;  %v12321_v40 = vld [vmem:[#allocation9 + $0x238] sm:$0xff]  }
 0x3f0   : > { %7910 = vmatprep.mubr.bf16.mxu0 %v10349_v55  ;;  %v8307_v49 = vrot.slane %v8306_v34, 4  ;;  %v8314_v2 = vshrl.u32 %v16139_v5, 16  ;;  %v5639_v30 = vrot.slane %v5637_v63, 5  ;;  %v10510_v4 = vcombine.low %v16112_v59, %v16115_v33 }
 0x3f1   : > { %v5634_v31 = vor.u32 %v5633_v28, %v5630_v58  ;;  %v5643_v14 = vrot.slane %v5641_v8, 4  ;;  %11651 = vmatpush3.bf16.msra.mxu1 %v12300_v19  ;;  %v8302_v54 = vsel %vm12923_vm5, %v8297_v6, %v8301_v32  ;;  %v8317_v16 = vshll.u32 %v16139_v5, 16 }
 0x3f2   : > { %v8312_v0 = vsel %vm12923_vm5, %v8307_v49, %v8311_v38  ;;  %v8316_v22 = vrot.slane %v8314_v2, 4  ;;  %11652 = vmatprep.subr.bf16.mxu1 %v12306_v25  ;;  %v8323_v59 = vshll.u32 %v16144_v21, 16  ;;  %v5649_v10 = vrot.slane %v5647_v53, 5  ;;  %v16180_v49 = vld [vmem:[#allocation3 + $0x30] sm:$0xf] }
 0x3f3   : > { %v10526_v44 = vcombine.low %v8302_v54, %v8312_v0  ;;  %7911 = vmatmul.mubr.bf16.gmra.mrb[228].mxu0 %v10333_v13  ;;  %v5635_v3 = vrot.slane %v5634_v31, 4  ;;  %v5644_v27 = vor.u32 %v5643_v14, %v5639_v30  ;;  %v8319_v24 = vrot.slane %v8317_v16, 5 }
 0x3f4   : > { %v8327_v33 = vshrl.u32 %v16144_v21, 16  ;;  %v8333_v42 = vshll.u32 %v8228_v26, 16  ;;  %v8325_v20 = vrot.slane %v8323_v59, 5  ;;  %v5652_v39 = vshrl.u32 %v16154_v1, 16 }
 0x3f5   : > { %9250 = vmatprep.mubr.bf16.mxu1 %v10526_v44  ;;  %v5640_v35 = vsel %vm12923_vm5, %v5635_v3, %v5639_v30  ;;  %v5645_v45 = vrot.slane %v5644_v27, 4  ;;  %11653 = vmatpush3.bf16.msra.mxu1 %v12306_v25  ;;  %v8320_v7 = vor.u32 %v8319_v24, %v8316_v22  ;;  %v10334_v57 = vcombine.low %v16126_v50, %v12378_v23  ;;  %v8229_v25 = vld [vmem:[#allocation3 + $0x50] sm:$0x1]  ;;  %v12379_v27 = vld [vmem:[#allocation3 + $0x28] sm:$0xf] }
 0x3f6   : > { %9251 = vmatmul.mubr.bf16.gmra.mrb[136].mxu1 %v10510_v4  ;;  %v8329_v17 = vrot.slane %v8327_v33, 4  ;;  %v5655_v52 = vshll.u32 %v16154_v1, 16  ;;  %11654 = vmatprep.subr.bf16.mxu1 %v12311_v18  ;;  %v5654_v36 = vrot.slane %v5652_v39, 4  ;;  %v5661_v19 = vshll.u32 %v15911_v47, 16 }
 0x3f7   : > { %v5650_v46 = vsel %vm12923_vm5, %v5645_v45, %v5649_v10  ;;  %v5665_v43 = vshrl.u32 %v15911_v47, 16  ;;  %v8321_v61 = vrot.slane %v8320_v7, 4  ;;  %v8335_v50 = vrot.slane %v8333_v42, 5  ;;  %v16191_v10 = vld [vmem:[#allocation3 + $0x34] sm:$0xf] }
 0x3f8   : > { %v10350_v37 = vcombine.low %v5640_v35, %v5650_v46  ;;  %v8330_v56 = vor.u32 %v8329_v17, %v8325_v20  ;;  %v5657_v32 = vrot.slane %v5655_v52, 5  ;;  %v5663_v15 = vrot.slane %v5661_v19, 5  ;;  %v16197_v45 = vld [vmem:[#allocation3 + $0x58] sm:$0xf]  ;;  %v8230_v19 = vld [vmem:[#allocation3 + $0x5c] sm:$0x1] }
 0x3f9   : > { %v5667_v62 = vrot.slane %v5665_v43, 4  ;;  %v5671_v11 = vshll.u32 %v15918_v60, 16  ;;  %11655 = vmatpush3.bf16.msra.mxu1 %v12311_v18  ;;  %v8326_v13 = vsel %vm12923_vm5, %v8321_v61, %v8325_v20  ;;  %v8338_v55 = vshrl.u32 %v16167_v48, 16  ;;  %v12381_v17 = vld [vmem:[#allocation3 + $0x38] sm:$0x1] }
 0x3fa   : > { %7918 = vmatprep.mubr.bf16.mxu0 %v10350_v37  ;;  %v8331_v51 = vrot.slane %v8330_v56, 4  ;;  %v5658_v47 = vor.u32 %v5657_v32, %v5654_v36  ;;  %11656 = vmatprep.subr.bf16.mxu1 %v12316_v12  ;;  %v8341_v38 = vshll.u32 %v16167_v48, 16  ;;  %v8347_v28 = vshll.u32 %v16169_v9, 16  ;;  %v16208_v61 = vld [vmem:[#allocation3 + $0x3c] sm:$0xf] }
 0x3fb   : > { %7919 = vmatmul.mubr.bf16.gmra.mrb[232].mxu0 %v10334_v57  ;;  %v5668_v34 = vor.u32 %v5667_v62, %v5663_v15  ;;  %v5673_v58 = vrot.slane %v5671_v11, 5  ;;  %v8340_v8 = vrot.slane %v8338_v55, 4  ;;  %v8351_v6 = vshrl.u32 %v16169_v9, 16 }
 0x3fc   : > { %v8336_v60 = vsel %vm12923_vm5, %v8331_v51, %v8335_v50  ;;  %v5659_v63 = vrot.slane %v5658_v47, 4  ;;  %v8343_v31 = vrot.slane %v8341_v38, 5  ;;  %v8349_v30 = vrot.slane %v8347_v28, 5 }
 0x3fd   : > { %v10527_v53 = vcombine.low %v8326_v13, %v8336_v60  ;;  %v5669_v2 = vrot.slane %v5668_v34, 4  ;;  %11657 = vmatpush3.bf16.msra.mxu1 %v12316_v12  ;;  %v10511_v4 = vcombine.low %v16139_v5, %v16144_v21  ;;  %v8353_v26 = vrot.slane %v8351_v6, 4  ;;  %v16194_v21 = vld [vmem:[#allocation3 + $0x54] sm:$0xf]  ;;  %v16219_v60 = vld [vmem:[#allocation3 + $0x40] sm:$0xf] }
 0x3fe   : > { %v5664_v14 = vsel %vm12923_vm5, %v5659_v63, %v5663_v15  ;;  %v8357_v54 = vshll.u32 %v8229_v25, 16  ;;  %11658 = vmatprep.subr.bf16.mxu1 %v12321_v40  ;;  %v8344_v22 = vor.u32 %v8343_v31, %v8340_v8  ;;  %v5676_v16 = vshrl.u32 %v16180_v49, 16  ;;  %v16223_v6 = vld [vmem:[#allocation3 + $0x60] sm:$0xf] }
 0x3ff   : > { %9258 = vmatprep.mubr.bf16.mxu1 %v10527_v53  ;;  %v5674_v0 = vsel %vm12923_vm5, %v5669_v2, %v5673_v58  ;;  %v5679_v18 = vshll.u32 %v16180_v49, 16  ;;  %v8354_v3 = vor.u32 %v8353_v26, %v8349_v30  ;;  %v10335_v59 = vcombine.low %v16154_v1, %v12379_v27 }
 0x400   : > { %v10351_v44 = vcombine.low %v5664_v14, %v5674_v0  ;;  %9259 = vmatmul.mubr.bf16.gmra.mrb[140].mxu1 %v10511_v4  ;;  %v5685_v5 = vshll.u32 %v16191_v10, 16  ;;  %v8345_v24 = vrot.slane %v8344_v22, 4  ;;  %v5678_v33 = vrot.slane %v5676_v16, 4  ;;  %v16225_v14 = vld [vmem:[#allocation3 + $0x64] sm:$0xf] }
 0x401   : > { %v5681_v42 = vrot.slane %v5679_v18, 5  ;;  %v5689_v35 = vshrl.u32 %v16191_v10, 16  ;;  %11659 = vmatpush3.bf16.msra.mxu1 %v12321_v40  ;;  %v8355_v20 = vrot.slane %v8354_v3, 4  ;;  %v8359_v39 = vrot.slane %v8357_v54, 5  ;;  %v12383_v54 = vld [vmem:[#allocation3 + $0x44] sm:$0x1] }
 0x402   : > { %7926 = vmatprep.mubr.bf16.mxu0 %v10351_v44  ;;  %v5687_v7 = vrot.slane %v5685_v5, 5  ;;  %v5695_v1 = vshll.u32 %v12381_v17, 16  ;;  %v8350_v23 = vsel %vm12923_vm5, %v8345_v24, %v8349_v30  ;;  %v8362_v12 = vshrl.u32 %v16194_v21, 16 }
 0x403   : > { %7927 = vmatmul.mubr.bf16.gmra.mrb[236].mxu0 %v10335_v59  ;;  %v5682_v57 = vor.u32 %v5681_v42, %v5678_v33  ;;  %v5691_v52 = vrot.slane %v5689_v35, 4  ;;  %v8360_v46 = vsel %vm12923_vm5, %v8355_v20, %v8359_v39  ;;  %v10512_v36 = vcombine.low %v16167_v48, %v16169_v9  ;;  %v8231_v59 = vld [vmem:[#allocation3 + $0x68] sm:$0x1] }
 0x404   : > { %v8365_v43 = vshll.u32 %v16194_v21, 16  ;;  %v8371_v37 = vshll.u32 %v16197_v45, 16  ;;  %v10528_v56 = vcombine.low %v8350_v23, %v8360_v46  ;;  %v8364_v15 = vrot.slane %v8362_v12, 4  ;;  %v16235_v20 = vld [vmem:[#allocation3 + $0x48] sm:$0xf] }
 0x405   : > { %v5683_v32 = vrot.slane %v5682_v57, 4  ;;  %v5692_v50 = vor.u32 %v5691_v52, %v5687_v7  ;;  %v5697_v62 = vrot.slane %v5695_v1, 5  ;;  %v8375_v51 = vshrl.u32 %v16197_v45, 16 }
 0x406   : > { %v8367_v11 = vrot.slane %v8365_v43, 5  ;;  %v8373_v13 = vrot.slane %v8371_v37, 5  ;;  %9266 = vmatprep.mubr.bf16.mxu1 %v10528_v56  ;;  %v8381_v47 = vshll.u32 %v8230_v19, 16  ;;  %v5700_v55 = vshrl.u32 %v16208_v61, 16 }
 0x407   : > { %v5688_v48 = vsel %vm12923_vm5, %v5683_v32, %v5687_v7  ;;  %v5693_v9 = vrot.slane %v5692_v50, 4  ;;  %v8377_v34 = vrot.slane %v8375_v51, 4  ;;  %v10336_v58 = vcombine.low %v16180_v49, %v16191_v10  ;;  %v16247_v50 = vld [vmem:[#allocation3 + $0x4c] sm:$0xf]  ;;  %v16253_v51 = vld [vmem:[#allocation3 + $0x70] sm:$0xf] }
 0x408   : > { %9267 = vmatmul.mubr.bf16.gmra.mrb[144].mxu1 %v10512_v36  ;;  %v8368_v40 = vor.u32 %v8367_v11, %v8364_v15  ;;  %v5703_v25 = vshll.u32 %v16208_v61, 16  ;;  %v5702_v28 = vrot.slane %v5700_v55, 4  ;;  %v5709_v63 = vshll.u32 %v16219_v60, 16  ;;  %v12385_v55 = vld [vmem:[#allocation3 + $0x50] sm:$0x1] }
 0x409   : > { %v5698_v38 = vsel %vm12923_vm5, %v5693_v9, %v5697_v62  ;;  %v5713_v8 = vshrl.u32 %v16219_v60, 16  ;;  %v8378_v31 = vor.u32 %v8377_v34, %v8373_v13  ;;  %v8383_v49 = vrot.slane %v8381_v47, 5 }
 0x40a   : > { %v10352_v53 = vcombine.low %v5688_v48, %v5698_v38  ;;  %v8369_v2 = vrot.slane %v8368_v40, 4  ;;  %v5705_v30 = vrot.slane %v5703_v25, 5  ;;  %v5711_v4 = vrot.slane %v5709_v63, 5 }
 0x40b   : > { %v5715_v26 = vrot.slane %v5713_v8, 4  ;;  %v5719_v0 = vshll.u32 %v12383_v54, 16  ;;  %v8379_v16 = vrot.slane %v8378_v31, 4  ;;  %v8386_v44 = vshrl.u32 %v16223_v6, 16 }
 0x40c   : > { %7934 = vmatprep.mubr.bf16.mxu0 %v10352_v53  ;;  %v8374_v22 = vsel %vm12923_vm5, %v8369_v2, %v8373_v13  ;;  %v5706_v18 = vor.u32 %v5705_v30, %v5702_v28  ;;  %v8389_v10 = vshll.u32 %v16223_v6, 16  ;;  %v8395_v5 = vshll.u32 %v16225_v14, 16  ;;  %v16264_v53 = vld [vmem:[#allocation3 + $0x54] sm:$0xf] }
 0x40d   : > { %7935 = vmatmul.mubr.bf16.gmra.mrb[240].mxu0 %v10336_v58  ;;  %v5716_v3 = vor.u32 %v5715_v26, %v5711_v4  ;;  %v5721_v27 = vrot.slane %v5719_v0, 5  ;;  %v8384_v24 = vsel %vm12923_vm5, %v8379_v16, %v8383_v49  ;;  %v8388_v42 = vrot.slane %v8386_v44, 4 }
 0x40e   : > { %v5707_v33 = vrot.slane %v5706_v18, 4  ;;  %v8399_v35 = vshrl.u32 %v16225_v14, 16  ;;  %v10529_v39 = vcombine.low %v8374_v22, %v8384_v24  ;;  %v8391_v17 = vrot.slane %v8389_v10, 5 }
 0x40f   : > { %v5717_v7 = vrot.slane %v5716_v3, 4  ;;  %v8397_v1 = vrot.slane %v8395_v5, 5  ;;  %v10513_v57 = vcombine.low %v16194_v21, %v16197_v45  ;;  %v8405_v12 = vshll.u32 %v8231_v59, 16  ;;  %v16250_v45 = vld [vmem:[#allocation3 + $0x6c] sm:$0xf] }
 0x410   : > { %v5712_v23 = vsel %vm12923_vm5, %v5707_v33, %v5711_v4  ;;  %v8401_v52 = vrot.slane %v8399_v35, 4  ;;  %9274 = vmatprep.mubr.bf16.mxu1 %v10529_v39  ;;  %v8392_v36 = vor.u32 %v8391_v17, %v8388_v42  ;;  %v5724_v19 = vshrl.u32 %v16235_v20, 16  ;;  %v16275_v5 = vld [vmem:[#allocation3 + $0x58] sm:$0xf] }
 0x411   : > { %v5722_v46 = vsel %vm12923_vm5, %v5717_v7, %v5721_v27  ;;  %v5727_v43 = vshll.u32 %v16235_v20, 16  ;;  %9275 = vmatmul.mubr.bf16.gmra.mrb[148].mxu1 %v10513_v57  ;;  %v10337_v32 = vcombine.low %v16208_v61, %v16219_v60  ;;  %v5733_v21 = vshll.u32 %v16247_v50, 16  ;;  %v8232_v60 = vld [vmem:[#allocation3 + $0x74] sm:$0x1]  ;;  %v16279_v42 = vld [vmem:[#allocation3 + $0x78] sm:$0xf] }
 0x412   : > { %v10353_v37 = vcombine.low %v5712_v23, %v5722_v46  ;;  %v8402_v56 = vor.u32 %v8401_v52, %v8397_v1  ;;  %v8393_v15 = vrot.slane %v8392_v36, 4  ;;  %v5726_v62 = vrot.slane %v5724_v19, 4  ;;  %v12387_v52 = vld [vmem:[#allocation3 + $0x5c] sm:$0x1] }
 0x413   : > { %v5729_v11 = vrot.slane %v5727_v43, 5  ;;  %v5737_v13 = vshrl.u32 %v16247_v50, 16  ;;  %v8407_v9 = vrot.slane %v8405_v12, 5  ;;  %v5735_v47 = vrot.slane %v5733_v21, 5 }
 0x414   : > { %7942 = vmatprep.mubr.bf16.mxu0 %v10353_v37  ;;  %v8403_v48 = vrot.slane %v8402_v56, 4  ;;  %v5743_v40 = vshll.u32 %v12385_v55, 16  ;;  %v8398_v61 = vsel %vm12923_vm5, %v8393_v15, %v8397_v1  ;;  %v8410_v25 = vshrl.u32 %v16250_v45, 16  ;;  %v16281_v1 = vld [vmem:[#allocation3 + $0x7c] sm:$0xf] }
 0x415   : > { %7943 = vmatmul.mubr.bf16.gmra.mrb[244].mxu0 %v10337_v32  ;;  %v5730_v34 = vor.u32 %v5729_v11, %v5726_v62  ;;  %v5739_v58 = vrot.slane %v5737_v13, 4  ;;  %v10514_v28 = vcombine.low %v16223_v6, %v16225_v14  ;;  %v8413_v63 = vshll.u32 %v16250_v45, 16  ;;  %v16286_v32 = vld [vmem:[#allocation3 + $0x80] sm:$0x1] }
 0x416   : > { %v8408_v38 = vsel %vm12923_vm5, %v8403_v48, %v8407_v9  ;;  %v8419_v8 = vshll.u32 %v16253_v51, 16  ;;  %v8412_v49 = vrot.slane %v8410_v25, 4  ;;  %v5745_v4 = vrot.slane %v5743_v40, 5  ;;  %v16293_v48 = vld [vmem:[#allocation3 + $0x60] sm:$0xf] }
 0x417   : > { %v10530_v2 = vcombine.low %v8398_v61, %v8408_v38  ;;  %v5731_v31 = vrot.slane %v5730_v34, 4  ;;  %v5740_v30 = vor.u32 %v5739_v58, %v5735_v47  ;;  %v8415_v26 = vrot.slane %v8413_v63, 5 }
 0x418   : > { %v8421_v54 = vrot.slane %v8419_v8, 5  ;;  %v8423_v0 = vshrl.u32 %v16253_v51, 16  ;;  %v8429_v22 = vshll.u32 %v8232_v60, 16  ;;  %v5748_v16 = vshrl.u32 %v16264_v53, 16 }
 0x419   : > { %9282 = vmatprep.mubr.bf16.mxu1 %v10530_v2  ;;  %v5736_v6 = vsel %vm12923_vm5, %v5731_v31, %v5735_v47  ;;  %v5741_v14 = vrot.slane %v5740_v30, 4  ;;  %v8416_v18 = vor.u32 %v8415_v26, %v8412_v49  ;;  %v10338_v3 = vcombine.low %v16235_v20, %v16247_v50  ;;  %v16306_v30 = vld [vmem:[#allocation3 + $0x64] sm:$0xf] }
 0x41a   : > { %9283 = vmatmul.mubr.bf16.gmra.mrb[152].mxu1 %v10514_v28  ;;  %v8425_v44 = vrot.slane %v8423_v0, 4  ;;  %v5751_v27 = vshll.u32 %v16264_v53, 16  ;;  %v5750_v10 = vrot.slane %v5748_v16, 4  ;;  %v5757_v24 = vshll.u32 %v16275_v5, 16 }
 0x41b   : > { %v5746_v59 = vsel %vm12923_vm5, %v5741_v14, %v5745_v4  ;;  %v5761_v33 = vshrl.u32 %v16275_v5, 16  ;;  %v8417_v39 = vrot.slane %v8416_v18, 4  ;;  %v8431_v20 = vrot.slane %v8429_v22, 5  ;;  %v12389_v22 = vld [vmem:[#allocation3 + $0x68] sm:$0x1] }
 0x41c   : > { %v10354_v35 = vcombine.low %v5736_v6, %v5746_v59  ;;  %v8426_v7 = vor.u32 %v8425_v44, %v8421_v54  ;;  %v5753_v17 = vrot.slane %v5751_v27, 5  ;;  %v5759_v23 = vrot.slane %v5757_v24, 5  ;;  %v16312_v18 = vld [vmem:[#allocation3 + $0x88] sm:$0xf]  ;;  %v16318_v59 = vld [vmem:[#allocation3 + $0x8c] sm:$0x1] }
 0x41d   : > { %v5763_v57 = vrot.slane %v5761_v33, 4  ;;  %v5767_v12 = vshll.u32 %v12387_v52, 16  ;;  %v8422_v46 = vsel %vm12923_vm5, %v8417_v39, %v8421_v54  ;;  %v8434_v43 = vshrl.u32 %v16279_v42, 16  ;;  %v16310_v54 = vld [vmem:[#allocation3 + $0x84] sm:$0xf] }
 0x41e   : > { %7950 = vmatprep.mubr.bf16.mxu0 %v10354_v35  ;;  %v8427_v36 = vrot.slane %v8426_v7, 4  ;;  %v5754_v19 = vor.u32 %v5753_v17, %v5750_v10  ;;  %v8437_v50 = vshll.u32 %v16279_v42, 16  ;;  %v8443_v21 = vshll.u32 %v16281_v1, 16  ;;  %v16324_v35 = vld [vmem:[#allocation3 + $0x6c] sm:$0xf] }
 0x41f   : > { %7951 = vmatmul.mubr.bf16.gmra.mrb[248].mxu0 %v10338_v3  ;;  %v5764_v37 = vor.u32 %v5763_v57, %v5759_v23  ;;  %v5769_v56 = vrot.slane %v5767_v12, 5  ;;  %v8436_v11 = vrot.slane %v8434_v43, 4  ;;  %v8447_v13 = vshrl.u32 %v16281_v1, 16 }
 0x420   : > { %v8432_v15 = vsel %vm12923_vm5, %v8427_v36, %v8431_v20  ;;  %v5755_v62 = vrot.slane %v5754_v19, 4  ;;  %v8439_v55 = vrot.slane %v8437_v50, 5  ;;  %v8445_v40 = vrot.slane %v8443_v21, 5 }
 0x421   : > { %v10531_v9 = vcombine.low %v8422_v46, %v8432_v15  ;;  %v5765_v47 = vrot.slane %v5764_v37, 4  ;;  %v10515_v34 = vcombine.low %v16250_v45, %v16253_v51  ;;  %v8449_v58 = vrot.slane %v8447_v13, 4 }
 0x422   : > { %v5760_v61 = vsel %vm12923_vm5, %v5755_v62, %v5759_v23  ;;  %v8453_v25 = vshll.u32 %v16286_v32, 16  ;;  %v8440_v28 = vor.u32 %v8439_v55, %v8436_v11  ;;  %v5772_v60 = vshrl.u32 %v16293_v48, 16  ;;  %v16337_v62 = vld [vmem:[#allocation3 + $0x70] sm:$0xf] }
 0x423   : > { %9290 = vmatprep.mubr.bf16.mxu1 %v10531_v9  ;;  %v5770_v38 = vsel %vm12923_vm5, %v5765_v47, %v5769_v56  ;;  %v5775_v63 = vshll.u32 %v16293_v48, 16  ;;  %v8450_v2 = vor.u32 %v8449_v58, %v8445_v40  ;;  %v10339_v31 = vcombine.low %v16264_v53, %v16275_v5 }
 0x424   : > { %v10355_v8 = vcombine.low %v5760_v61, %v5770_v38  ;;  %9291 = vmatmul.mubr.bf16.gmra.mrb[156].mxu1 %v10515_v34  ;;  %v5781_v45 = vshll.u32 %v16306_v30, 16  ;;  %v8441_v51 = vrot.slane %v8440_v28, 4  ;;  %v5774_v49 = vrot.slane %v5772_v60, 4  ;;  %v16343_v28 = vld [vmem:[#allocation3 + $0x94] sm:$0xf] }
 0x425   : > { %v5777_v4 = vrot.slane %v5775_v63, 5  ;;  %v5785_v26 = vshrl.u32 %v16306_v30, 16  ;;  %v8451_v0 = vrot.slane %v8450_v2, 4  ;;  %v8455_v6 = vrot.slane %v8453_v25, 5  ;;  %v12391_v25 = vld [vmem:[#allocation3 + $0x74] sm:$0x1] }
 0x426   : > { %7958 = vmatprep.mubr.bf16.mxu0 %v10355_v8  ;;  %v5783_v14 = vrot.slane %v5781_v45, 5  ;;  %v5791_v16 = vshll.u32 %v12389_v22, 16  ;;  %v8446_v53 = vsel %vm12923_vm5, %v8441_v51, %v8445_v40  ;;  %v10516_v27 = vcombine.low %v16279_v42, %v16281_v1  ;;  %v16349_v45 = vld [vmem:[#allocation3 + $0x98] sm:$0x1] }
 0x427   : > { %7959 = vmatmul.mubr.bf16.gmra.mrb[252].mxu0 %v10339_v31  ;;  %v5778_v44 = vor.u32 %v5777_v4, %v5774_v49  ;;  %v5787_v3 = vrot.slane %v5785_v26, 4  ;;  %v8456_v10 = vsel %vm12923_vm5, %v8451_v0, %v8455_v6  ;;  %v8458_v24 = vshrl.u32 %v16310_v54, 16 }
 0x428   : > { %v5793_v5 = vrot.slane %v5791_v16, 5  ;;  %v8461_v33 = vshll.u32 %v16310_v54, 16  ;;  %v10532_v39 = vcombine.low %v8446_v53, %v8456_v10  ;;  %v8467_v20 = vshll.u32 %v16312_v18, 16 }
 0x429   : > { %v5779_v7 = vrot.slane %v5778_v44, 4  ;;  %v5788_v17 = vor.u32 %v5787_v3, %v5783_v14  ;;  %v8460_v23 = vrot.slane %v8458_v24, 4  ;;  %v8471_v42 = vshrl.u32 %v16312_v18, 16 }
 0x42a   : > { %v8463_v57 = vrot.slane %v8461_v33, 5  ;;  %v8477_v52 = vshll.u32 %v16318_v59, 16  ;;  %9298 = vmatprep.mubr.bf16.mxu1 %v10532_v39  ;;  %v8469_v36 = vrot.slane %v8467_v20, 5  ;;  %v5796_v19 = vshrl.u32 %v16324_v35, 16 }
 0x42b   : > { %v5784_v12 = vsel %vm12923_vm5, %v5779_v7, %v5783_v14  ;;  %v5789_v46 = vrot.slane %v5788_v17, 4  ;;  %v10340_v43 = vcombine.low %v16293_v48, %v16306_v30  ;;  %v8473_v56 = vrot.slane %v8471_v42, 4  ;;  %v16341_v48 = vld [vmem:[#allocation3 + $0x90] sm:$0xf]  ;;  %v16357_v14 = vld [vmem:[#allocation3 + $0x78] sm:$0xf] }
 0x42c   : > { %9299 = vmatmul.mubr.bf16.gmra.mrb[160].mxu1 %v10516_v27  ;;  %v8464_v37 = vor.u32 %v8463_v57, %v8460_v23  ;;  %v5799_v50 = vshll.u32 %v16324_v35, 16  ;;  %v5798_v15 = vrot.slane %v5796_v19, 4  ;;  %v5805_v11 = vshll.u32 %v16337_v62, 16  ;;  %v16368_v23 = vld [vmem:[#allocation3 + $0x7c] sm:$0xf] }
 0x42d   : > { %v5794_v21 = vsel %vm12923_vm5, %v5789_v46, %v5793_v5  ;;  %v5809_v13 = vshrl.u32 %v16337_v62, 16  ;;  %v8474_v55 = vor.u32 %v8473_v56, %v8469_v36  ;;  %v8479_v61 = vrot.slane %v8477_v52, 5  ;;  %v12393_v56 = vld [vmem:[#allocation3 + $0x80] sm:$0x1] }
 0x42e   : > { %v10356_v9 = vcombine.low %v5784_v12, %v5794_v21  ;;  %v8465_v47 = vrot.slane %v8464_v37, 4  ;;  %v5801_v40 = vrot.slane %v5799_v50, 5  ;;  %v5807_v34 = vrot.slane %v5805_v11, 5  ;;  %v16374_v50 = vld [vmem:[#allocation3 + $0xa0] sm:$0xf] }
 0x42f   : > { %v5811_v58 = vrot.slane %v5809_v13, 4  ;;  %v5815_v38 = vshll.u32 %v12391_v25, 16  ;;  %v8475_v63 = vrot.slane %v8474_v55, 4  ;;  %v10517_v2 = vcombine.low %v16310_v54, %v16312_v18  ;;  %v16380_v13 = vld [vmem:[#allocation3 + $0xa4] sm:$0x1] }
 0x430   : > { %7966 = vmatprep.mubr.bf16.mxu0 %v10356_v9  ;;  %v8470_v60 = vsel %vm12923_vm5, %v8465_v47, %v8469_v36  ;;  %v5802_v8 = vor.u32 %v5801_v40, %v5798_v15  ;;  %v8482_v51 = vshrl.u32 %v16341_v48, 16  ;;  %v8485_v49 = vshll.u32 %v16341_v48, 16  ;;  %v16372_v36 = vld [vmem:[#allocation3 + $0x9c] sm:$0xf] }
 0x431   : > { %7967 = vmatmul.mubr.bf16.gmra.mrb[0].mxu0 %v10340_v43  ;;  %v5812_v31 = vor.u32 %v5811_v58, %v5807_v34  ;;  %v5817_v30 = vrot.slane %v5815_v38, 5  ;;  %v8480_v4 = vsel %vm12923_vm5, %v8475_v63, %v8479_v61  ;;  %v8491_v0 = vshll.u32 %v16343_v28, 16  ;;  %v16386_v61 = vld [vmem:[#allocation3 + $0x84] sm:$0xf] }
 0x432   : > { %v5803_v26 = vrot.slane %v5802_v8, 4  ;;  %v8495_v6 = vshrl.u32 %v16343_v28, 16  ;;  %v10533_v54 = vcombine.low %v8470_v60, %v8480_v4  ;;  %v8484_v16 = vrot.slane %v8482_v51, 4 }
 0x433   : > { %v5813_v22 = vrot.slane %v5812_v31, 4  ;;  %v8487_v53 = vrot.slane %v8485_v49, 5  ;;  %v8493_v3 = vrot.slane %v8491_v0, 5  ;;  %v8501_v10 = vshll.u32 %v16349_v45, 16 }
 0x434   : > { %v5808_v44 = vsel %vm12923_vm5, %v5803_v26, %v5807_v34  ;;  %v8497_v27 = vrot.slane %v8495_v6, 4  ;;  %9306 = vmatprep.mubr.bf16.mxu1 %v10533_v54  ;;  %v5820_v33 = vshrl.u32 %v16357_v14, 16  ;;  %v5823_v39 = vshll.u32 %v16357_v14, 16 }
 0x435   : > { %v5818_v5 = vsel %vm12923_vm5, %v5813_v22, %v5817_v30  ;;  %v8488_v24 = vor.u32 %v8487_v53, %v8484_v16  ;;  %v10341_v7 = vcombine.low %v16324_v35, %v16337_v62  ;;  %9307 = vmatmul.mubr.bf16.gmra.mrb[164].mxu1 %v10517_v2  ;;  %v5829_v57 = vshll.u32 %v16368_v23, 16  ;;  %v16399_v16 = vld [vmem:[#allocation3 + $0x88] sm:$0xf] }
 0x436   : > { %v10357_v17 = vcombine.low %v5808_v44, %v5818_v5  ;;  %v8498_v20 = vor.u32 %v8497_v27, %v8493_v3  ;;  %v5822_v52 = vrot.slane %v5820_v33, 4  ;;  %v5825_v12 = vrot.slane %v5823_v39, 5  ;;  %v16403_v27 = vld [vmem:[#allocation3 + $0xa8] sm:$0xf]  ;;  %v16405_v39 = vld [vmem:[#allocation3 + $0xac] sm:$0xf] }
 0x437   : > { %v8489_v42 = vrot.slane %v8488_v24, 4  ;;  %v5833_v46 = vshrl.u32 %v16368_v23, 16  ;;  %v8503_v43 = vrot.slane %v8501_v10, 5  ;;  %v5831_v37 = vrot.slane %v5829_v57, 5 }
 0x438   : > { %7974 = vmatprep.mubr.bf16.mxu0 %v10357_v17  ;;  %v8499_v19 = vrot.slane %v8498_v20, 4  ;;  %v5839_v35 = vshll.u32 %v12393_v56, 16  ;;  %v5826_v15 = vor.u32 %v5825_v12, %v5822_v52  ;;  %v10518_v11 = vcombine.low %v16341_v48, %v16343_v28 }
 0x439   : > { %v8494_v21 = vsel %vm12923_vm5, %v8489_v42, %v8493_v3  ;;  %7975 = vmatmul.mubr.bf16.gmra.mrb[4].mxu0 %v10341_v7  ;;  %v5835_v62 = vrot.slane %v5833_v46, 4  ;;  %v8506_v55 = vshrl.u32 %v16372_v36, 16  ;;  %v8509_v40 = vshll.u32 %v16372_v36, 16 }
 0x43a   : > { %v8504_v9 = vsel %vm12923_vm5, %v8499_v19, %v8503_v43  ;;  %v5841_v47 = vrot.slane %v5839_v35, 5  ;;  %v5827_v58 = vrot.slane %v5826_v15, 4  ;;  %v8515_v38 = vshll.u32 %v16374_v50, 16  ;;  %v16413_v35 = vld [vmem:[#allocation3 + $0xb0] sm:$0x1] }
 0x43b   : > { %v10534_v34 = vcombine.low %v8494_v21, %v8504_v9  ;;  %v5836_v25 = vor.u32 %v5835_v62, %v5831_v37  ;;  %v8508_v60 = vrot.slane %v8506_v55, 4  ;;  %v8511_v63 = vrot.slane %v8509_v40, 5 }
 0x43c   : > { %v8519_v48 = vshrl.u32 %v16374_v50, 16  ;;  %v8525_v8 = vshll.u32 %v16380_v13, 16  ;;  %v5832_v2 = vsel %vm12923_vm5, %v5827_v58, %v5831_v37  ;;  %v8517_v30 = vrot.slane %v8515_v38, 5 }
 0x43d   : > { %9314 = vmatprep.mubr.bf16.mxu1 %v10534_v34  ;;  %v5837_v31 = vrot.slane %v5836_v25, 4  ;;  %v5844_v51 = vshrl.u32 %v16386_v61, 16  ;;  %v10342_v49 = vcombine.low %v16357_v14, %v16368_v23  ;;  %v8512_v4 = vor.u32 %v8511_v63, %v8508_v60  ;;  %v12395_v23 = vld [vmem:[#allocation3 + $0x8c] sm:$0x1] }
 0x43e   : > { %9315 = vmatmul.mubr.bf16.gmra.mrb[168].mxu1 %v10518_v11  ;;  %v8521_v26 = vrot.slane %v8519_v48, 4  ;;  %v5847_v0 = vshll.u32 %v16386_v61, 16  ;;  %v11012_v6 = vpop.f32.mrb[160].mxu0  ;;  %v5853_v53 = vshll.u32 %v16399_v16, 16  ;;  %v5857_v44 = vshrl.u32 %v16399_v16, 16 }
 0x43f   : > { %v5842_v54 = vsel %vm12923_vm5, %v5837_v31, %v5841_v47  ;;  %v5846_v22 = vrot.slane %v5844_v51, 4  ;;  %v11013_v3 = vpop.f32.mrb[161].mxu0  ;;  %v8513_v10 = vrot.slane %v8512_v4, 4  ;;  %v8527_v7 = vrot.slane %v8525_v8, 5  ;;  %v16420_v47 = vld [vmem:[#allocation3 + $0x90] sm:$0xf] }
 0x440   : > { %v10358_v14 = vcombine.low %v5832_v2, %v5842_v54  ;;  %v8522_v5 = vor.u32 %v8521_v26, %v8517_v30  ;;  %v5849_v24 = vrot.slane %v5847_v0, 5  ;;  %v11015_v33 = vpop.f32.mrb[162].mxu0  ;;  %v5855_v17 = vrot.slane %v5853_v53, 5 }
 0x441   : > { %v5859_v20 = vrot.slane %v5857_v44, 4  ;;  %v5863_v57 = vshll.u32 %v12395_v23, 16  ;;  %v11016_v42 = vpop.f32.mrb[163].mxu0  ;;  %v8518_v52 = vsel %vm12923_vm5, %v8513_v10, %v8517_v30  ;;  %v16409_v19 = vadd.f32 %v11013_v3, %v11012_v6  ;;  %v16442_v23 = vld [vmem:[#allocation3 + $0xb8] sm:$0xf] }
 0x442   : > { %7982 = vmatprep.mubr.bf16.mxu0 %v10358_v14  ;;  %v8523_v12 = vrot.slane %v8522_v5, 4  ;;  %v5850_v46 = vor.u32 %v5849_v24, %v5846_v22  ;;  %v10519_v56 = vcombine.low %v16372_v36, %v16374_v50  ;;  %v8530_v21 = vshrl.u32 %v16403_v27, 16  ;;  %v16434_v22 = vld [vmem:[#allocation3 + $0x94] sm:$0xf] }
 0x443   : > { %7983 = vmatmul.mubr.bf16.gmra.mrb[8].mxu0 %v10342_v49  ;;  %v5860_v43 = vor.u32 %v5859_v20, %v5855_v17  ;;  %v5865_v37 = vrot.slane %v5863_v57, 5  ;;  %v8533_v11 = vshll.u32 %v16403_v27, 16  ;;  %v8539_v9 = vshll.u32 %v16405_v39, 16  ;;  %v16438_v24 = vld [vmem:[#allocation3 + $0xb4] sm:$0xf] }
 0x444   : > { %v8528_v15 = vsel %vm12923_vm5, %v8523_v12, %v8527_v7  ;;  %v5851_v62 = vrot.slane %v5850_v46, 4  ;;  %v8532_v34 = vrot.slane %v8530_v21, 4  ;;  %v8543_v58 = vshrl.u32 %v16405_v39, 16  ;;  %v16448_v46 = vld [vmem:[#allocation3 + $0xbc] sm:$0x1] }
 0x445   : > { %v10535_v55 = vcombine.low %v8518_v52, %v8528_v15  ;;  %v5861_v40 = vrot.slane %v5860_v43, 4  ;;  %v8535_v25 = vrot.slane %v8533_v11, 5  ;;  %v8541_v38 = vrot.slane %v8539_v9, 5 }
 0x446   : > { %v5856_v36 = vsel %vm12923_vm5, %v5851_v62, %v5855_v17  ;;  %v8549_v60 = vshll.u32 %v16413_v35, 16  ;;  %v11018_v63 = vpop.f32.mrb[164].mxu0  ;;  %v8545_v8 = vrot.slane %v8543_v58, 4  ;;  %v16428_v2 = vadd.f32 %v11016_v42, %v11015_v33 }
 0x447   : > { %9322 = vmatprep.mubr.bf16.mxu1 %v10535_v55  ;;  %v5866_v48 = vsel %vm12923_vm5, %v5861_v40, %v5865_v37  ;;  %v5868_v31 = vshrl.u32 %v16420_v47, 16  ;;  %v11019_v30 = vpop.f32.mrb[165].mxu0  ;;  %v10343_v51 = vcombine.low %v16386_v61, %v16399_v16  ;;  %v8536_v4 = vor.u32 %v8535_v25, %v8532_v34  ;;  %v12397_v61 = vld [vmem:[#allocation3 + $0x98] sm:$0x1]  ;;  %v16456_v55 = vld [vmem:[#allocation3 + $0x9c] sm:$0xf] }
 0x448   : > { %v10359_v49 = vcombine.low %v5856_v36, %v5866_v48  ;;  %9323 = vmatmul.mubr.bf16.gmra.mrb[172].mxu1 %v10519_v56  ;;  %v5871_v26 = vshll.u32 %v16420_v47, 16  ;;  %v11021_v0 = vpop.f32.mrb[166].mxu0  ;;  %v8546_v6 = vor.u32 %v8545_v8, %v8541_v38  ;;  %v5877_v53 = vshll.u32 %v16434_v22, 16 }
 0x449   : > { %v5870_v54 = vrot.slane %v5868_v31, 4  ;;  %v5881_v44 = vshrl.u32 %v16434_v22, 16  ;;  %v11022_v3 = vpop.f32.mrb[167].mxu0  ;;  %v8537_v14 = vrot.slane %v8536_v4, 4  ;;  %v8551_v10 = vrot.slane %v8549_v60, 5 }
 0x44a   : > { %7990 = vmatprep.mubr.bf16.mxu0 %v10359_v49  ;;  %v5873_v5 = vrot.slane %v5871_v26, 5  ;;  %v5887_v16 = vshll.u32 %v12397_v61, 16  ;;  %v8547_v33 = vrot.slane %v8546_v6, 4  ;;  %v5879_v7 = vrot.slane %v5877_v53, 5  ;;  %v16469_v53 = vld [vmem:[#allocation3 + $0xa0] sm:$0xf] }
 0x44b   : > { %7991 = vmatmul.mubr.bf16.gmra.mrb[12].mxu0 %v10343_v51  ;;  %v5883_v17 = vrot.slane %v5881_v44, 4  ;;  %v16440_v20 = vadd.f32 %v11019_v30, %v11018_v63  ;;  %v8542_v57 = vsel %vm12923_vm5, %v8537_v14, %v8541_v38  ;;  %v10520_v12 = vcombine.low %v16403_v27, %v16405_v39 }
 0x44c   : > { %v5874_v42 = vor.u32 %v5873_v5, %v5870_v54  ;;  %v5889_v52 = vrot.slane %v5887_v16, 5  ;;  %v8552_v43 = vsel %vm12923_vm5, %v8547_v33, %v8551_v10  ;;  %v8554_v56 = vshrl.u32 %v16438_v24, 16  ;;  %v12399_v10 = vld [vmem:[#allocation3 + $0xa4] sm:$0x1] }
 0x44d   : > { %v5884_v37 = vor.u32 %v5883_v17, %v5879_v7  ;;  %v8557_v21 = vshll.u32 %v16438_v24, 16  ;;  %v10536_v15 = vcombine.low %v8542_v57, %v8552_v43  ;;  %v8563_v11 = vshll.u32 %v16442_v23, 16 }
 0x44e   : > { %v5875_v62 = vrot.slane %v5874_v42, 4  ;;  %v8567_v9 = vshrl.u32 %v16442_v23, 16  ;;  %v11024_v40 = vpop.f32.mrb[168].mxu0  ;;  %v8556_v34 = vrot.slane %v8554_v56, 4  ;;  %v8573_v36 = vshll.u32 %v16448_v46, 16 }
 0x44f   : > { %v5885_v27 = vrot.slane %v5884_v37, 4  ;;  %v8559_v58 = vrot.slane %v8557_v21, 5  ;;  %v11025_v25 = vpop.f32.mrb[169].mxu0  ;;  %9330 = vmatprep.mubr.bf16.mxu1 %v10536_v15  ;;  %v8565_v60 = vrot.slane %v8563_v11, 5  ;;  %v16461_v48 = vadd.f32 %v11022_v3, %v11021_v0  ;;  %v16485_v56 = vld [vmem:[#allocation3 + $0xc8] sm:$0x1] }
 0x450   : > { %v5880_v38 = vsel %vm12923_vm5, %v5875_v62, %v5879_v7  ;;  %v8569_v63 = vrot.slane %v8567_v9, 4  ;;  %v11027_v8 = vpop.f32.mrb[170].mxu0  ;;  %v10344_v30 = vcombine.low %v16420_v47, %v16434_v22  ;;  %9331 = vmatmul.mubr.bf16.gmra.mrb[176].mxu1 %v10520_v12  ;;  %v5892_v49 = vshrl.u32 %v16456_v55, 16  ;;  %v16473_v47 = vld [vmem:[#allocation3 + $0xc0] sm:$0xf] }
 0x451   : > { %v5890_v31 = vsel %vm12923_vm5, %v5885_v27, %v5889_v52  ;;  %v8560_v51 = vor.u32 %v8559_v58, %v8556_v34  ;;  %v11028_v4 = vpop.f32.mrb[171].mxu0  ;;  %v5895_v54 = vshll.u32 %v16456_v55, 16  ;;  %v5901_v0 = vshll.u32 %v16469_v53, 16  ;;  %v16475_v7 = vld [vmem:[#allocation3 + $0xc4] sm:$0xf] }
 0x452   : > { %v10360_v26 = vcombine.low %v5880_v38, %v5890_v31  ;;  %v8570_v6 = vor.u32 %v8569_v63, %v8565_v60  ;;  %v5894_v3 = vrot.slane %v5892_v49, 4  ;;  %v5905_v14 = vshrl.u32 %v16469_v53, 16  ;;  %v16490_v34 = vld [vmem:[#allocation3 + $0xa8] sm:$0xf] }
 0x453   : > { %v8561_v44 = vrot.slane %v8560_v51, 4  ;;  %v5911_v5 = vshll.u32 %v12399_v10, 16  ;;  %v8575_v61 = vrot.slane %v8573_v36, 5  ;;  %v5897_v16 = vrot.slane %v5895_v54, 5 }
 0x454   : > { %7998 = vmatprep.mubr.bf16.mxu0 %v10360_v26  ;;  %v8571_v22 = vrot.slane %v8570_v6, 4  ;;  %v5903_v33 = vrot.slane %v5901_v0, 5  ;;  %v5907_v57 = vrot.slane %v5905_v14, 4  ;;  %v10345_v42 = vcombine.low %v16456_v55, %v16469_v53 }
 0x455   : > { %v8566_v17 = vsel %vm12923_vm5, %v8561_v44, %v8565_v60  ;;  %7999 = vmatmul.mubr.bf16.gmra.mrb[16].mxu0 %v10344_v30  ;;  %v16481_v52 = vadd.f32 %v11025_v25, %v11024_v40  ;;  %v5898_v43 = vor.u32 %v5897_v16, %v5894_v3  ;;  %v5913_v37 = vrot.slane %v5911_v5, 5  ;;  %v16504_v44 = vld [vmem:[#allocation3 + $0xac] sm:$0xf]  ;;  %v12401_v16 = vld [vmem:[#allocation3 + $0xb0] sm:$0x1] }
 0x456   : > { %v8576_v12 = vsel %vm12923_vm5, %v8571_v22, %v8575_v61  ;;  %v8578_v21 = vshrl.u32 %v16473_v47, 16  ;;  %v11030_v15 = vpop.f32.mrb[172].mxu0  ;;  %v5908_v11 = vor.u32 %v5907_v57, %v5903_v33  ;;  %v8581_v9 = vshll.u32 %v16473_v47, 16 }
 0x457   : > { %v10537_v62 = vcombine.low %v8566_v17, %v8576_v12  ;;  %v8587_v27 = vshll.u32 %v16475_v7, 16  ;;  %v11031_v55 = vpop.f32.mrb[173].mxu0  ;;  %v5899_v40 = vrot.slane %v5898_v43, 4  ;;  %v10521_v58 = vcombine.low %v16438_v24, %v16442_v23  ;;  %v16508_v17 = vld [vmem:[#allocation3 + $0xcc] sm:$0xf] }
 0x458   : > { %v8580_v36 = vrot.slane %v8578_v21, 4  ;;  %v8591_v25 = vshrl.u32 %v16475_v7, 16  ;;  %v11033_v38 = vpop.f32.mrb[174].mxu0  ;;  %v5909_v60 = vrot.slane %v5908_v11, 4  ;;  %v8583_v63 = vrot.slane %v8581_v9, 5 }
 0x459   : > { %9338 = vmatprep.mubr.bf16.mxu1 %v10537_v62  ;;  %v8589_v31 = vrot.slane %v8587_v27, 5  ;;  %v16495_v30 = vadd.f32 %v11028_v4, %v11027_v8  ;;  %v11034_v51 = vpop.f32.mrb[175].mxu0  ;;  %v5904_v49 = vsel %vm12923_vm5, %v5899_v40, %v5903_v33  ;;  %v8597_v6 = vshll.u32 %v16485_v56, 16  ;;  %v16512_v21 = vld [vmem:[#allocation3 + $0xd0] sm:$0xf] }
 0x45a   : > { %9339 = vmatmul.mubr.bf16.gmra.mrb[180].mxu1 %v10521_v58  ;;  %v8593_v26 = vrot.slane %v8591_v25, 4  ;;  %v5916_v24 = vshrl.u32 %v16490_v34, 16  ;;  %v5914_v54 = vsel %vm12923_vm5, %v5909_v60, %v5913_v37  ;;  %v8584_v53 = vor.u32 %v8583_v63, %v8580_v36  ;;  %v16518_v58 = vld [vmem:[#allocation3 + $0xd4] sm:$0x1] }
 0x45b   : > { %v5919_v0 = vshll.u32 %v16490_v34, 16  ;;  %v5925_v8 = vshll.u32 %v16504_v44, 16  ;;  %v10361_v4 = vcombine.low %v5904_v49, %v5914_v54  ;;  %v5929_v10 = vshrl.u32 %v16504_v44, 16 }
 0x45c   : > { %v8594_v3 = vor.u32 %v8593_v26, %v8589_v31  ;;  %v5918_v14 = vrot.slane %v5916_v24, 4  ;;  %v8585_v5 = vrot.slane %v8584_v53, 4  ;;  %v5935_v33 = vshll.u32 %v12401_v16, 16 }
 0x45d   : > { %v5921_v22 = vrot.slane %v5919_v0, 5  ;;  %v5927_v61 = vrot.slane %v5925_v8, 5  ;;  %8006 = vmatprep.mubr.bf16.mxu0 %v10361_v4  ;;  %v8599_v12 = vrot.slane %v8597_v6, 5  ;;  %v5931_v43 = vrot.slane %v5929_v10, 4  ;;  %v16526_v6 = vld [vmem:[#allocation3 + $0xb4] sm:$0xf] }
 0x45e   : > { %v8595_v57 = vrot.slane %v8594_v3, 4  ;;  %v16510_v37 = vadd.f32 %v11031_v55, %v11030_v15  ;;  %v11036_v62 = vpop.f32.mrb[176].mxu0  ;;  %v8590_v11 = vsel %vm12923_vm5, %v8585_v5, %v8589_v31  ;;  %8007 = vmatmul.mubr.bf16.gmra.mrb[20].mxu0 %v10345_v42  ;;  %v5937_v27 = vrot.slane %v5935_v33, 5 }
 0x45f   : > { %v5922_v9 = vor.u32 %v5921_v22, %v5918_v14  ;;  %v10522_v40 = vcombine.low %v16473_v47, %v16475_v7  ;;  %v11037_v36 = vpop.f32.mrb[177].mxu0  ;;  %v5932_v15 = vor.u32 %v5931_v43, %v5927_v61  ;;  %v8602_v55 = vshrl.u32 %v16508_v17, 16  ;;  %v16539_v43 = vld [vmem:[#allocation3 + $0xb8] sm:$0xf] }
 0x460   : > { %v8600_v25 = vsel %vm12923_vm5, %v8595_v57, %v8599_v12  ;;  %v8605_v60 = vshll.u32 %v16508_v17, 16  ;;  %v11039_v63 = vpop.f32.mrb[178].mxu0  ;;  %v8611_v42 = vshll.u32 %v16512_v21, 16  ;;  %v8615_v26 = vshrl.u32 %v16512_v21, 16 }
 0x461   : > { %v10538_v49 = vcombine.low %v8590_v11, %v8600_v25  ;;  %v5923_v31 = vrot.slane %v5922_v9, 4  ;;  %v11040_v47 = vpop.f32.mrb[179].mxu0  ;;  %v5933_v24 = vrot.slane %v5932_v15, 4  ;;  %v8604_v54 = vrot.slane %v8602_v55, 4 }
 0x462   : > { %v8607_v53 = vrot.slane %v8605_v60, 5  ;;  %v8621_v0 = vshll.u32 %v16518_v58, 16  ;;  %v8613_v4 = vrot.slane %v8611_v42, 5  ;;  %v8617_v3 = vrot.slane %v8615_v26, 4 }
 0x463   : > { %9346 = vmatprep.mubr.bf16.mxu1 %v10538_v49  ;;  %v5928_v8 = vsel %vm12923_vm5, %v5923_v31, %v5927_v61  ;;  %v16531_v14 = vadd.f32 %v11034_v51, %v11033_v38  ;;  %v5938_v10 = vsel %vm12923_vm5, %v5933_v24, %v5937_v27  ;;  %v10346_v5 = vcombine.low %v16490_v34, %v16504_v44  ;;  %v8625_v38 = vld [vmem:[#allocation3 + $0x18] sm:$0xe]  ;;  %v12403_v27 = vld [vmem:[#allocation3 + $0xbc] sm:$0x1]  ;;  %v12404_v24 = vld [vmem:[#allocation3 + $0x2c] sm:$0x1] }
 0x464   : > { %9347 = vmatmul.mubr.bf16.gmra.mrb[184].mxu1 %v10522_v40  ;;  %v8608_v22 = vor.u32 %v8607_v53, %v8604_v54  ;;  %v5940_v16 = vshrl.u32 %v16526_v6, 16  ;;  %v10362_v33 = vcombine.low %v5928_v8, %v5938_v10  ;;  %v8618_v57 = vor.u32 %v8617_v3, %v8613_v4 }
 0x465   : > { %v5943_v12 = vshll.u32 %v16526_v6, 16  ;;  %v5949_v61 = vshll.u32 %v16539_v43, 16  ;;  %v5953_v9 = vshrl.u32 %v16539_v43, 16  ;;  %v5959_v25 = vshll.u32 %v12403_v27, 16  ;;  %v12407_v27 = vld [vmem:[#allocation3 + $0x28] sm:$0xf] }
 0x466   : > { %v8609_v51 = vrot.slane %v8608_v22, 4  ;;  %v5942_v11 = vrot.slane %v5940_v16, 4  ;;  %v11042_v34 = vpop.f32.mrb[180].mxu0  ;;  %8014 = vmatprep.mubr.bf16.mxu0 %v10362_v33  ;;  %v8619_v44 = vrot.slane %v8618_v57, 4  ;;  %v8623_v40 = vrot.slane %v8621_v0, 5 }
 0x467   : > { %v5945_v15 = vrot.slane %v5943_v12, 5  ;;  %v5951_v55 = vrot.slane %v5949_v61, 5  ;;  %v11043_v60 = vpop.f32.mrb[181].mxu0  ;;  %8015 = vmatmul.mubr.bf16.gmra.mrb[24].mxu0 %v10346_v5  ;;  %v5955_v31 = vrot.slane %v5953_v9, 4  ;;  %v16545_v42 = vadd.f32 %v11037_v36, %v11036_v62  ;;  %v12405_v33 = vld [vmem:[#allocation3 + $0x1c] sm:$0xf] }
 0x468   : > { %v8614_v49 = vsel %vm12923_vm5, %v8609_v51, %v8613_v4  ;;  %v11045_v26 = vpop.f32.mrb[182].mxu0  ;;  %v8701_v54 = vrot.slane %v12404_v24, 5  ;;  %v8624_v53 = vsel %vm12923_vm5, %v8619_v44, %v8623_v40  ;;  %v10492_v3 = vrot.slane %v8625_v38, 9  ;;  %v8626_v12 = vld [vmem:[#allocation3 + $0x24] sm:$0xe] }
 0x469   : > { %v5946_v8 = vor.u32 %v5945_v15, %v5942_v11  ;;  %v11046_v10 = vpop.f32.mrb[183].mxu0  ;;  %v10539_v0 = vcombine.low %v8614_v49, %v8624_v53  ;;  %v5956_v22 = vor.u32 %v5955_v31, %v5951_v55  ;;  %v5961_v16 = vrot.slane %v5959_v25, 5  ;;  %v8627_v61 = vld [vmem:[#allocation3 + $0x30] sm:$0xe]  ;;  %v12406_v38 = vld [vmem:[#allocation3 + $0x20] sm:$0x1] }
 0x46a   : > { %v8691_v57 = vrot.slane %v12405_v33, 5  ;;  %v10523_v62 = vcombine.low %v16508_v17, %v16512_v21  ;;  %v16551_v36 = vadd.f32 %v11040_v47, %v11039_v63  ;;  %v16553_v5 = vadd.f32 %v11043_v60, %v11042_v34  ;;  %v12408_v63 = vld [vmem:[#allocation3 + $0x34] sm:$0xf] }
 0x46b   : > { %v5947_v4 = vrot.slane %v5946_v8, 4  ;;  %9354 = vmatprep.mubr.bf16.mxu1 %v10539_v0  ;;  %v5957_v51 = vrot.slane %v5956_v22, 4  ;;  %v8694_v9 = vrot.slane %v12406_v38, 5  ;;  %v8698_v44 = vrot.slane %v12407_v27, 5  ;;  %v8629_v27 = vld [vmem:[#allocation3 + $0x48] sm:$0xe] }
 0x46c   : > { %v8693_v11 = vrot.slane %v8691_v57, 4  ;;  %9355 = vmatmul.mubr.bf16.gmra.mrb[188].mxu1 %v10523_v62  ;;  %v8692_v40 = vsel %vm13521_vm8, %v10492_v3, %v8691_v57  ;;  %v10493_v17 = vrot.slane %v8626_v12, 9  ;;  %v8705_v47 = vrot.slane %v12408_v63, 5  ;;  %v12412_v63 = vld [vmem:[#allocation3 + $0x44] sm:$0x1] }
 0x46d   : > { %v5952_v25 = vsel %vm12923_vm5, %v5947_v4, %v5951_v55  ;;  %v5962_v34 = vsel %vm12923_vm5, %v5957_v51, %v5961_v16  ;;  %v8700_v60 = vrot.slane %v8698_v44, 4  ;;  %v10494_v49 = vrot.slane %v8627_v61, 9  ;;  %v12409_v55 = vld [vmem:[#allocation3 + $0x38] sm:$0x1]  ;;  %v12410_v4 = vld [vmem:[#allocation3 + $0x40] sm:$0xf] }
 0x46e   : > { %v8695_v15 = vsel %vm13521_vm8, %v8693_v11, %v8694_v9  ;;  %v11048_v31 = vpop.f32.mrb[184].mxu0  ;;  %v10363_v24 = vcombine.low %v5952_v25, %v5962_v34  ;;  %v8707_v8 = vrot.slane %v8705_v47, 4  ;;  %v8708_v0 = vrot.slane %v12409_v55, 5 }
 0x46f   : > { %v10540_v53 = vcombine.low %v8692_v40, %v8695_v15  ;;  %v11049_v22 = vpop.f32.mrb[185].mxu0  ;;  %v10347_v3 = vcombine.low %v16526_v6, %v16539_v43  ;;  %v8702_v33 = vsel %vm13521_vm8, %v8700_v60, %v8701_v54  ;;  %v16567_v41 = vadd.f32 %v11046_v10, %v11045_v26  ;;  %v12411_v43 = vld [vmem:[#allocation3 + $0x4c] sm:$0xf]  ;;  %v8628_v10 = vld [vmem:[#allocation3 + $0x3c] sm:$0xe] }
 0x470   : > { %v16569_v16 = vadd.f32 %v11049_v22, %v11048_v31  ;;  %v11051_v57 = vpop.f32.mrb[186].mxu0  ;;  %8022 = vmatprep.mubr.bf16.mxu0 %v10363_v24  ;;  %v8709_v12 = vsel %vm13521_vm8, %v8707_v8, %v8708_v0  ;;  %v8712_v62 = vrot.slane %v12410_v4, 5  ;;  %v8699_v6 = vsel %vm13521_vm8, %v10493_v17, %v8698_v44  ;;  %v12413_v44 = vld [vmem:[#allocation3 + $0x58] sm:$0xf]  ;;  %v12414_v31 = vld [vmem:[#allocation3 + $0x50] sm:$0x1] }
 0x471   : > { %11660 = vmatprep.mubr.bf16.mxu1 %v10540_v53  ;;  %v11052_v61 = vpop.f32.mrb[187].mxu0  ;;  %8023 = vmatmul.mubr.bf16.gmra.mrb[28].mxu0 %v10347_v3  ;;  %v8719_v51 = vrot.slane %v12411_v43, 5  ;;  %v10541_v54 = vcombine.low %v8699_v6, %v8702_v33  ;;  %v8706_v26 = vsel %vm13521_vm8, %v10494_v49, %v8705_v47  ;;  %v10495_v40 = vrot.slane %v8628_v10, 9  ;;  %v8630_v47 = vld [vmem:[#allocation3 + $0x54] sm:$0xe] }
 0x472   : > { %v16577_v11 = vadd.f32 %v11052_v61, %v11051_v57  ;;  %v10542_v38 = vcombine.low %v8706_v26, %v8709_v12  ;;  %v8714_v9 = vrot.slane %v8712_v62, 4  ;;  %v8715_v34 = vrot.slane %v12412_v63, 5  ;;  %v12415_v49 = vld [vmem:[#allocation3 + $0x64] sm:$0xf]  ;;  %v8631_v3 = vld [vmem:[#allocation3 + $0x60] sm:$0xe] }
 0x473   : > { %v8721_v25 = vrot.slane %v8719_v51, 4  ;;  %v8726_v17 = vrot.slane %v12413_v44, 5  ;;  %v10496_v60 = vrot.slane %v8629_v27, 9  ;;  %v8722_v24 = vrot.slane %v12414_v31, 5  ;;  %v16591_v63 = vld [vmem:[#allocation3 + $0x70] sm:$0xf] }
 0x474   : > { %11661 = vmatmul.mubr.bf16.vlgmr.msra.gmra.mrb[96].mxu1 %v10541_v54  ;;  %v8733_v8 = vrot.slane %v12415_v49, 5  ;;  %v8716_v55 = vsel %vm13521_vm8, %v8714_v9, %v8715_v34  ;;  %v8713_v12 = vsel %vm13521_vm8, %v10495_v40, %v8712_v62  ;;  %v10497_v4 = vrot.slane %v8630_v47, 9  ;;  %v12416_v9 = vld [vmem:[#allocation3 + $0x5c] sm:$0x1]  ;;  %v12418_v34 = vld [vmem:[#allocation3 + $0x68] sm:$0x1] }
 0x475   : > { %11664 = vmatprep.mubr.bf16.mxu1 %v10542_v38  ;;  %v8723_v33 = vsel %vm13521_vm8, %v8721_v25, %v8722_v24  ;;  %v8728_v61 = vrot.slane %v8726_v17, 4  ;;  %v10543_v43 = vcombine.low %v8713_v12, %v8716_v55  ;;  %v8720_v54 = vsel %vm13521_vm8, %v10496_v60, %v8719_v51  ;;  %v16594_v40 = vld [vmem:[#allocation3 + $0x6c] sm:$0xe]  ;;  %v16598_v51 = vld [vmem:[#allocation3 + $0x78] sm:$0xe] }
 0x476   : > { %v11054_v15 = vpop.f32.mrb[188].mxu0  ;;  %v10498_v26 = vrot.slane %v8631_v3, 9  ;;  %v8735_v10 = vrot.slane %v8733_v8, 4  ;;  %v10544_v38 = vcombine.low %v8720_v54, %v8723_v33  ;;  %v8729_v27 = vrot.slane %v12416_v9, 5  ;;  %v8637_v31 = vld [vmem:[#allocation3 + $0xa8] sm:$0xe] }
 0x477   : > { %v11055_v53 = vpop.f32.mrb[189].mxu0  ;;  %v8740_v25 = vrot.slane %v16591_v63, 5  ;;  %v8736_v62 = vrot.slane %v12418_v34, 5  ;;  %v8747_v60 = vrot.slane %v16281_v1, 5  ;;  %v8727_v24 = vsel %vm13521_vm8, %v10497_v4, %v8726_v17  ;;  %v12419_v17 = vld [vmem:[#allocation3 + $0x74] sm:$0x1] }
 0x478   : > { %v16581_v0 = vadd.f32 %v11055_v53, %v11054_v15  ;;  %v11057_v22 = vpop.f32.mrb[190].mxu0  ;;  %v8730_v15 = vsel %vm13521_vm8, %v8728_v61, %v8729_v27  ;;  %v8734_v53 = vsel %vm13521_vm8, %v10498_v26, %v8733_v8  ;;  %v8775_v1 = vrot.slane %v16405_v39, 5  ;;  %v8639_v54 = vld [vmem:[#allocation3 + $0xc0] sm:$0xe] }
 0x479   : > { %v11058_v57 = vpop.f32.mrb[191].mxu0  ;;  %v8737_v47 = vsel %vm13521_vm8, %v8735_v10, %v8736_v62  ;;  %v8742_v3 = vrot.slane %v8740_v25, 4  ;;  %v10545_v12 = vcombine.low %v8727_v24, %v8730_v15  ;;  %v8743_v4 = vrot.slane %v12419_v17, 5 }
 0x47a   : > { %v16587_v6 = vadd.f32 %v11058_v57, %v11057_v22  ;;  %v10499_v22 = vrot.slane %v16594_v40, 9  ;;  %v8638_v57 = vld [vmem:[#allocation3 + $0xb4] sm:$0xe]  ;;  %v10500_v8 = vrot.slane %v16598_v51, 9  ;;  %v10546_v26 = vcombine.low %v8734_v53, %v8737_v47 }
 0x47b   : > { %v8749_v10 = vrot.slane %v8747_v60, 4  ;;  %v8777_v9 = vrot.slane %v8775_v1, 4  ;;  %v8750_v27 = vrot.slane %v16286_v32, 5  ;;  %v8778_v34 = vrot.slane %v16413_v35, 5 }
 0x47c   : > { %11665 = vmatmul.mubr.bf16.gmra.mrb[100].mxu1 %v10543_v43  ;;  %v10504_v43 = vrot.slane %v8637_v31, 9  ;;  %v10505_v62 = vrot.slane %v8638_v57, 9  ;;  %v8782_v39 = vrot.slane %v16442_v23, 5  ;;  %v8744_v40 = vsel %vm13521_vm8, %v8742_v3, %v8743_v4  ;;  %v8640_v31 = vld [vmem:[#allocation3 + $0xcc] sm:$0xe] }
 0x47d   : > { %11668 = vmatprep.mubr.bf16.mxu1 %v10544_v38  ;;  %v8754_v15 = vrot.slane %v16312_v18, 5  ;;  %v8789_v51 = vrot.slane %v16475_v7, 5  ;;  %v16629_v32 = vsel %vm13521_vm8, %v8777_v9, %v8778_v34  ;;  %v8785_v23 = vrot.slane %v16448_v46, 5 }
 0x47e   : > { %v11060_v44 = vpop.f32.mrb[192].mxu0  ;;  %v16625_v24 = vsel %vm13521_vm8, %v10504_v43, %v8775_v1  ;;  %v8784_v35 = vrot.slane %v8782_v39, 4  ;;  %v8751_v18 = vsel %vm13521_vm8, %v8749_v10, %v8750_v27  ;;  %v10507_v46 = vrot.slane %v8640_v31, 9  ;;  %v8635_v31 = vld [vmem:[#allocation3 + $0x90] sm:$0xe] }
 0x47f   : > { %v11061_v49 = vpop.f32.mrb[193].mxu0  ;;  %v10552_v7 = vcombine.low %v16625_v24, %v16629_v32  ;;  %v8791_v47 = vrot.slane %v8789_v51, 4  ;;  %v8796_v57 = vrot.slane %v16512_v21, 5  ;;  %v8761_v43 = vrot.slane %v16343_v28, 5 }
 0x480   : > { %v16607_v55 = vadd.f32 %v11061_v49, %v11060_v44  ;;  %v11063_v33 = vpop.f32.mrb[194].mxu0  ;;  %v10506_v44 = vrot.slane %v8639_v54, 9  ;;  %v8792_v49 = vrot.slane %v16485_v56, 5  ;;  %v16643_v1 = vsel %vm13521_vm8, %v8784_v35, %v8785_v23 }
 0x481   : > { %v11064_v61 = vpop.f32.mrb[195].mxu0  ;;  %v8798_v10 = vrot.slane %v8796_v57, 4  ;;  %v8799_v9 = vrot.slane %v16518_v58, 5  ;;  %v8741_v21 = vsel %vm13521_vm8, %v10499_v22, %v8740_v25  ;;  %v8797_v28 = vsel %vm13521_vm8, %v10507_v46, %v8796_v57  ;;  %v8636_v57 = vld [vmem:[#allocation3 + $0x9c] sm:$0xe] }
 0x482   : > { %v16614_v38 = vadd.f32 %v11064_v61, %v11063_v33  ;;  %v16639_v33 = vsel %vm13521_vm8, %v10505_v62, %v8782_v39  ;;  %v8790_v56 = vsel %vm13521_vm8, %v10506_v44, %v8789_v51  ;;  %v8793_v61 = vsel %vm13521_vm8, %v8791_v47, %v8792_v49  ;;  %v8634_v39 = vld [vmem:[#allocation3 + $0x84] sm:$0xe] }
 0x483   : > { %v10553_v4 = vcombine.low %v16639_v33, %v16643_v1  ;;  %v10547_v34 = vcombine.low %v8741_v21, %v8744_v40  ;;  %v8748_v62 = vsel %vm13521_vm8, %v10500_v8, %v8747_v60  ;;  %v8800_v44 = vsel %vm13521_vm8, %v8798_v10, %v8799_v9 }
 0x484   : > { %11669 = vmatmul.mubr.bf16.gmra.mrb[104].mxu1 %v10545_v12  ;;  %v10548_v51 = vcombine.low %v8748_v62, %v8751_v18  ;;  %v8756_v58 = vrot.slane %v8754_v15, 4  ;;  %v10555_v63 = vcombine.low %v8797_v28, %v8800_v44  ;;  %v8763_v35 = vrot.slane %v8761_v43, 4 }
 0x485   : > { %11672 = vmatprep.mubr.bf16.mxu1 %v10546_v26  ;;  %v10554_v26 = vcombine.low %v8790_v56, %v8793_v61  ;;  %v10501_v25 = vrot.slane %v8634_v39, 9  ;;  %v8757_v22 = vrot.slane %v16318_v59, 5  ;;  %v10502_v23 = vrot.slane %v8635_v31, 9 }
 0x486   : > { %v11066_v53 = vpop.f32.mrb[196].mxu0  ;;  %v8764_v60 = vrot.slane %v16349_v45, 5  ;;  %v8768_v18 = vrot.slane %v16374_v50, 5  ;;  %v10503_v50 = vrot.slane %v8636_v57, 9  ;;  %v8771_v61 = vrot.slane %v16380_v13, 5 }
 0x487   : > { %v11067_v3 = vpop.f32.mrb[197].mxu0  ;;  %v8755_v59 = vsel %vm13521_vm8, %v10501_v25, %v8754_v15  ;;  %v8762_v45 = vsel %vm13521_vm8, %v10502_v23, %v8761_v43 }
 0x488   : > { %v16646_v12 = vadd.f32 %v11067_v3, %v11066_v53  ;;  %v11069_v17 = vpop.f32.mrb[198].mxu0  ;;  %v8758_v53 = vsel %vm13521_vm8, %v8756_v58, %v8757_v22  ;;  %v8765_v3 = vsel %vm13521_vm8, %v8763_v35, %v8764_v60  ;;  %v8770_v56 = vrot.slane %v8768_v18, 4 }
 0x489   : > { %v11070_v54 = vpop.f32.mrb[199].mxu0  ;;  %v10549_v46 = vcombine.low %v8755_v59, %v8758_v53  ;;  %v8769_v43 = vsel %vm13521_vm8, %v10503_v50, %v8768_v18 }
 0x48a   : > { %v16660_v27 = vadd.f32 %v11070_v54, %v11069_v17  ;;  %v10550_v17 = vcombine.low %v8762_v45, %v8765_v3  ;;  %v8772_v9 = vsel %vm13521_vm8, %v8770_v56, %v8771_v61 }
 0x48b   : > { %v10551_v39 = vcombine.low %v8769_v43, %v8772_v9 }
 0x48c   : > { %11673 = vmatmul.mubr.bf16.gmra.mrb[108].mxu1 %v10547_v34 }
 0x48d   : > { %11676 = vmatprep.mubr.bf16.mxu1 %v10548_v51 }
 0x48e   : > { %v11072_v40 = vpop.f32.mrb[200].mxu0 }
 0x48f   : > { %v11073_v8 = vpop.f32.mrb[201].mxu0 }
 0x490   : > { %v16672_v47 = vadd.f32 %v11073_v8, %v11072_v40  ;;  %v11075_v49 = vpop.f32.mrb[202].mxu0 }
 0x491   : > { %v11076_v33 = vpop.f32.mrb[203].mxu0 }
 0x492   : > { %v16679_v1 = vadd.f32 %v11076_v33, %v11075_v49 }
 0x494   : > { %11677 = vmatmul.mubr.bf16.gmra.mrb[112].mxu1 %v10549_v46 }
 0x495   : > { %11680 = vmatprep.mubr.bf16.mxu1 %v10550_v17 }
 0x496   : > { %v11078_v54 = vpop.f32.mrb[204].mxu0 }
 0x497   : > { %v11079_v10 = vpop.f32.mrb[205].mxu0 }
 0x498   : > { %v16686_v15 = vadd.f32 %v11079_v10, %v11078_v54  ;;  %v11081_v21 = vpop.f32.mrb[206].mxu0 }
 0x499   : > { %v11082_v34 = vpop.f32.mrb[207].mxu0 }
 0x49a   : > { %v16690_v62 = vadd.f32 %v11082_v34, %v11081_v21 }
 0x49c   : > { %11681 = vmatmul.mubr.bf16.gmra.mrb[116].mxu1 %v10551_v39 }
 0x49d   : > { %11684 = vmatprep.mubr.bf16.mxu1 %v10552_v7 }
 0x49e   : > { %v11084_v13 = vpop.f32.mrb[208].mxu0 }
 0x49f   : > { %v11085_v28 = vpop.f32.mrb[209].mxu0 }
 0x4a0   : > { %v16695_v44 = vadd.f32 %v11085_v28, %v11084_v13  ;;  %v11087_v51 = vpop.f32.mrb[210].mxu0 }
 0x4a1   : > { %v11088_v58 = vpop.f32.mrb[211].mxu0 }
 0x4a2   : > { %v16697_v31 = vadd.f32 %v11088_v58, %v11087_v51 }
 0x4a4   : > { %11685 = vmatmul.mubr.bf16.gmra.mrb[120].mxu1 %v10553_v4 }
 0x4a5   : > { %11688 = vmatprep.mubr.bf16.mxu1 %v10554_v26 }
 0x4a6   : > { %v11090_v29 = vpop.f32.mrb[212].mxu0 }
 0x4a7   : > { %v11091_v35 = vpop.f32.mrb[213].mxu0 }
 0x4a8   : > { %v16699_v25 = vadd.f32 %v11091_v35, %v11090_v29  ;;  %v11093_v22 = vpop.f32.mrb[214].mxu0 }
 0x4a9   : > { %v11094_v40 = vpop.f32.mrb[215].mxu0 }
 0x4aa   : > { %v16701_v23 = vadd.f32 %v11094_v40, %v11093_v22 }
 0x4ac   : > { %11689 = vmatmul.mubr.bf16.gmra.mrb[124].mxu1 %v10555_v63 }
 0x4ae   : > { %v11096_v24 = vpop.f32.mrb[216].mxu0 }
 0x4af   : > { %v11097_v32 = vpop.f32.mrb[217].mxu0 }
 0x4b0   : > { %v16703_v7 = vadd.f32 %v11097_v32, %v11096_v24  ;;  %v11099_v60 = vpop.f32.mrb[218].mxu0 }
 0x4b1   : > { %v11100_v8 = vpop.f32.mrb[219].mxu0 }
 0x4b2   : > { %v16705_v53 = vadd.f32 %v11100_v8, %v11099_v60 }
 0x4b6   : > { %v11102_v18 = vpop.f32.mrb[220].mxu0 }
 0x4b7   : > { %v11103_v4 = vpop.f32.mrb[221].mxu0  ;;  %v11284_v26 = vpop.f32.mrb[128].mxu1 }
 0x4b8   : > { %v16707_v49 = vadd.f32 %v11103_v4, %v11102_v18  ;;  %v11105_v3 = vpop.f32.mrb[222].mxu0  ;;  %v11285_v33 = vpop.f32.mrb[129].mxu1 }
 0x4b9   : > { %v11106_v59 = vpop.f32.mrb[223].mxu0  ;;  %v11286_v46 = vadd.f32 %v11285_v33, %v11284_v26  ;;  %v11287_v45 = vpop.f32.mrb[130].mxu1 }
 0x4ba   : > { %v16709_v57 = vadd.f32 %v11106_v59, %v11105_v3  ;;  %v11288_v63 = vpop.f32.mrb[131].mxu1 }
 0x4bb   : > { %v11289_v17 = vadd.f32 %v11288_v63, %v11287_v45 }
 0x4be   : > { %v11148_v56 = vpop.f32.mrb[224].mxu0 }
 0x4bf   : > { %v11149_v50 = vpop.f32.mrb[225].mxu0  ;;  %v11290_v61 = vpop.f32.mrb[132].mxu1 }
 0x4c0   : > { %v11150_v54 = vadd.f32 %v11149_v50, %v11148_v56  ;;  %v11151_v10 = vpop.f32.mrb[226].mxu0  ;;  %v11291_v9 = vpop.f32.mrb[133].mxu1 }
 0x4c1   : > { %v11152_v21 = vpop.f32.mrb[227].mxu0  ;;  %v11292_v34 = vadd.f32 %v11291_v9, %v11290_v61  ;;  %v11293_v43 = vpop.f32.mrb[134].mxu1 }
 0x4c2   : > { %v11823_v39 = vadd.f32 %v11150_v54, %v16409_v19  ;;  %v11153_v13 = vadd.f32 %v11152_v21, %v11151_v10  ;;  %v11294_v28 = vpop.f32.mrb[135].mxu1 }
 0x4c3   : > { %v11295_v51 = vadd.f32 %v11294_v28, %v11293_v43 }
 0x4c4   : > { %v11829_v58 = vadd.f32 %v11153_v13, %v16428_v2  ;;  %v16717_v45 = vadd.f32 %v11823_v39, %v11286_v46 }
 0x4c6   : > { %v11154_v29 = vpop.f32.mrb[228].mxu0  ;;  %v16721_v50 = vadd.f32 %v11829_v58, %v11289_v17 }
 0x4c7   : > { %v11155_v35 = vpop.f32.mrb[229].mxu0 }
 0x4c8   : > { %v11156_v22 = vadd.f32 %v11155_v35, %v11154_v29  ;;  %v11157_v40 = vpop.f32.mrb[230].mxu0 }
 0x4c9   : > { %v11158_v24 = vpop.f32.mrb[231].mxu0  ;;  %v11296_v32 = vpop.f32.mrb[136].mxu1 }
 0x4ca   : > { %v11820_v60 = vadd.f32 %v11156_v22, %v16440_v20  ;;  %v11159_v8 = vadd.f32 %v11158_v24, %v11157_v40  ;;  %v11297_v18 = vpop.f32.mrb[137].mxu1 }
 0x4cb   : > { %v11298_v4 = vadd.f32 %v11297_v18, %v11296_v32  ;;  %v11299_v26 = vpop.f32.mrb[138].mxu1 }
 0x4cc   : > { %v11826_v3 = vadd.f32 %v11159_v8, %v16461_v48  ;;  %v11300_v19 = vpop.f32.mrb[139].mxu1  ;;  %v16715_v33 = vadd.f32 %v11820_v60, %v11292_v34 }
 0x4cd   : > { %v11301_v59 = vadd.f32 %v11300_v19, %v11299_v26 }
 0x4ce   : > { %v11160_v2 = vpop.f32.mrb[232].mxu0  ;;  %v16719_v63 = vadd.f32 %v11826_v3, %v11295_v51 }
 0x4cf   : > { %v11161_v56 = vpop.f32.mrb[233].mxu0 }
 0x4d0   : > { %v11162_v61 = vadd.f32 %v11161_v56, %v11160_v2  ;;  %v11163_v20 = vpop.f32.mrb[234].mxu0 }
 0x4d1   : > { %v11164_v54 = vpop.f32.mrb[235].mxu0 }
 0x4d2   : > { %v11835_v10 = vadd.f32 %v11162_v61, %v16481_v52  ;;  %v11165_v9 = vadd.f32 %v11164_v54, %v11163_v20 }
 0x4d3   : > { %v11302_v21 = vpop.f32.mrb[140].mxu1 }
 0x4d4   : > { %v11841_v48 = vadd.f32 %v11165_v9, %v16495_v30  ;;  %v11303_v34 = vpop.f32.mrb[141].mxu1  ;;  %v16725_v46 = vadd.f32 %v11835_v10, %v11298_v4 }
 0x4d5   : > { %v11304_v43 = vadd.f32 %v11303_v34, %v11302_v21  ;;  %v11305_v13 = vpop.f32.mrb[142].mxu1 }
 0x4d6   : > { %v11306_v39 = vpop.f32.mrb[143].mxu1  ;;  %v11166_v28 = vpop.f32.mrb[236].mxu0  ;;  %v16727_v35 = vadd.f32 %v11841_v48, %v11301_v59 }
 0x4d7   : > { %v11307_v51 = vadd.f32 %v11306_v39, %v11305_v13  ;;  %v11167_v29 = vpop.f32.mrb[237].mxu0 }
 0x4d8   : > { %v11168_v17 = vadd.f32 %v11167_v29, %v11166_v28  ;;  %v11169_v58 = vpop.f32.mrb[238].mxu0 }
 0x4d9   : > { %v11170_v22 = vpop.f32.mrb[239].mxu0 }
 0x4da   : > { %v11832_v52 = vadd.f32 %v11168_v17, %v16510_v37  ;;  %v11171_v40 = vadd.f32 %v11170_v22, %v11169_v58 }
 0x4db   : > { %v11308_v24 = vpop.f32.mrb[144].mxu1 }
 0x4dc   : > { %v11838_v30 = vadd.f32 %v11171_v40, %v16531_v14  ;;  %v11309_v32 = vpop.f32.mrb[145].mxu1  ;;  %v16731_v60 = vadd.f32 %v11832_v52, %v11304_v43 }
 0x4dd   : > { %v11310_v8 = vadd.f32 %v11309_v32, %v11308_v24  ;;  %v11311_v18 = vpop.f32.mrb[146].mxu1 }
 0x4de   : > { %v11312_v4 = vpop.f32.mrb[147].mxu1  ;;  %v16733_v26 = vadd.f32 %v11838_v30, %v11307_v51 }
 0x4df   : > { %v11313_v3 = vadd.f32 %v11312_v4, %v11311_v18 }
 0x4e0   : > { %v11172_v19 = vpop.f32.mrb[240].mxu0 }
 0x4e1   : > { %v11173_v2 = vpop.f32.mrb[241].mxu0 }
 0x4e2   : > { %v11174_v59 = vadd.f32 %v11173_v2, %v11172_v19  ;;  %v11175_v56 = vpop.f32.mrb[242].mxu0 }
 0x4e3   : > { %v11176_v61 = vpop.f32.mrb[243].mxu0 }
 0x4e4   : > { %v11847_v37 = vadd.f32 %v11174_v59, %v16545_v42  ;;  %v11177_v20 = vadd.f32 %v11176_v61, %v11175_v56  ;;  %v11314_v54 = vpop.f32.mrb[148].mxu1 }
 0x4e5   : > { %v11315_v10 = vpop.f32.mrb[149].mxu1 }
 0x4e6   : > { %v11853_v14 = vadd.f32 %v11177_v20, %v16551_v36  ;;  %v16737_v9 = vadd.f32 %v11847_v37, %v11310_v8  ;;  %v11316_v21 = vadd.f32 %v11315_v10, %v11314_v54  ;;  %v11317_v48 = vpop.f32.mrb[150].mxu1 }
 0x4e7   : > { %v11318_v34 = vpop.f32.mrb[151].mxu1 }
 0x4e8   : > { %v11178_v43 = vpop.f32.mrb[244].mxu0  ;;  %v16739_v13 = vadd.f32 %v11853_v14, %v11313_v3  ;;  %v11319_v39 = vadd.f32 %v11318_v34, %v11317_v48 }
 0x4e9   : > { %v11179_v28 = vpop.f32.mrb[245].mxu0 }
 0x4ea   : > { %v11180_v51 = vadd.f32 %v11179_v28, %v11178_v43  ;;  %v11181_v29 = vpop.f32.mrb[246].mxu0 }
 0x4eb   : > { %v11182_v17 = vpop.f32.mrb[247].mxu0 }
 0x4ec   : > { %v11844_v42 = vadd.f32 %v11180_v51, %v16553_v5  ;;  %v11183_v58 = vadd.f32 %v11182_v17, %v11181_v29 }
 0x4ed   : > { %v11320_v22 = vpop.f32.mrb[152].mxu1 }
 0x4ee   : > { %v11850_v36 = vadd.f32 %v11183_v58, %v16567_v41  ;;  %v11321_v52 = vpop.f32.mrb[153].mxu1  ;;  %v16743_v40 = vadd.f32 %v11844_v42, %v11316_v21 }
 0x4ef   : > { %v11322_v24 = vadd.f32 %v11321_v52, %v11320_v22  ;;  %v11323_v30 = vpop.f32.mrb[154].mxu1 }
 0x4f0   : > { %v11324_v32 = vpop.f32.mrb[155].mxu1  ;;  %v16745_v8 = vadd.f32 %v11850_v36, %v11319_v39 }
 0x4f1   : > { %v11325_v18 = vadd.f32 %v11324_v32, %v11323_v30 }
 0x4f2   : > { %v11184_v4 = vpop.f32.mrb[248].mxu0 }
 0x4f3   : > { %v11185_v3 = vpop.f32.mrb[249].mxu0 }
 0x4f4   : > { %v11186_v19 = vadd.f32 %v11185_v3, %v11184_v4  ;;  %v11187_v2 = vpop.f32.mrb[250].mxu0 }
 0x4f5   : > { %v11188_v59 = vpop.f32.mrb[251].mxu0 }
 0x4f6   : > { %v11859_v5 = vadd.f32 %v11186_v19, %v16569_v16  ;;  %v11189_v56 = vadd.f32 %v11188_v59, %v11187_v2 }
 0x4f7   : > { %v11326_v61 = vpop.f32.mrb[156].mxu1 }
 0x4f8   : > { %v11865_v41 = vadd.f32 %v11189_v56, %v16577_v11  ;;  %v11327_v37 = vpop.f32.mrb[157].mxu1  ;;  %v16749_v20 = vadd.f32 %v11859_v5, %v11322_v24 }
 0x4f9   : > { %v11328_v54 = vadd.f32 %v11327_v37, %v11326_v61  ;;  %v11329_v14 = vpop.f32.mrb[158].mxu1 }
 0x4fa   : > { %v11330_v10 = vpop.f32.mrb[159].mxu1  ;;  %v11190_v21 = vpop.f32.mrb[252].mxu0  ;;  %v16751_v48 = vadd.f32 %v11865_v41, %v11325_v18 }
 0x4fb   : > { %v11331_v34 = vadd.f32 %v11330_v10, %v11329_v14  ;;  %v11191_v43 = vpop.f32.mrb[253].mxu0 }
 0x4fc   : > { %v11192_v39 = vadd.f32 %v11191_v43, %v11190_v21  ;;  %v11193_v28 = vpop.f32.mrb[254].mxu0 }
 0x4fd   : > { %v11194_v51 = vpop.f32.mrb[255].mxu0 }
 0x4fe   : > { %v11856_v16 = vadd.f32 %v11192_v39, %v16581_v0  ;;  %v11195_v29 = vadd.f32 %v11194_v51, %v11193_v28 }
 0x4ff   : > { %v11332_v17 = vpop.f32.mrb[160].mxu1 }
 0x500   : > { %v11862_v11 = vadd.f32 %v11195_v29, %v16587_v6  ;;  %v11333_v42 = vpop.f32.mrb[161].mxu1  ;;  %v16755_v58 = vadd.f32 %v11856_v16, %v11328_v54 }
 0x501   : > { %v11334_v22 = vadd.f32 %v11333_v42, %v11332_v17  ;;  %v11335_v36 = vpop.f32.mrb[162].mxu1 }
 0x502   : > { %v11336_v52 = vpop.f32.mrb[163].mxu1  ;;  %v16757_v24 = vadd.f32 %v11862_v11, %v11331_v34 }
 0x503   : > { %v11337_v30 = vadd.f32 %v11336_v52, %v11335_v36 }
 0x504   : > { %v11196_v32 = vpop.f32.mrb[0].mxu0 }
 0x505   : > { %v11197_v18 = vpop.f32.mrb[1].mxu0 }
 0x506   : > { %v11198_v4 = vadd.f32 %v11197_v18, %v11196_v32  ;;  %v11199_v3 = vpop.f32.mrb[2].mxu0 }
 0x507   : > { %v11200_v19 = vpop.f32.mrb[3].mxu0 }
 0x508   : > { %v11871_v0 = vadd.f32 %v11198_v4, %v16607_v55  ;;  %v11201_v2 = vadd.f32 %v11200_v19, %v11199_v3  ;;  %v11338_v59 = vpop.f32.mrb[164].mxu1 }
 0x509   : > { %v11339_v5 = vpop.f32.mrb[165].mxu1 }
 0x50a   : > { %v11877_v6 = vadd.f32 %v11201_v2, %v16614_v38  ;;  %v16761_v56 = vadd.f32 %v11871_v0, %v11334_v22  ;;  %v11340_v61 = vadd.f32 %v11339_v5, %v11338_v59  ;;  %v11341_v41 = vpop.f32.mrb[166].mxu1 }
 0x50b   : > { %v11342_v37 = vpop.f32.mrb[167].mxu1 }
 0x50c   : > { %v11202_v54 = vpop.f32.mrb[4].mxu0  ;;  %v16763_v14 = vadd.f32 %v11877_v6, %v11337_v30  ;;  %v11343_v10 = vadd.f32 %v11342_v37, %v11341_v41 }
 0x50d   : > { %v11203_v21 = vpop.f32.mrb[5].mxu0 }
 0x50e   : > { %v11204_v34 = vadd.f32 %v11203_v21, %v11202_v54  ;;  %v11205_v43 = vpop.f32.mrb[6].mxu0 }
 0x50f   : > { %v11206_v39 = vpop.f32.mrb[7].mxu0 }
 0x510   : > { %v11868_v55 = vadd.f32 %v11204_v34, %v16646_v12  ;;  %v11207_v28 = vadd.f32 %v11206_v39, %v11205_v43 }
 0x511   : > { %v11344_v51 = vpop.f32.mrb[168].mxu1 }
 0x512   : > { %v11874_v38 = vadd.f32 %v11207_v28, %v16660_v27  ;;  %v11345_v16 = vpop.f32.mrb[169].mxu1  ;;  %v16767_v29 = vadd.f32 %v11868_v55, %v11340_v61 }
 0x513   : > { %v11346_v17 = vadd.f32 %v11345_v16, %v11344_v51  ;;  %v11347_v11 = vpop.f32.mrb[170].mxu1 }
 0x514   : > { %v11348_v42 = vpop.f32.mrb[171].mxu1  ;;  %v16769_v22 = vadd.f32 %v11874_v38, %v11343_v10 }
 0x515   : > { %v11349_v36 = vadd.f32 %v11348_v42, %v11347_v11 }
 0x516   : > { %v11208_v52 = vpop.f32.mrb[8].mxu0 }
 0x517   : > { %v11209_v30 = vpop.f32.mrb[9].mxu0 }
 0x518   : > { %v11210_v32 = vadd.f32 %v11209_v30, %v11208_v52  ;;  %v11211_v18 = vpop.f32.mrb[10].mxu0 }
 0x519   : > { %v11212_v4 = vpop.f32.mrb[11].mxu0 }
 0x51a   : > { %v11883_v12 = vadd.f32 %v11210_v32, %v16672_v47  ;;  %v11213_v3 = vadd.f32 %v11212_v4, %v11211_v18 }
 0x51b   : > { %v11350_v19 = vpop.f32.mrb[172].mxu1 }
 0x51c   : > { %v11889_v27 = vadd.f32 %v11213_v3, %v16679_v1  ;;  %v11351_v0 = vpop.f32.mrb[173].mxu1  ;;  %v16773_v2 = vadd.f32 %v11883_v12, %v11346_v17 }
 0x51d   : > { %v11352_v59 = vadd.f32 %v11351_v0, %v11350_v19  ;;  %v11353_v6 = vpop.f32.mrb[174].mxu1 }
 0x51e   : > { %v11354_v5 = vpop.f32.mrb[175].mxu1  ;;  %v11214_v61 = vpop.f32.mrb[12].mxu0  ;;  %v16775_v41 = vadd.f32 %v11889_v27, %v11349_v36 }
 0x51f   : > { %v11355_v37 = vadd.f32 %v11354_v5, %v11353_v6  ;;  %v11215_v54 = vpop.f32.mrb[13].mxu0 }
 0x520   : > { %v11216_v10 = vadd.f32 %v11215_v54, %v11214_v61  ;;  %v11217_v21 = vpop.f32.mrb[14].mxu0 }
 0x521   : > { %v11218_v34 = vpop.f32.mrb[15].mxu0 }
 0x522   : > { %v11880_v47 = vadd.f32 %v11216_v10, %v16686_v15  ;;  %v11219_v43 = vadd.f32 %v11218_v34, %v11217_v21 }
 0x523   : > { %v11356_v1 = vpop.f32.mrb[176].mxu1 }
 0x524   : > { %v11886_v39 = vadd.f32 %v11219_v43, %v16690_v62  ;;  %v16779_v55 = vadd.f32 %v11880_v47, %v11352_v59  ;;  %v11357_v28 = vpop.f32.mrb[177].mxu1 }
 0x525   : > { %v11358_v51 = vadd.f32 %v11357_v28, %v11356_v1  ;;  %v11359_v38 = vpop.f32.mrb[178].mxu1 }
 0x526   : > { %v16781_v16 = vadd.f32 %v11886_v39, %v11355_v37  ;;  %v11360_v17 = vpop.f32.mrb[179].mxu1 }
 0x527   : > { %v11361_v11 = vadd.f32 %v11360_v17, %v11359_v38 }
 0x528   : > { %v11220_v42 = vpop.f32.mrb[16].mxu0 }
 0x529   : > { %v11221_v36 = vpop.f32.mrb[17].mxu0 }
 0x52a   : > { %v11222_v52 = vadd.f32 %v11221_v36, %v11220_v42  ;;  %v11223_v30 = vpop.f32.mrb[18].mxu0 }
 0x52b   : > { %v11224_v32 = vpop.f32.mrb[19].mxu0 }
 0x52c   : > { %v11895_v15 = vadd.f32 %v11222_v52, %v16695_v44  ;;  %v11225_v18 = vadd.f32 %v11224_v32, %v11223_v30 }
 0x52d   : > { %v11362_v4 = vpop.f32.mrb[180].mxu1 }
 0x52e   : > { %v11901_v62 = vadd.f32 %v11225_v18, %v16697_v31  ;;  %v11363_v12 = vpop.f32.mrb[181].mxu1  ;;  %v16785_v3 = vadd.f32 %v11895_v15, %v11358_v51 }
 0x52f   : > { %v11364_v19 = vadd.f32 %v11363_v12, %v11362_v4  ;;  %v11365_v27 = vpop.f32.mrb[182].mxu1 }
 0x530   : > { %v11366_v0 = vpop.f32.mrb[183].mxu1  ;;  %v16787_v59 = vadd.f32 %v11901_v62, %v11361_v11 }
 0x531   : > { %v11367_v6 = vadd.f32 %v11366_v0, %v11365_v27  ;;  %v11226_v5 = vpop.f32.mrb[20].mxu0 }
 0x532   : > { %v11227_v61 = vpop.f32.mrb[21].mxu0 }
 0x533   : > { %v11228_v37 = vadd.f32 %v11227_v61, %v11226_v5  ;;  %v11229_v54 = vpop.f32.mrb[22].mxu0 }
 0x534   : > { %v11230_v10 = vpop.f32.mrb[23].mxu0 }
 0x535   : > { %v11892_v44 = vadd.f32 %v11228_v37, %v16699_v25  ;;  %v11231_v21 = vadd.f32 %v11230_v10, %v11229_v54 }
 0x537   : > { %v11368_v34 = vpop.f32.mrb[184].mxu1  ;;  %v11898_v31 = vadd.f32 %v11231_v21, %v16701_v23  ;;  %v16791_v43 = vadd.f32 %v11892_v44, %v11364_v19  ;;  %v16806_v44 = vld [vmem:[%s17266_s4] ss:$0 sm:$0xff] }
 0x538   : > { %v11369_v47 = vpop.f32.mrb[185].mxu1 }
 0x539   : > { %v11370_v39 = vadd.f32 %v11369_v47, %v11368_v34  ;;  %v11371_v1 = vpop.f32.mrb[186].mxu1  ;;  %v16793_v51 = vadd.f32 %v11898_v31, %v11367_v6 }
 0x53a   : > { %v11372_v28 = vpop.f32.mrb[187].mxu1  ;;  %v11232_v17 = vpop.f32.mrb[24].mxu0 }
 0x53b   : > { %v11373_v38 = vadd.f32 %v11372_v28, %v11371_v1  ;;  %v11233_v11 = vpop.f32.mrb[25].mxu0 }
 0x53c   : > { %v11234_v42 = vadd.f32 %v11233_v11, %v11232_v17  ;;  %v11235_v36 = vpop.f32.mrb[26].mxu0 }
 0x53d   : > { %v11236_v52 = vpop.f32.mrb[27].mxu0 }
 0x53e   : > { %v11907_v25 = vadd.f32 %v11234_v42, %v16703_v7  ;;  %v11237_v30 = vadd.f32 %v11236_v52, %v11235_v36 }
 0x53f   : > { %v11374_v32 = vpop.f32.mrb[188].mxu1 }
 0x540   : > { %v11913_v23 = vadd.f32 %v11237_v30, %v16705_v53  ;;  %v11375_v15 = vpop.f32.mrb[189].mxu1  ;;  %v16797_v18 = vadd.f32 %v11907_v25, %v11370_v39 }
 0x541   : > { %v11376_v4 = vadd.f32 %v11375_v15, %v11374_v32  ;;  %v11377_v62 = vpop.f32.mrb[190].mxu1 }
 0x542   : > { %v11378_v12 = vpop.f32.mrb[191].mxu1  ;;  %v16799_v19 = vadd.f32 %v11913_v23, %v11373_v38 }
 0x543   : > { %v11379_v27 = vadd.f32 %v11378_v12, %v11377_v62 }
 0x544   : > { %v11238_v0 = vpop.f32.mrb[28].mxu0 }
 0x545   : > { %v11239_v6 = vpop.f32.mrb[29].mxu0 }
 0x546   : > { %v11240_v5 = vadd.f32 %v11239_v6, %v11238_v0  ;;  %v11241_v61 = vpop.f32.mrb[30].mxu0 }
 0x547   : > { %v11242_v37 = vpop.f32.mrb[31].mxu0  ;;  %v11662_v54 = vpop.f32.mrb[96].mxu1 }
 0x548   : > { %v11904_v7 = vadd.f32 %v11240_v5, %v16707_v49  ;;  %v11243_v10 = vadd.f32 %v11242_v37, %v11241_v61  ;;  %v11822_v53 = vadd.f32 %v16715_v33, %v11662_v54  ;;  %v9397_v21 = vpop.f32.mrb[97].mxu1 }
 0x549   : > { %v11825_v34 = vadd.f32 %v16717_v45, %v9397_v21  ;;  %v11663_v31 = vpop.f32.mrb[98].mxu1 }
 0x54a   : > { %v11910_v47 = vadd.f32 %v11243_v10, %v16709_v57  ;;  %v11828_v39 = vadd.f32 %v16719_v63, %v11663_v31  ;;  %v9400_v1 = vpop.f32.mrb[99].mxu1  ;;  %v16811_v28 = vadd.f32 %v11904_v7, %v11376_v4  ;;  %v16820_v17 = vadd.f32 %v11822_v53, %v16806_v44 }
 0x54b   : > { %v16814_v49 = vadd.f32 %v11825_v34, %v16806_v44  ;;  %v11831_v33 = vadd.f32 %v16721_v50, %v9400_v1 }
 0x54c   : > { %v16817_v38 = vadd.f32 %v11910_v47, %v11379_v27  ;;  %v16826_v57 = vadd.f32 %v11828_v39, %v16806_v44  ;;  %v9634_v25 = vmul.f32 %v16820_v17, %v16820_v17 }
 0x54d   : > { %v16823_v45 = vadd.f32 %v11831_v33, %v16806_v44  ;;  %v9632_v63 = vmul.f32 %v16814_v49, %v16814_v49 }
 0x54e   : > { %v9635_v4 = vmul.f32 %v16826_v57, %v16826_v57 }
 0x54f   : > { %v9595_v11 = vadd.f32 %v16823_v45, %v16814_v49  ;;  %v9633_v50 = vmul.f32 %v16823_v45, %v16823_v45  ;;  %v11666_v42 = vpop.f32.mrb[100].mxu1 }
 0x550   : > { %v11834_v36 = vadd.f32 %v16731_v60, %v11666_v42  ;;  %v9413_v52 = vpop.f32.mrb[101].mxu1 }
 0x551   : > { %v9596_v30 = vadd.f32 %v9595_v11, %v16820_v17  ;;  %v9664_v32 = vadd.f32 %v9633_v50, %v9632_v63  ;;  %v11837_v23 = vadd.f32 %v16725_v46, %v9413_v52  ;;  %v11667_v15 = vpop.f32.mrb[102].mxu1 }
 0x552   : > { %v11840_v62 = vadd.f32 %v16733_v26, %v11667_v15  ;;  %v9416_v12 = vpop.f32.mrb[103].mxu1  ;;  %v16848_v5 = vadd.f32 %v11834_v36, %v16806_v44 }
 0x553   : > { %v9665_v27 = vadd.f32 %v9664_v32, %v9634_v25  ;;  %v16843_v0 = vadd.f32 %v11837_v23, %v16806_v44  ;;  %v9597_v60 = vadd.f32 %v9596_v30, %v16826_v57  ;;  %v11843_v6 = vadd.f32 %v16727_v35, %v9416_v12 }
 0x554   : > { %v16857_v54 = vadd.f32 %v11840_v62, %v16806_v44  ;;  %v9638_v31 = vmul.f32 %v16848_v5, %v16848_v5 }
 0x555   : > { %v9598_v46 = vadd.f32 %v9597_v60, %v16843_v0  ;;  %v9636_v61 = vmul.f32 %v16843_v0, %v16843_v0  ;;  %v9666_v37 = vadd.f32 %v9665_v27, %v9635_v4  ;;  %v16854_v26 = vadd.f32 %v11843_v6, %v16806_v44 }
 0x556   : > { %v9639_v63 = vmul.f32 %v16857_v54, %v16857_v54 }
 0x557   : > { %v9667_v7 = vadd.f32 %v9666_v37, %v9636_v61  ;;  %v9599_v10 = vadd.f32 %v9598_v46, %v16854_v26  ;;  %v9637_v35 = vmul.f32 %v16854_v26, %v16854_v26  ;;  %v11670_v53 = vpop.f32.mrb[104].mxu1 }
 0x558   : > { %v11846_v21 = vadd.f32 %v16743_v40, %v11670_v53  ;;  %v9429_v34 = vpop.f32.mrb[105].mxu1 }
 0x559   : > { %v9600_v47 = vadd.f32 %v9599_v10, %v16848_v5  ;;  %v9668_v39 = vadd.f32 %v9667_v7, %v9637_v35  ;;  %v11849_v1 = vadd.f32 %v16737_v9, %v9429_v34  ;;  %v11671_v33 = vpop.f32.mrb[106].mxu1 }
 0x55a   : > { %v11852_v11 = vadd.f32 %v16745_v8, %v11671_v33  ;;  %v9432_v50 = vpop.f32.mrb[107].mxu1  ;;  %v16876_v25 = vadd.f32 %v11846_v21, %v16806_v44 }
 0x55b   : > { %v9669_v42 = vadd.f32 %v9668_v39, %v9638_v31  ;;  %v16871_v36 = vadd.f32 %v11849_v1, %v16806_v44  ;;  %v9601_v40 = vadd.f32 %v9600_v47, %v16857_v54  ;;  %v11855_v52 = vadd.f32 %v16739_v13, %v9432_v50 }
 0x55c   : > { %v16885_v23 = vadd.f32 %v11852_v11, %v16806_v44  ;;  %v9642_v60 = vmul.f32 %v16876_v25, %v16876_v25 }
 0x55d   : > { %v9602_v9 = vadd.f32 %v9601_v40, %v16871_v36  ;;  %v9640_v30 = vmul.f32 %v16871_v36, %v16871_v36  ;;  %v9670_v32 = vadd.f32 %v9669_v42, %v9639_v63  ;;  %v16882_v8 = vadd.f32 %v11855_v52, %v16806_v44 }
 0x55e   : > { %v9643_v7 = vmul.f32 %v16885_v23, %v16885_v23 }
 0x55f   : > { %v9671_v15 = vadd.f32 %v9670_v32, %v9640_v30  ;;  %v9603_v4 = vadd.f32 %v9602_v9, %v16882_v8  ;;  %v9641_v13 = vmul.f32 %v16882_v8, %v16882_v8  ;;  %v11674_v62 = vpop.f32.mrb[108].mxu1 }
 0x560   : > { %v11858_v12 = vadd.f32 %v16755_v58, %v11674_v62  ;;  %v9445_v27 = vpop.f32.mrb[109].mxu1 }
 0x561   : > { %v9604_v6 = vadd.f32 %v9603_v4, %v16876_v25  ;;  %v9672_v46 = vadd.f32 %v9671_v15, %v9641_v13  ;;  %v11861_v61 = vadd.f32 %v16749_v20, %v9445_v27  ;;  %v11675_v37 = vpop.f32.mrb[110].mxu1 }
 0x562   : > { %v11864_v10 = vadd.f32 %v16757_v24, %v11675_v37  ;;  %v9448_v35 = vpop.f32.mrb[111].mxu1  ;;  %v16904_v31 = vadd.f32 %v11858_v12, %v16806_v44 }
 0x563   : > { %v9673_v53 = vadd.f32 %v9672_v46, %v9642_v60  ;;  %v16899_v21 = vadd.f32 %v11861_v61, %v16806_v44  ;;  %v9605_v58 = vadd.f32 %v9604_v6, %v16885_v23  ;;  %v11867_v34 = vadd.f32 %v16751_v48, %v9448_v35 }
 0x564   : > { %v16913_v1 = vadd.f32 %v11864_v10, %v16806_v44  ;;  %v9646_v40 = vmul.f32 %v16904_v31, %v16904_v31 }
 0x565   : > { %v9606_v20 = vadd.f32 %v9605_v58, %v16899_v21  ;;  %v9644_v47 = vmul.f32 %v16899_v21, %v16899_v21  ;;  %v9674_v39 = vadd.f32 %v9673_v53, %v9643_v7  ;;  %v16910_v24 = vadd.f32 %v11867_v34, %v16806_v44 }
 0x566   : > { %v9647_v15 = vmul.f32 %v16913_v1, %v16913_v1 }
 0x567   : > { %v9675_v33 = vadd.f32 %v9674_v39, %v9644_v47  ;;  %v9607_v63 = vadd.f32 %v9606_v20, %v16910_v24  ;;  %v9645_v48 = vmul.f32 %v16910_v24, %v16910_v24  ;;  %v11678_v11 = vpop.f32.mrb[112].mxu1 }
 0x568   : > { %v11870_v50 = vadd.f32 %v16767_v29, %v11678_v11  ;;  %v9461_v42 = vpop.f32.mrb[113].mxu1 }
 0x569   : > { %v9608_v52 = vadd.f32 %v9607_v63, %v16904_v31  ;;  %v9676_v9 = vadd.f32 %v9675_v33, %v9645_v48  ;;  %v11873_v30 = vadd.f32 %v16761_v56, %v9461_v42  ;;  %v11679_v32 = vpop.f32.mrb[114].mxu1 }
 0x56a   : > { %v11876_v4 = vadd.f32 %v16769_v22, %v11679_v32  ;;  %v9464_v13 = vpop.f32.mrb[115].mxu1  ;;  %v16932_v60 = vadd.f32 %v11870_v50, %v16806_v44 }
 0x56b   : > { %v9677_v62 = vadd.f32 %v9676_v9, %v9646_v40  ;;  %v16927_v12 = vadd.f32 %v11873_v30, %v16806_v44  ;;  %v9609_v29 = vadd.f32 %v9608_v52, %v16913_v1  ;;  %v11879_v27 = vadd.f32 %v16763_v14, %v9464_v13 }
 0x56c   : > { %v16941_v61 = vadd.f32 %v11876_v4, %v16806_v44  ;;  %v9650_v58 = vmul.f32 %v16932_v60, %v16932_v60 }
 0x56d   : > { %v9610_v56 = vadd.f32 %v9609_v29, %v16927_v12  ;;  %v9648_v6 = vmul.f32 %v16927_v12, %v16927_v12  ;;  %v9678_v46 = vadd.f32 %v9677_v62, %v9647_v15  ;;  %v16938_v22 = vadd.f32 %v11879_v27, %v16806_v44 }
 0x56e   : > { %v9651_v33 = vmul.f32 %v16941_v61, %v16941_v61 }
 0x56f   : > { %v9679_v37 = vadd.f32 %v9678_v46, %v9648_v6  ;;  %v9611_v7 = vadd.f32 %v9610_v56, %v16938_v22  ;;  %v9649_v14 = vmul.f32 %v16938_v22, %v16938_v22  ;;  %v11682_v10 = vpop.f32.mrb[116].mxu1 }
 0x570   : > { %v11882_v35 = vadd.f32 %v16779_v55, %v11682_v10  ;;  %v9477_v53 = vpop.f32.mrb[117].mxu1 }
 0x571   : > { %v9612_v34 = vadd.f32 %v9611_v7, %v16932_v60  ;;  %v9680_v20 = vadd.f32 %v9679_v37, %v9649_v14  ;;  %v11885_v47 = vadd.f32 %v16773_v2, %v9477_v53  ;;  %v11683_v39 = vpop.f32.mrb[118].mxu1 }
 0x572   : > { %v11888_v63 = vadd.f32 %v16781_v16, %v11683_v39  ;;  %v9480_v48 = vpop.f32.mrb[119].mxu1  ;;  %v16960_v40 = vadd.f32 %v11882_v35, %v16806_v44 }
 0x573   : > { %v9681_v11 = vadd.f32 %v9680_v20, %v9650_v58  ;;  %v16955_v50 = vadd.f32 %v11885_v47, %v16806_v44  ;;  %v9613_v55 = vadd.f32 %v9612_v34, %v16941_v61  ;;  %v11891_v42 = vadd.f32 %v16775_v41, %v9480_v48 }
 0x574   : > { %v16969_v30 = vadd.f32 %v11888_v63, %v16806_v44  ;;  %v9654_v29 = vmul.f32 %v16960_v40, %v16960_v40 }
 0x575   : > { %v9614_v2 = vadd.f32 %v9613_v55, %v16955_v50  ;;  %v9652_v52 = vmul.f32 %v16955_v50, %v16955_v50  ;;  %v9682_v9 = vadd.f32 %v9681_v11, %v9651_v33  ;;  %v16966_v16 = vadd.f32 %v11891_v42, %v16806_v44 }
 0x576   : > { %v9655_v37 = vmul.f32 %v16969_v30, %v16969_v30 }
 0x577   : > { %v9683_v32 = vadd.f32 %v9682_v9, %v9652_v52  ;;  %v9615_v15 = vadd.f32 %v9614_v2, %v16966_v16  ;;  %v9653_v41 = vmul.f32 %v16966_v16, %v16966_v16  ;;  %v11686_v4 = vpop.f32.mrb[120].mxu1 }
 0x578   : > { %v11894_v13 = vadd.f32 %v16791_v43, %v11686_v4  ;;  %v9493_v62 = vpop.f32.mrb[121].mxu1 }
 0x579   : > { %v9616_v27 = vadd.f32 %v9615_v15, %v16960_v40  ;;  %v9684_v56 = vadd.f32 %v9683_v32, %v9653_v41  ;;  %v11897_v6 = vadd.f32 %v16785_v3, %v9493_v62  ;;  %v11687_v46 = vpop.f32.mrb[122].mxu1 }
 0x57a   : > { %v11900_v7 = vadd.f32 %v16793_v51, %v11687_v46  ;;  %v9496_v14 = vpop.f32.mrb[123].mxu1  ;;  %v16988_v58 = vadd.f32 %v11894_v13, %v16806_v44 }
 0x57b   : > { %v9685_v10 = vadd.f32 %v9684_v56, %v9654_v29  ;;  %v16983_v35 = vadd.f32 %v11897_v6, %v16806_v44  ;;  %v9617_v43 = vadd.f32 %v9616_v27, %v16969_v30  ;;  %v11903_v53 = vadd.f32 %v16787_v59, %v9496_v14 }
 0x57c   : > { %v16997_v47 = vadd.f32 %v11900_v7, %v16806_v44  ;;  %v9658_v55 = vmul.f32 %v16988_v58, %v16988_v58 }
 0x57d   : > { %v9618_v3 = vadd.f32 %v9617_v43, %v16983_v35  ;;  %v9656_v34 = vmul.f32 %v16983_v35, %v16983_v35  ;;  %v9686_v20 = vadd.f32 %v9685_v10, %v9655_v37  ;;  %v16994_v51 = vadd.f32 %v11903_v53, %v16806_v44 }
 0x57e   : > { %v9659_v32 = vmul.f32 %v16997_v47, %v16997_v47 }
 0x57f   : > { %v9687_v39 = vadd.f32 %v9686_v20, %v9656_v34  ;;  %v9619_v33 = vadd.f32 %v9618_v3, %v16994_v51  ;;  %v9657_v59 = vmul.f32 %v16994_v51, %v16994_v51  ;;  %v11690_v63 = vpop.f32.mrb[124].mxu1 }
 0x580   : > { %v11906_v48 = vadd.f32 %v16811_v28, %v11690_v63  ;;  %v9509_v11 = vpop.f32.mrb[125].mxu1 }
 0x581   : > { %v9620_v42 = vadd.f32 %v9619_v33, %v16988_v58  ;;  %v9688_v2 = vadd.f32 %v9687_v39, %v9657_v59  ;;  %v11909_v52 = vadd.f32 %v16797_v18, %v9509_v11  ;;  %v11691_v9 = vpop.f32.mrb[126].mxu1 }
 0x582   : > { %v11912_v15 = vadd.f32 %v16817_v38, %v11691_v9  ;;  %v9512_v41 = vpop.f32.mrb[127].mxu1  ;;  %v17016_v29 = vadd.f32 %v11906_v48, %v16806_v44 }
 0x583   : > { %v9689_v4 = vadd.f32 %v9688_v2, %v9658_v55  ;;  %v17011_v13 = vadd.f32 %v11909_v52, %v16806_v44  ;;  %v9621_v28 = vadd.f32 %v9620_v42, %v16997_v47  ;;  %v11915_v62 = vadd.f32 %v16799_v19, %v9512_v41 }
 0x584   : > { %v17025_v46 = vadd.f32 %v11912_v15, %v16806_v44  ;;  %v9662_v7 = vmul.f32 %v17016_v29, %v17016_v29 }
 0x585   : > { %v9622_v18 = vadd.f32 %v9621_v28, %v17011_v13  ;;  %v9660_v27 = vmul.f32 %v17011_v13, %v17011_v13  ;;  %v9690_v56 = vadd.f32 %v9689_v4, %v9659_v32  ;;  %v17022_v38 = vadd.f32 %v11915_v62, %v16806_v44 }
 0x586   : > { %v9663_v43 = vmul.f32 %v17025_v46, %v17025_v46 }
 0x587   : > { %v9691_v6 = vadd.f32 %v9690_v56, %v9660_v27  ;;  %v9623_v37 = vadd.f32 %v9622_v18, %v17022_v38  ;;  %v9661_v19 = vmul.f32 %v17022_v38, %v17022_v38 }
 0x589   : > { %v9624_v14 = vadd.f32 %v9623_v37, %v17016_v29  ;;  %v9692_v10 = vadd.f32 %v9691_v6, %v9661_v19 }
 0x58b   : > { %v9625_v53 = vadd.f32 %v9624_v14, %v17025_v46  ;;  %v9693_v3 = vadd.f32 %v9692_v10, %v9662_v7 }
 0x58d   : > { %v9626_v34 = vrot.slane %v9625_v53, 4  ;;  %v9694_v44 = vadd.f32 %v9693_v3, %v9663_v43 }
 0x58f   : > { %v9627_v20 = vadd.f32 %v9626_v34, %v9625_v53  ;;  %v9695_v39 = vrot.slane %v9694_v44, 4  ;;  %v12420_v34 = vld [vmem:[%s12820_s6 + $0xe8] sm:$0xff] }
 0x591   : > { %v9628_v33 = vrot.slane %v9627_v20, 2  ;;  %v9696_v59 = vadd.f32 %v9695_v39, %v9694_v44 }
 0x593   : > { %v9629_v63 = vadd.f32 %v9628_v33, %v9627_v20  ;;  %v9697_v48 = vrot.slane %v9696_v59, 2 }
 0x595   : > { %v9630_v11 = vrot.slane %v9629_v63, 1  ;;  %v9698_v55 = vadd.f32 %v9697_v48, %v9696_v59 }
 0x597   : > { %v9631_v42 = vadd.f32 %v9630_v11, %v9629_v63  ;;  %v9699_v2 = vrot.slane %v9698_v55, 1 }
 0x599   : > { %v9700_v52 = vadd.f32 %v9699_v2, %v9698_v55  ;;  %v17036_v9 = vmul.f32 0.00390625, %v9631_v42 }
 0x59b   : > { %v9702_v32 = vmul.f32 0.00390625, %v9700_v52  ;;  %v9703_v15 = vmul.f32 %v17036_v9, %v17036_v9  ;;  %v9735_v41 = vsub.f32 %v17022_v38, %v17036_v9  ;;  %v9715_v28 = vsub.f32 %v16882_v8, %v17036_v9 }
 0x59c   : > { %v9717_v62 = vsub.f32 %v16885_v23, %v17036_v9  ;;  %v9718_v27 = vsub.f32 %v16899_v21, %v17036_v9  ;;  %v9719_v56 = vsub.f32 %v16910_v24, %v17036_v9  ;;  %v9720_v6 = vsub.f32 %v16904_v31, %v17036_v9 }
 0x59d   : > { %v9704_v4 = vsub.f32 %v9702_v32, %v9703_v15  ;;  %v9721_v38 = vsub.f32 %v16913_v1, %v17036_v9  ;;  %v9722_v37 = vsub.f32 %v16927_v12, %v17036_v9  ;;  %v9723_v8 = vsub.f32 %v16938_v22, %v17036_v9 }
 0x59e   : > { %v9724_v23 = vsub.f32 %v16932_v60, %v17036_v9  ;;  %v9725_v21 = vsub.f32 %v16941_v61, %v17036_v9  ;;  %v9726_v24 = vsub.f32 %v16955_v50, %v17036_v9  ;;  %v9727_v31 = vsub.f32 %v16966_v16, %v17036_v9 }
 0x59f   : > { %v9705_v18 = vmax.f32 %v9704_v4, 0.0  ;;  %v9728_v1 = vsub.f32 %v16960_v40, %v17036_v9  ;;  %v9729_v12 = vsub.f32 %v16969_v30, %v17036_v9  ;;  %v9730_v22 = vsub.f32 %v16983_v35, %v17036_v9 }
 0x5a0   : > { %v9731_v60 = vsub.f32 %v16994_v51, %v17036_v9  ;;  %v9732_v61 = vsub.f32 %v16988_v58, %v17036_v9  ;;  %v9733_v50 = vsub.f32 %v16997_v47, %v17036_v9  ;;  %v9734_v16 = vsub.f32 %v17011_v13, %v17036_v9 }
 0x5a1   : > { %v9738_v19 = vadd.f32 1e-05, %v9705_v18  ;;  %v9736_v40 = vsub.f32 %v17016_v29, %v17036_v9  ;;  %v9737_v30 = vsub.f32 %v17025_v46, %v17036_v9  ;;  %v9706_v35 = vsub.f32 %v16814_v49, %v17036_v9 }
 0x5a2   : > { %v9707_v51 = vsub.f32 %v16823_v45, %v17036_v9  ;;  %v9708_v58 = vsub.f32 %v16820_v17, %v17036_v9  ;;  %v9709_v47 = vsub.f32 %v16826_v57, %v17036_v9  ;;  %v9710_v13 = vsub.f32 %v16843_v0, %v17036_v9 }
 0x5a3   : > { %12326 = vrsqrt.f32 %v9738_v19  ;;  %v9711_v29 = vsub.f32 %v16854_v26, %v17036_v9  ;;  %v9712_v49 = vsub.f32 %v16848_v5, %v17036_v9  ;;  %v9713_v45 = vsub.f32 %v16857_v54, %v17036_v9  ;;  %v12424_v19 = vld [vmem:[%s12820_s6 + $0x18] sm:$0xff] }
 0x5a4   : > { %v9714_v17 = vsub.f32 %v16871_v36, %v17036_v9  ;;  %v9716_v57 = vsub.f32 %v16876_v25, %v17036_v9 }
 0x5ad   : > { %v12327_v46 = vpop.eup %12326 }
 0x5ae   : > { %v9769_v7 = vmul.f32 %v12327_v46, %v9735_v41  ;;  %v9740_v14 = vmul.f32 %v12327_v46, %v9706_v35  ;;  %v9741_v0 = vmul.f32 %v12327_v46, %v9707_v51  ;;  %v9742_v10 = vmul.f32 %v12327_v46, %v9708_v58  ;;  %v12431_v51 = vld [vmem:[%s12820_s6 + $0x50] sm:$0xff] }
 0x5af   : > { %v9743_v43 = vmul.f32 %v12327_v46, %v9709_v47  ;;  %v9744_v26 = vmul.f32 %v12327_v46, %v9710_v13  ;;  %v9745_v53 = vmul.f32 %v12327_v46, %v9711_v29  ;;  %v9746_v3 = vmul.f32 %v12327_v46, %v9712_v49  ;;  %v12432_v47 = vld [vmem:[%s12820_s6 + $0x58] sm:$0xff]  ;;  %v12433_v29 = vld [vmem:[%s12820_s6 + $0x60] sm:$0xff]  ;;  %v12434_v49 = vld [vmem:[%s12820_s6 + $0x68] sm:$0xff] }
 0x5b0   : > { %v9801_v5 = vadd.f32 %v12420_v34, %v9769_v7  ;;  %v9747_v44 = vmul.f32 %v12327_v46, %v9713_v45  ;;  %v9748_v20 = vmul.f32 %v12327_v46, %v9714_v17  ;;  %v9749_v54 = vmul.f32 %v12327_v46, %v9715_v28  ;;  %v12435_v17 = vld [vmem:[%s12820_s6 + $0x70] sm:$0xff]  ;;  %v12436_v7 = vld [vmem:[%s12820_s6 + $0x78] sm:$0xff] }
 0x5b1   : > { %v9750_v39 = vmul.f32 %v12327_v46, %v9716_v57  ;;  %v9751_v33 = vmul.f32 %v12327_v46, %v9717_v62  ;;  %v9752_v36 = vmul.f32 %v12327_v46, %v9718_v27  ;;  %v9753_v59 = vmul.f32 %v12327_v46, %v9719_v56  ;;  %v12421_v56 = vld [vmem:[%s12820_s6] sm:$0xff]  ;;  %v12440_v34 = vld [vmem:[%s12820_s6 + $0x98] sm:$0xff] }
 0x5b2   : > { %9833 = vst [vmem:[%s17107_s11 + $0xe8] sm:$0xff] %v9801_v5  ;;  %v9754_v25 = vmul.f32 %v12327_v46, %v9720_v6  ;;  %v9755_v63 = vmul.f32 %v12327_v46, %v9721_v38  ;;  %v9756_v48 = vmul.f32 %v12327_v46, %v9722_v37  ;;  %v9757_v11 = vmul.f32 %v12327_v46, %v9723_v8  ;;  %v12422_v38 = vld [vmem:[%s12820_s6 + $0x8] sm:$0xff]  ;;  %v12423_v8 = vld [vmem:[%s12820_s6 + $0x10] sm:$0xff] }
 0x5b3   : > { %v9758_v55 = vmul.f32 %v12327_v46, %v9724_v23  ;;  %v17110_v42 = vmul.f32 %v12327_v46, %v9725_v21  ;;  %v17112_v2 = vmul.f32 %v12327_v46, %v9726_v24  ;;  %v17114_v52 = vmul.f32 %v12327_v46, %v9727_v31  ;;  %v12425_v24 = vld [vmem:[%s12820_s6 + $0x20] sm:$0xff] }
 0x5b4   : > { %v17116_v9 = vmul.f32 %v12327_v46, %v9728_v1  ;;  %v17118_v32 = vmul.f32 %v12327_v46, %v9729_v12  ;;  %v17120_v15 = vmul.f32 %v12327_v46, %v9730_v22  ;;  %v17122_v41 = vmul.f32 %v12327_v46, %v9731_v60  ;;  %v12426_v1 = vld [vmem:[%s12820_s6 + $0x28] sm:$0xff]  ;;  %v12427_v22 = vld [vmem:[%s12820_s6 + $0x30] sm:$0xff] }
 0x5b5   : > { %v17124_v4 = vmul.f32 %v12327_v46, %v9732_v61  ;;  %v17126_v28 = vmul.f32 %v12327_v46, %v9733_v50  ;;  %v17128_v62 = vmul.f32 %v12327_v46, %v9734_v16  ;;  %v17130_v18 = vmul.f32 %v12327_v46, %v9736_v40  ;;  %v12428_v61 = vld [vmem:[%s12820_s6 + $0x38] sm:$0xff]  ;;  %v12429_v16 = vld [vmem:[%s12820_s6 + $0x40] sm:$0xff] }
 0x5b6   : > { %v17132_v27 = vmul.f32 %v12327_v46, %v9737_v30  ;;  %v9772_v6 = vadd.f32 %v12421_v56, %v9740_v14  ;;  %v9773_v37 = vadd.f32 %v12422_v38, %v9741_v0  ;;  %v9774_v23 = vadd.f32 %v12423_v8, %v9742_v10  ;;  %v12430_v30 = vld [vmem:[%s12820_s6 + $0x48] sm:$0xff]  ;;  %v12437_v0 = vld [vmem:[%s12820_s6 + $0x80] sm:$0xff]  ;;  %v12451_v56 = vld [vmem:[%s12820_s6 + $0xf8] sm:$0xff] }
 0x5b7   : > { %v9775_v21 = vadd.f32 %v12424_v19, %v9743_v43  ;;  %v9776_v31 = vadd.f32 %v12425_v24, %v9744_v26  ;;  %v9777_v12 = vadd.f32 %v12426_v1, %v9745_v53  ;;  %v9778_v60 = vadd.f32 %v12427_v22, %v9746_v3  ;;  %v12438_v43 = vld [vmem:[%s12820_s6 + $0x88] sm:$0xff]  ;;  %v12439_v53 = vld [vmem:[%s12820_s6 + $0x90] sm:$0xff] }
 0x5b8   : > { %v9779_v50 = vadd.f32 %v12428_v61, %v9747_v44  ;;  %v9780_v40 = vadd.f32 %v12429_v16, %v9748_v20  ;;  %v9781_v35 = vadd.f32 %v12430_v30, %v9749_v54  ;;  %v9782_v58 = vadd.f32 %v12431_v51, %v9750_v39  ;;  %9804 = vst [vmem:[%s17107_s11] sm:$0xff] %v9772_v6  ;;  %v12441_v44 = vld [vmem:[%s12820_s6 + $0xa0] sm:$0xff]  ;;  %v12442_v54 = vld [vmem:[%s12820_s6 + $0xa8] sm:$0xff] }
 0x5b9   : > { %9805 = vst [vmem:[%s17107_s11 + $0x8] sm:$0xff] %v9773_v37  ;;  %9806 = vst [vmem:[%s17107_s11 + $0x10] sm:$0xff] %v9774_v23  ;;  %v9783_v13 = vadd.f32 %v12432_v47, %v9751_v33  ;;  %v9784_v46 = vadd.f32 %v12433_v29, %v9752_v36  ;;  %v9785_v45 = vadd.f32 %v12434_v49, %v9753_v59  ;;  %v12443_v33 = vld [vmem:[%s12820_s6 + $0xb0] sm:$0xff]  ;;  %v12444_v59 = vld [vmem:[%s12820_s6 + $0xb8] sm:$0xff] }
 0x5ba   : > { %v9786_v57 = vadd.f32 %v12435_v17, %v9754_v25  ;;  %9807 = vst [vmem:[%s17107_s11 + $0x18] sm:$0xff] %v9775_v21  ;;  %9808 = vst [vmem:[%s17107_s11 + $0x20] sm:$0xff] %v9776_v31  ;;  %v9787_v14 = vadd.f32 %v12436_v7, %v9755_v63  ;;  %v9788_v10 = vadd.f32 %v12437_v0, %v9756_v48  ;;  %v12445_v63 = vld [vmem:[%s12820_s6 + $0xc0] sm:$0xff] }
 0x5bb   : > { %9809 = vst [vmem:[%s17107_s11 + $0x28] sm:$0xff] %v9777_v12  ;;  %9810 = vst [vmem:[%s17107_s11 + $0x30] sm:$0xff] %v9778_v60  ;;  %v9789_v26 = vadd.f32 %v12438_v43, %v9757_v11  ;;  %v9790_v3 = vadd.f32 %v12439_v53, %v9758_v55  ;;  %v9791_v5 = vadd.f32 %v12440_v34, %v17110_v42  ;;  %v12446_v11 = vld [vmem:[%s12820_s6 + $0xc8] sm:$0xff]  ;;  %v12447_v42 = vld [vmem:[%s12820_s6 + $0xd0] sm:$0xff] }
 0x5bc   : > { %9811 = vst [vmem:[%s17107_s11 + $0x38] sm:$0xff] %v9779_v50  ;;  %9812 = vst [vmem:[%s17107_s11 + $0x40] sm:$0xff] %v9780_v40  ;;  %v9792_v20 = vadd.f32 %v12441_v44, %v17112_v2  ;;  %v9793_v39 = vadd.f32 %v12442_v54, %v17114_v52  ;;  %v9794_v36 = vadd.f32 %v12443_v33, %v17116_v9  ;;  %v12448_v52 = vld [vmem:[%s12820_s6 + $0xd8] sm:$0xff] }
 0x5bd   : > { %9813 = vst [vmem:[%s17107_s11 + $0x48] sm:$0xff] %v9781_v35  ;;  %9814 = vst [vmem:[%s17107_s11 + $0x50] sm:$0xff] %v9782_v58  ;;  %v9795_v25 = vadd.f32 %v12444_v59, %v17118_v32  ;;  %v9796_v48 = vadd.f32 %v12445_v63, %v17120_v15  ;;  %v9797_v55 = vadd.f32 %v12446_v11, %v17122_v41  ;;  %v12449_v32 = vld [vmem:[%s12820_s6 + $0xe0] sm:$0xff]  ;;  %v12450_v41 = vld [vmem:[%s12820_s6 + $0xf0] sm:$0xff] }
 0x5be   : > { %9815 = vst [vmem:[%s17107_s11 + $0x58] sm:$0xff] %v9783_v13  ;;  %9816 = vst [vmem:[%s17107_s11 + $0x60] sm:$0xff] %v9784_v46  ;;  %v9798_v2 = vadd.f32 %v12447_v42, %v17124_v4  ;;  %v9799_v9 = vadd.f32 %v12448_v52, %v17126_v28  ;;  %v9800_v15 = vadd.f32 %v12449_v32, %v17128_v62 }
 0x5bf   : > { %9817 = vst [vmem:[%s17107_s11 + $0x68] sm:$0xff] %v9785_v45  ;;  %9818 = vst [vmem:[%s17107_s11 + $0x70] sm:$0xff] %v9786_v57  ;;  %v9802_v4 = vadd.f32 %v12450_v41, %v17130_v18  ;;  %v9803_v6 = vadd.f32 %v12451_v56, %v17132_v27 }
 0x5c0   : > { %9819 = vst [vmem:[%s17107_s11 + $0x78] sm:$0xff] %v9787_v14  ;;  %9820 = vst [vmem:[%s17107_s11 + $0x80] sm:$0xff] %v9788_v10 }
 0x5c1   : > { %9821 = vst [vmem:[%s17107_s11 + $0x88] sm:$0xff] %v9789_v26  ;;  %9822 = vst [vmem:[%s17107_s11 + $0x90] sm:$0xff] %v9790_v3 }
 0x5c2   : > { %9823 = vst [vmem:[%s17107_s11 + $0x98] sm:$0xff] %v9791_v5  ;;  %9824 = vst [vmem:[%s17107_s11 + $0xa0] sm:$0xff] %v9792_v20 }
 0x5c3   : > { %9825 = vst [vmem:[%s17107_s11 + $0xa8] sm:$0xff] %v9793_v39  ;;  %9826 = vst [vmem:[%s17107_s11 + $0xb0] sm:$0xff] %v9794_v36 }
 0x5c4   : > { %9827 = vst [vmem:[%s17107_s11 + $0xb8] sm:$0xff] %v9795_v25  ;;  %9828 = vst [vmem:[%s17107_s11 + $0xc0] sm:$0xff] %v9796_v48 }
 0x5c5   : > { %9829 = vst [vmem:[%s17107_s11 + $0xc8] sm:$0xff] %v9797_v55  ;;  %9830 = vst [vmem:[%s17107_s11 + $0xd0] sm:$0xff] %v9798_v2 }
 0x5c6   : > { %9831 = vst [vmem:[%s17107_s11 + $0xd8] sm:$0xff] %v9799_v9  ;;  %9832 = vst [vmem:[%s17107_s11 + $0xe0] sm:$0xff] %v9800_v15 }
 0x5c7   : > { %9834 = vst [vmem:[%s17107_s11 + $0xf0] sm:$0xff] %v9802_v4  ;;  %9835 = vst [vmem:[%s17107_s11 + $0xf8] sm:$0xff] %v9803_v6 }
 0x5c8   : > { %12551 = shalt.err (!%p12548_p7)
}
 0x5c9   : > { %s12552_s6 = scalar_lea.hbm %s17195_s9, 4096  ;;  %s12556_s8 = scalar_lea.hbm %s17267_s5, 16384 }
 0x5ca   : > { %p12553_p9 = scmp.ne.s32.totalorder %s17195_s9, %s12552_s6  ;;  %p12557_p5 = scmp.lt.u32.totalorder %s17195_s9, %s17267_s5 }
 0x5cb   : > { %p12558_p10 = scmp.lt.u32.totalorder %s12556_s8, %s12552_s6  ;;  %p12560_p1 = scmp.lt.u32.totalorder %s12552_s6, %s17195_s9 }
 0x5cc   : > { %p12554_p12 = pnand %p12553_p9, %p12762_p4 }
 0x5cd   : > { %p12559_p11 = por %p12558_p10, %p12557_p5 }
 0x5ce   : > { %p12555_p0 = pneg %p12554_p12 }
 0x5cf   : > { %p12561_p2 = por %p12560_p1, %p12559_p11 }
 0x5d1   : > { %p12562_p6 = pnand %p12561_p2, %p12555_p0 }
 0x5d3   : > { %12565 = shalt.err (!%p12562_p6)
}
 0x5d4   : > { %s12618_s28 = smov 128   ;;  %s12619_s15 = smov 8  }
 0x5d5   : > { %12022 = dma.vmem_to_hbm [thread:$0]  (%p12762_p4), %s17199_s30, 4096, %s17195_s9, %s9837_s22, %s12618_s28, %s12618_s28, %s12619_s15  }
 0x5d6 PF: > { %p12044_p8 = scmp.ge.s32.totalorder %s12608_s21, 2  ;;  %s9865_s16 = sand.u32 1, %s12596_s18  }
 0x5d7   : > { %p17533_p13 = scmp.ne.s32.totalorder %s17321_s25, 0  ;;  %s9866_s12 = scalar_lea.sflag [#allocation6], %s9865_s16 }
 0x5d9   : > { %p12036_p3 = pnand %p12044_p8, %p17533_p13 }
 0x5db   : > { %12591 = dma.done.wait (!%p12036_p3), %s9866_s12, 4096  }
 0x5dc   : > { %12593 = vsyncadd (!%p12036_p3), %s9866_s12, 4294963200  ;;  %p19_p7 = scmp.ge.s32.totalorder %s12752_s14, 6   ;;  %s17534_s18 = smov %s12600_s19 }
 0x5dd   : > { %s17535_s19 = smov %s12604_s20  ;;  %s17536_s20 = smov %s12768_s27 }
 0x5de   : > { %s17537_s21 = smov %s12752_s14  ;;  %21 = sbr.rel (!%p19_p7) target bundleno = 6 (0x6), region = 103 }
 0x5e5   :  { %9871 = vsyncpa [#allocation5], 1 }
 0x5e6   :  { %9873 = vsyncpa [#allocation5 + $0x1], 1 }
 0x5e7   :  { %9874 = vsyncpa [#allocation8], 1 }
 0x5e8   :  { %9875 = vsyncpa [#allocation6], 1 }
 0x5e9   :  { %9877 = vsyncpa [#allocation6 + $0x1], 1 }

</bundles_post_ra>
